<compile_context>
chip_gen: v6e
topology: v6e:2x2x1
jax: 0.10.0
libtpu: 0.0.40
codegen_flags: <defaults>
</compile_context>

<pallas_src>
import functools

import jax
import jax.numpy as jnp
from jax import lax
from jax.experimental import pallas as pl
from jax.experimental.pallas import tpu as pltpu

NEG_SLOPE = 0.01      # F.leaky_relu default negative_slope
_K = 25               # positions per phase stream (forced by the 128*25 flatten)
_L = 8 * _K           # 200
_C3 = 128             # bottleneck channels


# ----------------------------------------------------------------------------
# In-kernel helpers (pure jnp; traced inside the Pallas kernel body)
# ----------------------------------------------------------------------------
def _leaky(x):
    return jnp.where(x > 0, x, NEG_SLOPE * x)


def _shift_prev(s, nb):
    """Stream value at within-stream position k-1 (k==0 -> zeros).

    Rows are k*nb + n, so 'previous position' is a shift by nb rows; the zero
    block is exactly the sequence zero-padding (no element-boundary masking).
    """
    z = jnp.zeros((nb, s.shape[1]), s.dtype)
    return jnp.concatenate([z, s[:-nb, :]], axis=0)


def _shift_next(s, nb):
    """Stream value at within-stream position k+1 (k==24 -> zeros)."""
    z = jnp.zeros((nb, s.shape[1]), s.dtype)
    return jnp.concatenate([s[nb:, :], z], axis=0)


def _stream_conv_lrelu(streams, w_ref, b_ref, nb):
    """k=3, stride=1, pad=1 conv (deconv weights pre-flipped) + LeakyReLU.

    streams: S values of shape (25*nb, Cin); global position p = S*k + phase.
    w_ref:   (3*Cin, Cout) bf16 im2col slab, row blocks = [x[p-1], x[p], x[p+1]].
    b_ref:   (1, Cout) f32.
    """
    S = len(streams)
    w = w_ref[...]
    b = b_ref[...]
    outs = []
    for phi in range(S):
        prev = streams[phi - 1] if phi > 0 else _shift_prev(streams[S - 1], nb)
        nxt = streams[phi + 1] if phi < S - 1 else _shift_next(streams[0], nb)
        cols = jnp.concatenate([prev, streams[phi], nxt], axis=1)
        y = jnp.dot(cols.astype(jnp.bfloat16), w,
                    preferred_element_type=jnp.float32) + b
        outs.append(_leaky(y))
    return outs


def _stream_pool(streams):
    """MaxPool1d(2,2): S streams -> S//2 streams + bool masks (True = even won)."""
    pooled, masks = [], []
    for psi in range(len(streams) // 2):
        e, o = streams[2 * psi], streams[2 * psi + 1]
        masks.append(e >= o)                  # PyTorch first-index tie-break
        pooled.append(jnp.maximum(e, o))
    return pooled, masks


def _stream_unpool(streams, masks):
    """MaxUnpool1d(2,2): S streams -> 2*S streams, scattering by the masks."""
    out = []
    for psi, v in enumerate(streams):
        m = masks[psi]
        out.append(jnp.where(m, v, 0.0))      # even slot
        out.append(jnp.where(m, 0.0, v))      # odd slot
    return out


# ----------------------------------------------------------------------------
# The fused autoencoder kernel: NB batch elements per grid step
# ----------------------------------------------------------------------------
def _ae_kernel(nb, n_ori,
               x_ref,
               w1_ref, b1_ref, w2_ref, b2_ref, w3_ref, b3_ref,
               we_ref, be_ref, wr_ref, br_ref,
               wd1_ref, bd1_ref, wd2_ref, bd2_ref, wd3_ref, bd3_ref,
               recon_ref, emb_ref):
    # level-0 input: 8 phase streams, each (25*nb, n_ori)
    s0 = [x_ref[0, phi] for phi in range(8)]

    # ---- encoder -----------------------------------------------------------
    c1 = _stream_conv_lrelu(s0, w1_ref, b1_ref, nb)      # 8 x (25nb, 32)
    p1, m1 = _stream_pool(c1)                            # 4 streams + masks
    c2 = _stream_conv_lrelu(p1, w2_ref, b2_ref, nb)      # 4 x (25nb, 64)
    p2, m2 = _stream_pool(c2)                            # 2 streams + masks
    c3 = _stream_conv_lrelu(p2, w3_ref, b3_ref, nb)      # 2 x (25nb, 128)
    p3, m3 = _stream_pool(c3)                            # 1 stream (25nb, 128)

    # ---- bottleneck: (nb, 3200) GEMMs, emb never leaves VMEM ----------------
    bott = p3[0]                                          # row = k*nb + n
    flat = jnp.concatenate(
        [bott[k * nb:(k + 1) * nb, :] for k in range(_K)], axis=1)  # (nb, 3200)
    emb = jnp.dot(flat.astype(jnp.bfloat16), we_ref[...],
                  preferred_element_type=jnp.float32) + be_ref[...]
    emb_ref[0] = emb                                      # (nb, emb_dim)
    rec = jnp.dot(emb.astype(jnp.bfloat16), wr_ref[...],
                  preferred_element_type=jnp.float32) + br_ref[...]  # (nb, 3200)
    v3 = jnp.concatenate(
        [rec[:, k * _C3:(k + 1) * _C3] for k in range(_K)], axis=0)  # (25nb, 128)

    # ---- decoder -----------------------------------------------------------
    u2 = _stream_unpool([v3], m3)                        # 2 x (25nb, 128)
    d1 = _stream_conv_lrelu(u2, wd1_ref, bd1_ref, nb)    # 2 x (25nb, 64)
    u1 = _stream_unpool(d1, m2)                          # 4 x (25nb, 64)
    d2 = _stream_conv_lrelu(u1, wd2_ref, bd2_ref, nb)    # 4 x (25nb, 32)
    u0 = _stream_unpool(d2, m1)                          # 8 x (25nb, 32)
    d3 = _stream_conv_lrelu(u0, wd3_ref, bd3_ref, nb)    # 8 x (25nb, n_ori)

    # lane-pack the 8 phase streams into one (25nb, 8*n_ori) store
    recon_ref[0] = jnp.concatenate(d3, axis=1)


# ----------------------------------------------------------------------------
# Parameter preparation (tiny XLA ops in the wrapper)
# ----------------------------------------------------------------------------
def _conv_slab(w_oik):
    """Conv1d weight (Cout, Cin, 3) -> im2col slab (3*Cin, Cout)."""
    cout, cin, k = w_oik.shape
    return jnp.transpose(w_oik, (2, 1, 0)).reshape(k * cin, cout)


def _deconv_slab(w_iok):
    """ConvTranspose1d weight (Cin, Cout, 3) -> tap-flipped slab (3*Cin, Cout)."""
    cin, cout, k = w_iok.shape
    return jnp.transpose(w_iok[:, :, ::-1], (2, 0, 1)).reshape(k * cin, cout)


def _emb_w_prepped(w):
    """(emb, 3200) PyTorch col order c*25+k -> (3200, emb) row order k*128+c."""
    e = w.shape[0]
    return jnp.transpose(w.reshape(e, _C3, _K), (2, 1, 0)).reshape(_C3 * _K, e)


def _rec_w_prepped(w):
    """(3200, emb) PyTorch row order c*25+k -> (emb, 3200) col order k*128+c."""
    e = w.shape[1]
    return jnp.transpose(w.reshape(_C3, _K, e), (2, 1, 0)).reshape(e, _C3 * _K)


def _rec_b_prepped(b):
    return jnp.transpose(b.reshape(_C3, _K)).reshape(1, _C3 * _K)


def _pick_tile(batch):
    """Largest batch tile (<=32) that divides B while keeping grid >= 2 (v7x TCs)."""
    for nb in (32, 16, 8, 4, 2):
        if batch % nb == 0 and batch // nb >= 2:
            return nb
    return 1


# ----------------------------------------------------------------------------
# Full forward pass (mirrors Conv1D_AE.forward); returns ((B,n_ori,L), (B,emb))
# ----------------------------------------------------------------------------
def conv1d_ae_forward(params, x_ncl):
    B, n_ori, L = x_ncl.shape
    assert L == _L, "128*25 flatten in the module forces L == 200"
    emb_dim = params["emb_b"].shape[0]

    nb = _pick_tile(B)
    T = B // nb

    # (B, C, 200) -> (T, 8, 25*nb, C): phase-major streams, row = k*nb + n
    x_str = (x_ncl.astype(jnp.float32)
             .transpose(0, 2, 1)                  # (B, L, C)
             .reshape(T, nb, _K, 8, n_ori)        # l = 8k + phase
             .transpose(0, 3, 2, 1, 4)            # (T, 8, 25, nb, C)
             .reshape(T, 8, _K * nb, n_ori))

    bf16 = jnp.bfloat16
    f32 = jnp.float32
    args = (
        x_str,
        _conv_slab(params["conv1_w"]).astype(bf16), params["conv1_b"].reshape(1, -1).astype(f32),
        _conv_slab(params["conv2_w"]).astype(bf16), params["conv2_b"].reshape(1, -1).astype(f32),
        _conv_slab(params["conv3_w"]).astype(bf16), params["conv3_b"].reshape(1, -1).astype(f32),
        _emb_w_prepped(params["emb_w"]).astype(bf16), params["emb_b"].reshape(1, -1).astype(f32),
        _rec_w_prepped(params["rec_w"]).astype(bf16), _rec_b_prepped(params["rec_b"]).astype(f32),
        _deconv_slab(params["deconv1_w"]).astype(bf16), params["deconv1_b"].reshape(1, -1).astype(f32),
        _deconv_slab(params["deconv2_w"]).astype(bf16), params["deconv2_b"].reshape(1, -1).astype(f32),
        _deconv_slab(params["deconv3_w"]).astype(bf16), params["deconv3_b"].reshape(1, -1).astype(f32),
    )

    x_spec = pl.BlockSpec((1, 8, _K * nb, n_ori), lambda t: (t, 0, 0, 0))
    param_specs = [pl.BlockSpec(a.shape, lambda t: (0, 0)) for a in args[1:]]

    recon_str, emb3 = pl.pallas_call(
        functools.partial(_ae_kernel, nb, n_ori),
        grid=(T,),
        in_specs=[x_spec] + param_specs,
        out_specs=(pl.BlockSpec((1, _K * nb, 8 * n_ori), lambda t: (t, 0, 0)),
                   pl.BlockSpec((1, nb, emb_dim), lambda t: (t, 0, 0))),
        out_shape=(jax.ShapeDtypeStruct((T, _K * nb, 8 * n_ori), jnp.float32),
                   jax.ShapeDtypeStruct((T, nb, emb_dim), jnp.float32)),
        compiler_params=pltpu.CompilerParams(
            dimension_semantics=("parallel",)),   # batch tiles split across TCs
    )(*args)

    # (T, 25*nb, 8*C) -> (B, C, 200)
    recon = (recon_str
             .reshape(T, _K, nb, 8, n_ori)
             .transpose(0, 2, 4, 1, 3)            # (T, nb, C, 25, 8)
             .reshape(B, n_ori, L))
    emb = emb3.reshape(B, emb_dim)
    return recon, emb


# ----------------------------------------------------------------------------
# Deterministic synthetic parameters (shapes follow the PyTorch module)
# ----------------------------------------------------------------------------
def init_params(key, n_ori, emb_dim):
    ks = jax.random.split(key, 16)

    def w(k, shape, scale=0.05):
        return scale * jax.random.normal(k, shape, dtype=jnp.float32)

    p = {}
    p["conv1_w"] = w(ks[0], (32, n_ori, 3));  p["conv1_b"] = w(ks[1], (32,))
    p["conv2_w"] = w(ks[2], (64, 32, 3));     p["conv2_b"] = w(ks[3], (64,))
    p["conv3_w"] = w(ks[4], (128, 64, 3));    p["conv3_b"] = w(ks[5], (128,))
    p["emb_w"] = w(ks[6], (emb_dim, 128 * 25));  p["emb_b"] = w(ks[7], (emb_dim,))
    p["rec_w"] = w(ks[8], (128 * 25, emb_dim));  p["rec_b"] = w(ks[9], (128 * 25,))
    p["deconv1_w"] = w(ks[10], (128, 64, 3));   p["deconv1_b"] = w(ks[11], (64,))
    p["deconv2_w"] = w(ks[12], (64, 32, 3));    p["deconv2_b"] = w(ks[13], (32,))
    p["deconv3_w"] = w(ks[14], (32, n_ori, 3)); p["deconv3_b"] = w(ks[15], (n_ori,))
    return p


# ----------------------------------------------------------------------------
# Pure-JAX reference of the PyTorch module (for a correctness sanity check)
# ----------------------------------------------------------------------------
def _ref_conv1d(x, w, b):                       # x: (B,Cin,L), w: (Cout,Cin,3)
    L = x.shape[2]
    xp = jnp.pad(x, ((0, 0), (0, 0), (1, 1)))
    y = sum(jnp.einsum('bcl,oc->bol', xp[:, :, k:k + L], w[:, :, k],
                       precision=lax.Precision.HIGHEST) for k in range(3))
    return y + b[None, :, None]


def _ref_deconv1d(x, w, b):                     # x: (B,Cin,L), w: (Cin,Cout,3)
    L = x.shape[2]
    xp = jnp.pad(x, ((0, 0), (0, 0), (1, 1)))
    y = sum(jnp.einsum('bcl,co->bol', xp[:, :, 2 - k:2 - k + L], w[:, :, k],
                       precision=lax.Precision.HIGHEST) for k in range(3))
    return y + b[None, :, None]


def _ref_pool(x):
    B, C, L = x.shape
    xr = x.reshape(B, C, L // 2, 2)
    return xr.max(axis=-1), (xr[..., 0] >= xr[..., 1]).astype(x.dtype)


def _ref_unpool(x, mask_even):
    B, C, lh = x.shape
    e = x * mask_even
    o = x * (1.0 - mask_even)
    return jnp.stack([e, o], axis=-1).reshape(B, C, 2 * lh)


def _ref_leaky(x):
    return jnp.where(x > 0, x, NEG_SLOPE * x)


def _reference_forward(params, x):
    B = x.shape[0]
    h = _ref_leaky(_ref_conv1d(x, params["conv1_w"], params["conv1_b"]))
    h, m1 = _ref_pool(h)
    h = _ref_leaky(_ref_conv1d(h, params["conv2_w"], params["conv2_b"]))
    h, m2 = _ref_pool(h)
    h = _ref_leaky(_ref_conv1d(h, params["conv3_w"], params["conv3_b"]))
    h, m3 = _ref_pool(h)
    flat = h.reshape(B, 128 * 25)
    emb = jnp.matmul(flat, params["emb_w"].T,
                     precision=lax.Precision.HIGHEST) + params["emb_b"]
    rec = jnp.matmul(emb, params["rec_w"].T,
                     precision=lax.Precision.HIGHEST) + params["rec_b"]
    h = rec.reshape(B, 128, 25)
    h = _ref_unpool(h, m3)
    h = _ref_leaky(_ref_deconv1d(h, params["deconv1_w"], params["deconv1_b"]))
    h = _ref_unpool(h, m2)
    h = _ref_leaky(_ref_deconv1d(h, params["deconv2_w"], params["deconv2_b"]))
    h = _ref_unpool(h, m1)
    h = _ref_leaky(_ref_deconv1d(h, params["deconv3_w"], params["deconv3_b"]))
    return h, emb


if __name__ == "__main__":
    key = jax.random.PRNGKey(0)
    kx, kp = jax.random.split(key)

    B, n_ori, L, emb_dim = 4, 4, _L, 16   # L=200 is forced by the 128*25 flatten
    x = jax.random.normal(kx, (B, n_ori, L), dtype=jnp.float32)
    params = init_params(kp, n_ori, emb_dim)

    fwd = jax.jit(conv1d_ae_forward)
    recon, emb = fwd(params, x)
    jax.block_until_ready((recon, emb))

    assert recon.shape == (B, n_ori, L), recon.shape
    assert emb.shape == (B, emb_dim), emb.shape

    # sanity check against a pure-JAX f32 reference of the PyTorch module
    # (kernel uses bf16 MXU operands with f32 accumulation -> loose tolerances)
    recon_want, emb_want = jax.jit(_reference_forward)(params, x)
    jax.block_until_ready((recon_want, emb_want))
    assert jnp.allclose(emb, emb_want, rtol=2e-2, atol=2e-3), "embedding mismatch"
    err = jnp.abs(recon - recon_want)
    assert float(err.mean()) < 3e-3, f"recon mean abs err {float(err.mean())}"
    assert float(err.max()) < 5e-2, f"recon max abs err {float(err.max())}"

    print("KERNEL_OK")
</pallas_src>

<mosaic_0001>
module attributes {stable_mosaic.version = 11 : i64} {
  func.func @_ae_kernel(%arg0: i32, %arg1: memref<1x8x50x4xf32, #tpu.memory_space<vmem>>, %arg2: memref<12x32xbf16, #tpu.memory_space<vmem>>, %arg3: memref<1x32xf32, #tpu.memory_space<vmem>>, %arg4: memref<96x64xbf16, #tpu.memory_space<vmem>>, %arg5: memref<1x64xf32, #tpu.memory_space<vmem>>, %arg6: memref<192x128xbf16, #tpu.memory_space<vmem>>, %arg7: memref<1x128xf32, #tpu.memory_space<vmem>>, %arg8: memref<3200x16xbf16, #tpu.memory_space<vmem>>, %arg9: memref<1x16xf32, #tpu.memory_space<vmem>>, %arg10: memref<16x3200xbf16, #tpu.memory_space<vmem>>, %arg11: memref<1x3200xf32, #tpu.memory_space<vmem>>, %arg12: memref<384x64xbf16, #tpu.memory_space<vmem>>, %arg13: memref<1x64xf32, #tpu.memory_space<vmem>>, %arg14: memref<192x32xbf16, #tpu.memory_space<vmem>>, %arg15: memref<1x32xf32, #tpu.memory_space<vmem>>, %arg16: memref<96x4xbf16, #tpu.memory_space<vmem>>, %arg17: memref<1x4xf32, #tpu.memory_space<vmem>>, %arg18: memref<1x50x32xf32, #tpu.memory_space<vmem>>, %arg19: memref<1x2x16xf32, #tpu.memory_space<vmem>>) attributes {dimension_semantics = [#tpu.dimension_semantics<parallel>], iteration_bounds = array<i64: 2>, scalar_prefetch = 0 : i64, scratch_operands = 0 : i64, tpu.core_type = #tpu.core_type<tc>, window_params = [{transform_indices = @transform_0, window_bounds = array<i64: 1, 8, 50, 4>}, {pipeline_mode = #tpu.pipeline_mode<synchronous>, transform_indices = @transform_1, window_bounds = array<i64: 12, 32>}, {pipeline_mode = #tpu.pipeline_mode<synchronous>, transform_indices = @transform_2, window_bounds = array<i64: 1, 32>}, {pipeline_mode = #tpu.pipeline_mode<synchronous>, transform_indices = @transform_3, window_bounds = array<i64: 96, 64>}, {pipeline_mode = #tpu.pipeline_mode<synchronous>, transform_indices = @transform_4, window_bounds = array<i64: 1, 64>}, {pipeline_mode = #tpu.pipeline_mode<synchronous>, transform_indices = @transform_5, window_bounds = array<i64: 192, 128>}, {pipeline_mode = #tpu.pipeline_mode<synchronous>, transform_indices = @transform_6, window_bounds = array<i64: 1, 128>}, {pipeline_mode = #tpu.pipeline_mode<synchronous>, transform_indices = @transform_7, window_bounds = array<i64: 3200, 16>}, {pipeline_mode = #tpu.pipeline_mode<synchronous>, transform_indices = @transform_8, window_bounds = array<i64: 1, 16>}, {pipeline_mode = #tpu.pipeline_mode<synchronous>, transform_indices = @transform_9, window_bounds = array<i64: 16, 3200>}, {pipeline_mode = #tpu.pipeline_mode<synchronous>, transform_indices = @transform_10, window_bounds = array<i64: 1, 3200>}, {pipeline_mode = #tpu.pipeline_mode<synchronous>, transform_indices = @transform_11, window_bounds = array<i64: 384, 64>}, {pipeline_mode = #tpu.pipeline_mode<synchronous>, transform_indices = @transform_12, window_bounds = array<i64: 1, 64>}, {pipeline_mode = #tpu.pipeline_mode<synchronous>, transform_indices = @transform_13, window_bounds = array<i64: 192, 32>}, {pipeline_mode = #tpu.pipeline_mode<synchronous>, transform_indices = @transform_14, window_bounds = array<i64: 1, 32>}, {pipeline_mode = #tpu.pipeline_mode<synchronous>, transform_indices = @transform_15, window_bounds = array<i64: 96, 4>}, {pipeline_mode = #tpu.pipeline_mode<synchronous>, transform_indices = @transform_16, window_bounds = array<i64: 1, 4>}, {transform_indices = @transform_17, window_bounds = array<i64: 1, 50, 32>}, {transform_indices = @transform_18, window_bounds = array<i64: 1, 2, 16>}]} {
    %c0 = arith.constant 0 : index
    %c0_0 = arith.constant 0 : index
    %c0_1 = arith.constant 0 : index
    %c0_2 = arith.constant 0 : index
    %0 = vector.load %arg1[%c0, %c0_0, %c0_1, %c0_2] : memref<1x8x50x4xf32, #tpu.memory_space<vmem>>, vector<1x1x50x4xf32>
    %1 = vector.shape_cast %0 : vector<1x1x50x4xf32> to vector<50x4xf32>
    %c0_3 = arith.constant 0 : index
    %c1 = arith.constant 1 : index
    %c0_4 = arith.constant 0 : index
    %c0_5 = arith.constant 0 : index
    %2 = vector.load %arg1[%c0_3, %c1, %c0_4, %c0_5] : memref<1x8x50x4xf32, #tpu.memory_space<vmem>>, vector<1x1x50x4xf32>
    %3 = vector.shape_cast %2 : vector<1x1x50x4xf32> to vector<50x4xf32>
    %c0_6 = arith.constant 0 : index
    %c2 = arith.constant 2 : index
    %c0_7 = arith.constant 0 : index
    %c0_8 = arith.constant 0 : index
    %4 = vector.load %arg1[%c0_6, %c2, %c0_7, %c0_8] : memref<1x8x50x4xf32, #tpu.memory_space<vmem>>, vector<1x1x50x4xf32>
    %5 = vector.shape_cast %4 : vector<1x1x50x4xf32> to vector<50x4xf32>
    %c0_9 = arith.constant 0 : index
    %c3 = arith.constant 3 : index
    %c0_10 = arith.constant 0 : index
    %c0_11 = arith.constant 0 : index
    %6 = vector.load %arg1[%c0_9, %c3, %c0_10, %c0_11] : memref<1x8x50x4xf32, #tpu.memory_space<vmem>>, vector<1x1x50x4xf32>
    %7 = vector.shape_cast %6 : vector<1x1x50x4xf32> to vector<50x4xf32>
    %c0_12 = arith.constant 0 : index
    %c4 = arith.constant 4 : index
    %c0_13 = arith.constant 0 : index
    %c0_14 = arith.constant 0 : index
    %8 = vector.load %arg1[%c0_12, %c4, %c0_13, %c0_14] : memref<1x8x50x4xf32, #tpu.memory_space<vmem>>, vector<1x1x50x4xf32>
    %9 = vector.shape_cast %8 : vector<1x1x50x4xf32> to vector<50x4xf32>
    %c0_15 = arith.constant 0 : index
    %c5 = arith.constant 5 : index
    %c0_16 = arith.constant 0 : index
    %c0_17 = arith.constant 0 : index
    %10 = vector.load %arg1[%c0_15, %c5, %c0_16, %c0_17] : memref<1x8x50x4xf32, #tpu.memory_space<vmem>>, vector<1x1x50x4xf32>
    %11 = vector.shape_cast %10 : vector<1x1x50x4xf32> to vector<50x4xf32>
    %c0_18 = arith.constant 0 : index
    %c6 = arith.constant 6 : index
    %c0_19 = arith.constant 0 : index
    %c0_20 = arith.constant 0 : index
    %12 = vector.load %arg1[%c0_18, %c6, %c0_19, %c0_20] : memref<1x8x50x4xf32, #tpu.memory_space<vmem>>, vector<1x1x50x4xf32>
    %13 = vector.shape_cast %12 : vector<1x1x50x4xf32> to vector<50x4xf32>
    %c0_21 = arith.constant 0 : index
    %c7 = arith.constant 7 : index
    %c0_22 = arith.constant 0 : index
    %c0_23 = arith.constant 0 : index
    %14 = vector.load %arg1[%c0_21, %c7, %c0_22, %c0_23] : memref<1x8x50x4xf32, #tpu.memory_space<vmem>>, vector<1x1x50x4xf32>
    %15 = vector.shape_cast %14 : vector<1x1x50x4xf32> to vector<50x4xf32>
    %c0_24 = arith.constant 0 : index
    %c0_25 = arith.constant 0 : index
    %16 = vector.load %arg2[%c0_24, %c0_25] : memref<12x32xbf16, #tpu.memory_space<vmem>>, vector<12x32xbf16>
    %c0_26 = arith.constant 0 : index
    %c0_27 = arith.constant 0 : index
    %17 = vector.load %arg3[%c0_26, %c0_27] : memref<1x32xf32, #tpu.memory_space<vmem>>, vector<1x32xf32>
    %cst = arith.constant 0.000000e+00 : f32
    %18 = vector.broadcast %cst : f32 to vector<2x4xf32>
    %19 = vector.extract_strided_slice %15 {offsets = [0, 0], sizes = [48, 4], strides = [1, 1]} : vector<50x4xf32> to vector<48x4xf32>
    %20 = tpu.concatenate %18, %19 in 0 : vector<2x4xf32>, vector<48x4xf32> -> vector<50x4xf32>
    %21 = tpu.concatenate %20, %1, %3 in 1 : vector<50x4xf32>, vector<50x4xf32>, vector<50x4xf32> -> vector<50x12xf32>
    %22 = arith.truncf %21 : vector<50x12xf32> to vector<50x12xbf16>
    %cst_28 = arith.constant dense<0.000000e+00> : vector<50x32xf32>
    %23 = tpu.matmul %22, %16, %cst_28 {dimension_numbers = #tpu.dot_dimension_numbers<[1], [0], [0], [1], [0, 0, 1, 1], [], []>} : vector<50x12xbf16>, vector<12x32xbf16>, vector<50x32xf32> -> vector<50x32xf32>
    %24 = vector.broadcast %17 : vector<1x32xf32> to vector<50x32xf32>
    %25 = arith.addf %23, %24 : vector<50x32xf32>
    %cst_29 = arith.constant 0.000000e+00 : f32
    %26 = vector.broadcast %cst_29 : f32 to vector<50x32xf32>
    %27 = arith.cmpf ogt, %25, %26 : vector<50x32xf32>
    %cst_30 = arith.constant 0.00999999977 : f32
    %28 = vector.broadcast %cst_30 : f32 to vector<50x32xf32>
    %29 = arith.mulf %28, %25 : vector<50x32xf32>
    %30 = arith.select %27, %25, %29 : vector<50x32xi1>, vector<50x32xf32>
    %31 = tpu.concatenate %1, %3, %5 in 1 : vector<50x4xf32>, vector<50x4xf32>, vector<50x4xf32> -> vector<50x12xf32>
    %32 = arith.truncf %31 : vector<50x12xf32> to vector<50x12xbf16>
    %cst_31 = arith.constant dense<0.000000e+00> : vector<50x32xf32>
    %33 = tpu.matmul %32, %16, %cst_31 {dimension_numbers = #tpu.dot_dimension_numbers<[1], [0], [0], [1], [0, 0, 1, 1], [], []>} : vector<50x12xbf16>, vector<12x32xbf16>, vector<50x32xf32> -> vector<50x32xf32>
    %34 = vector.broadcast %17 : vector<1x32xf32> to vector<50x32xf32>
    %35 = arith.addf %33, %34 : vector<50x32xf32>
    %cst_32 = arith.constant 0.000000e+00 : f32
    %36 = vector.broadcast %cst_32 : f32 to vector<50x32xf32>
    %37 = arith.cmpf ogt, %35, %36 : vector<50x32xf32>
    %cst_33 = arith.constant 0.00999999977 : f32
    %38 = vector.broadcast %cst_33 : f32 to vector<50x32xf32>
    %39 = arith.mulf %38, %35 : vector<50x32xf32>
    %40 = arith.select %37, %35, %39 : vector<50x32xi1>, vector<50x32xf32>
    %41 = tpu.concatenate %3, %5, %7 in 1 : vector<50x4xf32>, vector<50x4xf32>, vector<50x4xf32> -> vector<50x12xf32>
    %42 = arith.truncf %41 : vector<50x12xf32> to vector<50x12xbf16>
    %cst_34 = arith.constant dense<0.000000e+00> : vector<50x32xf32>
    %43 = tpu.matmul %42, %16, %cst_34 {dimension_numbers = #tpu.dot_dimension_numbers<[1], [0], [0], [1], [0, 0, 1, 1], [], []>} : vector<50x12xbf16>, vector<12x32xbf16>, vector<50x32xf32> -> vector<50x32xf32>
    %44 = vector.broadcast %17 : vector<1x32xf32> to vector<50x32xf32>
    %45 = arith.addf %43, %44 : vector<50x32xf32>
    %cst_35 = arith.constant 0.000000e+00 : f32
    %46 = vector.broadcast %cst_35 : f32 to vector<50x32xf32>
    %47 = arith.cmpf ogt, %45, %46 : vector<50x32xf32>
    %cst_36 = arith.constant 0.00999999977 : f32
    %48 = vector.broadcast %cst_36 : f32 to vector<50x32xf32>
    %49 = arith.mulf %48, %45 : vector<50x32xf32>
    %50 = arith.select %47, %45, %49 : vector<50x32xi1>, vector<50x32xf32>
    %51 = tpu.concatenate %5, %7, %9 in 1 : vector<50x4xf32>, vector<50x4xf32>, vector<50x4xf32> -> vector<50x12xf32>
    %52 = arith.truncf %51 : vector<50x12xf32> to vector<50x12xbf16>
    %cst_37 = arith.constant dense<0.000000e+00> : vector<50x32xf32>
    %53 = tpu.matmul %52, %16, %cst_37 {dimension_numbers = #tpu.dot_dimension_numbers<[1], [0], [0], [1], [0, 0, 1, 1], [], []>} : vector<50x12xbf16>, vector<12x32xbf16>, vector<50x32xf32> -> vector<50x32xf32>
    %54 = vector.broadcast %17 : vector<1x32xf32> to vector<50x32xf32>
    %55 = arith.addf %53, %54 : vector<50x32xf32>
    %cst_38 = arith.constant 0.000000e+00 : f32
    %56 = vector.broadcast %cst_38 : f32 to vector<50x32xf32>
    %57 = arith.cmpf ogt, %55, %56 : vector<50x32xf32>
    %cst_39 = arith.constant 0.00999999977 : f32
    %58 = vector.broadcast %cst_39 : f32 to vector<50x32xf32>
    %59 = arith.mulf %58, %55 : vector<50x32xf32>
    %60 = arith.select %57, %55, %59 : vector<50x32xi1>, vector<50x32xf32>
    %61 = tpu.concatenate %7, %9, %11 in 1 : vector<50x4xf32>, vector<50x4xf32>, vector<50x4xf32> -> vector<50x12xf32>
    %62 = arith.truncf %61 : vector<50x12xf32> to vector<50x12xbf16>
    %cst_40 = arith.constant dense<0.000000e+00> : vector<50x32xf32>
    %63 = tpu.matmul %62, %16, %cst_40 {dimension_numbers = #tpu.dot_dimension_numbers<[1], [0], [0], [1], [0, 0, 1, 1], [], []>} : vector<50x12xbf16>, vector<12x32xbf16>, vector<50x32xf32> -> vector<50x32xf32>
    %64 = vector.broadcast %17 : vector<1x32xf32> to vector<50x32xf32>
    %65 = arith.addf %63, %64 : vector<50x32xf32>
    %cst_41 = arith.constant 0.000000e+00 : f32
    %66 = vector.broadcast %cst_41 : f32 to vector<50x32xf32>
    %67 = arith.cmpf ogt, %65, %66 : vector<50x32xf32>
    %cst_42 = arith.constant 0.00999999977 : f32
    %68 = vector.broadcast %cst_42 : f32 to vector<50x32xf32>
    %69 = arith.mulf %68, %65 : vector<50x32xf32>
    %70 = arith.select %67, %65, %69 : vector<50x32xi1>, vector<50x32xf32>
    %71 = tpu.concatenate %9, %11, %13 in 1 : vector<50x4xf32>, vector<50x4xf32>, vector<50x4xf32> -> vector<50x12xf32>
    %72 = arith.truncf %71 : vector<50x12xf32> to vector<50x12xbf16>
    %cst_43 = arith.constant dense<0.000000e+00> : vector<50x32xf32>
    %73 = tpu.matmul %72, %16, %cst_43 {dimension_numbers = #tpu.dot_dimension_numbers<[1], [0], [0], [1], [0, 0, 1, 1], [], []>} : vector<50x12xbf16>, vector<12x32xbf16>, vector<50x32xf32> -> vector<50x32xf32>
    %74 = vector.broadcast %17 : vector<1x32xf32> to vector<50x32xf32>
    %75 = arith.addf %73, %74 : vector<50x32xf32>
    %cst_44 = arith.constant 0.000000e+00 : f32
    %76 = vector.broadcast %cst_44 : f32 to vector<50x32xf32>
    %77 = arith.cmpf ogt, %75, %76 : vector<50x32xf32>
    %cst_45 = arith.constant 0.00999999977 : f32
    %78 = vector.broadcast %cst_45 : f32 to vector<50x32xf32>
    %79 = arith.mulf %78, %75 : vector<50x32xf32>
    %80 = arith.select %77, %75, %79 : vector<50x32xi1>, vector<50x32xf32>
    %81 = tpu.concatenate %11, %13, %15 in 1 : vector<50x4xf32>, vector<50x4xf32>, vector<50x4xf32> -> vector<50x12xf32>
    %82 = arith.truncf %81 : vector<50x12xf32> to vector<50x12xbf16>
    %cst_46 = arith.constant dense<0.000000e+00> : vector<50x32xf32>
    %83 = tpu.matmul %82, %16, %cst_46 {dimension_numbers = #tpu.dot_dimension_numbers<[1], [0], [0], [1], [0, 0, 1, 1], [], []>} : vector<50x12xbf16>, vector<12x32xbf16>, vector<50x32xf32> -> vector<50x32xf32>
    %84 = vector.broadcast %17 : vector<1x32xf32> to vector<50x32xf32>
    %85 = arith.addf %83, %84 : vector<50x32xf32>
    %cst_47 = arith.constant 0.000000e+00 : f32
    %86 = vector.broadcast %cst_47 : f32 to vector<50x32xf32>
    %87 = arith.cmpf ogt, %85, %86 : vector<50x32xf32>
    %cst_48 = arith.constant 0.00999999977 : f32
    %88 = vector.broadcast %cst_48 : f32 to vector<50x32xf32>
    %89 = arith.mulf %88, %85 : vector<50x32xf32>
    %90 = arith.select %87, %85, %89 : vector<50x32xi1>, vector<50x32xf32>
    %cst_49 = arith.constant 0.000000e+00 : f32
    %91 = vector.broadcast %cst_49 : f32 to vector<2x4xf32>
    %92 = vector.extract_strided_slice %1 {offsets = [2, 0], sizes = [48, 4], strides = [1, 1]} : vector<50x4xf32> to vector<48x4xf32>
    %93 = tpu.concatenate %92, %91 in 0 : vector<48x4xf32>, vector<2x4xf32> -> vector<50x4xf32>
    %94 = tpu.concatenate %13, %15, %93 in 1 : vector<50x4xf32>, vector<50x4xf32>, vector<50x4xf32> -> vector<50x12xf32>
    %95 = arith.truncf %94 : vector<50x12xf32> to vector<50x12xbf16>
    %cst_50 = arith.constant dense<0.000000e+00> : vector<50x32xf32>
    %96 = tpu.matmul %95, %16, %cst_50 {dimension_numbers = #tpu.dot_dimension_numbers<[1], [0], [0], [1], [0, 0, 1, 1], [], []>} : vector<50x12xbf16>, vector<12x32xbf16>, vector<50x32xf32> -> vector<50x32xf32>
    %97 = vector.broadcast %17 : vector<1x32xf32> to vector<50x32xf32>
    %98 = arith.addf %96, %97 : vector<50x32xf32>
    %cst_51 = arith.constant 0.000000e+00 : f32
    %99 = vector.broadcast %cst_51 : f32 to vector<50x32xf32>
    %100 = arith.cmpf ogt, %98, %99 : vector<50x32xf32>
    %cst_52 = arith.constant 0.00999999977 : f32
    %101 = vector.broadcast %cst_52 : f32 to vector<50x32xf32>
    %102 = arith.mulf %101, %98 : vector<50x32xf32>
    %103 = arith.select %100, %98, %102 : vector<50x32xi1>, vector<50x32xf32>
    %104 = arith.cmpf oge, %30, %40 : vector<50x32xf32>
    %105 = arith.maximumf %30, %40 : vector<50x32xf32>
    %106 = arith.cmpf oge, %50, %60 : vector<50x32xf32>
    %107 = arith.maximumf %50, %60 : vector<50x32xf32>
    %108 = arith.cmpf oge, %70, %80 : vector<50x32xf32>
    %109 = arith.maximumf %70, %80 : vector<50x32xf32>
    %110 = arith.cmpf oge, %90, %103 : vector<50x32xf32>
    %111 = arith.maximumf %90, %103 : vector<50x32xf32>
    %c0_53 = arith.constant 0 : index
    %c0_54 = arith.constant 0 : index
    %112 = vector.load %arg4[%c0_53, %c0_54] : memref<96x64xbf16, #tpu.memory_space<vmem>>, vector<96x64xbf16>
    %c0_55 = arith.constant 0 : index
    %c0_56 = arith.constant 0 : index
    %113 = vector.load %arg5[%c0_55, %c0_56] : memref<1x64xf32, #tpu.memory_space<vmem>>, vector<1x64xf32>
    %cst_57 = arith.constant 0.000000e+00 : f32
    %114 = vector.broadcast %cst_57 : f32 to vector<2x32xf32>
    %115 = vector.extract_strided_slice %111 {offsets = [0, 0], sizes = [48, 32], strides = [1, 1]} : vector<50x32xf32> to vector<48x32xf32>
    %116 = tpu.concatenate %114, %115 in 0 : vector<2x32xf32>, vector<48x32xf32> -> vector<50x32xf32>
    %117 = tpu.concatenate %116, %105, %107 in 1 : vector<50x32xf32>, vector<50x32xf32>, vector<50x32xf32> -> vector<50x96xf32>
    %118 = arith.truncf %117 : vector<50x96xf32> to vector<50x96xbf16>
    %cst_58 = arith.constant dense<0.000000e+00> : vector<50x64xf32>
    %119 = tpu.matmul %118, %112, %cst_58 {dimension_numbers = #tpu.dot_dimension_numbers<[1], [0], [0], [1], [0, 0, 1, 1], [], []>} : vector<50x96xbf16>, vector<96x64xbf16>, vector<50x64xf32> -> vector<50x64xf32>
    %120 = vector.broadcast %113 : vector<1x64xf32> to vector<50x64xf32>
    %121 = arith.addf %119, %120 : vector<50x64xf32>
    %cst_59 = arith.constant 0.000000e+00 : f32
    %122 = vector.broadcast %cst_59 : f32 to vector<50x64xf32>
    %123 = arith.cmpf ogt, %121, %122 : vector<50x64xf32>
    %cst_60 = arith.constant 0.00999999977 : f32
    %124 = vector.broadcast %cst_60 : f32 to vector<50x64xf32>
    %125 = arith.mulf %124, %121 : vector<50x64xf32>
    %126 = arith.select %123, %121, %125 : vector<50x64xi1>, vector<50x64xf32>
    %127 = tpu.concatenate %105, %107, %109 in 1 : vector<50x32xf32>, vector<50x32xf32>, vector<50x32xf32> -> vector<50x96xf32>
    %128 = arith.truncf %127 : vector<50x96xf32> to vector<50x96xbf16>
    %cst_61 = arith.constant dense<0.000000e+00> : vector<50x64xf32>
    %129 = tpu.matmul %128, %112, %cst_61 {dimension_numbers = #tpu.dot_dimension_numbers<[1], [0], [0], [1], [0, 0, 1, 1], [], []>} : vector<50x96xbf16>, vector<96x64xbf16>, vector<50x64xf32> -> vector<50x64xf32>
    %130 = vector.broadcast %113 : vector<1x64xf32> to vector<50x64xf32>
    %131 = arith.addf %129, %130 : vector<50x64xf32>
    %cst_62 = arith.constant 0.000000e+00 : f32
    %132 = vector.broadcast %cst_62 : f32 to vector<50x64xf32>
    %133 = arith.cmpf ogt, %131, %132 : vector<50x64xf32>
    %cst_63 = arith.constant 0.00999999977 : f32
    %134 = vector.broadcast %cst_63 : f32 to vector<50x64xf32>
    %135 = arith.mulf %134, %131 : vector<50x64xf32>
    %136 = arith.select %133, %131, %135 : vector<50x64xi1>, vector<50x64xf32>
    %137 = tpu.concatenate %107, %109, %111 in 1 : vector<50x32xf32>, vector<50x32xf32>, vector<50x32xf32> -> vector<50x96xf32>
    %138 = arith.truncf %137 : vector<50x96xf32> to vector<50x96xbf16>
    %cst_64 = arith.constant dense<0.000000e+00> : vector<50x64xf32>
    %139 = tpu.matmul %138, %112, %cst_64 {dimension_numbers = #tpu.dot_dimension_numbers<[1], [0], [0], [1], [0, 0, 1, 1], [], []>} : vector<50x96xbf16>, vector<96x64xbf16>, vector<50x64xf32> -> vector<50x64xf32>
    %140 = vector.broadcast %113 : vector<1x64xf32> to vector<50x64xf32>
    %141 = arith.addf %139, %140 : vector<50x64xf32>
    %cst_65 = arith.constant 0.000000e+00 : f32
    %142 = vector.broadcast %cst_65 : f32 to vector<50x64xf32>
    %143 = arith.cmpf ogt, %141, %142 : vector<50x64xf32>
    %cst_66 = arith.constant 0.00999999977 : f32
    %144 = vector.broadcast %cst_66 : f32 to vector<50x64xf32>
    %145 = arith.mulf %144, %141 : vector<50x64xf32>
    %146 = arith.select %143, %141, %145 : vector<50x64xi1>, vector<50x64xf32>
    %cst_67 = arith.constant 0.000000e+00 : f32
    %147 = vector.broadcast %cst_67 : f32 to vector<2x32xf32>
    %148 = vector.extract_strided_slice %105 {offsets = [2, 0], sizes = [48, 32], strides = [1, 1]} : vector<50x32xf32> to vector<48x32xf32>
    %149 = tpu.concatenate %148, %147 in 0 : vector<48x32xf32>, vector<2x32xf32> -> vector<50x32xf32>
    %150 = tpu.concatenate %109, %111, %149 in 1 : vector<50x32xf32>, vector<50x32xf32>, vector<50x32xf32> -> vector<50x96xf32>
    %151 = arith.truncf %150 : vector<50x96xf32> to vector<50x96xbf16>
    %cst_68 = arith.constant dense<0.000000e+00> : vector<50x64xf32>
    %152 = tpu.matmul %151, %112, %cst_68 {dimension_numbers = #tpu.dot_dimension_numbers<[1], [0], [0], [1], [0, 0, 1, 1], [], []>} : vector<50x96xbf16>, vector<96x64xbf16>, vector<50x64xf32> -> vector<50x64xf32>
    %153 = vector.broadcast %113 : vector<1x64xf32> to vector<50x64xf32>
    %154 = arith.addf %152, %153 : vector<50x64xf32>
    %cst_69 = arith.constant 0.000000e+00 : f32
    %155 = vector.broadcast %cst_69 : f32 to vector<50x64xf32>
    %156 = arith.cmpf ogt, %154, %155 : vector<50x64xf32>
    %cst_70 = arith.constant 0.00999999977 : f32
    %157 = vector.broadcast %cst_70 : f32 to vector<50x64xf32>
    %158 = arith.mulf %157, %154 : vector<50x64xf32>
    %159 = arith.select %156, %154, %158 : vector<50x64xi1>, vector<50x64xf32>
    %160 = arith.cmpf oge, %126, %136 : vector<50x64xf32>
    %161 = arith.maximumf %126, %136 : vector<50x64xf32>
    %162 = arith.cmpf oge, %146, %159 : vector<50x64xf32>
    %163 = arith.maximumf %146, %159 : vector<50x64xf32>
    %c0_71 = arith.constant 0 : index
    %c0_72 = arith.constant 0 : index
    %164 = vector.load %arg6[%c0_71, %c0_72] : memref<192x128xbf16, #tpu.memory_space<vmem>>, vector<192x128xbf16>
    %c0_73 = arith.constant 0 : index
    %c0_74 = arith.constant 0 : index
    %165 = vector.load %arg7[%c0_73, %c0_74] : memref<1x128xf32, #tpu.memory_space<vmem>>, vector<1x128xf32>
    %cst_75 = arith.constant 0.000000e+00 : f32
    %166 = vector.broadcast %cst_75 : f32 to vector<2x64xf32>
    %167 = vector.extract_strided_slice %163 {offsets = [0, 0], sizes = [48, 64], strides = [1, 1]} : vector<50x64xf32> to vector<48x64xf32>
    %168 = tpu.concatenate %166, %167 in 0 : vector<2x64xf32>, vector<48x64xf32> -> vector<50x64xf32>
    %169 = tpu.concatenate %168, %161, %163 in 1 : vector<50x64xf32>, vector<50x64xf32>, vector<50x64xf32> -> vector<50x192xf32>
    %170 = arith.truncf %169 : vector<50x192xf32> to vector<50x192xbf16>
    %cst_76 = arith.constant dense<0.000000e+00> : vector<50x128xf32>
    %171 = tpu.matmul %170, %164, %cst_76 {dimension_numbers = #tpu.dot_dimension_numbers<[1], [0], [0], [1], [0, 0, 1, 1], [], []>} : vector<50x192xbf16>, vector<192x128xbf16>, vector<50x128xf32> -> vector<50x128xf32>
    %172 = vector.broadcast %165 : vector<1x128xf32> to vector<50x128xf32>
    %173 = arith.addf %171, %172 : vector<50x128xf32>
    %cst_77 = arith.constant 0.000000e+00 : f32
    %174 = vector.broadcast %cst_77 : f32 to vector<50x128xf32>
    %175 = arith.cmpf ogt, %173, %174 : vector<50x128xf32>
    %cst_78 = arith.constant 0.00999999977 : f32
    %176 = vector.broadcast %cst_78 : f32 to vector<50x128xf32>
    %177 = arith.mulf %176, %173 : vector<50x128xf32>
    %178 = arith.select %175, %173, %177 : vector<50x128xi1>, vector<50x128xf32>
    %cst_79 = arith.constant 0.000000e+00 : f32
    %179 = vector.broadcast %cst_79 : f32 to vector<2x64xf32>
    %180 = vector.extract_strided_slice %161 {offsets = [2, 0], sizes = [48, 64], strides = [1, 1]} : vector<50x64xf32> to vector<48x64xf32>
    %181 = tpu.concatenate %180, %179 in 0 : vector<48x64xf32>, vector<2x64xf32> -> vector<50x64xf32>
    %182 = tpu.concatenate %161, %163, %181 in 1 : vector<50x64xf32>, vector<50x64xf32>, vector<50x64xf32> -> vector<50x192xf32>
    %183 = arith.truncf %182 : vector<50x192xf32> to vector<50x192xbf16>
    %cst_80 = arith.constant dense<0.000000e+00> : vector<50x128xf32>
    %184 = tpu.matmul %183, %164, %cst_80 {dimension_numbers = #tpu.dot_dimension_numbers<[1], [0], [0], [1], [0, 0, 1, 1], [], []>} : vector<50x192xbf16>, vector<192x128xbf16>, vector<50x128xf32> -> vector<50x128xf32>
    %185 = vector.broadcast %165 : vector<1x128xf32> to vector<50x128xf32>
    %186 = arith.addf %184, %185 : vector<50x128xf32>
    %cst_81 = arith.constant 0.000000e+00 : f32
    %187 = vector.broadcast %cst_81 : f32 to vector<50x128xf32>
    %188 = arith.cmpf ogt, %186, %187 : vector<50x128xf32>
    %cst_82 = arith.constant 0.00999999977 : f32
    %189 = vector.broadcast %cst_82 : f32 to vector<50x128xf32>
    %190 = arith.mulf %189, %186 : vector<50x128xf32>
    %191 = arith.select %188, %186, %190 : vector<50x128xi1>, vector<50x128xf32>
    %192 = arith.cmpf oge, %178, %191 : vector<50x128xf32>
    %193 = arith.maximumf %178, %191 : vector<50x128xf32>
    %194 = vector.extract_strided_slice %193 {offsets = [0, 0], sizes = [2, 128], strides = [1, 1]} : vector<50x128xf32> to vector<2x128xf32>
    %195 = vector.extract_strided_slice %193 {offsets = [2, 0], sizes = [2, 128], strides = [1, 1]} : vector<50x128xf32> to vector<2x128xf32>
    %196 = vector.extract_strided_slice %193 {offsets = [4, 0], sizes = [2, 128], strides = [1, 1]} : vector<50x128xf32> to vector<2x128xf32>
    %197 = vector.extract_strided_slice %193 {offsets = [6, 0], sizes = [2, 128], strides = [1, 1]} : vector<50x128xf32> to vector<2x128xf32>
    %198 = vector.extract_strided_slice %193 {offsets = [8, 0], sizes = [2, 128], strides = [1, 1]} : vector<50x128xf32> to vector<2x128xf32>
    %199 = vector.extract_strided_slice %193 {offsets = [10, 0], sizes = [2, 128], strides = [1, 1]} : vector<50x128xf32> to vector<2x128xf32>
    %200 = vector.extract_strided_slice %193 {offsets = [12, 0], sizes = [2, 128], strides = [1, 1]} : vector<50x128xf32> to vector<2x128xf32>
    %201 = vector.extract_strided_slice %193 {offsets = [14, 0], sizes = [2, 128], strides = [1, 1]} : vector<50x128xf32> to vector<2x128xf32>
    %202 = vector.extract_strided_slice %193 {offsets = [16, 0], sizes = [2, 128], strides = [1, 1]} : vector<50x128xf32> to vector<2x128xf32>
    %203 = vector.extract_strided_slice %193 {offsets = [18, 0], sizes = [2, 128], strides = [1, 1]} : vector<50x128xf32> to vector<2x128xf32>
    %204 = vector.extract_strided_slice %193 {offsets = [20, 0], sizes = [2, 128], strides = [1, 1]} : vector<50x128xf32> to vector<2x128xf32>
    %205 = vector.extract_strided_slice %193 {offsets = [22, 0], sizes = [2, 128], strides = [1, 1]} : vector<50x128xf32> to vector<2x128xf32>
    %206 = vector.extract_strided_slice %193 {offsets = [24, 0], sizes = [2, 128], strides = [1, 1]} : vector<50x128xf32> to vector<2x128xf32>
    %207 = vector.extract_strided_slice %193 {offsets = [26, 0], sizes = [2, 128], strides = [1, 1]} : vector<50x128xf32> to vector<2x128xf32>
    %208 = vector.extract_strided_slice %193 {offsets = [28, 0], sizes = [2, 128], strides = [1, 1]} : vector<50x128xf32> to vector<2x128xf32>
    %209 = vector.extract_strided_slice %193 {offsets = [30, 0], sizes = [2, 128], strides = [1, 1]} : vector<50x128xf32> to vector<2x128xf32>
    %210 = vector.extract_strided_slice %193 {offsets = [32, 0], sizes = [2, 128], strides = [1, 1]} : vector<50x128xf32> to vector<2x128xf32>
    %211 = vector.extract_strided_slice %193 {offsets = [34, 0], sizes = [2, 128], strides = [1, 1]} : vector<50x128xf32> to vector<2x128xf32>
    %212 = vector.extract_strided_slice %193 {offsets = [36, 0], sizes = [2, 128], strides = [1, 1]} : vector<50x128xf32> to vector<2x128xf32>
    %213 = vector.extract_strided_slice %193 {offsets = [38, 0], sizes = [2, 128], strides = [1, 1]} : vector<50x128xf32> to vector<2x128xf32>
    %214 = vector.extract_strided_slice %193 {offsets = [40, 0], sizes = [2, 128], strides = [1, 1]} : vector<50x128xf32> to vector<2x128xf32>
    %215 = vector.extract_strided_slice %193 {offsets = [42, 0], sizes = [2, 128], strides = [1, 1]} : vector<50x128xf32> to vector<2x128xf32>
    %216 = vector.extract_strided_slice %193 {offsets = [44, 0], sizes = [2, 128], strides = [1, 1]} : vector<50x128xf32> to vector<2x128xf32>
    %217 = vector.extract_strided_slice %193 {offsets = [46, 0], sizes = [2, 128], strides = [1, 1]} : vector<50x128xf32> to vector<2x128xf32>
    %218 = vector.extract_strided_slice %193 {offsets = [48, 0], sizes = [2, 128], strides = [1, 1]} : vector<50x128xf32> to vector<2x128xf32>
    %219 = tpu.concatenate %194, %195, %196, %197, %198, %199, %200, %201, %202, %203, %204, %205, %206, %207, %208, %209 in 1 : vector<2x128xf32>, vector<2x128xf32>, vector<2x128xf32>, vector<2x128xf32>, vector<2x128xf32>, vector<2x128xf32>, vector<2x128xf32>, vector<2x128xf32>, vector<2x128xf32>, vector<2x128xf32>, vector<2x128xf32>, vector<2x128xf32>, vector<2x128xf32>, vector<2x128xf32>, vector<2x128xf32>, vector<2x128xf32> -> vector<2x2048xf32>
    %220 = tpu.concatenate %210, %211, %212, %213, %214, %215, %216, %217, %218 in 1 : vector<2x128xf32>, vector<2x128xf32>, vector<2x128xf32>, vector<2x128xf32>, vector<2x128xf32>, vector<2x128xf32>, vector<2x128xf32>, vector<2x128xf32>, vector<2x128xf32> -> vector<2x1152xf32>
    %221 = tpu.concatenate %219, %220 in 1 : vector<2x2048xf32>, vector<2x1152xf32> -> vector<2x3200xf32>
    %222 = arith.truncf %221 : vector<2x3200xf32> to vector<2x3200xbf16>
    %c0_83 = arith.constant 0 : index
    %c0_84 = arith.constant 0 : index
    %223 = vector.load %arg8[%c0_83, %c0_84] : memref<3200x16xbf16, #tpu.memory_space<vmem>>, vector<3200x16xbf16>
    %cst_85 = arith.constant dense<0.000000e+00> : vector<2x16xf32>
    %224 = tpu.matmul %222, %223, %cst_85 {dimension_numbers = #tpu.dot_dimension_numbers<[1], [0], [0], [1], [0, 0, 1, 1], [], []>} : vector<2x3200xbf16>, vector<3200x16xbf16>, vector<2x16xf32> -> vector<2x16xf32>
    %c0_86 = arith.constant 0 : index
    %c0_87 = arith.constant 0 : index
    %225 = vector.load %arg9[%c0_86, %c0_87] : memref<1x16xf32, #tpu.memory_space<vmem>>, vector<1x16xf32>
    %226 = vector.broadcast %225 : vector<1x16xf32> to vector<2x16xf32>
    %227 = arith.addf %224, %226 : vector<2x16xf32>
    %c0_88 = arith.constant 0 : index
    %c0_89 = arith.constant 0 : index
    %c0_90 = arith.constant 0 : index
    %228 = vector.load %arg19[%c0_88, %c0_89, %c0_90] : memref<1x2x16xf32, #tpu.memory_space<vmem>>, vector<1x2x16xf32>
    %229 = vector.shape_cast %228 : vector<1x2x16xf32> to vector<2x16xf32>
    %230 = vector.shape_cast %227 : vector<2x16xf32> to vector<1x2x16xf32>
    tpu.vector_store %arg19[%c0_88, %c0_89, %c0_90], %230 {strides = array<i32>} : memref<1x2x16xf32, #tpu.memory_space<vmem>>, vector<1x2x16xf32>,
    %231 = arith.truncf %227 : vector<2x16xf32> to vector<2x16xbf16>
    %c0_91 = arith.constant 0 : index
    %c0_92 = arith.constant 0 : index
    %232 = vector.load %arg10[%c0_91, %c0_92] : memref<16x3200xbf16, #tpu.memory_space<vmem>>, vector<16x3200xbf16>
    %cst_93 = arith.constant dense<0.000000e+00> : vector<2x3200xf32>
    %233 = tpu.matmul %231, %232, %cst_93 {dimension_numbers = #tpu.dot_dimension_numbers<[1], [0], [0], [1], [0, 0, 1, 1], [], []>} : vector<2x16xbf16>, vector<16x3200xbf16>, vector<2x3200xf32> -> vector<2x3200xf32>
    %c0_94 = arith.constant 0 : index
    %c0_95 = arith.constant 0 : index
    %234 = vector.load %arg11[%c0_94, %c0_95] : memref<1x3200xf32, #tpu.memory_space<vmem>>, vector<1x3200xf32>
    %235 = vector.broadcast %234 : vector<1x3200xf32> to vector<2x3200xf32>
    %236 = arith.addf %233, %235 : vector<2x3200xf32>
    %237 = vector.extract_strided_slice %236 {offsets = [0, 0], sizes = [2, 128], strides = [1, 1]} : vector<2x3200xf32> to vector<2x128xf32>
    %238 = vector.extract_strided_slice %236 {offsets = [0, 128], sizes = [2, 128], strides = [1, 1]} : vector<2x3200xf32> to vector<2x128xf32>
    %239 = vector.extract_strided_slice %236 {offsets = [0, 256], sizes = [2, 128], strides = [1, 1]} : vector<2x3200xf32> to vector<2x128xf32>
    %240 = vector.extract_strided_slice %236 {offsets = [0, 384], sizes = [2, 128], strides = [1, 1]} : vector<2x3200xf32> to vector<2x128xf32>
    %241 = vector.extract_strided_slice %236 {offsets = [0, 512], sizes = [2, 128], strides = [1, 1]} : vector<2x3200xf32> to vector<2x128xf32>
    %242 = vector.extract_strided_slice %236 {offsets = [0, 640], sizes = [2, 128], strides = [1, 1]} : vector<2x3200xf32> to vector<2x128xf32>
    %243 = vector.extract_strided_slice %236 {offsets = [0, 768], sizes = [2, 128], strides = [1, 1]} : vector<2x3200xf32> to vector<2x128xf32>
    %244 = vector.extract_strided_slice %236 {offsets = [0, 896], sizes = [2, 128], strides = [1, 1]} : vector<2x3200xf32> to vector<2x128xf32>
    %245 = vector.extract_strided_slice %236 {offsets = [0, 1024], sizes = [2, 128], strides = [1, 1]} : vector<2x3200xf32> to vector<2x128xf32>
    %246 = vector.extract_strided_slice %236 {offsets = [0, 1152], sizes = [2, 128], strides = [1, 1]} : vector<2x3200xf32> to vector<2x128xf32>
    %247 = vector.extract_strided_slice %236 {offsets = [0, 1280], sizes = [2, 128], strides = [1, 1]} : vector<2x3200xf32> to vector<2x128xf32>
    %248 = vector.extract_strided_slice %236 {offsets = [0, 1408], sizes = [2, 128], strides = [1, 1]} : vector<2x3200xf32> to vector<2x128xf32>
    %249 = vector.extract_strided_slice %236 {offsets = [0, 1536], sizes = [2, 128], strides = [1, 1]} : vector<2x3200xf32> to vector<2x128xf32>
    %250 = vector.extract_strided_slice %236 {offsets = [0, 1664], sizes = [2, 128], strides = [1, 1]} : vector<2x3200xf32> to vector<2x128xf32>
    %251 = vector.extract_strided_slice %236 {offsets = [0, 1792], sizes = [2, 128], strides = [1, 1]} : vector<2x3200xf32> to vector<2x128xf32>
    %252 = vector.extract_strided_slice %236 {offsets = [0, 1920], sizes = [2, 128], strides = [1, 1]} : vector<2x3200xf32> to vector<2x128xf32>
    %253 = vector.extract_strided_slice %236 {offsets = [0, 2048], sizes = [2, 128], strides = [1, 1]} : vector<2x3200xf32> to vector<2x128xf32>
    %254 = vector.extract_strided_slice %236 {offsets = [0, 2176], sizes = [2, 128], strides = [1, 1]} : vector<2x3200xf32> to vector<2x128xf32>
    %255 = vector.extract_strided_slice %236 {offsets = [0, 2304], sizes = [2, 128], strides = [1, 1]} : vector<2x3200xf32> to vector<2x128xf32>
    %256 = vector.extract_strided_slice %236 {offsets = [0, 2432], sizes = [2, 128], strides = [1, 1]} : vector<2x3200xf32> to vector<2x128xf32>
    %257 = vector.extract_strided_slice %236 {offsets = [0, 2560], sizes = [2, 128], strides = [1, 1]} : vector<2x3200xf32> to vector<2x128xf32>
    %258 = vector.extract_strided_slice %236 {offsets = [0, 2688], sizes = [2, 128], strides = [1, 1]} : vector<2x3200xf32> to vector<2x128xf32>
    %259 = vector.extract_strided_slice %236 {offsets = [0, 2816], sizes = [2, 128], strides = [1, 1]} : vector<2x3200xf32> to vector<2x128xf32>
    %260 = vector.extract_strided_slice %236 {offsets = [0, 2944], sizes = [2, 128], strides = [1, 1]} : vector<2x3200xf32> to vector<2x128xf32>
    %261 = vector.extract_strided_slice %236 {offsets = [0, 3072], sizes = [2, 128], strides = [1, 1]} : vector<2x3200xf32> to vector<2x128xf32>
    %262 = tpu.concatenate %237, %238, %239, %240, %241, %242, %243, %244, %245, %246, %247, %248, %249, %250, %251, %252 in 0 : vector<2x128xf32>, vector<2x128xf32>, vector<2x128xf32>, vector<2x128xf32>, vector<2x128xf32>, vector<2x128xf32>, vector<2x128xf32>, vector<2x128xf32>, vector<2x128xf32>, vector<2x128xf32>, vector<2x128xf32>, vector<2x128xf32>, vector<2x128xf32>, vector<2x128xf32>, vector<2x128xf32>, vector<2x128xf32> -> vector<32x128xf32>
    %263 = tpu.concatenate %253, %254, %255, %256, %257, %258, %259, %260, %261 in 0 : vector<2x128xf32>, vector<2x128xf32>, vector<2x128xf32>, vector<2x128xf32>, vector<2x128xf32>, vector<2x128xf32>, vector<2x128xf32>, vector<2x128xf32>, vector<2x128xf32> -> vector<18x128xf32>
    %264 = tpu.concatenate %262, %263 in 0 : vector<32x128xf32>, vector<18x128xf32> -> vector<50x128xf32>
    %cst_96 = arith.constant 0.000000e+00 : f32
    %265 = vector.broadcast %cst_96 : f32 to vector<50x128xf32>
    %266 = arith.select %192, %264, %265 : vector<50x128xi1>, vector<50x128xf32>
    %cst_97 = arith.constant 0.000000e+00 : f32
    %267 = vector.broadcast %cst_97 : f32 to vector<50x128xf32>
    %268 = arith.select %192, %267, %264 : vector<50x128xi1>, vector<50x128xf32>
    %c0_98 = arith.constant 0 : index
    %c0_99 = arith.constant 0 : index
    %269 = vector.load %arg12[%c0_98, %c0_99] : memref<384x64xbf16, #tpu.memory_space<vmem>>, vector<384x64xbf16>
    %c0_100 = arith.constant 0 : index
    %c0_101 = arith.constant 0 : index
    %270 = vector.load %arg13[%c0_100, %c0_101] : memref<1x64xf32, #tpu.memory_space<vmem>>, vector<1x64xf32>
    %cst_102 = arith.constant 0.000000e+00 : f32
    %271 = vector.broadcast %cst_102 : f32 to vector<2x128xf32>
    %272 = vector.extract_strided_slice %268 {offsets = [0, 0], sizes = [48, 128], strides = [1, 1]} : vector<50x128xf32> to vector<48x128xf32>
    %273 = tpu.concatenate %271, %272 in 0 : vector<2x128xf32>, vector<48x128xf32> -> vector<50x128xf32>
    %274 = tpu.concatenate %273, %266, %268 in 1 : vector<50x128xf32>, vector<50x128xf32>, vector<50x128xf32> -> vector<50x384xf32>
    %275 = arith.truncf %274 : vector<50x384xf32> to vector<50x384xbf16>
    %cst_103 = arith.constant dense<0.000000e+00> : vector<50x64xf32>
    %276 = tpu.matmul %275, %269, %cst_103 {dimension_numbers = #tpu.dot_dimension_numbers<[1], [0], [0], [1], [0, 0, 1, 1], [], []>} : vector<50x384xbf16>, vector<384x64xbf16>, vector<50x64xf32> -> vector<50x64xf32>
    %277 = vector.broadcast %270 : vector<1x64xf32> to vector<50x64xf32>
    %278 = arith.addf %276, %277 : vector<50x64xf32>
    %cst_104 = arith.constant 0.000000e+00 : f32
    %279 = vector.broadcast %cst_104 : f32 to vector<50x64xf32>
    %280 = arith.cmpf ogt, %278, %279 : vector<50x64xf32>
    %cst_105 = arith.constant 0.00999999977 : f32
    %281 = vector.broadcast %cst_105 : f32 to vector<50x64xf32>
    %282 = arith.mulf %281, %278 : vector<50x64xf32>
    %283 = arith.select %280, %278, %282 : vector<50x64xi1>, vector<50x64xf32>
    %cst_106 = arith.constant 0.000000e+00 : f32
    %284 = vector.broadcast %cst_106 : f32 to vector<2x128xf32>
    %285 = vector.extract_strided_slice %266 {offsets = [2, 0], sizes = [48, 128], strides = [1, 1]} : vector<50x128xf32> to vector<48x128xf32>
    %286 = tpu.concatenate %285, %284 in 0 : vector<48x128xf32>, vector<2x128xf32> -> vector<50x128xf32>
    %287 = tpu.concatenate %266, %268, %286 in 1 : vector<50x128xf32>, vector<50x128xf32>, vector<50x128xf32> -> vector<50x384xf32>
    %288 = arith.truncf %287 : vector<50x384xf32> to vector<50x384xbf16>
    %cst_107 = arith.constant dense<0.000000e+00> : vector<50x64xf32>
    %289 = tpu.matmul %288, %269, %cst_107 {dimension_numbers = #tpu.dot_dimension_numbers<[1], [0], [0], [1], [0, 0, 1, 1], [], []>} : vector<50x384xbf16>, vector<384x64xbf16>, vector<50x64xf32> -> vector<50x64xf32>
    %290 = vector.broadcast %270 : vector<1x64xf32> to vector<50x64xf32>
    %291 = arith.addf %289, %290 : vector<50x64xf32>
    %cst_108 = arith.constant 0.000000e+00 : f32
    %292 = vector.broadcast %cst_108 : f32 to vector<50x64xf32>
    %293 = arith.cmpf ogt, %291, %292 : vector<50x64xf32>
    %cst_109 = arith.constant 0.00999999977 : f32
    %294 = vector.broadcast %cst_109 : f32 to vector<50x64xf32>
    %295 = arith.mulf %294, %291 : vector<50x64xf32>
    %296 = arith.select %293, %291, %295 : vector<50x64xi1>, vector<50x64xf32>
    %cst_110 = arith.constant 0.000000e+00 : f32
    %297 = vector.broadcast %cst_110 : f32 to vector<50x64xf32>
    %298 = arith.select %160, %283, %297 : vector<50x64xi1>, vector<50x64xf32>
    %cst_111 = arith.constant 0.000000e+00 : f32
    %299 = vector.broadcast %cst_111 : f32 to vector<50x64xf32>
    %300 = arith.select %160, %299, %283 : vector<50x64xi1>, vector<50x64xf32>
    %cst_112 = arith.constant 0.000000e+00 : f32
    %301 = vector.broadcast %cst_112 : f32 to vector<50x64xf32>
    %302 = arith.select %162, %296, %301 : vector<50x64xi1>, vector<50x64xf32>
    %cst_113 = arith.constant 0.000000e+00 : f32
    %303 = vector.broadcast %cst_113 : f32 to vector<50x64xf32>
    %304 = arith.select %162, %303, %296 : vector<50x64xi1>, vector<50x64xf32>
    %c0_114 = arith.constant 0 : index
    %c0_115 = arith.constant 0 : index
    %305 = vector.load %arg14[%c0_114, %c0_115] : memref<192x32xbf16, #tpu.memory_space<vmem>>, vector<192x32xbf16>
    %c0_116 = arith.constant 0 : index
    %c0_117 = arith.constant 0 : index
    %306 = vector.load %arg15[%c0_116, %c0_117] : memref<1x32xf32, #tpu.memory_space<vmem>>, vector<1x32xf32>
    %cst_118 = arith.constant 0.000000e+00 : f32
    %307 = vector.broadcast %cst_118 : f32 to vector<2x64xf32>
    %308 = vector.extract_strided_slice %304 {offsets = [0, 0], sizes = [48, 64], strides = [1, 1]} : vector<50x64xf32> to vector<48x64xf32>
    %309 = tpu.concatenate %307, %308 in 0 : vector<2x64xf32>, vector<48x64xf32> -> vector<50x64xf32>
    %310 = tpu.concatenate %309, %298, %300 in 1 : vector<50x64xf32>, vector<50x64xf32>, vector<50x64xf32> -> vector<50x192xf32>
    %311 = arith.truncf %310 : vector<50x192xf32> to vector<50x192xbf16>
    %cst_119 = arith.constant dense<0.000000e+00> : vector<50x32xf32>
    %312 = tpu.matmul %311, %305, %cst_119 {dimension_numbers = #tpu.dot_dimension_numbers<[1], [0], [0], [1], [0, 0, 1, 1], [], []>} : vector<50x192xbf16>, vector<192x32xbf16>, vector<50x32xf32> -> vector<50x32xf32>
    %313 = vector.broadcast %306 : vector<1x32xf32> to vector<50x32xf32>
    %314 = arith.addf %312, %313 : vector<50x32xf32>
    %cst_120 = arith.constant 0.000000e+00 : f32
    %315 = vector.broadcast %cst_120 : f32 to vector<50x32xf32>
    %316 = arith.cmpf ogt, %314, %315 : vector<50x32xf32>
    %cst_121 = arith.constant 0.00999999977 : f32
    %317 = vector.broadcast %cst_121 : f32 to vector<50x32xf32>
    %318 = arith.mulf %317, %314 : vector<50x32xf32>
    %319 = arith.select %316, %314, %318 : vector<50x32xi1>, vector<50x32xf32>
    %320 = tpu.concatenate %298, %300, %302 in 1 : vector<50x64xf32>, vector<50x64xf32>, vector<50x64xf32> -> vector<50x192xf32>
    %321 = arith.truncf %320 : vector<50x192xf32> to vector<50x192xbf16>
    %cst_122 = arith.constant dense<0.000000e+00> : vector<50x32xf32>
    %322 = tpu.matmul %321, %305, %cst_122 {dimension_numbers = #tpu.dot_dimension_numbers<[1], [0], [0], [1], [0, 0, 1, 1], [], []>} : vector<50x192xbf16>, vector<192x32xbf16>, vector<50x32xf32> -> vector<50x32xf32>
    %323 = vector.broadcast %306 : vector<1x32xf32> to vector<50x32xf32>
    %324 = arith.addf %322, %323 : vector<50x32xf32>
    %cst_123 = arith.constant 0.000000e+00 : f32
    %325 = vector.broadcast %cst_123 : f32 to vector<50x32xf32>
    %326 = arith.cmpf ogt, %324, %325 : vector<50x32xf32>
    %cst_124 = arith.constant 0.00999999977 : f32
    %327 = vector.broadcast %cst_124 : f32 to vector<50x32xf32>
    %328 = arith.mulf %327, %324 : vector<50x32xf32>
    %329 = arith.select %326, %324, %328 : vector<50x32xi1>, vector<50x32xf32>
    %330 = tpu.concatenate %300, %302, %304 in 1 : vector<50x64xf32>, vector<50x64xf32>, vector<50x64xf32> -> vector<50x192xf32>
    %331 = arith.truncf %330 : vector<50x192xf32> to vector<50x192xbf16>
    %cst_125 = arith.constant dense<0.000000e+00> : vector<50x32xf32>
    %332 = tpu.matmul %331, %305, %cst_125 {dimension_numbers = #tpu.dot_dimension_numbers<[1], [0], [0], [1], [0, 0, 1, 1], [], []>} : vector<50x192xbf16>, vector<192x32xbf16>, vector<50x32xf32> -> vector<50x32xf32>
    %333 = vector.broadcast %306 : vector<1x32xf32> to vector<50x32xf32>
    %334 = arith.addf %332, %333 : vector<50x32xf32>
    %cst_126 = arith.constant 0.000000e+00 : f32
    %335 = vector.broadcast %cst_126 : f32 to vector<50x32xf32>
    %336 = arith.cmpf ogt, %334, %335 : vector<50x32xf32>
    %cst_127 = arith.constant 0.00999999977 : f32
    %337 = vector.broadcast %cst_127 : f32 to vector<50x32xf32>
    %338 = arith.mulf %337, %334 : vector<50x32xf32>
    %339 = arith.select %336, %334, %338 : vector<50x32xi1>, vector<50x32xf32>
    %cst_128 = arith.constant 0.000000e+00 : f32
    %340 = vector.broadcast %cst_128 : f32 to vector<2x64xf32>
    %341 = vector.extract_strided_slice %298 {offsets = [2, 0], sizes = [48, 64], strides = [1, 1]} : vector<50x64xf32> to vector<48x64xf32>
    %342 = tpu.concatenate %341, %340 in 0 : vector<48x64xf32>, vector<2x64xf32> -> vector<50x64xf32>
    %343 = tpu.concatenate %302, %304, %342 in 1 : vector<50x64xf32>, vector<50x64xf32>, vector<50x64xf32> -> vector<50x192xf32>
    %344 = arith.truncf %343 : vector<50x192xf32> to vector<50x192xbf16>
    %cst_129 = arith.constant dense<0.000000e+00> : vector<50x32xf32>
    %345 = tpu.matmul %344, %305, %cst_129 {dimension_numbers = #tpu.dot_dimension_numbers<[1], [0], [0], [1], [0, 0, 1, 1], [], []>} : vector<50x192xbf16>, vector<192x32xbf16>, vector<50x32xf32> -> vector<50x32xf32>
    %346 = vector.broadcast %306 : vector<1x32xf32> to vector<50x32xf32>
    %347 = arith.addf %345, %346 : vector<50x32xf32>
    %cst_130 = arith.constant 0.000000e+00 : f32
    %348 = vector.broadcast %cst_130 : f32 to vector<50x32xf32>
    %349 = arith.cmpf ogt, %347, %348 : vector<50x32xf32>
    %cst_131 = arith.constant 0.00999999977 : f32
    %350 = vector.broadcast %cst_131 : f32 to vector<50x32xf32>
    %351 = arith.mulf %350, %347 : vector<50x32xf32>
    %352 = arith.select %349, %347, %351 : vector<50x32xi1>, vector<50x32xf32>
    %cst_132 = arith.constant 0.000000e+00 : f32
    %353 = vector.broadcast %cst_132 : f32 to vector<50x32xf32>
    %354 = arith.select %104, %319, %353 : vector<50x32xi1>, vector<50x32xf32>
    %cst_133 = arith.constant 0.000000e+00 : f32
    %355 = vector.broadcast %cst_133 : f32 to vector<50x32xf32>
    %356 = arith.select %104, %355, %319 : vector<50x32xi1>, vector<50x32xf32>
    %cst_134 = arith.constant 0.000000e+00 : f32
    %357 = vector.broadcast %cst_134 : f32 to vector<50x32xf32>
    %358 = arith.select %106, %329, %357 : vector<50x32xi1>, vector<50x32xf32>
    %cst_135 = arith.constant 0.000000e+00 : f32
    %359 = vector.broadcast %cst_135 : f32 to vector<50x32xf32>
    %360 = arith.select %106, %359, %329 : vector<50x32xi1>, vector<50x32xf32>
    %cst_136 = arith.constant 0.000000e+00 : f32
    %361 = vector.broadcast %cst_136 : f32 to vector<50x32xf32>
    %362 = arith.select %108, %339, %361 : vector<50x32xi1>, vector<50x32xf32>
    %cst_137 = arith.constant 0.000000e+00 : f32
    %363 = vector.broadcast %cst_137 : f32 to vector<50x32xf32>
    %364 = arith.select %108, %363, %339 : vector<50x32xi1>, vector<50x32xf32>
    %cst_138 = arith.constant 0.000000e+00 : f32
    %365 = vector.broadcast %cst_138 : f32 to vector<50x32xf32>
    %366 = arith.select %110, %352, %365 : vector<50x32xi1>, vector<50x32xf32>
    %cst_139 = arith.constant 0.000000e+00 : f32
    %367 = vector.broadcast %cst_139 : f32 to vector<50x32xf32>
    %368 = arith.select %110, %367, %352 : vector<50x32xi1>, vector<50x32xf32>
    %c0_140 = arith.constant 0 : index
    %c0_141 = arith.constant 0 : index
    %369 = vector.load %arg16[%c0_140, %c0_141] : memref<96x4xbf16, #tpu.memory_space<vmem>>, vector<96x4xbf16>
    %c0_142 = arith.constant 0 : index
    %c0_143 = arith.constant 0 : index
    %370 = vector.load %arg17[%c0_142, %c0_143] : memref<1x4xf32, #tpu.memory_space<vmem>>, vector<1x4xf32>
    %cst_144 = arith.constant 0.000000e+00 : f32
    %371 = vector.broadcast %cst_144 : f32 to vector<2x32xf32>
    %372 = vector.extract_strided_slice %368 {offsets = [0, 0], sizes = [48, 32], strides = [1, 1]} : vector<50x32xf32> to vector<48x32xf32>
    %373 = tpu.concatenate %371, %372 in 0 : vector<2x32xf32>, vector<48x32xf32> -> vector<50x32xf32>
    %374 = tpu.concatenate %373, %354, %356 in 1 : vector<50x32xf32>, vector<50x32xf32>, vector<50x32xf32> -> vector<50x96xf32>
    %375 = arith.truncf %374 : vector<50x96xf32> to vector<50x96xbf16>
    %cst_145 = arith.constant dense<0.000000e+00> : vector<50x4xf32>
    %376 = tpu.matmul %375, %369, %cst_145 {dimension_numbers = #tpu.dot_dimension_numbers<[1], [0], [0], [1], [0, 0, 1, 1], [], []>} : vector<50x96xbf16>, vector<96x4xbf16>, vector<50x4xf32> -> vector<50x4xf32>
    %377 = vector.broadcast %370 : vector<1x4xf32> to vector<50x4xf32>
    %378 = arith.addf %376, %377 : vector<50x4xf32>
    %cst_146 = arith.constant 0.000000e+00 : f32
    %379 = vector.broadcast %cst_146 : f32 to vector<50x4xf32>
    %380 = arith.cmpf ogt, %378, %379 : vector<50x4xf32>
    %cst_147 = arith.constant 0.00999999977 : f32
    %381 = vector.broadcast %cst_147 : f32 to vector<50x4xf32>
    %382 = arith.mulf %381, %378 : vector<50x4xf32>
    %383 = arith.select %380, %378, %382 : vector<50x4xi1>, vector<50x4xf32>
    %384 = tpu.concatenate %354, %356, %358 in 1 : vector<50x32xf32>, vector<50x32xf32>, vector<50x32xf32> -> vector<50x96xf32>
    %385 = arith.truncf %384 : vector<50x96xf32> to vector<50x96xbf16>
    %cst_148 = arith.constant dense<0.000000e+00> : vector<50x4xf32>
    %386 = tpu.matmul %385, %369, %cst_148 {dimension_numbers = #tpu.dot_dimension_numbers<[1], [0], [0], [1], [0, 0, 1, 1], [], []>} : vector<50x96xbf16>, vector<96x4xbf16>, vector<50x4xf32> -> vector<50x4xf32>
    %387 = vector.broadcast %370 : vector<1x4xf32> to vector<50x4xf32>
    %388 = arith.addf %386, %387 : vector<50x4xf32>
    %cst_149 = arith.constant 0.000000e+00 : f32
    %389 = vector.broadcast %cst_149 : f32 to vector<50x4xf32>
    %390 = arith.cmpf ogt, %388, %389 : vector<50x4xf32>
    %cst_150 = arith.constant 0.00999999977 : f32
    %391 = vector.broadcast %cst_150 : f32 to vector<50x4xf32>
    %392 = arith.mulf %391, %388 : vector<50x4xf32>
    %393 = arith.select %390, %388, %392 : vector<50x4xi1>, vector<50x4xf32>
    %394 = tpu.concatenate %356, %358, %360 in 1 : vector<50x32xf32>, vector<50x32xf32>, vector<50x32xf32> -> vector<50x96xf32>
    %395 = arith.truncf %394 : vector<50x96xf32> to vector<50x96xbf16>
    %cst_151 = arith.constant dense<0.000000e+00> : vector<50x4xf32>
    %396 = tpu.matmul %395, %369, %cst_151 {dimension_numbers = #tpu.dot_dimension_numbers<[1], [0], [0], [1], [0, 0, 1, 1], [], []>} : vector<50x96xbf16>, vector<96x4xbf16>, vector<50x4xf32> -> vector<50x4xf32>
    %397 = vector.broadcast %370 : vector<1x4xf32> to vector<50x4xf32>
    %398 = arith.addf %396, %397 : vector<50x4xf32>
    %cst_152 = arith.constant 0.000000e+00 : f32
    %399 = vector.broadcast %cst_152 : f32 to vector<50x4xf32>
    %400 = arith.cmpf ogt, %398, %399 : vector<50x4xf32>
    %cst_153 = arith.constant 0.00999999977 : f32
    %401 = vector.broadcast %cst_153 : f32 to vector<50x4xf32>
    %402 = arith.mulf %401, %398 : vector<50x4xf32>
    %403 = arith.select %400, %398, %402 : vector<50x4xi1>, vector<50x4xf32>
    %404 = tpu.concatenate %358, %360, %362 in 1 : vector<50x32xf32>, vector<50x32xf32>, vector<50x32xf32> -> vector<50x96xf32>
    %405 = arith.truncf %404 : vector<50x96xf32> to vector<50x96xbf16>
    %cst_154 = arith.constant dense<0.000000e+00> : vector<50x4xf32>
    %406 = tpu.matmul %405, %369, %cst_154 {dimension_numbers = #tpu.dot_dimension_numbers<[1], [0], [0], [1], [0, 0, 1, 1], [], []>} : vector<50x96xbf16>, vector<96x4xbf16>, vector<50x4xf32> -> vector<50x4xf32>
    %407 = vector.broadcast %370 : vector<1x4xf32> to vector<50x4xf32>
    %408 = arith.addf %406, %407 : vector<50x4xf32>
    %cst_155 = arith.constant 0.000000e+00 : f32
    %409 = vector.broadcast %cst_155 : f32 to vector<50x4xf32>
    %410 = arith.cmpf ogt, %408, %409 : vector<50x4xf32>
    %cst_156 = arith.constant 0.00999999977 : f32
    %411 = vector.broadcast %cst_156 : f32 to vector<50x4xf32>
    %412 = arith.mulf %411, %408 : vector<50x4xf32>
    %413 = arith.select %410, %408, %412 : vector<50x4xi1>, vector<50x4xf32>
    %414 = tpu.concatenate %360, %362, %364 in 1 : vector<50x32xf32>, vector<50x32xf32>, vector<50x32xf32> -> vector<50x96xf32>
    %415 = arith.truncf %414 : vector<50x96xf32> to vector<50x96xbf16>
    %cst_157 = arith.constant dense<0.000000e+00> : vector<50x4xf32>
    %416 = tpu.matmul %415, %369, %cst_157 {dimension_numbers = #tpu.dot_dimension_numbers<[1], [0], [0], [1], [0, 0, 1, 1], [], []>} : vector<50x96xbf16>, vector<96x4xbf16>, vector<50x4xf32> -> vector<50x4xf32>
    %417 = vector.broadcast %370 : vector<1x4xf32> to vector<50x4xf32>
    %418 = arith.addf %416, %417 : vector<50x4xf32>
    %cst_158 = arith.constant 0.000000e+00 : f32
    %419 = vector.broadcast %cst_158 : f32 to vector<50x4xf32>
    %420 = arith.cmpf ogt, %418, %419 : vector<50x4xf32>
    %cst_159 = arith.constant 0.00999999977 : f32
    %421 = vector.broadcast %cst_159 : f32 to vector<50x4xf32>
    %422 = arith.mulf %421, %418 : vector<50x4xf32>
    %423 = arith.select %420, %418, %422 : vector<50x4xi1>, vector<50x4xf32>
    %424 = tpu.concatenate %362, %364, %366 in 1 : vector<50x32xf32>, vector<50x32xf32>, vector<50x32xf32> -> vector<50x96xf32>
    %425 = arith.truncf %424 : vector<50x96xf32> to vector<50x96xbf16>
    %cst_160 = arith.constant dense<0.000000e+00> : vector<50x4xf32>
    %426 = tpu.matmul %425, %369, %cst_160 {dimension_numbers = #tpu.dot_dimension_numbers<[1], [0], [0], [1], [0, 0, 1, 1], [], []>} : vector<50x96xbf16>, vector<96x4xbf16>, vector<50x4xf32> -> vector<50x4xf32>
    %427 = vector.broadcast %370 : vector<1x4xf32> to vector<50x4xf32>
    %428 = arith.addf %426, %427 : vector<50x4xf32>
    %cst_161 = arith.constant 0.000000e+00 : f32
    %429 = vector.broadcast %cst_161 : f32 to vector<50x4xf32>
    %430 = arith.cmpf ogt, %428, %429 : vector<50x4xf32>
    %cst_162 = arith.constant 0.00999999977 : f32
    %431 = vector.broadcast %cst_162 : f32 to vector<50x4xf32>
    %432 = arith.mulf %431, %428 : vector<50x4xf32>
    %433 = arith.select %430, %428, %432 : vector<50x4xi1>, vector<50x4xf32>
    %434 = tpu.concatenate %364, %366, %368 in 1 : vector<50x32xf32>, vector<50x32xf32>, vector<50x32xf32> -> vector<50x96xf32>
    %435 = arith.truncf %434 : vector<50x96xf32> to vector<50x96xbf16>
    %cst_163 = arith.constant dense<0.000000e+00> : vector<50x4xf32>
    %436 = tpu.matmul %435, %369, %cst_163 {dimension_numbers = #tpu.dot_dimension_numbers<[1], [0], [0], [1], [0, 0, 1, 1], [], []>} : vector<50x96xbf16>, vector<96x4xbf16>, vector<50x4xf32> -> vector<50x4xf32>
    %437 = vector.broadcast %370 : vector<1x4xf32> to vector<50x4xf32>
    %438 = arith.addf %436, %437 : vector<50x4xf32>
    %cst_164 = arith.constant 0.000000e+00 : f32
    %439 = vector.broadcast %cst_164 : f32 to vector<50x4xf32>
    %440 = arith.cmpf ogt, %438, %439 : vector<50x4xf32>
    %cst_165 = arith.constant 0.00999999977 : f32
    %441 = vector.broadcast %cst_165 : f32 to vector<50x4xf32>
    %442 = arith.mulf %441, %438 : vector<50x4xf32>
    %443 = arith.select %440, %438, %442 : vector<50x4xi1>, vector<50x4xf32>
    %cst_166 = arith.constant 0.000000e+00 : f32
    %444 = vector.broadcast %cst_166 : f32 to vector<2x32xf32>
    %445 = vector.extract_strided_slice %354 {offsets = [2, 0], sizes = [48, 32], strides = [1, 1]} : vector<50x32xf32> to vector<48x32xf32>
    %446 = tpu.concatenate %445, %444 in 0 : vector<48x32xf32>, vector<2x32xf32> -> vector<50x32xf32>
    %447 = tpu.concatenate %366, %368, %446 in 1 : vector<50x32xf32>, vector<50x32xf32>, vector<50x32xf32> -> vector<50x96xf32>
    %448 = arith.truncf %447 : vector<50x96xf32> to vector<50x96xbf16>
    %cst_167 = arith.constant dense<0.000000e+00> : vector<50x4xf32>
    %449 = tpu.matmul %448, %369, %cst_167 {dimension_numbers = #tpu.dot_dimension_numbers<[1], [0], [0], [1], [0, 0, 1, 1], [], []>} : vector<50x96xbf16>, vector<96x4xbf16>, vector<50x4xf32> -> vector<50x4xf32>
    %450 = vector.broadcast %370 : vector<1x4xf32> to vector<50x4xf32>
    %451 = arith.addf %449, %450 : vector<50x4xf32>
    %cst_168 = arith.constant 0.000000e+00 : f32
    %452 = vector.broadcast %cst_168 : f32 to vector<50x4xf32>
    %453 = arith.cmpf ogt, %451, %452 : vector<50x4xf32>
    %cst_169 = arith.constant 0.00999999977 : f32
    %454 = vector.broadcast %cst_169 : f32 to vector<50x4xf32>
    %455 = arith.mulf %454, %451 : vector<50x4xf32>
    %456 = arith.select %453, %451, %455 : vector<50x4xi1>, vector<50x4xf32>
    %457 = tpu.concatenate %383, %393, %403, %413, %423, %433, %443, %456 in 1 : vector<50x4xf32>, vector<50x4xf32>, vector<50x4xf32>, vector<50x4xf32>, vector<50x4xf32>, vector<50x4xf32>, vector<50x4xf32>, vector<50x4xf32> -> vector<50x32xf32>
    %c0_170 = arith.constant 0 : index
    %c0_171 = arith.constant 0 : index
    %c0_172 = arith.constant 0 : index
    %458 = vector.load %arg18[%c0_170, %c0_171, %c0_172] : memref<1x50x32xf32, #tpu.memory_space<vmem>>, vector<1x50x32xf32>
    %459 = vector.shape_cast %458 : vector<1x50x32xf32> to vector<50x32xf32>
    %460 = vector.shape_cast %457 : vector<50x32xf32> to vector<1x50x32xf32>
    tpu.vector_store %arg18[%c0_170, %c0_171, %c0_172], %460 {strides = array<i32>} : memref<1x50x32xf32, #tpu.memory_space<vmem>>, vector<1x50x32xf32>,
    return
  }
  func.func @transform_0(%arg0: i32) -> (i32, i32, i32, i32) {
    %c0_i32 = arith.constant 0 : i32
    %c0_i32_0 = arith.constant 0 : i32
    %c0_i32_1 = arith.constant 0 : i32
    %c0_i32_2 = arith.constant 0 : i32
    return %arg0, %c0_i32, %c0_i32_0, %c0_i32_1 : i32, i32, i32, i32
  }
  func.func @transform_1(%arg0: i32) -> (i32, i32) {
    %c0_i32 = arith.constant 0 : i32
    %c0_i32_0 = arith.constant 0 : i32
    %c0_i32_1 = arith.constant 0 : i32
    return %c0_i32, %c0_i32_0 : i32, i32
  }
  func.func @transform_2(%arg0: i32) -> (i32, i32) {
    %c0_i32 = arith.constant 0 : i32
    %c0_i32_0 = arith.constant 0 : i32
    %c0_i32_1 = arith.constant 0 : i32
    return %c0_i32, %c0_i32_0 : i32, i32
  }
  func.func @transform_3(%arg0: i32) -> (i32, i32) {
    %c0_i32 = arith.constant 0 : i32
    %c0_i32_0 = arith.constant 0 : i32
    %c0_i32_1 = arith.constant 0 : i32
    return %c0_i32, %c0_i32_0 : i32, i32
  }
  func.func @transform_4(%arg0: i32) -> (i32, i32) {
    %c0_i32 = arith.constant 0 : i32
    %c0_i32_0 = arith.constant 0 : i32
    %c0_i32_1 = arith.constant 0 : i32
    return %c0_i32, %c0_i32_0 : i32, i32
  }
  func.func @transform_5(%arg0: i32) -> (i32, i32) {
    %c0_i32 = arith.constant 0 : i32
    %c0_i32_0 = arith.constant 0 : i32
    %c0_i32_1 = arith.constant 0 : i32
    return %c0_i32, %c0_i32_0 : i32, i32
  }
  func.func @transform_6(%arg0: i32) -> (i32, i32) {
    %c0_i32 = arith.constant 0 : i32
    %c0_i32_0 = arith.constant 0 : i32
    %c0_i32_1 = arith.constant 0 : i32
    return %c0_i32, %c0_i32_0 : i32, i32
  }
  func.func @transform_7(%arg0: i32) -> (i32, i32) {
    %c0_i32 = arith.constant 0 : i32
    %c0_i32_0 = arith.constant 0 : i32
    %c0_i32_1 = arith.constant 0 : i32
    return %c0_i32, %c0_i32_0 : i32, i32
  }
  func.func @transform_8(%arg0: i32) -> (i32, i32) {
    %c0_i32 = arith.constant 0 : i32
    %c0_i32_0 = arith.constant 0 : i32
    %c0_i32_1 = arith.constant 0 : i32
    return %c0_i32, %c0_i32_0 : i32, i32
  }
  func.func @transform_9(%arg0: i32) -> (i32, i32) {
    %c0_i32 = arith.constant 0 : i32
    %c0_i32_0 = arith.constant 0 : i32
    %c0_i32_1 = arith.constant 0 : i32
    return %c0_i32, %c0_i32_0 : i32, i32
  }
  func.func @transform_10(%arg0: i32) -> (i32, i32) {
    %c0_i32 = arith.constant 0 : i32
    %c0_i32_0 = arith.constant 0 : i32
    %c0_i32_1 = arith.constant 0 : i32
    return %c0_i32, %c0_i32_0 : i32, i32
  }
  func.func @transform_11(%arg0: i32) -> (i32, i32) {
    %c0_i32 = arith.constant 0 : i32
    %c0_i32_0 = arith.constant 0 : i32
    %c0_i32_1 = arith.constant 0 : i32
    return %c0_i32, %c0_i32_0 : i32, i32
  }
  func.func @transform_12(%arg0: i32) -> (i32, i32) {
    %c0_i32 = arith.constant 0 : i32
    %c0_i32_0 = arith.constant 0 : i32
    %c0_i32_1 = arith.constant 0 : i32
    return %c0_i32, %c0_i32_0 : i32, i32
  }
  func.func @transform_13(%arg0: i32) -> (i32, i32) {
    %c0_i32 = arith.constant 0 : i32
    %c0_i32_0 = arith.constant 0 : i32
    %c0_i32_1 = arith.constant 0 : i32
    return %c0_i32, %c0_i32_0 : i32, i32
  }
  func.func @transform_14(%arg0: i32) -> (i32, i32) {
    %c0_i32 = arith.constant 0 : i32
    %c0_i32_0 = arith.constant 0 : i32
    %c0_i32_1 = arith.constant 0 : i32
    return %c0_i32, %c0_i32_0 : i32, i32
  }
  func.func @transform_15(%arg0: i32) -> (i32, i32) {
    %c0_i32 = arith.constant 0 : i32
    %c0_i32_0 = arith.constant 0 : i32
    %c0_i32_1 = arith.constant 0 : i32
    return %c0_i32, %c0_i32_0 : i32, i32
  }
  func.func @transform_16(%arg0: i32) -> (i32, i32) {
    %c0_i32 = arith.constant 0 : i32
    %c0_i32_0 = arith.constant 0 : i32
    %c0_i32_1 = arith.constant 0 : i32
    return %c0_i32, %c0_i32_0 : i32, i32
  }
  func.func @transform_17(%arg0: i32) -> (i32, i32, i32) {
    %c0_i32 = arith.constant 0 : i32
    %c0_i32_0 = arith.constant 0 : i32
    %c0_i32_1 = arith.constant 0 : i32
    return %arg0, %c0_i32, %c0_i32_0 : i32, i32, i32
  }
  func.func @transform_18(%arg0: i32) -> (i32, i32, i32) {
    %c0_i32 = arith.constant 0 : i32
    %c0_i32_0 = arith.constant 0 : i32
    %c0_i32_1 = arith.constant 0 : i32
    return %arg0, %c0_i32, %c0_i32_0 : i32, i32, i32
  }
}

</mosaic_0001>

<bundles_post_ra>
// kernel: conv1d_ae_forward.1
= control target key start
LH: loop header
LB: loop body
LE: loop exit
PB: predicated region body
PF: predicated region fallthrough
CT: control target
= control target key end

     0   :  { %s16945_s0 = inlined_call_operand.vmem [shape: f32[2,8,50,4], index: 0, kind: input, shape index: {}]   ;;  %s16946_s1 = inlined_call_operand.vmem [shape: bf16[12,32], index: 1, kind: input, shape index: {}]   ;;  %s16947_s2 = inlined_call_operand.vmem [shape: f32[1,32], index: 2, kind: input, shape index: {}]   ;;  %s16948_s3 = inlined_call_operand.vmem [shape: bf16[96,64], index: 3, kind: input, shape index: {}]   ;;  %s16949_s4 = inlined_call_operand.vmem [shape: f32[1,64], index: 4, kind: input, shape index: {}]   ;;  %s16950_s5 = inlined_call_operand.vmem [shape: bf16[192,128], index: 5, kind: input, shape index: {}]   ;;  %s16951_s6 = inlined_call_operand.vmem [shape: f32[1,128], index: 6, kind: input, shape index: {}]   ;;  %s16952_s7 = inlined_call_operand.vmem [shape: bf16[3200,16], index: 7, kind: input, shape index: {}]   ;;  %s16953_s8 = inlined_call_operand.vmem [shape: f32[1,16], index: 8, kind: input, shape index: {}]   ;;  %s16954_s9 = inlined_call_operand.vmem [shape: bf16[16,3200], index: 9, kind: input, shape index: {}]   ;;  %s16955_s10 = inlined_call_operand.vmem [shape: f32[1,3200], index: 10, kind: input, shape index: {}]   ;;  %s16956_s11 = inlined_call_operand.vmem [shape: bf16[384,64], index: 11, kind: input, shape index: {}]   ;;  %s16957_s12 = inlined_call_operand.vmem [shape: f32[1,64], index: 12, kind: input, shape index: {}]   ;;  %s16958_s13 = inlined_call_operand.vmem [shape: bf16[192,32], index: 13, kind: input, shape index: {}]   ;;  %s16959_s14 = inlined_call_operand.vmem [shape: f32[1,32], index: 14, kind: input, shape index: {}]   ;;  %s16960_s15 = inlined_call_operand.vmem [shape: bf16[96,4], index: 15, kind: input, shape index: {}]   ;;  %s16961_s16 = inlined_call_operand.vmem [shape: f32[1,4], index: 16, kind: input, shape index: {}]   ;;  %s16962_s17 = inlined_call_operand.vmem [shape: f32[2,50,32], index: 17, kind: output, shape index: {0}]   ;;  %s16963_s18 = inlined_call_operand.hbm [shape: f32[2,2,16], index: 18, kind: output, shape index: {1}]  }
   0x1   :  { %17233 = sst [smem:[#allocation116_spill]] %s16945_s0 }
   0x2   :  { %17234 = sst [smem:[#allocation117_spill]] %s16946_s1 }
   0x3   :  { %17235 = sst [smem:[#allocation118_spill]] %s16947_s2 }
   0x4   :  { %17236 = sst [smem:[#allocation119_spill]] %s16948_s3 }
   0x5   :  { %17237 = sst [smem:[#allocation120_spill]] %s16949_s4 }
   0x6   :  { %17238 = sst [smem:[#allocation121_spill]] %s16950_s5 }
   0x7   :  { %24 = vsyncpa [#allocation3], 0 }
   0x8   :  { %26 = vsyncpa [#allocation3 + $0x1], 0  ;;  %s12339_s27 = smov 0   ;;  %s12341_s28 = smov 0  }
   0x9   :  { %s12343_s29 = smov 0   ;;  %s12345_s30 = smov 0  }
   0xa LB: > { %17239 = sst [smem:[#allocation5_spill]] %s12215_s27  ;;  %s12360_s0 = sadd.s32 4294967295, %s12227_s30   ;;  %s12227_s30 = sphi %s12345_s30, %s17879_s30   ;;  %s12223_s29 = sphi %s12343_s29, %s17881_s29   ;;  %s12219_s28 = sphi %s12341_s28, %s17883_s28   ;;  %s12215_s27 = sphi %s12339_s27, %s17882_s27  }
   0xb   : > { %17240 = sst [smem:[#allocation6_spill]] %s12223_s29  ;;  %s9490_s19 = sadd.s32 4294967294, %s12227_s30  }
   0xc   : > { %s12364_s1 = sadd.s32 1, %s12227_s30   ;;  %s427_s20 = sadd.s32 1, %s12223_s29 }
   0xd   : > { %17241 = sst [smem:[#allocation7_spill]] %s12364_s1  ;;  %s424_s21 = ssub.s32 %s12227_s30, %s12364_s1 }
   0xe   : > { %p437_p0 = scmp.ne.s32.totalorder %s12223_s29, %s12219_s28  ;;  %p425_p1 = scmp.eq.s32.totalorder %s424_s21, 0 }
   0xf   : > { %p438_p2 = scmp.eq.s32.totalorder %s12360_s0, 1  ;;  %p443_p3 = scmp.ne.s32.totalorder %s12219_s28, %s12215_s27 }
  0x10   : > { %p444_p4 = scmp.eq.s32.totalorder %s9490_s19, 1  ;;  %p9493_p7 = scmp.ge.s32.totalorder %s12227_s30, 1 }
  0x11   : > { %s12375_s22 = scalar_select %p425_p1, %s12223_s29, %s427_s20  }
  0x12   : > { %p12377_p5 = por %p438_p2, %p437_p0  ;;  %p12381_p6 = por %p444_p4, %p443_p3 }
  0x13   : > { %17242 = sst [smem:[#allocation8_spill]] %s12375_s22  ;;  %p518_p8 = scmp.lt.s32.totalorder %s12227_s30, 3 }
  0x14   : > { %s17244_s23 = scalar_select %p12381_p6, 1, 0 }
  0x15   : > { %p519_p9 = pnand %p9493_p7, %p518_p8 }
  0x16   : > { %17245 = sst [smem:[#allocation9_spill]] %s17244_s23 }
  0x17   : > { %522 = sbr.rel (%p519_p9) target bundleno = 2885 (0xb45), region = 88 }
  0x1c   : > { %p577_p10 = scmp.lt.s32.totalorder %s12360_s0, 1  ;;  %s17246_s20 = sld [smem:[#allocation116_spill]]  ;;  %vm780_vm0 = vcmask 1045504   ;;  %vm660_vm1 = vcmask 1041408   ;;  %vm16974_vm2 = vcmask 31744   ;;  %vm16973_vm3 = vcmask 64512  }
  0x1d   : > { %s16965_s26 = smov 8   ;;  %s17248_s19 = smov 8   ;;  %vm16972_vm4 = vcmask 97280  }
  0x1e   : > { %s12389_s24 = scalar_select %p577_p10, %s12360_s0, 1 }
  0x1f   : > { %s17260_s3 = sld [smem:[#allocation119_spill]]  ;;  %s17262_s22 = smov 32  }
  0x20   : > { %s10968_s25 = smul.u32 448, %s12389_s24  ;;  %s17319_s5 = sld [smem:[#allocation121_spill]] }
  0x21   : > { %s17320_s4 = sld [smem:[#allocation120_spill]]  ;;  %s17841_s27 = smov 4  }
  0x22   : > { %s12395_s21 = scalar_lea.vmem %s17246_s20, %s10968_s25  ;;  %s16967_s25 = smov 4  }
  0x23   : > { %v12398_v0 = vld [vmem:[%s12395_s21 + $0x10] sm:$0xff]  ;;  %v12401_v1 = vld [vmem:[%s12395_s21 + $0x18] sm:$0xff]  ;;  %v12404_v2 = vld [vmem:[%s12395_s21] sm:$0xff]  ;;  %s17249_s20 = sld [smem:[#allocation118_spill]]  ;;  %s12238_s23 = smov 12  }
  0x24   : > { %v11033_v3 = vpack.i.bf16 %v12401_v1, %v12398_v0  ;;  %v12409_v4 = vld [vmem:[%s12395_s21 + $0x8] sm:$0xff]  ;;  %v9497_v5 = vld [vmem:[%s12395_s21 + $0x38] sm:$0xff]  ;;  %v9498_v6 = vld [vmem:[%s12395_s21 + $0x40] sm:$0xff]  ;;  %v1852_v22 = vrot.slane %v12401_v1, 2  ;;  %v1850_v23 = vrot.slane %v12398_v0, 2  ;;  %v1847_v25 = vrot.slane %v12404_v2, 2 }
  0x25   : > { %v11023_v7 = vpack.i.bf16 %v12409_v4, %v12404_v2  ;;  %v11038_v8 = vpack.i.bf16 %v9498_v6, %v9497_v5  ;;  %v9504_v9 = vld [vmem:[%s12395_s21 + $0x70] sm:$0xff]  ;;  %v9505_v10 = vld [vmem:[%s12395_s21 + $0x78] sm:$0xff]  ;;  %v9499_v11 = vld [vmem:[%s12395_s21 + $0x48] sm:$0xff]  ;;  %v1848_v24 = vrot.slane %v12409_v4, 2  ;;  %s10024_s29 = sshll.u32 %s12360_s0, 5  ;;  %s17845_s0 = sand.u32 1, %s12219_s28  }
  0x26   : > { %11034 = vrot.lane.b32.xlu1 %v11033_v3, %s16967_s25  ;;  %v9500_v12 = vld [vmem:[%s12395_s21 + $0x50] sm:$0xff]  ;;  %v12422_v13 = vpack.i.bf16 %v9505_v10, %v9504_v9  ;;  %v9506_v15 = vld [vmem:[%s12395_s21 + $0x80] sm:$0xff]  ;;  %v9507_v16 = vld [vmem:[%s12395_s21 + $0x88] sm:$0xff]  ;;  %v1853_v2 = vsel %vm780_vm0, %v1850_v23, %v1852_v22 }
  0x27   : > { %11024 = vrot.lane.b32.xlu0 %v11023_v7, %s16967_s25  ;;  %v11043_v14 = vpack.i.bf16 %v9500_v12, %v9499_v11  ;;  %v12429_v17 = vpack.i.bf16 %v9507_v16, %v9506_v15  ;;  %v9501_v18 = vld [vmem:[%s12395_s21 + $0x58] sm:$0xff]  ;;  %v9502_v19 = vld [vmem:[%s12395_s21 + $0x60] sm:$0xff]  ;;  %v12438_v21 = vld [vmem:[%s12395_s21 + $0x28] sm:$0xff] }
  0x28   : > { %v12435_v20 = vld [vmem:[%s12395_s21 + $0x20] sm:$0xff]  ;;  %v11068_v26 = vpack.i.bf16 %v9502_v19, %v9501_v18  ;;  %v12451_v29 = vld [vmem:[%s12395_s21 + $0x30] sm:$0x3]  ;;  %v9503_v30 = vld [vmem:[%s12395_s21 + $0x68] sm:$0x3]  ;;  %v1856_v32 = vrot.slane %v12438_v21, 2 }
  0x29   : > { %v11063_v27 = vpack.i.bf16 %v12438_v21, %v12435_v20  ;;  %v1854_v28 = vrot.slane %v12435_v20, 2  ;;  %v12455_v31 = vld [vmem:[%s12395_s21 + $0x188] sm:$0xff]  ;;  %v1858_v33 = vrot.slane %v12451_v29, 2  ;;  %v12460_v34 = vld [vmem:[%s12395_s21 + $0x190] sm:$0xff]  ;;  %v12464_v36 = vld [vmem:[%s12395_s21 + $0x198] sm:$0xff]  ;;  %v11073_v48 = vpack.i.bf16 %v9503_v30, %v12451_v29 }
  0x2a   : > { %11039 = vrot.lane.b32.xlu1 %v11038_v8, %s16965_s26  ;;  %v661_v35 = vrot.slane %v12455_v31, 6  ;;  %v12467_v37 = vld [vmem:[%s12395_s21 + $0x1a0] sm:$0xff]  ;;  %v662_v39 = vrot.slane %v12460_v34, 6  ;;  %v664_v41 = vrot.slane %v12464_v36, 6  ;;  %v12474_v42 = vld [vmem:[%s12395_s21 + $0x1a8] sm:$0xff]  ;;  %v12477_v43 = vld [vmem:[%s12395_s21 + $0x1b0] sm:$0xff] }
  0x2b   : > { %11029 = vrot.lane.b32.xlu0 %v11038_v8, %s16967_s25  ;;  %v9510_v38 = vld [vmem:[%s12395_s21 + $0xa0] sm:$0x3]  ;;  %v666_v40 = vrot.slane %v12467_v37, 6  ;;  %v9508_v44 = vld [vmem:[%s12395_s21 + $0x90] sm:$0xff]  ;;  %v9509_v45 = vld [vmem:[%s12395_s21 + $0x98] sm:$0xff]  ;;  %v670_v46 = vrot.slane %v12477_v43, 6  ;;  %v1855_v4 = vsel %vm780_vm0, %v1852_v22, %v1854_v28  ;;  %v1857_v1 = vsel %vm780_vm0, %v1854_v28, %v1856_v32 }
  0x2c   : > { %v668_v49 = vrot.slane %v12474_v42, 6  ;;  %v12492_v50 = vsel %vm660_vm1, 0.0, %v661_v35  ;;  %v9511_v51 = vld [vmem:[%s12395_s21 + $0xa8] sm:$0xff]  ;;  %v9512_v52 = vld [vmem:[%s12395_s21 + $0xb0] sm:$0xff]  ;;  %v11088_v54 = vpack.i.bf16 %v9510_v38, %v9503_v30  ;;  %v11083_v55 = vpack.i.bf16 %v9509_v45, %v9508_v44  ;;  %v9518_v57 = vld [vmem:[%s12395_s21 + $0xe0] sm:$0xff] }
  0x2d   : > { %v11098_v56 = vpack.i.bf16 %v9512_v52, %v9511_v51  ;;  %v9519_v58 = vld [vmem:[%s12395_s21 + $0xe8] sm:$0xff]  ;;  %v9513_v59 = vld [vmem:[%s12395_s21 + $0xb8] sm:$0xff]  ;;  %v9514_v60 = vld [vmem:[%s12395_s21 + $0xc0] sm:$0xff]  ;;  %v1859_v22 = vsel %vm780_vm0, %v1856_v32, %v1858_v33  ;;  %v663_v32 = vsel %vm660_vm1, %v661_v35, %v662_v39 }
  0x2e   : > { %11049 = vrot.lane.b32.xlu1 %v12422_v13, %s16965_s26  ;;  %v9520_v61 = vld [vmem:[%s12395_s21 + $0xf0] sm:$0xff]  ;;  %v9521_v62 = vld [vmem:[%s12395_s21 + $0xf8] sm:$0xff]  ;;  %v11118_v63 = vpack.i.bf16 %v9519_v58, %v9518_v57  ;;  %v11113_v3 = vpack.i.bf16 %v9514_v60, %v9513_v59  ;;  %v9515_v5 = vld [vmem:[%s12395_s21 + $0xc8] sm:$0xff] }
  0x2f   : > { %11044 = vrot.lane.b32.xlu0 %v11043_v14, %s16967_s25  ;;  %v9516_v6 = vld [vmem:[%s12395_s21 + $0xd0] sm:$0xff]  ;;  %v11128_v7 = vpack.i.bf16 %v9521_v62, %v9520_v61  ;;  %v9517_v9 = vld [vmem:[%s12395_s21 + $0xd8] sm:$0x3]  ;;  %v9522_v11 = vld [vmem:[%s12395_s21 + $0x100] sm:$0xff]  ;;  %v11238_v62 = vpack.i.bf16 %v12460_v34, %v12455_v31 }
  0x30   : > { %v11138_v8 = vpack.i.bf16 %v9516_v6, %v9515_v5  ;;  %v9524_v10 = vld [vmem:[%s12395_s21 + $0x110] sm:$0x3]  ;;  %v9523_v12 = vld [vmem:[%s12395_s21 + $0x108] sm:$0xff]  ;;  %v9526_v15 = vld [vmem:[%s12395_s21 + $0x120] sm:$0xff]  ;;  %v11253_v6 = vpack.i.bf16 %v12467_v37, %v12464_v36 }
  0x31   : > { %v11158_v16 = vpack.i.bf16 %v9524_v10, %v9517_v9  ;;  %v9532_v19 = vld [vmem:[%s12395_s21 + $0x150] sm:$0xff]  ;;  %v9535_v44 = vld [vmem:[%s12395_s21 + $0x168] sm:$0xff]  ;;  %v9530_v51 = vld [vmem:[%s12395_s21 + $0x140] sm:$0xff] }
  0x32   : > { %11059 = vrot.lane.b32.xlu1 %v12429_v17, %s16965_s26  ;;  %v9528_v30 = vld [vmem:[%s12395_s21 + $0x130] sm:$0xff]  ;;  %v9537_v58 = vld [vmem:[%s12395_s21 + $0x178] sm:$0xff] }
  0x33   : > { %11054 = vrot.lane.b32.xlu0 %v11043_v14, %s16965_s26  ;;  %s17247_s26 = sld [smem:[#allocation117_spill]]  ;;  %v9525_v14 = vld [vmem:[%s12395_s21 + $0x118] sm:$0xff]  ;;  %v9536_v57 = vld [vmem:[%s12395_s21 + $0x170] sm:$0xff] }
  0x34   : > { %v11168_v18 = vpack.i.bf16 %v9526_v15, %v9525_v14  ;;  %v11223_v61 = vpack.i.bf16 %v9537_v58, %v9536_v57 }
  0x36   : > { %11069 = vrot.lane.b32.xlu1 %v11068_v26, %s16967_s25 }
  0x37   : > { %11064 = vrot.lane.b32.xlu0 %v11063_v27, %s16967_s25  ;;  %v9527_v27 = vld [vmem:[%s12395_s21 + $0x128] sm:$0xff] }
  0x39   : > { %v11813_v47 = vld [vmem:[%s17247_s26] sm:$0x3f]  }
  0x3a   : > { %10960 = vmatprep.subr.msk.bf16.mxu0 %vm780_vm0, %v11813_v47  ;;  %10961 = vmatprep.subr.msk.bf16.mxu1 %vm780_vm0, %v11813_v47  ;;  %v12499_v53 = vsel %vm780_vm0, %v11813_v47, 0 }
  0x3b   : > { %11079 = vrot.lane.b32.xlu1 %v11068_v26, %s17248_s19  ;;  %10567 = vmatpush3.bf16.msra.mxu0 %v12499_v53  ;;  %v9533_v26 = vld [vmem:[%s12395_s21 + $0x158] sm:$0xff] }
  0x3c   : > { %11074 = vrot.lane.b32.xlu0 %v11073_v48, %s16967_s25  ;;  %10577 = vmatpush3.bf16.msra.mxu1 %v12499_v53  ;;  %v11188_v45 = vpack.i.bf16 %v9533_v26, %v9532_v19  ;;  %v9529_v48 = vld [vmem:[%s12395_s21 + $0x138] sm:$0xff] }
  0x3d   : > { %10962 = vmatprep.subr.msk.bf16.mxu0 %vm780_vm0, %v11813_v47  ;;  %10963 = vmatprep.subr.msk.bf16.mxu1 %vm780_vm0, %v11813_v47  ;;  %v11183_v47 = vpack.i.bf16 %v9528_v30, %v9527_v27 }
  0x3f   : > { %11089 = vrot.lane.b32.xlu1 %v11088_v54, %s17248_s19  ;;  %v11208_v54 = vpack.i.bf16 %v9530_v51, %v9529_v48 }
  0x40   : > { %11084 = vrot.lane.b32.xlu0 %v11083_v55, %s17248_s19 }
  0x43   : > { %11099 = vrot.lane.b32.xlu1 %v11098_v56, %s16967_s25 }
  0x44   : > { %11094 = vrot.lane.b32.xlu0 %v12422_v13, %s16967_s25  ;;  %v11143_v13 = vpack.i.bf16 %v9517_v9, %v9510_v38  ;;  %v9534_v38 = vld [vmem:[%s12395_s21 + $0x160] sm:$0xff]  ;;  %v11293_v9 = vpack.i.bf16 %v1859_v22, %v1857_v1 }
  0x45   : > { %v11198_v52 = vpack.i.bf16 %v9535_v44, %v9534_v38  ;;  %v12111_v44 = vld [vmem:[%s12395_s21] sm:$0xff] }
  0x47   : > { %11109 = vrot.lane.b32.xlu1 %v11098_v56, %s17248_s19  ;;  %v9538_v56 = vld [vmem:[%s12395_s21 + $0x180] sm:$0x3] }
  0x48   : > { %11104 = vrot.lane.b32.xlu0 %v12429_v17, %s16967_s25  ;;  %v11153_v17 = vpack.i.bf16 %v9523_v12, %v9522_v11 }
  0x4b   : > { %11119 = vrot.lane.b32.xlu1 %v11118_v63, %s17248_s19 }
  0x4c   : > { %11114 = vrot.lane.b32.xlu0 %v11113_v3, %s16967_s25 }
  0x4f   : > { %11129 = vrot.lane.b32.xlu1 %v11128_v7, %s17248_s19 }
  0x50   : > { %11124 = vrot.lane.b32.xlu0 %v11113_v3, %s17248_s19  ;;  %v1851_v3 = vsel %vm780_vm0, %v1848_v24, %v1850_v23  ;;  %v16975_v23 = vmov 0.0  }
  0x53   : > { %11139 = vrot.lane.b32.xlu1 %v11138_v8, %s16967_s25 }
  0x54   : > { %11134 = vrot.lane.b32.xlu0 %v11083_v55, %s16967_s25  ;;  %v9531_v55 = vld [vmem:[%s12395_s21 + $0x148] sm:$0x3] }
  0x55   : > { %v11213_v59 = vpack.i.bf16 %v9531_v55, %v9524_v10  ;;  %v11228_v60 = vpack.i.bf16 %v9538_v56, %v9531_v55  ;;  %v665_v55 = vsel %vm660_vm1, %v662_v39, %v664_v41 }
  0x57   : > { %11149 = vrot.lane.b32.xlu1 %v11138_v8, %s17248_s19 }
  0x58   : > { %11144 = vrot.lane.b32.xlu0 %v11143_v13, %s16967_s25 }
  0x5b   : > { %11159 = vrot.lane.b32.xlu1 %v11158_v16, %s17248_s19 }
  0x5c   : > { %11154 = vrot.lane.b32.xlu0 %v11153_v17, %s17248_s19 }
  0x5f   : > { %11169 = vrot.lane.b32.xlu1 %v11168_v18, %s16967_s25 }
  0x60   : > { %11164 = vrot.lane.b32.xlu0 %v11118_v63, %s16967_s25  ;;  %v1849_v63 = vsel %vm780_vm0, %v1847_v25, %v1848_v24  ;;  %v11268_v24 = vpack.i.bf16 %v1855_v4, %v1853_v2  ;;  %v11278_v25 = vpack.i.bf16 %v12477_v43, %v12474_v42 }
  0x61   : > { %v11258_v5 = vpack.i.bf16 %v1851_v3, %v1849_v63  ;;  %v12114_v3 = vld [vmem:[%s12395_s21 + $0x10] sm:$0xff] }
  0x63   : > { %11179 = vrot.lane.b32.xlu1 %v11168_v18, %s17248_s19 }
  0x64   : > { %11174 = vrot.lane.b32.xlu0 %v11128_v7, %s16967_s25  ;;  %v9545_v7 = vld [vmem:[%s12395_s21 + $0x1b8] sm:$0x3] }
  0x65   : > { %v11283_v0 = vpack.i.bf16 %v9545_v7, %v9538_v56  ;;  %v11298_v8 = vpack.i.bf16 %v16975_v23, %v9545_v7  ;;  %v667_v56 = vsel %vm660_vm1, %v664_v41, %v666_v40 }
  0x67   : > { %11189 = vrot.lane.b32.xlu1 %v11188_v45, %s17248_s19 }
  0x68   : > { %11184 = vrot.lane.b32.xlu0 %v11183_v47, %s16967_s25 }
  0x6b   : > { %11199 = vrot.lane.b32.xlu1 %v11198_v52, %s17248_s19 }
  0x6c   : > { %11194 = vrot.lane.b32.xlu0 %v11183_v47, %s17248_s19 }
  0x6f   : > { %11209 = vrot.lane.b32.xlu1 %v11208_v54, %s16967_s25 }
  0x70   : > { %11204 = vrot.lane.b32.xlu0 %v11153_v17, %s16967_s25 }
  0x73   : > { %11219 = vrot.lane.b32.xlu1 %v11208_v54, %s17248_s19 }
  0x74   : > { %11214 = vrot.lane.b32.xlu0 %v11213_v59, %s16967_s25 }
  0x77   : > { %11229 = vrot.lane.b32.xlu1 %v11228_v60, %s17248_s19 }
  0x78   : > { %11224 = vrot.lane.b32.xlu0 %v11223_v61, %s17248_s19 }
  0x7b   : > { %11239 = vrot.lane.b32.xlu1 %v11238_v62, %s16967_s25 }
  0x7c   : > { %11234 = vrot.lane.b32.xlu0 %v11188_v45, %s16967_s25 }
  0x7f   : > { %11249 = vrot.lane.b32.xlu1 %v11238_v62, %s17248_s19  ;;  %v12113_v62 = vld [vmem:[%s12395_s21 + $0x18] sm:$0xff] }
  0x80   : > { %11244 = vrot.lane.b32.xlu0 %v11198_v52, %s16967_s25 }
  0x83   : > { %11259 = vrot.lane.b32.xlu1 %v11258_v5, %s17248_s19 }
  0x84   : > { %11254 = vrot.lane.b32.xlu0 %v11253_v6, %s16967_s25 }
  0x87   : > { %11269 = vrot.lane.b32.xlu1 %v11268_v24, %s17248_s19 }
  0x88   : > { %11264 = vrot.lane.b32.xlu0 %v11253_v6, %s17248_s19 }
  0x8b   : > { %11279 = vrot.lane.b32.xlu1 %v11278_v25, %s16967_s25 }
  0x8c   : > { %11274 = vrot.lane.b32.xlu0 %v11223_v61, %s16967_s25 }
  0x8f   : > { %11289 = vrot.lane.b32.xlu1 %v11278_v25, %s17248_s19 }
  0x90   : > { %11284 = vrot.lane.b32.xlu0 %v11283_v0, %s16967_s25 }
  0x93   : > { %11299 = vrot.lane.b32.xlu1 %v11298_v8, %s17248_s19 }
  0x94   : > { %11294 = vrot.lane.b32.xlu0 %v11293_v9, %s17248_s19  ;;  %v669_v9 = vsel %vm660_vm1, %v666_v40, %v668_v49 }
  0x98   : > { %v11035_v20 = vpop.permute.xlu1 %11034 }
  0x99   : > { %v11025_v28 = vpop.permute.xlu0 %11024  ;;  %v11037_v48 = vunpack.i.h.bf16 %v11035_v20  ;;  %v11036_v51 = vunpack.i.l.bf16 %v11035_v20  ;;  %v671_v20 = vsel %vm660_vm1, %v668_v49, %v670_v46 }
  0x9a   : > { %v11027_v21 = vunpack.i.h.bf16 %v11025_v28  ;;  %v11026_v29 = vunpack.i.l.bf16 %v11025_v28 }
  0x9b   : > { %v740_v39 = vsel %vm16974_vm2, %v667_v56, %v11037_v48  ;;  %v739_v36 = vsel %vm16974_vm2, %v665_v55, %v11036_v51 }
  0x9c   : > { %v11040_v33 = vpop.permute.xlu1 %11039  ;;  %v737_v15 = vsel %vm16974_vm2, %v12492_v50, %v11026_v29  ;;  %v738_v16 = vsel %vm16974_vm2, %v663_v32, %v11027_v21  ;;  %v12112_v50 = vld [vmem:[%s12395_s21 + $0x8] sm:$0xff]  ;;  %v12672_v21 = vld [vmem:[%s17247_s26] sm:$0x3f]   ;;  %s17076_s26 = smov 64  }
  0x9d   : > { %v11042_v10 = vunpack.i.h.bf16 %v11040_v33  ;;  %v11041_v11 = vunpack.i.l.bf16 %v11040_v33  ;;  %v11030_v12 = vpop.permute.xlu0 %11029 }
  0x9e   : > { %v11032_v13 = vunpack.i.h.bf16 %v11030_v12  ;;  %v11031_v14 = vunpack.i.l.bf16 %v11030_v12 }
  0x9f   : > { %v745_v17 = vsel %vm16973_vm3, %v737_v15, %v11041_v11  ;;  %v746_v18 = vsel %vm16973_vm3, %v738_v16, %v11042_v10 }
  0xa0   : > { %v11050_v31 = vpop.permute.xlu1 %11049  ;;  %v752_v19 = vpack.c.bf16 %v746_v18, %v745_v17  ;;  %v918_v45 = vsel %vm16974_vm2, %v12111_v44, %v11031_v14  ;;  %v919_v47 = vsel %vm16974_vm2, %v12112_v50, %v11032_v13  ;;  %v12118_v44 = vld [vmem:[%s12395_s21 + $0x20] sm:$0xff] }
  0xa1   : > { %v11052_v35 = vunpack.i.h.bf16 %v11050_v31  ;;  %v11051_v26 = vunpack.i.l.bf16 %v11050_v31  ;;  %v11045_v27 = vpop.permute.xlu0 %11044  ;;  %v12116_v31 = vld [vmem:[%s12395_s21 + $0x30] sm:$0x3] }
  0xa2   : > { %v11047_v30 = vunpack.i.h.bf16 %v11045_v27  ;;  %v11046_v38 = vunpack.i.l.bf16 %v11045_v27  ;;  %10568 = vmatprep.mubr.msk.bf16.mxu0 %vm16972_vm4, %v752_v19 }
  0xa3   : > { %v925_v52 = vsel %vm16973_vm3, %v918_v45, %v11051_v26  ;;  %v926_v54 = vsel %vm16973_vm3, %v919_v47, %v11052_v35 }
  0xa4   : > { %v11060_v57 = vpop.permute.xlu1 %11059  ;;  %v932_v58 = vpack.c.bf16 %v926_v54, %v925_v52  ;;  %v921_v63 = vsel %vm16974_vm2, %v12113_v62, %v11047_v30  ;;  %v920_v5 = vsel %vm16974_vm2, %v12114_v3, %v11046_v38  ;;  %v12117_v30 = vld [vmem:[%s12395_s21 + $0x28] sm:$0xff]  ;;  %v12119_v3 = vld [vmem:[%s12395_s21 + $0x40] sm:$0xff] }
  0xa5   : > { %v11062_v59 = vunpack.i.h.bf16 %v11060_v57  ;;  %v11061_v60 = vunpack.i.l.bf16 %v11060_v57  ;;  %v11055_v61 = vpop.permute.xlu0 %11054 }
  0xa6   : > { %v11057_v34 = vunpack.i.h.bf16 %v11055_v61  ;;  %v11056_v6 = vunpack.i.l.bf16 %v11055_v61  ;;  %10578 = vmatprep.mubr.msk.bf16.mxu1 %vm16972_vm4, %v932_v58 }
  0xa7   : > { %v927_v41 = vsel %vm16973_vm3, %v920_v5, %v11061_v60  ;;  %v928_v2 = vsel %vm16973_vm3, %v921_v63, %v11062_v59 }
  0xa8   : > { %v748_v4 = vsel %vm16973_vm3, %v740_v39, %v11057_v34  ;;  %v747_v24 = vsel %vm16973_vm3, %v739_v36, %v11056_v6  ;;  %v11070_v25 = vpop.permute.xlu1 %11069  ;;  %v933_v7 = vpack.c.bf16 %v928_v2, %v927_v41  ;;  %v12120_v34 = vld [vmem:[%s12395_s21 + $0x38] sm:$0xff] }
  0xa9   : > { %v11065_v0 = vpop.permute.xlu0 %11064  ;;  %v753_v1 = vpack.c.bf16 %v748_v4, %v747_v24  ;;  %v11072_v10 = vunpack.i.h.bf16 %v11070_v25  ;;  %v11071_v11 = vunpack.i.l.bf16 %v11070_v25 }
  0xaa   : > { %v11067_v22 = vunpack.i.h.bf16 %v11065_v0  ;;  %v11066_v8 = vunpack.i.l.bf16 %v11065_v0  ;;  %10579 = vmatmul.mubr.msk.bf16.vlgmr.msra.gmra.mxu1 %vm16972_vm4, %v933_v7  ;;  %v12121_v7 = vld [vmem:[%s12395_s21 + $0x78] sm:$0xff] }
  0xab   : > { %10569 = vmatmul.mubr.msk.bf16.vlgmr.msra.gmra.mxu0 %vm16972_vm4, %v753_v1  ;;  %10597 = vmatpush3.bf16.msra.mxu1 %v12499_v53  ;;  %v923_v38 = vsel %vm16974_vm2, %v12117_v30, %v11072_v10  ;;  %v922_v45 = vsel %vm16974_vm2, %v12118_v44, %v11071_v11  ;;  %v12122_v1 = vld [vmem:[%s12395_s21 + $0x70] sm:$0xff]  ;;  %v12123_v10 = vld [vmem:[%s12395_s21 + $0x88] sm:$0xff] }
  0xac   : > { %10587 = vmatpush3.bf16.msra.mxu0 %v12499_v53  ;;  %10965 = vmatprep.subr.msk.bf16.mxu1 %vm780_vm0, %v12672_v21  ;;  %v742_v49 = vsel %vm16974_vm2, %v671_v20, %v11067_v22  ;;  %v741_v29 = vsel %vm16974_vm2, %v669_v9, %v11066_v8 }
  0xad   : > { %v11080_v28 = vpop.permute.xlu1 %11079  ;;  %10964 = vmatprep.subr.msk.bf16.mxu0 %vm780_vm0, %v12672_v21 }
  0xae   : > { %v11082_v37 = vunpack.i.h.bf16 %v11080_v28  ;;  %v11081_v40 = vunpack.i.l.bf16 %v11080_v28  ;;  %v11075_v42 = vpop.permute.xlu0 %11074 }
  0xaf   : > { %v11077_v32 = vunpack.i.h.bf16 %v11075_v42  ;;  %v11076_v33 = vunpack.i.l.bf16 %v11075_v42 }
  0xb0   : > { %v749_v12 = vsel %vm16973_vm3, %v741_v29, %v11081_v40  ;;  %v750_v13 = vsel %vm16973_vm3, %v742_v49, %v11082_v37 }
  0xb1   : > { %v11090_v14 = vpop.permute.xlu1 %11089  ;;  %v754_v15 = vpack.c.bf16 %v750_v13, %v749_v12  ;;  %v924_v19 = vsel %vm16974_vm2, %v12116_v31, %v11077_v32  ;;  %v743_v35 = vsel %vm16974_vm2, %v670_v46, %v11076_v33  ;;  %v12124_v12 = vld [vmem:[%s12395_s21 + $0x80] sm:$0xff] }
  0xb2   : > { %v11092_v16 = vunpack.i.h.bf16 %v11090_v14  ;;  %v11091_v17 = vunpack.i.l.bf16 %v11090_v14  ;;  %v11085_v18 = vpop.permute.xlu0 %11084 }
  0xb3   : > { %v11087_v26 = vunpack.i.h.bf16 %v11085_v18  ;;  %v11086_v27 = vunpack.i.l.bf16 %v11085_v18  ;;  %10572 = vmatprep.mubr.msk.bf16.mxu0 %vm16972_vm4, %v754_v15  ;;  %v12126_v18 = vld [vmem:[%s12395_s21 + $0x48] sm:$0xff] }
  0xb4   : > { %v751_v50 = vsel %vm16973_vm3, %v743_v35, %v11091_v17  ;;  %v931_v47 = vsel %vm16973_vm3, %v924_v19, %v11092_v16  ;;  %v12125_v16 = vld [vmem:[%s12395_s21 + $0x50] sm:$0xff] }
  0xb5   : > { %v930_v48 = vsel %vm16973_vm3, %v923_v38, %v11087_v26  ;;  %v929_v43 = vsel %vm16973_vm3, %v922_v45, %v11086_v27  ;;  %v11100_v51 = vpop.permute.xlu1 %11099  ;;  %v755_v46 = vpack.c.bf16 %v751_v50, %v751_v50  ;;  %v935_v52 = vpack.c.bf16 %v931_v47, %v931_v47 }
  0xb6   : > { %v11095_v54 = vpop.permute.xlu0 %11094  ;;  %v934_v55 = vpack.c.bf16 %v930_v48, %v929_v43  ;;  %v11102_v62 = vunpack.i.h.bf16 %v11100_v51  ;;  %v11101_v63 = vunpack.i.l.bf16 %v11100_v51 }
  0xb7   : > { %v11097_v56 = vunpack.i.h.bf16 %v11095_v54  ;;  %v11096_v57 = vunpack.i.l.bf16 %v11095_v54  ;;  %10573 = vmatmul.mubr.msk.bf16.gmra.mxu0 %vm16972_vm4, %v755_v46 }
  0xb8   : > { %10582 = vmatprep.mubr.msk.bf16.mxu1 %vm16972_vm4, %v934_v55  ;;  %v1247_v0 = vsel %vm16974_vm2, %v12121_v7, %v11102_v62  ;;  %v1246_v22 = vsel %vm16974_vm2, %v12122_v1, %v11101_v63  ;;  %v12128_v55 = vld [vmem:[%s12395_s21 + $0x58] sm:$0xff]  ;;  %v12132_v7 = vld [vmem:[%s12395_s21 + $0x90] sm:$0xff] }
  0xb9   : > { %10583 = vmatmul.mubr.msk.bf16.gmra.mxu1 %vm16972_vm4, %v935_v52  ;;  %v11110_v58 = vpop.permute.xlu1 %11109  ;;  %v1083_v5 = vsel %vm16974_vm2, %v12119_v3, %v11097_v56  ;;  %v1082_v6 = vsel %vm16974_vm2, %v12120_v34, %v11096_v57  ;;  %v12127_v52 = vld [vmem:[%s12395_s21 + $0x60] sm:$0xff] }
  0xba   : > { %v11112_v59 = vunpack.i.h.bf16 %v11110_v58  ;;  %v11111_v60 = vunpack.i.l.bf16 %v11110_v58  ;;  %v11105_v61 = vpop.permute.xlu0 %11104 }
  0xbb   : > { %v11107_v20 = vunpack.i.h.bf16 %v11105_v61  ;;  %v11106_v28 = vunpack.i.l.bf16 %v11105_v61 }
  0xbc   : > { %v1089_v39 = vsel %vm16973_vm3, %v1082_v6, %v11111_v60  ;;  %v1090_v36 = vsel %vm16973_vm3, %v1083_v5, %v11112_v59  ;;  %v12129_v6 = vld [vmem:[%s12395_s21 + $0xa0] sm:$0x3] }
  0xbd   : > { %v11120_v41 = vpop.permute.xlu1 %11119  ;;  %v1096_v2 = vpack.c.bf16 %v1090_v36, %v1089_v39  ;;  %v1085_v17 = vsel %vm16974_vm2, %v12125_v16, %v11107_v20  ;;  %v1084_v31 = vsel %vm16974_vm2, %v12126_v18, %v11106_v28  ;;  %v12130_v36 = vld [vmem:[%s12395_s21 + $0x68] sm:$0x3] }
  0xbe   : > { %v11122_v4 = vunpack.i.h.bf16 %v11120_v41  ;;  %v11121_v24 = vunpack.i.l.bf16 %v11120_v41  ;;  %v11115_v25 = vpop.permute.xlu0 %11114  ;;  %v12134_v16 = vld [vmem:[%s12395_s21 + $0xa8] sm:$0xff] }
  0xbf   : > { %v11117_v8 = vunpack.i.h.bf16 %v11115_v25  ;;  %v11116_v9 = vunpack.i.l.bf16 %v11115_v25  ;;  %10588 = vmatprep.mubr.msk.bf16.mxu0 %vm16972_vm4, %v1096_v2 }
  0xc0   : > { %v1253_v37 = vsel %vm16973_vm3, %v1246_v22, %v11121_v24  ;;  %v1254_v40 = vsel %vm16973_vm3, %v1247_v0, %v11122_v4  ;;  %v12131_v24 = vld [vmem:[%s12395_s21 + $0x98] sm:$0xff] }
  0xc1   : > { %v11130_v42 = vpop.permute.xlu1 %11129  ;;  %v1260_v49 = vpack.c.bf16 %v1254_v40, %v1253_v37  ;;  %v1249_v11 = vsel %vm16974_vm2, %v12123_v10, %v11117_v8  ;;  %v1248_v13 = vsel %vm16974_vm2, %v12124_v12, %v11116_v9 }
  0xc2   : > { %v11132_v29 = vunpack.i.h.bf16 %v11130_v42  ;;  %v11131_v32 = vunpack.i.l.bf16 %v11130_v42  ;;  %v11125_v33 = vpop.permute.xlu0 %11124 }
  0xc3   : > { %v11127_v14 = vunpack.i.h.bf16 %v11125_v33  ;;  %v11126_v15 = vunpack.i.l.bf16 %v11125_v33  ;;  %10598 = vmatprep.mubr.msk.bf16.mxu1 %vm16972_vm4, %v1260_v49 }
  0xc4   : > { %v1255_v19 = vsel %vm16973_vm3, %v1248_v13, %v11131_v32  ;;  %v1256_v35 = vsel %vm16973_vm3, %v1249_v11, %v11132_v29 }
  0xc5   : > { %v1261_v26 = vpack.c.bf16 %v1256_v35, %v1255_v19  ;;  %v1091_v27 = vsel %vm16973_vm3, %v1084_v31, %v11126_v15  ;;  %v1092_v30 = vsel %vm16973_vm3, %v1085_v17, %v11127_v14  ;;  %v11140_v38 = vpop.permute.xlu1 %11139  ;;  %v12133_v14 = vld [vmem:[%s12395_s21 + $0xb0] sm:$0xff] }
  0xc6   : > { %v1097_v44 = vpack.c.bf16 %v1092_v30, %v1091_v27  ;;  %v11135_v45 = vpop.permute.xlu0 %11134  ;;  %v11142_v59 = vunpack.i.h.bf16 %v11140_v38  ;;  %v11141_v60 = vunpack.i.l.bf16 %v11140_v38  ;;  %v12135_v38 = vld [vmem:[%s12395_s21 + $0xe8] sm:$0xff] }
  0xc7   : > { %v11137_v50 = vunpack.i.h.bf16 %v11135_v45  ;;  %v11136_v47 = vunpack.i.l.bf16 %v11135_v45  ;;  %10599 = vmatmul.mubr.msk.bf16.vlgmr.msra.gmra.mxu1 %vm16972_vm4, %v1261_v26  ;;  %v12136_v45 = vld [vmem:[%s12395_s21 + $0xe0] sm:$0xff] }
  0xc8   : > { %10589 = vmatmul.mubr.msk.bf16.vlgmr.msra.gmra.mxu0 %vm16972_vm4, %v1097_v44  ;;  %10617 = vmatpush3.bf16.msra.mxu1 %v12499_v53  ;;  %v1251_v25 = vsel %vm16974_vm2, %v12131_v24, %v11142_v59  ;;  %v1250_v0 = vsel %vm16974_vm2, %v12132_v7, %v11141_v60  ;;  %v12137_v59 = vld [vmem:[%s12395_s21 + $0xf8] sm:$0xff] }
  0xc9   : > { %v11150_v48 = vpop.permute.xlu1 %11149  ;;  %10607 = vmatpush3.bf16.msra.mxu0 %v12499_v53  ;;  %10967 = vmatprep.subr.msk.bf16.mxu1 %vm780_vm0, %v12672_v21  ;;  %v1087_v54 = vsel %vm16974_vm2, %v12127_v52, %v11137_v50  ;;  %v1086_v56 = vsel %vm16974_vm2, %v12128_v55, %v11136_v47 }
  0xca   : > { %v11152_v43 = vunpack.i.h.bf16 %v11150_v48  ;;  %v11151_v51 = vunpack.i.l.bf16 %v11150_v48  ;;  %v11145_v46 = vpop.permute.xlu0 %11144  ;;  %10966 = vmatprep.subr.msk.bf16.mxu0 %vm780_vm0, %v12672_v21 }
  0xcb   : > { %v11147_v57 = vunpack.i.h.bf16 %v11145_v46  ;;  %v11146_v58 = vunpack.i.l.bf16 %v11145_v46 }
  0xcc   : > { %v1093_v61 = vsel %vm16973_vm3, %v1086_v56, %v11151_v51  ;;  %v1094_v62 = vsel %vm16973_vm3, %v1087_v54, %v11152_v43 }
  0xcd   : > { %v11160_v63 = vpop.permute.xlu1 %11159  ;;  %v1098_v21 = vpack.c.bf16 %v1094_v62, %v1093_v61  ;;  %v1252_v39 = vsel %vm16974_vm2, %v12129_v6, %v11147_v57  ;;  %v1088_v41 = vsel %vm16974_vm2, %v12130_v36, %v11146_v58  ;;  %v12138_v61 = vld [vmem:[%s12395_s21 + $0xf0] sm:$0xff] }
  0xce   : > { %v11162_v3 = vunpack.i.h.bf16 %v11160_v63  ;;  %v11161_v5 = vunpack.i.l.bf16 %v11160_v63  ;;  %v11155_v34 = vpop.permute.xlu0 %11154 }
  0xcf   : > { %v11157_v2 = vunpack.i.h.bf16 %v11155_v34  ;;  %v11156_v4 = vunpack.i.l.bf16 %v11155_v34  ;;  %10592 = vmatprep.mubr.msk.bf16.mxu0 %vm16972_vm4, %v1098_v21  ;;  %v12140_v34 = vld [vmem:[%s12395_s21 + $0xb8] sm:$0xff] }
  0xd0   : > { %v1095_v1 = vsel %vm16973_vm3, %v1088_v41, %v11161_v5  ;;  %v1259_v22 = vsel %vm16973_vm3, %v1252_v39, %v11162_v3  ;;  %v12139_v3 = vld [vmem:[%s12395_s21 + $0xc0] sm:$0xff] }
  0xd1   : > { %v1258_v8 = vsel %vm16973_vm3, %v1251_v25, %v11157_v2  ;;  %v1257_v9 = vsel %vm16973_vm3, %v1250_v0, %v11156_v4  ;;  %v11170_v20 = vpop.permute.xlu1 %11169  ;;  %v1099_v28 = vpack.c.bf16 %v1095_v1, %v1095_v1  ;;  %v1263_v37 = vpack.c.bf16 %v1259_v22, %v1259_v22 }
  0xd2   : > { %v11165_v40 = vpop.permute.xlu0 %11164  ;;  %v1262_v42 = vpack.c.bf16 %v1258_v8, %v1257_v9  ;;  %v11172_v12 = vunpack.i.h.bf16 %v11170_v20  ;;  %v11171_v13 = vunpack.i.l.bf16 %v11170_v20 }
  0xd3   : > { %v11167_v49 = vunpack.i.h.bf16 %v11165_v40  ;;  %v11166_v29 = vunpack.i.l.bf16 %v11165_v40  ;;  %10593 = vmatmul.mubr.msk.bf16.gmra.mxu0 %vm16972_vm4, %v1099_v28  ;;  %v12141_v28 = vld [vmem:[%s12395_s21 + $0xd0] sm:$0xff]  ;;  %v12142_v40 = vld [vmem:[%s12395_s21 + $0xc8] sm:$0xff] }
  0xd4   : > { %10602 = vmatprep.mubr.msk.bf16.mxu1 %vm16972_vm4, %v1262_v42  ;;  %v1575_v44 = vsel %vm16974_vm2, %v12135_v38, %v11172_v12  ;;  %v1574_v50 = vsel %vm16974_vm2, %v12136_v45, %v11171_v13 }
  0xd5   : > { %10603 = vmatmul.mubr.msk.bf16.gmra.mxu1 %vm16972_vm4, %v1263_v37  ;;  %v11180_v32 = vpop.permute.xlu1 %11179  ;;  %v1411_v15 = vsel %vm16974_vm2, %v12133_v14, %v11167_v49  ;;  %v1410_v17 = vsel %vm16974_vm2, %v12134_v16, %v11166_v29  ;;  %v12143_v16 = vld [vmem:[%s12395_s21 + $0x110] sm:$0x3] }
  0xd6   : > { %v11182_v33 = vunpack.i.h.bf16 %v11180_v32  ;;  %v11181_v10 = vunpack.i.l.bf16 %v11180_v32  ;;  %v11175_v11 = vpop.permute.xlu0 %11174 }
  0xd7   : > { %v11177_v43 = vunpack.i.h.bf16 %v11175_v11  ;;  %v11176_v51 = vunpack.i.l.bf16 %v11175_v11 }
  0xd8   : > { %v1417_v18 = vsel %vm16973_vm3, %v1410_v17, %v11181_v10  ;;  %v1418_v31 = vsel %vm16973_vm3, %v1411_v15, %v11182_v33 }
  0xd9   : > { %v11190_v19 = vpop.permute.xlu1 %11189  ;;  %v1424_v35 = vpack.c.bf16 %v1418_v31, %v1417_v18  ;;  %v1413_v5 = vsel %vm16974_vm2, %v12139_v3, %v11177_v43  ;;  %v1412_v6 = vsel %vm16974_vm2, %v12140_v34, %v11176_v51  ;;  %v12144_v18 = vld [vmem:[%s12395_s21 + $0xd8] sm:$0x3] }
  0xda   : > { %v11192_v26 = vunpack.i.h.bf16 %v11190_v19  ;;  %v11191_v27 = vunpack.i.l.bf16 %v11190_v19  ;;  %v11185_v30 = vpop.permute.xlu0 %11184 }
  0xdb   : > { %v11187_v47 = vunpack.i.h.bf16 %v11185_v30  ;;  %v11186_v48 = vunpack.i.l.bf16 %v11185_v30  ;;  %10608 = vmatprep.mubr.msk.bf16.mxu0 %vm16972_vm4, %v1424_v35  ;;  %v12146_v30 = vld [vmem:[%s12395_s21 + $0x100] sm:$0xff] }
  0xdc   : > { %v1581_v46 = vsel %vm16973_vm3, %v1574_v50, %v11191_v27  ;;  %v1582_v52 = vsel %vm16973_vm3, %v1575_v44, %v11192_v26  ;;  %v12145_v26 = vld [vmem:[%s12395_s21 + $0x108] sm:$0xff] }
  0xdd   : > { %v11200_v54 = vpop.permute.xlu1 %11199  ;;  %v1588_v55 = vpack.c.bf16 %v1582_v52, %v1581_v46  ;;  %v1577_v60 = vsel %vm16974_vm2, %v12137_v59, %v11187_v47  ;;  %v1576_v62 = vsel %vm16974_vm2, %v12138_v61, %v11186_v48 }
  0xde   : > { %v11202_v56 = vunpack.i.h.bf16 %v11200_v54  ;;  %v11201_v57 = vunpack.i.l.bf16 %v11200_v54  ;;  %v11195_v58 = vpop.permute.xlu0 %11194 }
  0xdf   : > { %v11197_v63 = vunpack.i.h.bf16 %v11195_v58  ;;  %v11196_v21 = vunpack.i.l.bf16 %v11195_v58  ;;  %10618 = vmatprep.mubr.msk.bf16.mxu1 %vm16972_vm4, %v1588_v55 }
  0xe0   : > { %v1583_v39 = vsel %vm16973_vm3, %v1576_v62, %v11201_v57  ;;  %v1584_v36 = vsel %vm16973_vm3, %v1577_v60, %v11202_v56  ;;  %v12147_v62 = vld [vmem:[%s12395_s21 + $0x120] sm:$0xff] }
  0xe1   : > { %v1589_v41 = vpack.c.bf16 %v1584_v36, %v1583_v39  ;;  %v1419_v2 = vsel %vm16973_vm3, %v1412_v6, %v11196_v21  ;;  %v1420_v4 = vsel %vm16973_vm3, %v1413_v5, %v11197_v63  ;;  %v11210_v24 = vpop.permute.xlu1 %11209  ;;  %v12148_v21 = vld [vmem:[%s12395_s21 + $0x118] sm:$0xff] }
  0xe2   : > { %v1425_v25 = vpack.c.bf16 %v1420_v4, %v1419_v2  ;;  %v11205_v7 = vpop.permute.xlu0 %11204  ;;  %v11212_v32 = vunpack.i.h.bf16 %v11210_v24  ;;  %v11211_v33 = vunpack.i.l.bf16 %v11210_v24  ;;  %v12149_v4 = vld [vmem:[%s12395_s21 + $0x158] sm:$0xff] }
  0xe3   : > { %v11207_v0 = vunpack.i.h.bf16 %v11205_v7  ;;  %v11206_v1 = vunpack.i.l.bf16 %v11205_v7  ;;  %10619 = vmatmul.mubr.msk.bf16.vlgmr.msra.gmra.mxu1 %vm16972_vm4, %v1589_v41 }
  0xe4   : > { %10609 = vmatmul.mubr.msk.bf16.vlgmr.msra.gmra.mxu0 %vm16972_vm4, %v1425_v25  ;;  %10637 = vmatpush3.bf16.msra.mxu1 %v12499_v53  ;;  %v1579_v27 = vsel %vm16974_vm2, %v12145_v26, %v11212_v32  ;;  %v1578_v38 = vsel %vm16974_vm2, %v12146_v30, %v11211_v33  ;;  %v12150_v25 = vld [vmem:[%s12395_s21 + $0x150] sm:$0xff]  ;;  %v12152_v33 = vld [vmem:[%s12395_s21 + $0x160] sm:$0xff] }
  0xe5   : > { %v11220_v22 = vpop.permute.xlu1 %11219  ;;  %10627 = vmatpush3.bf16.msra.mxu0 %v12499_v53  ;;  %v1415_v37 = vsel %vm16974_vm2, %v12141_v28, %v11207_v0  ;;  %v1414_v42 = vsel %vm16974_vm2, %v12142_v40, %v11206_v1 }
  0xe6   : > { %v11222_v8 = vunpack.i.h.bf16 %v11220_v22  ;;  %v11221_v9 = vunpack.i.l.bf16 %v11220_v22  ;;  %v11215_v20 = vpop.permute.xlu0 %11214 }
  0xe7   : > { %v11217_v49 = vunpack.i.h.bf16 %v11215_v20  ;;  %v11216_v29 = vunpack.i.l.bf16 %v11215_v20 }
  0xe8   : > { %v1421_v10 = vsel %vm16973_vm3, %v1414_v42, %v11221_v9  ;;  %v1422_v53 = vsel %vm16973_vm3, %v1415_v37, %v11222_v8 }
  0xe9   : > { %v11230_v11 = vpop.permute.xlu1 %11229  ;;  %v1426_v12 = vpack.c.bf16 %v1422_v53, %v1421_v10  ;;  %v1580_v17 = vsel %vm16974_vm2, %v12143_v16, %v11217_v49  ;;  %v1416_v31 = vsel %vm16974_vm2, %v12144_v18, %v11216_v29  ;;  %v12151_v29 = vld [vmem:[%s12395_s21 + $0x168] sm:$0xff] }
  0xea   : > { %v11232_v13 = vunpack.i.h.bf16 %v11230_v11  ;;  %v11231_v14 = vunpack.i.l.bf16 %v11230_v11  ;;  %v11225_v15 = vpop.permute.xlu0 %11224 }
  0xeb   : > { %v11227_v19 = vunpack.i.h.bf16 %v11225_v15  ;;  %v11226_v35 = vunpack.i.l.bf16 %v11225_v15  ;;  %10612 = vmatprep.mubr.msk.bf16.mxu0 %vm16972_vm4, %v1426_v12  ;;  %v12153_v12 = vld [vmem:[%s12395_s21 + $0x130] sm:$0xff] }
  0xec   : > { %v1423_v44 = vsel %vm16973_vm3, %v1416_v31, %v11231_v14  ;;  %v1587_v45 = vsel %vm16973_vm3, %v1580_v17, %v11232_v13  ;;  %v12154_v14 = vld [vmem:[%s12395_s21 + $0x128] sm:$0xff] }
  0xed   : > { %v1586_v50 = vsel %vm16973_vm3, %v1579_v27, %v11227_v19  ;;  %v1585_v47 = vsel %vm16973_vm3, %v1578_v38, %v11226_v35  ;;  %v11240_v48 = vpop.permute.xlu1 %11239  ;;  %v1427_v43 = vpack.c.bf16 %v1423_v44, %v1423_v44  ;;  %v1591_v51 = vpack.c.bf16 %v1587_v45, %v1587_v45  ;;  %v12155_v44 = vld [vmem:[%s12395_s21 + $0x140] sm:$0xff] }
  0xee   : > { %v11235_v46 = vpop.permute.xlu0 %11234  ;;  %v1590_v52 = vpack.c.bf16 %v1586_v50, %v1585_v47  ;;  %v11242_v60 = vunpack.i.h.bf16 %v11240_v48  ;;  %v11241_v61 = vunpack.i.l.bf16 %v11240_v48  ;;  %v12156_v50 = vld [vmem:[%s12395_s21 + $0x138] sm:$0xff] }
  0xef   : > { %v11237_v54 = vunpack.i.h.bf16 %v11235_v46  ;;  %v11236_v55 = vunpack.i.l.bf16 %v11235_v46  ;;  %10613 = vmatmul.mubr.msk.bf16.gmra.mxu0 %vm16972_vm4, %v1427_v43 }
  0xf0   : > { %10622 = vmatprep.mubr.msk.bf16.mxu1 %vm16972_vm4, %v1590_v52  ;;  %v1904_v24 = vsel %vm16974_vm2, %v12149_v4, %v11242_v60  ;;  %v1903_v7 = vsel %vm16974_vm2, %v12150_v25, %v11241_v61  ;;  %v12158_v61 = vld [vmem:[%s12395_s21 + $0x148] sm:$0x3] }
  0xf1   : > { %10623 = vmatmul.mubr.msk.bf16.gmra.mxu1 %vm16972_vm4, %v1591_v51  ;;  %v11250_v56 = vpop.permute.xlu1 %11249  ;;  %v1733_v63 = vsel %vm16974_vm2, %v12147_v62, %v11237_v54  ;;  %v1732_v3 = vsel %vm16974_vm2, %v12148_v21, %v11236_v55 }
  0xf2   : > { %v11252_v57 = vunpack.i.h.bf16 %v11250_v56  ;;  %v11251_v58 = vunpack.i.l.bf16 %v11250_v56  ;;  %v11245_v59 = vpop.permute.xlu0 %11244 }
  0xf3   : > { %v11247_v22 = vunpack.i.h.bf16 %v11245_v59  ;;  %v11246_v8 = vunpack.i.l.bf16 %v11245_v59  ;;  %v12157_v59 = vld [vmem:[%s12395_s21 + $0x180] sm:$0x3] }
  0xf4   : > { %v1739_v5 = vsel %vm16973_vm3, %v1732_v3, %v11251_v58  ;;  %v1740_v34 = vsel %vm16973_vm3, %v1733_v63, %v11252_v57  ;;  %v12159_v3 = vld [vmem:[%s12395_s21 + $0x178] sm:$0xff] }
  0xf5   : > { %v11260_v6 = vpop.permute.xlu1 %11259  ;;  %v1746_v39 = vpack.c.bf16 %v1740_v34, %v1739_v5  ;;  %v1735_v13 = vsel %vm16974_vm2, %v12153_v12, %v11247_v22  ;;  %v1734_v15 = vsel %vm16974_vm2, %v12154_v14, %v11246_v8  ;;  %v12160_v34 = vld [vmem:[%s12395_s21 + $0x170] sm:$0xff]  ;;  %s16969_s21 = smov 32  }
  0xf6   : > { %v11255_v36 = vpop.permute.xlu0 %11254  ;;  %v11262_v41 = vunpack.i.h.bf16 %v11260_v6  ;;  %v11261_v2 = vunpack.i.l.bf16 %v11260_v6 }
  0xf7   : > { %v11257_v0 = vunpack.i.h.bf16 %v11255_v36  ;;  %v11256_v1 = vunpack.i.l.bf16 %v11255_v36  ;;  %10628 = vmatprep.mubr.msk.bf16.mxu0 %vm16972_vm4, %v1746_v39 }
  0xf8   : > { %v1911_v9 = vsel %vm16973_vm3, %v1904_v24, %v11262_v41  ;;  %v1910_v20 = vsel %vm16973_vm3, %v1903_v7, %v11261_v2 }
  0xf9   : > { %v11270_v28 = vpop.permute.xlu1 %11269  ;;  %v1917_v37 = vpack.c.bf16 %v1911_v9, %v1910_v20  ;;  %v1906_v32 = vsel %vm16974_vm2, %v12151_v29, %v11257_v0  ;;  %v1905_v10 = vsel %vm16974_vm2, %v12152_v33, %v11256_v1  ;;  %v12860_v9 = vld [vmem:[%s17249_s20] ss:$0 sm:$0xff]  ;;  %s12241_s20 = smov 24  }
  0xfa   : > { %v11265_v40 = vpop.permute.xlu0 %11264  ;;  %v11272_v42 = vunpack.i.h.bf16 %v11270_v28  ;;  %v11271_v49 = vunpack.i.l.bf16 %v11270_v28 }
  0xfb   : > { %v11267_v53 = vunpack.i.h.bf16 %v11265_v40  ;;  %v11266_v11 = vunpack.i.l.bf16 %v11265_v40  ;;  %10638 = vmatprep.mubr.msk.bf16.mxu1 %vm16972_vm4, %v1917_v37 }
  0xfc   : > { %v1913_v16 = vsel %vm16973_vm3, %v1906_v32, %v11272_v42  ;;  %v1912_v17 = vsel %vm16973_vm3, %v1905_v10, %v11271_v49 }
  0xfd   : > { %v1741_v18 = vsel %vm16973_vm3, %v1734_v15, %v11266_v11  ;;  %v1742_v31 = vsel %vm16973_vm3, %v1735_v13, %v11267_v53  ;;  %v1918_v19 = vpack.c.bf16 %v1913_v16, %v1912_v17  ;;  %v11280_v35 = vpop.permute.xlu1 %11279 }
  0xfe   : > { %v1747_v26 = vpack.c.bf16 %v1742_v31, %v1741_v18  ;;  %v11275_v27 = vpop.permute.xlu0 %11274  ;;  %v11282_v43 = vunpack.i.h.bf16 %v11280_v35  ;;  %v11281_v51 = vunpack.i.l.bf16 %v11280_v35 }
  0xff   : > { %v11277_v30 = vunpack.i.h.bf16 %v11275_v27  ;;  %v11276_v38 = vunpack.i.l.bf16 %v11275_v27  ;;  %10639 = vmatmul.mubr.msk.bf16.vlgmr.msra.gmra.mxu1 %vm16972_vm4, %v1918_v19 }
 0x100   : > { %10629 = vmatmul.mubr.msk.bf16.vlgmr.msra.gmra.mxu0 %vm16972_vm4, %v1747_v26  ;;  %v1908_v5 = vsel %vm16974_vm2, %v12159_v3, %v11282_v43  ;;  %v1907_v6 = vsel %vm16974_vm2, %v12160_v34, %v11281_v51 }
 0x101   : > { %v1737_v45 = vsel %vm16974_vm2, %v12155_v44, %v11277_v30  ;;  %v1736_v47 = vsel %vm16974_vm2, %v12156_v50, %v11276_v38  ;;  %v11290_v48 = vpop.permute.xlu1 %11289 }
 0x102   : > { %v11285_v46 = vpop.permute.xlu0 %11284  ;;  %v11292_v52 = vunpack.i.h.bf16 %v11290_v48  ;;  %v11291_v54 = vunpack.i.l.bf16 %v11290_v48 }
 0x103   : > { %v11287_v55 = vunpack.i.h.bf16 %v11285_v46  ;;  %v11286_v56 = vunpack.i.l.bf16 %v11285_v46 }
 0x104   : > { %v1744_v57 = vsel %vm16973_vm3, %v1737_v45, %v11292_v52  ;;  %v1743_v58 = vsel %vm16973_vm3, %v1736_v47, %v11291_v54 }
 0x105   : > { %v1909_v60 = vsel %vm16974_vm2, %v12157_v59, %v11287_v55  ;;  %v1738_v62 = vsel %vm16974_vm2, %v12158_v61, %v11286_v56  ;;  %v11300_v63 = vpop.permute.xlu1 %11299  ;;  %v1748_v21 = vpack.c.bf16 %v1744_v57, %v1743_v58 }
 0x106   : > { %v11295_v39 = vpop.permute.xlu0 %11294  ;;  %v11302_v36 = vunpack.i.h.bf16 %v11300_v63  ;;  %v11301_v41 = vunpack.i.l.bf16 %v11300_v63 }
 0x107   : > { %v11297_v2 = vunpack.i.h.bf16 %v11295_v39  ;;  %v11296_v4 = vunpack.i.l.bf16 %v11295_v39  ;;  %10632 = vmatprep.mubr.msk.bf16.mxu0 %vm16972_vm4, %v1748_v21 }
 0x108   : > { %v1745_v24 = vsel %vm16973_vm3, %v1738_v62, %v11301_v41  ;;  %v1916_v25 = vsel %vm16973_vm3, %v1909_v60, %v11302_v36 }
 0x109   : > { %v1914_v7 = vsel %vm16973_vm3, %v1907_v6, %v11296_v4  ;;  %v1915_v0 = vsel %vm16973_vm3, %v1908_v5, %v11297_v2  ;;  %v1749_v1 = vpack.c.bf16 %v1745_v24, %v1745_v24  ;;  %v1920_v22 = vpack.c.bf16 %v1916_v25, %v1916_v25  ;;  %v12927_v25 = vld [vmem:[%s17260_s3 + $0x28] sm:$0xff]  }
 0x10a   : > { %v1919_v8 = vpack.c.bf16 %v1915_v0, %v1914_v7  ;;  %v12932_v7 = vld [vmem:[%s17260_s3 + $0x20] sm:$0xff]   ;;  %10646 = vmatprep.subr.bf16.mxu0 %v12927_v25  ;;  %10666 = vmatprep.subr.bf16.mxu1 %v12927_v25 }
 0x10b   : > { %10633 = vmatmul.mubr.msk.bf16.gmra.mxu0 %vm16972_vm4, %v1749_v1  ;;  %10667 = vmatpush3.bf16.msra.mxu1 %v12927_v25 }
 0x10c   : > { %10642 = vmatprep.mubr.msk.bf16.mxu1 %vm16972_vm4, %v1919_v8  ;;  %10647 = vmatpush3.bf16.msra.mxu0 %v12927_v25 }
 0x10d   : > { %10643 = vmatmul.mubr.msk.bf16.gmra.mxu1 %vm16972_vm4, %v1920_v22  ;;  %10648 = vmatprep.subr.bf16.mxu0 %v12932_v7 }
 0x10e   : > { %10668 = vmatprep.subr.bf16.mxu1 %v12932_v7 }
 0x10f   : > { %10669 = vmatpush3.bf16.msra.mxu1 %v12932_v7 }
 0x110   : > { %10649 = vmatpush3.bf16.msra.mxu0 %v12932_v7 }
 0x16a   : > { %v10580_v20 = vpop.f32.mrf.mxu1 }
 0x16b   : > { %v10570_v28 = vpop.f32.mrf.mxu0  ;;  %v991_v37 = vadd.f32 %v10580_v20, %v12860_v9 }
 0x16c   : > { %v827_v40 = vadd.f32 %v10570_v28, %v12860_v9  ;;  %v982_v42 = vpop.f32.mrf.mxu1 }
 0x16d   : > { %vm1014_vm5 = vcmp.gt.f32.partialorder %v991_v37, 0.0  ;;  %v1021_v49 = vmul.f32 0.01, %v991_v37  ;;  %v818_v29 = vpop.f32.mrf.mxu0  ;;  %v983_v32 = vadd.f32 %v12860_v9, %v982_v42 }
 0x16e   : > { %vm850_vm6 = vcmp.gt.f32.partialorder %v827_v40, 0.0  ;;  %v857_v33 = vmul.f32 0.01, %v827_v40  ;;  %v819_v10 = vadd.f32 %v12860_v9, %v818_v29  ;;  %v10581_v53 = vpop.f32.mrf.mxu1 }
 0x16f   : > { %v12866_v11 = vsel %vm1014_vm5, %v991_v37, %v1021_v49  ;;  %vm1012_vm7 = vcmp.gt.f32.partialorder %v983_v32, 0.0  ;;  %v1019_v12 = vmul.f32 0.01, %v983_v32  ;;  %v10571_v13 = vpop.f32.mrf.mxu0  ;;  %v994_v14 = vadd.f32 %v10581_v53, %v12860_v9 }
 0x170   : > { %17250 = vst [vmem:[#allocation10_spill] sm:$0xff] %v12866_v11  ;;  %v12869_v15 = vsel %vm850_vm6, %v827_v40, %v857_v33  ;;  %vm848_vm8 = vcmp.gt.f32.partialorder %v819_v10, 0.0  ;;  %v855_v16 = vmul.f32 0.01, %v819_v10  ;;  %v830_v17 = vadd.f32 %v10571_v13, %v12860_v9  ;;  %v985_v18 = vpop.f32.mrf.mxu1  ;;  %v12954_v40 = vld [vmem:[%s17260_s3 + $0x18] sm:$0xff]  }
 0x171   : > { %17251 = vst [vmem:[#allocation11_spill] sm:$0xff] %v12869_v15  ;;  %v12874_v31 = vsel %vm1012_vm7, %v983_v32, %v1019_v12  ;;  %vm1015_vm10 = vcmp.gt.f32.partialorder %v994_v14, 0.0  ;;  %v821_v19 = vpop.f32.mrf.mxu0  ;;  %v1022_v27 = vmul.f32 0.01, %v994_v14  ;;  %v986_v38 = vadd.f32 %v12860_v9, %v985_v18  ;;  %10650 = vmatprep.subr.bf16.mxu0 %v12954_v40  ;;  %10670 = vmatprep.subr.bf16.mxu1 %v12954_v40 }
 0x172   : > { %17252 = vst [vmem:[#allocation12_spill] sm:$0xff] %v12874_v31  ;;  %v12876_v35 = vsel %vm848_vm8, %v819_v10, %v855_v16  ;;  %vm851_vm11 = vcmp.gt.f32.partialorder %v830_v17, 0.0  ;;  %v858_v26 = vmul.f32 0.01, %v830_v17  ;;  %v822_v30 = vadd.f32 %v12860_v9, %v821_v19  ;;  %10651 = vmatpush3.bf16.msra.mxu0 %v12954_v40  ;;  %10671 = vmatpush3.bf16.msra.mxu1 %v12954_v40 }
 0x173   : > { %17253 = vst [vmem:[#allocation13_spill] sm:$0xff] %v12876_v35  ;;  %v12884_v44 = vmax.f32 %v12869_v15, %v12866_v11  ;;  %v12888_v50 = vsel %vm1015_vm10, %v994_v14, %v1022_v27  ;;  %vm1013_vm15 = vcmp.gt.f32.partialorder %v986_v38, 0.0  ;;  %v1020_v43 = vmul.f32 0.01, %v986_v38  ;;  %v12985_v27 = vld [vmem:[%s17260_s3 + $0x10] sm:$0xff]  }
 0x174   : > { %v12886_v45 = vsel %vm851_vm11, %v830_v17, %v858_v26  ;;  %17255 = vst [vmem:[#allocation15_spill] sm:$0xff] %v12888_v50  ;;  %vm849_vm14 = vcmp.gt.f32.partialorder %v822_v30, 0.0  ;;  %v856_v48 = vmul.f32 0.01, %v822_v30  ;;  %v12911_v61 = vmax.f32 %v12876_v35, %v12874_v31  ;;  %10652 = vmatprep.subr.bf16.mxu0 %v12985_v27  ;;  %10672 = vmatprep.subr.bf16.mxu1 %v12985_v27  ;;  %v11880_v35 = vld [vmem:[%s16952_s7 + $0x158] sm:$0xff]  }
 0x175   : > { %17254 = vst [vmem:[#allocation14_spill] sm:$0xff] %v12886_v45  ;;  %v12894_v47 = vmax.f32 %v12886_v45, %v12888_v50  ;;  %v12901_v55 = vsel %vm1013_vm15, %v986_v38, %v1020_v43 }
 0x176   : > { %v12896_v46 = vsel %vm849_vm14, %v822_v30, %v856_v48  ;;  %17257 = vst [vmem:[#allocation17_spill] sm:$0xff] %v12901_v55  ;;  %10653 = vmatpush3.bf16.msra.mxu0 %v12985_v27  ;;  %10673 = vmatpush3.bf16.msra.mxu1 %v12985_v27 }
 0x177   : > { %v10574_v51 = vpop.f32.mrf.mxu0  ;;  %17256 = vst [vmem:[#allocation16_spill] sm:$0xff] %v12896_v46  ;;  %v11303_v54 = vpack.i.bf16 %v12894_v47, %v12884_v44  ;;  %v12905_v58 = vmax.f32 %v12896_v46, %v12901_v55 }
 0x178   : > { %v843_v52 = vadd.f32 %v10574_v51, %v12860_v9 }
 0x179   : > { %v10584_v56 = vpop.f32.mrf.mxu1  ;;  %v834_v57 = vpop.f32.mrf.mxu0  ;;  %11304 = vrot.lane.b32.xlu0 %v11303_v54, %s16969_s21  ;;  %v11308_v41 = vpack.i.bf16 %v12905_v58, %v12911_v61  ;;  %s16799_s21 = scalar_lea.hbm %s16963_s18, %s10024_s29 }
 0x17a   : > { %vm854_vm5 = vcmp.gt.f32.partialorder %v843_v52, 0.0  ;;  %v861_v59 = vmul.f32 0.01, %v843_v52  ;;  %v1007_v60 = vadd.f32 %v10584_v56, %v12860_v9  ;;  %v835_v62 = vadd.f32 %v12860_v9, %v834_v57 }
 0x17b   : > { %v998_v63 = vpop.f32.mrf.mxu1  ;;  %v10575_v21 = vpop.f32.mrf.mxu0 }
 0x17c   : > { %v12916_v3 = vsel %vm854_vm5, %v843_v52, %v861_v59  ;;  %vm1018_vm7 = vcmp.gt.f32.partialorder %v1007_v60, 0.0  ;;  %v1025_v5 = vmul.f32 0.01, %v1007_v60  ;;  %v999_v34 = vadd.f32 %v12860_v9, %v998_v63 }
 0x17d   : > { %17258 = vst [vmem:[#allocation18_spill] sm:$0xff] %v12916_v3  ;;  %vm852_vm8 = vcmp.gt.f32.partialorder %v835_v62, 0.0  ;;  %v859_v6 = vmul.f32 0.01, %v835_v62  ;;  %v10585_v39 = vpop.f32.mrf.mxu1  ;;  %v837_v36 = vpop.f32.mrf.mxu0  ;;  %11309 = vrot.lane.b32.xlu0 %v11308_v41, %s17262_s22 }
 0x17e   : > { %v12921_v2 = vsel %vm1018_vm7, %v1007_v60, %v1025_v5  ;;  %vm1016_vm10 = vcmp.gt.f32.partialorder %v999_v34, 0.0  ;;  %v1023_v4 = vmul.f32 0.01, %v999_v34  ;;  %v838_v24 = vadd.f32 %v12860_v9, %v837_v36 }
 0x17f   : > { %17259 = vst [vmem:[#allocation19_spill] sm:$0xff] %v12921_v2  ;;  %v12936_v0 = vsel %vm852_vm8, %v835_v62, %v859_v6  ;;  %v1001_v1 = vpop.f32.mrf.mxu1 }
 0x180   : > { %17261 = vst [vmem:[#allocation20_spill] sm:$0xff] %v12936_v0  ;;  %v12939_v22 = vsel %vm1016_vm10, %v999_v34, %v1023_v4  ;;  %vm853_vm14 = vcmp.gt.f32.partialorder %v838_v24, 0.0  ;;  %v860_v8 = vmul.f32 0.01, %v838_v24  ;;  %v1002_v20 = vadd.f32 %v12860_v9, %v1001_v1  ;;  %v13010_v34 = vld [vmem:[%s17260_s3 + $0x8] sm:$0xff]  }
 0x181   : > { %17263 = vst [vmem:[#allocation21_spill] sm:$0xff] %v12939_v22  ;;  %v12961_v49 = vmax.f32 %v12936_v0, %v12939_v22  ;;  %10654 = vmatprep.subr.bf16.mxu0 %v13010_v34  ;;  %10674 = vmatprep.subr.bf16.mxu1 %v13010_v34 }
 0x182   : > { %v12948_v28 = vsel %vm853_vm14, %v838_v24, %v860_v8  ;;  %vm1017_vm5 = vcmp.gt.f32.partialorder %v1002_v20, 0.0  ;;  %v1024_v37 = vmul.f32 0.01, %v1002_v20  ;;  %10655 = vmatpush3.bf16.msra.mxu0 %v13010_v34  ;;  %10675 = vmatpush3.bf16.msra.mxu1 %v13010_v34 }
 0x183   : > { %17264 = vst [vmem:[#allocation22_spill] sm:$0xff] %v12948_v28 }
 0x184   : > { %v12957_v42 = vsel %vm1017_vm5, %v1002_v20, %v1024_v37 }
 0x185   : > { %17265 = vst [vmem:[#allocation23_spill] sm:$0xff] %v12957_v42  ;;  %v12965_v29 = vmax.f32 %v12948_v28, %v12957_v42 }
 0x187   : > { %v10600_v32 = vpop.f32.mrf.mxu1  ;;  %v11313_v33 = vpack.i.bf16 %v12965_v29, %v12961_v49 }
 0x188   : > { %v10590_v10 = vpop.f32.mrf.mxu0  ;;  %v1319_v53 = vadd.f32 %v10600_v32, %v12860_v9  ;;  %v13038_v32 = vld [vmem:[%s17260_s3] sm:$0xff]   ;;  %s12242_s3 = smov 28  }
 0x189   : > { %v1155_v12 = vadd.f32 %v10590_v10, %v12860_v9  ;;  %11314 = vrot.lane.b32.xlu0 %v11313_v33, %s17262_s22  ;;  %v1310_v13 = vpop.f32.mrf.mxu1  ;;  %10656 = vmatprep.subr.bf16.mxu0 %v13038_v32 }
 0x18a   : > { %vm1342_vm8 = vcmp.gt.f32.partialorder %v1319_v53, 0.0  ;;  %v1349_v14 = vmul.f32 0.01, %v1319_v53  ;;  %v1146_v16 = vpop.f32.mrf.mxu0  ;;  %v1311_v17 = vadd.f32 %v12860_v9, %v1310_v13  ;;  %10657 = vmatpush3.bf16.msra.mxu0 %v13038_v32  ;;  %10676 = vmatprep.subr.bf16.mxu1 %v13038_v32 }
 0x18b   : > { %vm1178_vm10 = vcmp.gt.f32.partialorder %v1155_v12, 0.0  ;;  %v1185_v18 = vmul.f32 0.01, %v1155_v12  ;;  %v1147_v19 = vadd.f32 %v12860_v9, %v1146_v16  ;;  %v10601_v26 = vpop.f32.mrf.mxu1  ;;  %10677 = vmatpush3.bf16.msra.mxu1 %v13038_v32  ;;  %10686 = vmatprep.subr.bf16.mxu0 %v12927_v25 }
 0x18c   : > { %v12987_v30 = vsel %vm1342_vm8, %v1319_v53, %v1349_v14  ;;  %vm1340_vm14 = vcmp.gt.f32.partialorder %v1311_v17, 0.0  ;;  %v1347_v38 = vmul.f32 0.01, %v1311_v17  ;;  %v10591_v48 = vpop.f32.mrf.mxu0  ;;  %v1322_v43 = vadd.f32 %v10601_v26, %v12860_v9  ;;  %10706 = vmatprep.subr.bf16.mxu1 %v12927_v25 }
 0x18d   : > { %17266 = vst [vmem:[#allocation24_spill] sm:$0xff] %v12987_v30  ;;  %v12990_v51 = vsel %vm1178_vm10, %v1155_v12, %v1185_v18  ;;  %vm1176_vm5 = vcmp.gt.f32.partialorder %v1147_v19, 0.0  ;;  %v1183_v52 = vmul.f32 0.01, %v1147_v19  ;;  %v1158_v54 = vadd.f32 %v10591_v48, %v12860_v9  ;;  %v1313_v56 = vpop.f32.mrf.mxu1 }
 0x18e   : > { %17267 = vst [vmem:[#allocation25_spill] sm:$0xff] %v12990_v51  ;;  %v12997_v57 = vsel %vm1340_vm14, %v1311_v17, %v1347_v38  ;;  %vm1343_vm4 = vcmp.gt.f32.partialorder %v1322_v43, 0.0  ;;  %v1149_v59 = vpop.f32.mrf.mxu0  ;;  %v1350_v63 = vmul.f32 0.01, %v1322_v43  ;;  %v1314_v5 = vadd.f32 %v12860_v9, %v1313_v56 }
 0x18f   : > { %17268 = vst [vmem:[#allocation26_spill] sm:$0xff] %v12997_v57  ;;  %v13001_v60 = vsel %vm1176_vm5, %v1147_v19, %v1183_v52  ;;  %vm1179_vm10 = vcmp.gt.f32.partialorder %v1158_v54, 0.0  ;;  %v1186_v62 = vmul.f32 0.01, %v1158_v54  ;;  %v1150_v21 = vadd.f32 %v12860_v9, %v1149_v59 }
 0x190   : > { %17269 = vst [vmem:[#allocation27_spill] sm:$0xff] %v13001_v60  ;;  %v13014_v6 = vmax.f32 %v12990_v51, %v12987_v30  ;;  %v13018_v36 = vsel %vm1343_vm4, %v1322_v43, %v1350_v63  ;;  %vm1341_vm2 = vcmp.gt.f32.partialorder %v1314_v5, 0.0  ;;  %v1348_v24 = vmul.f32 0.01, %v1314_v5 }
 0x191   : > { %v13016_v39 = vsel %vm1179_vm10, %v1158_v54, %v1186_v62  ;;  %17271 = vst [vmem:[#allocation29_spill] sm:$0xff] %v13018_v36  ;;  %vm1177_vm5 = vcmp.gt.f32.partialorder %v1150_v21, 0.0  ;;  %v1184_v4 = vmul.f32 0.01, %v1150_v21  ;;  %v13042_v33 = vmax.f32 %v13001_v60, %v12997_v57 }
 0x192   : > { %17270 = vst [vmem:[#allocation28_spill] sm:$0xff] %v13016_v39  ;;  %v13024_v41 = vmax.f32 %v13016_v39, %v13018_v36  ;;  %v13044_v10 = vsel %vm1341_vm2, %v1314_v5, %v1348_v24 }
 0x193   : > { %v10594_v1 = vpop.f32.mrf.mxu0  ;;  %v13030_v8 = vsel %vm1177_vm5, %v1150_v21, %v1184_v4  ;;  %17273 = vst [vmem:[#allocation31_spill] sm:$0xff] %v13044_v10  ;;  %v13072_v21 = vmax.f32 %v12916_v3, %v12921_v2 }
 0x194   : > { %17272 = vst [vmem:[#allocation30_spill] sm:$0xff] %v13030_v8  ;;  %v1171_v20 = vadd.f32 %v10594_v1, %v12860_v9  ;;  %v11318_v37 = vpack.i.bf16 %v13024_v41, %v13014_v6  ;;  %v13048_v13 = vmax.f32 %v13030_v8, %v13044_v10 }
 0x195   : > { %v10604_v53 = vpop.f32.mrf.mxu1  ;;  %v1162_v12 = vpop.f32.mrf.mxu0 }
 0x196   : > { %vm1182_vm4 = vcmp.gt.f32.partialorder %v1171_v20, 0.0  ;;  %v1189_v14 = vmul.f32 0.01, %v1171_v20  ;;  %v1335_v16 = vadd.f32 %v10604_v53, %v12860_v9  ;;  %11319 = vrot.lane.b32.xlu0 %v11318_v37, %s17262_s22  ;;  %v1163_v17 = vadd.f32 %v12860_v9, %v1162_v12 }
 0x197   : > { %v1326_v18 = vpop.f32.mrf.mxu1  ;;  %v10595_v19 = vpop.f32.mrf.mxu0  ;;  %v11328_v52 = vpack.i.bf16 %v13048_v13, %v13042_v33 }
 0x198   : > { %v13058_v26 = vsel %vm1182_vm4, %v1171_v20, %v1189_v14  ;;  %vm1346_vm10 = vcmp.gt.f32.partialorder %v1335_v16, 0.0  ;;  %v1353_v38 = vmul.f32 0.01, %v1335_v16  ;;  %v1327_v48 = vadd.f32 %v12860_v9, %v1326_v18 }
 0x199   : > { %17274 = vst [vmem:[#allocation32_spill] sm:$0xff] %v13058_v26  ;;  %vm1180_vm5 = vcmp.gt.f32.partialorder %v1163_v17, 0.0  ;;  %v1187_v43 = vmul.f32 0.01, %v1163_v17  ;;  %v10605_v54 = vpop.f32.mrf.mxu1  ;;  %v1165_v56 = vpop.f32.mrf.mxu0  ;;  %11329 = vrot.lane.b32.xlu1 %v11328_v52, %s17262_s22 }
 0x19a   : > { %v13066_v59 = vsel %vm1346_vm10, %v1335_v16, %v1353_v38  ;;  %vm1344_vm4 = vcmp.gt.f32.partialorder %v1327_v48, 0.0  ;;  %v1351_v62 = vmul.f32 0.01, %v1327_v48  ;;  %v1166_v63 = vadd.f32 %v12860_v9, %v1165_v56  ;;  %11324 = vrot.lane.b32.xlu0 %v11318_v37, %s17076_s26 }
 0x19b   : > { %17275 = vst [vmem:[#allocation33_spill] sm:$0xff] %v13066_v59  ;;  %v13078_v5 = vmax.f32 %v13058_v26, %v13066_v59  ;;  %v13080_v4 = vsel %vm1180_vm5, %v1163_v17, %v1187_v43  ;;  %v1329_v24 = vpop.f32.mrf.mxu1 }
 0x19c   : > { %17276 = vst [vmem:[#allocation34_spill] sm:$0xff] %v13080_v4  ;;  %v13083_v1 = vsel %vm1344_vm4, %v1327_v48, %v1351_v62  ;;  %vm1181_vm10 = vcmp.gt.f32.partialorder %v1166_v63, 0.0  ;;  %v1188_v20 = vmul.f32 0.01, %v1166_v63  ;;  %v1330_v37 = vadd.f32 %v12860_v9, %v1329_v24 }
 0x19d   : > { %17277 = vst [vmem:[#allocation35_spill] sm:$0xff] %v13083_v1  ;;  %v11338_v53 = vpack.i.bf16 %v13078_v5, %v13072_v21  ;;  %11334 = vrot.lane.b32.xlu1 %v11328_v52, %s17076_s26  ;;  %v13098_v17 = vmax.f32 %v13080_v4, %v13083_v1 }
 0x19e   : > { %v13090_v12 = vsel %vm1181_vm10, %v1166_v63, %v1188_v20  ;;  %vm1345_vm11 = vcmp.gt.f32.partialorder %v1330_v37, 0.0  ;;  %v1352_v14 = vmul.f32 0.01, %v1330_v37 }
 0x19f   : > { %17278 = vst [vmem:[#allocation36_spill] sm:$0xff] %v13090_v12  ;;  %11339 = vrot.lane.b32.xlu0 %v11338_v53, %s17262_s22 }
 0x1a0   : > { %v13094_v16 = vsel %vm1345_vm11, %v1330_v37, %v1352_v14 }
 0x1a1   : > { %17279 = vst [vmem:[#allocation37_spill] sm:$0xff] %v13094_v16  ;;  %v13102_v18 = vmax.f32 %v13090_v12, %v13094_v16 }
 0x1a3   : > { %v10620_v19 = vpop.f32.mrf.mxu1  ;;  %v13108_v38 = vpack.i.bf16 %v13102_v18, %v13098_v17 }
 0x1a4   : > { %v10610_v48 = vpop.f32.mrf.mxu0  ;;  %v1647_v43 = vadd.f32 %v10620_v19, %v12860_v9 }
 0x1a5   : > { %v1483_v52 = vadd.f32 %v10610_v48, %v12860_v9  ;;  %11344 = vrot.lane.b32.xlu1 %v13108_v38, %s17262_s22  ;;  %v1638_v54 = vpop.f32.mrf.mxu1 }
 0x1a6   : > { %vm1670_vm11 = vcmp.gt.f32.partialorder %v1647_v43, 0.0  ;;  %v1677_v56 = vmul.f32 0.01, %v1647_v43  ;;  %v1474_v62 = vpop.f32.mrf.mxu0  ;;  %v1639_v63 = vadd.f32 %v12860_v9, %v1638_v54 }
 0x1a7   : > { %vm1506_vm4 = vcmp.gt.f32.partialorder %v1483_v52, 0.0  ;;  %v1513_v24 = vmul.f32 0.01, %v1483_v52  ;;  %v1475_v20 = vadd.f32 %v12860_v9, %v1474_v62  ;;  %v10621_v37 = vpop.f32.mrf.mxu1 }
 0x1a8   : > { %v13116_v53 = vsel %vm1670_vm11, %v1647_v43, %v1677_v56  ;;  %vm1668_vm10 = vcmp.gt.f32.partialorder %v1639_v63, 0.0  ;;  %v1675_v14 = vmul.f32 0.01, %v1639_v63  ;;  %v10611_v19 = vpop.f32.mrf.mxu0  ;;  %v1650_v48 = vadd.f32 %v10621_v37, %v12860_v9 }
 0x1a9   : > { %17280 = vst [vmem:[#allocation38_spill] sm:$0xff] %v13116_v53  ;;  %v13119_v23 = vsel %vm1506_vm4, %v1483_v52, %v1513_v24  ;;  %vm1504_vm7 = vcmp.gt.f32.partialorder %v1475_v20, 0.0  ;;  %v1511_v1 = vmul.f32 0.01, %v1475_v20  ;;  %v1486_v4 = vadd.f32 %v10611_v19, %v12860_v9  ;;  %v1641_v59 = vpop.f32.mrf.mxu1 }
 0x1aa   : > { %17281 = vst [vmem:[#allocation39_spill] sm:$0xff] %v13119_v23  ;;  %v13124_v54 = vsel %vm1668_vm10, %v1639_v63, %v1675_v14  ;;  %vm1671_vm15 = vcmp.gt.f32.partialorder %v1650_v48, 0.0  ;;  %v1477_v43 = vpop.f32.mrf.mxu0  ;;  %v1678_v26 = vmul.f32 0.01, %v1650_v48  ;;  %v1642_v24 = vadd.f32 %v12860_v9, %v1641_v59 }
 0x1ab   : > { %17282 = vst [vmem:[#allocation40_spill] sm:$0xff] %v13124_v54  ;;  %v13126_v56 = vsel %vm1504_vm7, %v1475_v20, %v1511_v1  ;;  %vm1507_vm11 = vcmp.gt.f32.partialorder %v1486_v4, 0.0  ;;  %v1514_v62 = vmul.f32 0.01, %v1486_v4  ;;  %v1478_v52 = vadd.f32 %v12860_v9, %v1477_v43 }
 0x1ac   : > { %17283 = vst [vmem:[#allocation41_spill] sm:$0xff] %v13126_v56  ;;  %v13134_v37 = vmax.f32 %v13119_v23, %v13116_v53  ;;  %v13138_v14 = vsel %vm1671_vm15, %v1650_v48, %v1678_v26  ;;  %vm1669_vm5 = vcmp.gt.f32.partialorder %v1642_v24, 0.0  ;;  %v1676_v19 = vmul.f32 0.01, %v1642_v24 }
 0x1ad   : > { %v13136_v63 = vsel %vm1507_vm11, %v1486_v4, %v1514_v62  ;;  %17285 = vst [vmem:[#allocation43_spill] sm:$0xff] %v13138_v14  ;;  %vm1505_vm10 = vcmp.gt.f32.partialorder %v1478_v52, 0.0  ;;  %v1512_v20 = vmul.f32 0.01, %v1478_v52 }
 0x1ae   : > { %17284 = vst [vmem:[#allocation42_spill] sm:$0xff] %v13136_v63  ;;  %v13144_v1 = vmax.f32 %v13136_v63, %v13138_v14  ;;  %v13153_v4 = vsel %vm1669_vm5, %v1642_v24, %v1676_v19 }
 0x1af   : > { %v10614_v59 = vpop.f32.mrf.mxu0  ;;  %v13146_v43 = vsel %vm1505_vm10, %v1478_v52, %v1512_v20  ;;  %17287 = vst [vmem:[#allocation45_spill] sm:$0xff] %v13153_v4  ;;  %v13164_v52 = vmax.f32 %v13126_v56, %v13124_v54 }
 0x1b0   : > { %17286 = vst [vmem:[#allocation44_spill] sm:$0xff] %v13146_v43  ;;  %v1499_v53 = vadd.f32 %v10614_v59, %v12860_v9  ;;  %v13151_v26 = vpack.i.bf16 %v13144_v1, %v13134_v37  ;;  %v13157_v23 = vmax.f32 %v13146_v43, %v13153_v4 }
 0x1b1   : > { %v10624_v48 = vpop.f32.mrf.mxu1  ;;  %v1490_v62 = vpop.f32.mrf.mxu0 }
 0x1b2   : > { %vm1510_vm15 = vcmp.gt.f32.partialorder %v1499_v53, 0.0  ;;  %v1517_v14 = vmul.f32 0.01, %v1499_v53  ;;  %v1663_v63 = vadd.f32 %v10624_v48, %v12860_v9  ;;  %11349 = vrot.lane.b32.xlu1 %v13151_v26, %s17076_s26  ;;  %v1491_v24 = vadd.f32 %v12860_v9, %v1490_v62 }
 0x1b3   : > { %v1654_v20 = vpop.f32.mrf.mxu1  ;;  %v10615_v19 = vpop.f32.mrf.mxu0  ;;  %v11363_v2 = vpack.i.bf16 %v13157_v23, %v13164_v52 }
 0x1b4   : > { %v13169_v59 = vsel %vm1510_vm15, %v1499_v53, %v1517_v14  ;;  %vm1674_vm11 = vcmp.gt.f32.partialorder %v1663_v63, 0.0  ;;  %v1681_v16 = vmul.f32 0.01, %v1663_v63  ;;  %v1655_v48 = vadd.f32 %v12860_v9, %v1654_v20 }
 0x1b5   : > { %17288 = vst [vmem:[#allocation46_spill] sm:$0xff] %v13169_v59  ;;  %vm1508_vm10 = vcmp.gt.f32.partialorder %v1491_v24, 0.0  ;;  %v1515_v12 = vmul.f32 0.01, %v1491_v24  ;;  %v10625_v54 = vpop.f32.mrf.mxu1  ;;  %v1493_v56 = vpop.f32.mrf.mxu0  ;;  %11364 = vrot.lane.b32.xlu0 %v11363_v2, %s17262_s22 }
 0x1b6   : > { %v13174_v3 = vsel %vm1674_vm11, %v1663_v63, %v1681_v16  ;;  %vm1672_vm7 = vcmp.gt.f32.partialorder %v1655_v48, 0.0  ;;  %v1679_v62 = vmul.f32 0.01, %v1655_v48  ;;  %v1494_v19 = vadd.f32 %v12860_v9, %v1493_v56  ;;  %11354 = vrot.lane.b32.xlu1 %v11363_v2, %s17076_s26 }
 0x1b7   : > { %17289 = vst [vmem:[#allocation47_spill] sm:$0xff] %v13174_v3  ;;  %v13179_v53 = vsel %vm1508_vm10, %v1491_v24, %v1515_v12  ;;  %v1657_v14 = vpop.f32.mrf.mxu1  ;;  %v13188_v63 = vmax.f32 %v13169_v59, %v13174_v3  ;;  %v2651_v2 = vrot.slane %v12905_v58, 2 }
 0x1b8   : > { %17290 = vst [vmem:[#allocation48_spill] sm:$0xff] %v13179_v53  ;;  %v13183_v20 = vsel %vm1672_vm7, %v1655_v48, %v1679_v62  ;;  %vm1509_vm4 = vcmp.gt.f32.partialorder %v1494_v19, 0.0  ;;  %v1516_v54 = vmul.f32 0.01, %v1494_v19  ;;  %v1658_v16 = vadd.f32 %v12860_v9, %v1657_v14 }
 0x1b9   : > { %17291 = vst [vmem:[#allocation49_spill] sm:$0xff] %v13183_v20  ;;  %v2650_v48 = vrot.slane %v12911_v61, 2  ;;  %v17017_v62 = vrot.slane %v12884_v44, 2  ;;  %v13203_v14 = vmax.f32 %v13179_v53, %v13183_v20 }
 0x1ba   : > { %v13192_v12 = vsel %vm1509_vm4, %v1494_v19, %v1516_v54  ;;  %vm1673_vm10 = vcmp.gt.f32.partialorder %v1658_v16, 0.0  ;;  %v1680_v56 = vmul.f32 0.01, %v1658_v16  ;;  %11359 = vrot.lane.b32.xlu1 %v13108_v38, %s17076_s26  ;;  %v11368_v54 = vpack.i.bf16 %v13188_v63, %v13078_v5 }
 0x1bb   : > { %17292 = vst [vmem:[#allocation50_spill] sm:$0xff] %v13192_v12  ;;  %v2652_v38 = vsel %vm780_vm0, %v2650_v48, %v2651_v2 }
 0x1bc   : > { %v13197_v24 = vsel %vm1673_vm10, %v1658_v16, %v1680_v56  ;;  %v2654_v16 = vsel %vm780_vm0, %v2651_v2, %v17017_v62 }
 0x1bd   : > { %17293 = vst [vmem:[#allocation51_spill] sm:$0xff] %v13197_v24  ;;  %v13207_v19 = vmax.f32 %v13192_v12, %v13197_v24  ;;  %v11383_v48 = vpack.i.bf16 %v2654_v16, %v2652_v38 }
 0x1be   : > { %11369 = vrot.lane.b32.xlu1 %v11368_v54, %s17076_s26 }
 0x1bf   : > { %v10640_v56 = vpop.f32.mrf.mxu1  ;;  %v13220_v3 = vpack.i.bf16 %v13207_v19, %v13203_v14 }
 0x1c0   : > { %v10630_v59 = vpop.f32.mrf.mxu0  ;;  %v1976_v20 = vadd.f32 %v10640_v56, %v12860_v9 }
 0x1c1   : > { %v1805_v53 = vadd.f32 %v10630_v59, %v12860_v9  ;;  %11374 = vrot.lane.b32.xlu0 %v13220_v3, %s17076_s26  ;;  %v1967_v24 = vpop.f32.mrf.mxu1 }
 0x1c2   : > { %vm1999_vm7 = vcmp.gt.f32.partialorder %v1976_v20, 0.0  ;;  %v2006_v12 = vmul.f32 0.01, %v1976_v20  ;;  %v1796_v2 = vpop.f32.mrf.mxu0  ;;  %v1968_v54 = vadd.f32 %v12860_v9, %v1967_v24  ;;  %11384 = vrot.lane.b32.xlu1 %v11383_v48, %s17076_s26 }
 0x1c3   : > { %vm1828_vm10 = vcmp.gt.f32.partialorder %v1805_v53, 0.0  ;;  %v1835_v62 = vmul.f32 0.01, %v1805_v53  ;;  %v1797_v4 = vadd.f32 %v12860_v9, %v1796_v2  ;;  %v10641_v43 = vpop.f32.mrf.mxu1 }
 0x1c4   : > { %v13229_v56 = vsel %vm1999_vm7, %v1976_v20, %v2006_v12  ;;  %vm1997_vm4 = vcmp.gt.f32.partialorder %v1968_v54, 0.0  ;;  %v2004_v59 = vmul.f32 0.01, %v1968_v54  ;;  %v10631_v42 = vpop.f32.mrf.mxu0  ;;  %v1979_v38 = vadd.f32 %v10641_v43, %v12860_v9 }
 0x1c5   : > { %17294 = vst [vmem:[#allocation52_spill] sm:$0xff] %v13229_v56  ;;  %v13232_v16 = vsel %vm1828_vm10, %v1805_v53, %v1835_v62  ;;  %vm1826_vm15 = vcmp.gt.f32.partialorder %v1797_v4, 0.0  ;;  %v1833_v28 = vmul.f32 0.01, %v1797_v4  ;;  %v1808_v24 = vadd.f32 %v10631_v42, %v12860_v9  ;;  %11379 = vrot.lane.b32.xlu0 %v13151_v26, %s17262_s22  ;;  %v1970_v12 = vpop.f32.mrf.mxu1 }
 0x1c6   : > { %17295 = vst [vmem:[#allocation53_spill] sm:$0xff] %v13232_v16  ;;  %v13239_v48 = vsel %vm1997_vm4, %v1968_v54, %v2004_v59  ;;  %vm2000_vm7 = vcmp.gt.f32.partialorder %v1979_v38, 0.0  ;;  %v1799_v20 = vpop.f32.mrf.mxu0  ;;  %v2007_v53 = vmul.f32 0.01, %v1979_v38  ;;  %v2069_v26 = vmax.f32 %v13232_v16, %v13229_v56 }
 0x1c7   : > { %17296 = vst [vmem:[#allocation54_spill] sm:$0xff] %v13239_v48  ;;  %v13241_v2 = vsel %vm1826_vm15, %v1797_v4, %v1833_v28  ;;  %vm1829_vm5 = vcmp.gt.f32.partialorder %v1808_v24, 0.0  ;;  %v1836_v43 = vmul.f32 0.01, %v1808_v24  ;;  %v1800_v42 = vadd.f32 %v12860_v9, %v1799_v20 }
 0x1c8   : > { %17297 = vst [vmem:[#allocation55_spill] sm:$0xff] %v13241_v2  ;;  %v13250_v54 = vsel %vm2000_vm7, %v1979_v38, %v2007_v53  ;;  %v1971_v59 = vadd.f32 %v12860_v9, %v1970_v12  ;;  %v2096_v53 = vrot.slane %v2069_v26, 6 }
 0x1c9   : > { %v13248_v62 = vsel %vm1829_vm5, %v1808_v24, %v1836_v43  ;;  %17299 = vst [vmem:[#allocation57_spill] sm:$0xff] %v13250_v54  ;;  %vm1827_vm4 = vcmp.gt.f32.partialorder %v1800_v42, 0.0  ;;  %v1834_v20 = vmul.f32 0.01, %v1800_v42 }
 0x1ca   : > { %17298 = vst [vmem:[#allocation56_spill] sm:$0xff] %v13248_v62  ;;  %v13257_v28 = vmax.f32 %v13248_v62, %v13250_v54  ;;  %vm1998_vm11 = vcmp.gt.f32.partialorder %v1971_v59, 0.0  ;;  %v2005_v22 = vmul.f32 0.01, %v1971_v59  ;;  %v13266_v54 = vmax.f32 %v13241_v2, %v13239_v48 }
 0x1cb   : > { %v10634_v56 = vpop.f32.mrf.mxu0  ;;  %v13268_v62 = vsel %vm1827_vm4, %v1800_v42, %v1834_v20 }
 0x1cc   : > { %v1821_v12 = vadd.f32 %v10634_v56, %v12860_v9  ;;  %v11388_v43 = vpack.i.bf16 %v13257_v28, %v2069_v26  ;;  %17300 = vst [vmem:[#allocation58_spill] sm:$0xff] %v13268_v62  ;;  %v13270_v4 = vsel %vm1998_vm11, %v1971_v59, %v2005_v22  ;;  %v17302_v42 = vrot.slane %v13257_v28, 6 }
 0x1cd   : > { %17301 = vst [vmem:[#allocation59_spill] sm:$0xff] %v13270_v4  ;;  %v10644_v16 = vpop.f32.mrf.mxu1  ;;  %v1812_v0 = vpop.f32.mrf.mxu0  ;;  %v2068_v24 = vmax.f32 %v13268_v62, %v13270_v4  ;;  %v17052_v39 = vrot.slane %v13266_v54, 6 }
 0x1ce   : > { %vm1832_vm5 = vcmp.gt.f32.partialorder %v1821_v12, 0.0  ;;  %v1839_v38 = vmul.f32 0.01, %v1821_v12  ;;  %v1992_v56 = vadd.f32 %v10644_v16, %v12860_v9  ;;  %11389 = vrot.lane.b32.xlu0 %v11388_v43, %s17262_s22  ;;  %v1813_v26 = vadd.f32 %v12860_v9, %v1812_v0 }
 0x1cf   : > { %v1983_v30 = vpop.f32.mrf.mxu1  ;;  %v10635_v48 = vpop.f32.mrf.mxu0  ;;  %v13280_v22 = vsel %vm660_vm1, %v2096_v53, %v17302_v42  ;;  %v2094_v59 = vrot.slane %v2068_v24, 6  ;;  %v11398_v0 = vpack.i.bf16 %v2068_v24, %v13266_v54 }
 0x1d0   : > { %v13284_v20 = vsel %vm1832_vm5, %v1821_v12, %v1839_v38  ;;  %vm2003_vm7 = vcmp.gt.f32.partialorder %v1992_v56, 0.0  ;;  %v2010_v2 = vmul.f32 0.01, %v1992_v56  ;;  %vm1830_vm4 = vcmp.gt.f32.partialorder %v1813_v26, 0.0 }
 0x1d1   : > { %17303 = vst [vmem:[#allocation60_spill] sm:$0xff] %v13284_v20  ;;  %v1837_v16 = vmul.f32 0.01, %v1813_v26  ;;  %v1984_v51 = vadd.f32 %v12860_v9, %v1983_v30  ;;  %v10645_v48 = vpop.f32.mrf.mxu1  ;;  %v1815_v36 = vpop.f32.mrf.mxu0  ;;  %v2097_v38 = vsel %vm660_vm1, %v2094_v59, %v2096_v53  ;;  %11399 = vrot.lane.b32.xlu1 %v11398_v0, %s17262_s22  ;;  %v2659_v53 = vrot.slane %v12965_v29, 2 }
 0x1d2   : > { %v13289_v42 = vsel %vm2003_vm7, %v1992_v56, %v2010_v2  ;;  %11394 = vrot.lane.b32.xlu0 %v11388_v43, %s17076_s26  ;;  %v1816_v4 = vadd.f32 %v12860_v9, %v1815_v36  ;;  %v2095_v56 = vsel %vm660_vm1, %v17052_v39, %v2094_v59  ;;  %v2661_v59 = vrot.slane %v13072_v21, 2 }
 0x1d3   : > { %17304 = vst [vmem:[#allocation61_spill] sm:$0xff] %v13289_v42  ;;  %v13296_v12 = vsel %vm1830_vm4, %v1813_v26, %v1837_v16  ;;  %vm2001_vm15 = vcmp.gt.f32.partialorder %v1984_v51, 0.0  ;;  %v2008_v30 = vmul.f32 0.01, %v1984_v51  ;;  %v1986_v24 = vpop.f32.mrf.mxu1  ;;  %v2073_v43 = vmax.f32 %v13284_v20, %v13289_v42 }
 0x1d4   : > { %17305 = vst [vmem:[#allocation62_spill] sm:$0xff] %v13296_v12  ;;  %vm1831_vm11 = vcmp.gt.f32.partialorder %v1816_v4, 0.0  ;;  %v1838_v48 = vmul.f32 0.01, %v1816_v4  ;;  %v1987_v2 = vadd.f32 %v12860_v9, %v1986_v24  ;;  %v17307_v9 = vrot.slane %v12961_v49, 2 }
 0x1d5   : > { %v13302_v36 = vsel %vm2001_vm15, %v1984_v51, %v2008_v30  ;;  %v17308_v51 = vrot.slane %v12894_v47, 2  ;;  %11404 = vrot.lane.b32.xlu1 %v11398_v0, %s17076_s26  ;;  %v17311_v20 = vrot.slane %v12884_v44, 2  ;;  %v2662_v0 = vsel %vm780_vm0, %v2659_v53, %v2661_v59 }
 0x1d6   : > { %17306 = vst [vmem:[#allocation63_spill] sm:$0xff] %v13302_v36  ;;  %v2071_v26 = vmax.f32 %v13296_v12, %v13302_v36  ;;  %vm2002_vm4 = vcmp.gt.f32.partialorder %v1987_v2, 0.0  ;;  %11414 = vrot.lane.b32.xlu0 %v13220_v3, %s17262_s22  ;;  %v13319_v30 = vsel %vm1831_vm11, %v1816_v4, %v1838_v48  ;;  %v2009_v24 = vmul.f32 0.01, %v1987_v2 }
 0x1d7   : > { %v2658_v16 = vsel %vm780_vm0, %v17308_v51, %v17307_v9  ;;  %17309 = vst [vmem:[#allocation64_spill] sm:$0xff] %v13319_v30  ;;  %v17310_v42 = vmov %v17308_v51  ;;  %v11418_v36 = vpack.i.bf16 %v2073_v43, %v13188_v63  ;;  %v17313_v4 = vmov %v17307_v9 }
 0x1d8   : > { %v2100_v39 = vrot.slane %v2071_v26, 6  ;;  %v2656_v3 = vsel %vm780_vm0, %v17311_v20, %v17310_v42  ;;  %v13329_v12 = vsel %vm2002_vm4, %v1987_v2, %v2009_v24  ;;  %v2660_v48 = vsel %vm780_vm0, %v17313_v4, %v2659_v53 }
 0x1d9   : > { %17312 = vst [vmem:[#allocation65_spill] sm:$0xff] %v13329_v12  ;;  %v11408_v62 = vpack.i.bf16 %v2658_v16, %v2656_v3  ;;  %v13337_v9 = vmax.f32 %v13319_v30, %v13329_v12  ;;  %v17314_v51 = vrot.slane %v13257_v28, 6  ;;  %v11423_v53 = vpack.i.bf16 %v2662_v0, %v2660_v48 }
 0x1da   : > { %11419 = vrot.lane.b32.xlu0 %v11418_v36, %s17262_s22  ;;  %v17315_v28 = vmov 0.0   ;;  %vm17080_vm11 = vcmask 261120   ;;  %vm17100_vm4 = vcmask 523264   ;;  %vm17079_vm5 = vcmask 785408  }
 0x1db   : > { %v13343_v20 = vsel %vm660_vm1, %v17314_v51, %v2100_v39  ;;  %11409 = vrot.lane.b32.xlu1 %v11408_v62, %s17076_s26  ;;  %v17063_v42 = vrot.slane %v13337_v9, 6  ;;  %v11428_v2 = vpack.i.bf16 %v13337_v9, %v2071_v26  ;;  %v11438_v16 = vpack.i.bf16 %v17315_v28, %v2073_v43 }
 0x1dd   : > { %v13354_v36 = vsel %vm660_vm1, %v2100_v39, %v17063_v42 }
 0x1de   : > { %11424 = vrot.lane.b32.xlu0 %v11423_v53, %s17076_s26 }
 0x1df   : > { %11429 = vrot.lane.b32.xlu1 %v11428_v2, %s17262_s22 }
 0x1e3   : > { %11434 = vrot.lane.b32.xlu1 %v11428_v2, %s17076_s26 }
 0x1e7   : > { %11439 = vrot.lane.b32.xlu1 %v11438_v16, %s17076_s26  ;;  %s17331_s26 = smov 64  }
 0x1eb   : > { %v11305_v62 = vpop.permute.xlu0 %11304 }
 0x1ec   : > { %v11307_v3 = vunpack.i.h.bf16 %v11305_v62  ;;  %v11306_v4 = vunpack.i.l.bf16 %v11305_v62  ;;  %v17316_v62 = vrot.slane %v13266_v54, 6 }
 0x1ee   : > { %v2171_v53 = vsel %vm17080_vm11, %v2097_v38, %v11306_v4  ;;  %v2172_v43 = vsel %vm17080_vm11, %v13280_v22, %v11307_v3  ;;  %v2111_v15 = vsel %vm660_vm1, 0.0, %v17316_v62 }
 0x1ef   : > { %v11310_v24 = vpop.permute.xlu0 %11309 }
 0x1f0   : > { %v11312_v2 = vunpack.i.h.bf16 %v11310_v24  ;;  %v11311_v16 = vunpack.i.l.bf16 %v11310_v24 }
 0x1f2   : > { %v2170_v38 = vsel %vm17080_vm11, %v2095_v56, %v11312_v2 }
 0x1fb   : > { %v13360_v59 = vpop.permute.xlu0 %11314 }
 0x1fc   : > { %v11316_v4 = vunpack.i.l.bf16 %v13360_v59 }
 0x208   : > { %v11320_v26 = vpop.permute.xlu0 %11319 }
 0x20b   : > { %v11330_v39 = vpop.permute.xlu1 %11329 }
 0x20c   : > { %v11325_v48 = vpop.permute.xlu0 %11324  ;;  %v11332_v54 = vunpack.i.h.bf16 %v11330_v39 }
 0x20d   : > { %v11327_v0 = vunpack.i.h.bf16 %v11325_v48  ;;  %v11326_v51 = vunpack.i.l.bf16 %v11325_v48  ;;  %v2169_v48 = vsel %vm17080_vm11, %v2111_v15, %v11311_v16 }
 0x20f   : > { %v2179_v42 = vsel %vm17100_vm4, %v2171_v53, %v11326_v51  ;;  %v2180_v12 = vsel %vm17100_vm4, %v2172_v43, %v11327_v0  ;;  %v11335_v11 = vpop.permute.xlu1 %11334 }
 0x210   : > { %v2185_v30 = vpack.c.bf16 %v2180_v12, %v2179_v42  ;;  %v11337_v50 = vunpack.i.h.bf16 %v11335_v11  ;;  %v11336_v45 = vunpack.i.l.bf16 %v11335_v11  ;;  %v11331_v12 = vunpack.i.l.bf16 %v11330_v39 }
 0x211   : > { %v11317_v42 = vunpack.i.h.bf16 %v13360_v59  ;;  %v2378_v39 = vsel %vm17080_vm11, %v12905_v58, %v11332_v54  ;;  %v11340_v59 = vpop.permute.xlu0 %11339  ;;  %v2173_v58 = vsel %vm17080_vm11, %v13343_v20, %v11316_v4 }
 0x212   : > { %v2177_v22 = vsel %vm17100_vm4, %v2169_v48, %v11336_v45  ;;  %v2178_v24 = vsel %vm17100_vm4, %v2170_v38, %v11337_v50  ;;  %v11322_v45 = vunpack.i.h.bf16 %v11320_v26  ;;  %v11321_v50 = vunpack.i.l.bf16 %v11320_v26 }
 0x213   : > { %v2184_v3 = vpack.c.bf16 %v2178_v24, %v2177_v22  ;;  %v2377_v2 = vsel %vm17080_vm11, %v12911_v61, %v11331_v12  ;;  %v2174_v61 = vsel %vm17080_vm11, %v13354_v36, %v11317_v42  ;;  %v17317_v36 = vrot.slane %v13337_v9, 6 }
 0x214   : > { %v2380_v51 = vsel %vm17080_vm11, %v12894_v47, %v11322_v45  ;;  %v2379_v53 = vsel %vm17080_vm11, %v12884_v44, %v11321_v50  ;;  %v11342_v50 = vunpack.i.h.bf16 %v11340_v59 }
 0x215   : > { %10658 = vmatprep.mubr.msk.bf16.mxu0 %vm17079_vm5, %v2184_v3 }
 0x216   : > { %10659 = vmatmul.mubr.msk.bf16.vlgmr.msra.gmra.mxu0 %vm17079_vm5, %v2185_v30 }
 0x217   : > { %10687 = vmatpush3.bf16.msra.mxu0 %v12927_v25  ;;  %v11345_v11 = vpop.permute.xlu1 %11344 }
 0x218   : > { %10688 = vmatprep.subr.bf16.mxu0 %v12932_v7 }
 0x21b   : > { %10689 = vmatpush3.bf16.msra.mxu0 %v12932_v7 }
 0x21c   : > { %10690 = vmatprep.subr.bf16.mxu0 %v12954_v40 }
 0x21f   : > { %10691 = vmatpush3.bf16.msra.mxu0 %v12954_v40 }
 0x220   : > { %10692 = vmatprep.subr.bf16.mxu0 %v12985_v27 }
 0x223   : > { %10693 = vmatpush3.bf16.msra.mxu0 %v12985_v27 }
 0x224   : > { %v11350_v15 = vpop.permute.xlu1 %11349  ;;  %10694 = vmatprep.subr.bf16.mxu0 %v13010_v34 }
 0x225   : > { %v11352_v56 = vunpack.i.h.bf16 %v11350_v15  ;;  %v11351_v30 = vunpack.i.l.bf16 %v11350_v15  ;;  %v11341_v15 = vunpack.i.l.bf16 %v11340_v59 }
 0x227   : > { %10695 = vmatpush3.bf16.msra.mxu0 %v13010_v34  ;;  %v2387_v16 = vsel %vm17100_vm4, %v2380_v51, %v11352_v56  ;;  %v2386_v62 = vsel %vm17100_vm4, %v2379_v53, %v11351_v30  ;;  %v11365_v45 = vpop.permute.xlu0 %11364  ;;  %v11347_v56 = vunpack.i.h.bf16 %v11345_v11  ;;  %v11346_v30 = vunpack.i.l.bf16 %v11345_v11 }
 0x228   : > { %v11355_v0 = vpop.permute.xlu1 %11354  ;;  %10696 = vmatprep.subr.bf16.mxu0 %v13038_v32  ;;  %v2392_v22 = vpack.c.bf16 %v2387_v16, %v2386_v62  ;;  %v2175_v42 = vsel %vm17080_vm11, %v17317_v36, %v11341_v15 }
 0x229   : > { %v11357_v26 = vunpack.i.h.bf16 %v11355_v0  ;;  %v11356_v43 = vunpack.i.l.bf16 %v11355_v0 }
 0x22b   : > { %v2384_v47 = vsel %vm17100_vm4, %v2377_v2, %v11356_v43  ;;  %v2385_v48 = vsel %vm17100_vm4, %v2378_v39, %v11357_v26  ;;  %10697 = vmatpush3.bf16.msra.mxu0 %v13038_v32  ;;  %v2383_v26 = vsel %vm17080_vm11, %v13072_v21, %v11342_v50  ;;  %v2381_v2 = vsel %vm17080_vm11, %v12961_v49, %v11346_v30 }
 0x22c   : > { %v11360_v44 = vpop.permute.xlu1 %11359  ;;  %v2391_v38 = vpack.c.bf16 %v2385_v48, %v2384_v47  ;;  %v11367_v48 = vunpack.i.h.bf16 %v11365_v45 }
 0x22d   : > { %v11362_v24 = vunpack.i.h.bf16 %v11360_v44  ;;  %v11361_v3 = vunpack.i.l.bf16 %v11360_v44 }
 0x22e   : > { %10678 = vmatprep.mubr.msk.bf16.mxu1 %vm17079_vm5, %v2391_v38  ;;  %v11366_v38 = vunpack.i.l.bf16 %v11365_v45 }
 0x22f   : > { %v2181_v54 = vsel %vm17100_vm4, %v2173_v58, %v11361_v3  ;;  %v2182_v12 = vsel %vm17100_vm4, %v2174_v61, %v11362_v24  ;;  %10679 = vmatmul.mubr.msk.bf16.vlgmr.msra.gmra.mxu1 %vm17079_vm5, %v2392_v22 }
 0x230   : > { %v11370_v0 = vpop.permute.xlu1 %11369  ;;  %v2186_v51 = vpack.c.bf16 %v2182_v12, %v2181_v54  ;;  %10707 = vmatpush3.bf16.msra.mxu1 %v12927_v25  ;;  %v2382_v25 = vsel %vm17080_vm11, %v12965_v29, %v11347_v56  ;;  %v2536_v54 = vsel %vm17080_vm11, %v13048_v13, %v11367_v48 }
 0x231   : > { %v11372_v20 = vunpack.i.h.bf16 %v11370_v0  ;;  %v11371_v4 = vunpack.i.l.bf16 %v11370_v0  ;;  %10708 = vmatprep.subr.bf16.mxu1 %v12932_v7 }
 0x232   : > { %10662 = vmatprep.mubr.msk.bf16.mxu0 %vm17079_vm5, %v2186_v51 }
 0x233   : > { %v11375_v53 = vpop.permute.xlu0 %11374  ;;  %v2183_v39 = vsel %vm17100_vm4, %v2175_v42, %v11371_v4  ;;  %v2390_v9 = vsel %vm17100_vm4, %v2383_v26, %v11372_v20 }
 0x234   : > { %v11377_v43 = vunpack.i.h.bf16 %v11375_v53  ;;  %v11376_v11 = vunpack.i.l.bf16 %v11375_v53  ;;  %v2187_v59 = vpack.c.bf16 %v2183_v39, %v2183_v39  ;;  %10709 = vmatpush3.bf16.msra.mxu1 %v12932_v7  ;;  %v2394_v47 = vpack.c.bf16 %v2390_v9, %v2390_v9  ;;  %v11385_v29 = vpop.permute.xlu1 %11384 }
 0x235   : > { %10710 = vmatprep.subr.bf16.mxu1 %v12954_v40  ;;  %v11387_v61 = vunpack.i.h.bf16 %v11385_v29 }
 0x236   : > { %v2388_v16 = vsel %vm17100_vm4, %v2381_v2, %v11376_v11  ;;  %v2389_v62 = vsel %vm17100_vm4, %v2382_v25, %v11377_v43  ;;  %10663 = vmatmul.mubr.msk.bf16.gmra.mxu0 %vm17079_vm5, %v2187_v59 }
 0x237   : > { %v2393_v21 = vpack.c.bf16 %v2389_v62, %v2388_v16  ;;  %v11380_v49 = vpop.permute.xlu0 %11379 }
 0x238   : > { %10711 = vmatpush3.bf16.msra.mxu1 %v12954_v40  ;;  %v11382_v22 = vunpack.i.h.bf16 %v11380_v49  ;;  %v11381_v24 = vunpack.i.l.bf16 %v11380_v49 }
 0x239   : > { %10682 = vmatprep.mubr.msk.bf16.mxu1 %vm17079_vm5, %v2393_v21  ;;  %10712 = vmatprep.subr.bf16.mxu1 %v12985_v27 }
 0x23a   : > { %10683 = vmatmul.mubr.msk.bf16.gmra.mxu1 %vm17079_vm5, %v2394_v47  ;;  %v2538_v56 = vsel %vm17080_vm11, %v13024_v41, %v11382_v22  ;;  %v2537_v13 = vsel %vm17080_vm11, %v13014_v6, %v11381_v24 }
 0x23c   : > { %10713 = vmatpush3.bf16.msra.mxu1 %v12985_v27  ;;  %v11386_v27 = vunpack.i.l.bf16 %v11385_v29 }
 0x23d   : > { %10714 = vmatprep.subr.bf16.mxu1 %v13010_v34 }
 0x240   : > { %v11390_v7 = vpop.permute.xlu0 %11389  ;;  %10715 = vmatpush3.bf16.msra.mxu1 %v13010_v34 }
 0x241   : > { %10716 = vmatprep.subr.bf16.mxu1 %v13038_v32  ;;  %v11392_v36 = vunpack.i.h.bf16 %v11390_v7 }
 0x243   : > { %v11400_v40 = vpop.permute.xlu1 %11399  ;;  %v2708_v2 = vsel %vm17080_vm11, %v13144_v1, %v11392_v36  ;;  %v11825_v36 = vld [vmem:[%s17319_s5 + $0x10] sm:$0xff]  }
 0x244   : > { %v11395_v44 = vpop.permute.xlu0 %11394  ;;  %10717 = vmatpush3.bf16.msra.mxu1 %v13038_v32  ;;  %v11402_v3 = vunpack.i.h.bf16 %v11400_v40  ;;  %v11401_v58 = vunpack.i.l.bf16 %v11400_v40  ;;  %v2535_v32 = vsel %vm17080_vm11, %v13042_v33, %v11366_v38 }
 0x245   : > { %v11397_v15 = vunpack.i.h.bf16 %v11395_v44  ;;  %v11396_v50 = vunpack.i.l.bf16 %v11395_v44 }
 0x246   : > { %v2706_v34 = vsel %vm17080_vm11, %v13157_v23, %v11402_v3  ;;  %v2705_v45 = vsel %vm17080_vm11, %v13164_v52, %v11401_v58  ;;  %v11391_v52 = vunpack.i.l.bf16 %v11390_v7 }
 0x247   : > { %v11405_v30 = vpop.permute.xlu1 %11404  ;;  %v2712_v0 = vsel %vm17100_vm4, %v2705_v45, %v11386_v27  ;;  %v2713_v51 = vsel %vm17100_vm4, %v2706_v34, %v11387_v61  ;;  %v2545_v42 = vsel %vm17100_vm4, %v2538_v56, %v11397_v15  ;;  %v2544_v33 = vsel %vm17100_vm4, %v2537_v13, %v11396_v50 }
 0x248   : > { %v11415_v12 = vpop.permute.xlu0 %11414  ;;  %v11407_v20 = vunpack.i.h.bf16 %v11405_v30  ;;  %v11406_v23 = vunpack.i.l.bf16 %v11405_v30  ;;  %v2719_v4 = vpack.c.bf16 %v2713_v51, %v2712_v0  ;;  %v2550_v39 = vpack.c.bf16 %v2545_v42, %v2544_v33  ;;  %v11827_v42 = vld [vmem:[%s17319_s5] sm:$0xff]   ;;  %v11828_v33 = vld [vmem:[%s17319_s5 + $0x58] sm:$0xff]  }
 0x249   : > { %v2707_v59 = vsel %vm17080_vm11, %v13134_v37, %v11391_v52  ;;  %v11417_v44 = vunpack.i.h.bf16 %v11415_v12  ;;  %v11416_v1 = vunpack.i.l.bf16 %v11415_v12  ;;  %v17082_v13 = vmov 0   ;;  %v11826_v52 = vld [vmem:[%s17319_s5 + $0x8] sm:$0xff]  }
 0x24a   : > { %v2543_v53 = vsel %vm17100_vm4, %v2536_v54, %v11407_v20  ;;  %v2542_v41 = vsel %vm17100_vm4, %v2535_v32, %v11406_v23  ;;  %10718 = vmatprep.mubr.msk.bf16.mxu1 %vm17079_vm5, %v2719_v4  ;;  %3031 = vmatprep.subr.bf16.mxu0 %v17082_v13  ;;  %v11822_v20 = vld [vmem:[%s17319_s5 + $0x28] sm:$0xff]   ;;  %v11823_v23 = vld [vmem:[%s17319_s5 + $0x20] sm:$0xff]   ;;  %v11824_v4 = vld [vmem:[%s17319_s5 + $0x18] sm:$0xff]  }
 0x24b   : > { %v2549_v11 = vpack.c.bf16 %v2543_v53, %v2542_v41  ;;  %v2540_v27 = vsel %vm17080_vm11, %v13102_v18, %v11417_v44  ;;  %v2539_v15 = vsel %vm17080_vm11, %v13098_v17, %v11416_v1  ;;  %3184 = vmatprep.subr.bf16.mxu1 %v17082_v13  ;;  %v11829_v53 = vld [vmem:[%s17319_s5 + $0x50] sm:$0xff]   ;;  %v11830_v41 = vld [vmem:[%s17319_s5 + $0x48] sm:$0xff]  }
 0x24c   : > { %v11420_v26 = vpop.permute.xlu0 %11419 }
 0x24d   : > { %v11410_v43 = vpop.permute.xlu1 %11409  ;;  %10698 = vmatprep.mubr.msk.bf16.mxu0 %vm17079_vm5, %v2549_v11  ;;  %v11422_v50 = vunpack.i.h.bf16 %v11420_v26  ;;  %v11421_v54 = vunpack.i.l.bf16 %v11420_v26  ;;  %v13553_v11 = vld [vmem:[%s17320_s4] ss:$0 sm:$0xff] }
 0x24e   : > { %v11412_v6 = vunpack.i.h.bf16 %v11410_v43  ;;  %v11411_v25 = vunpack.i.l.bf16 %v11410_v43  ;;  %10699 = vmatmul.mubr.msk.bf16.vlgmr.msra.gmra.mxu0 %vm17079_vm5, %v2550_v39 }
 0x24f   : > { %v2711_v18 = vsel %vm17080_vm11, %v13188_v63, %v11422_v50  ;;  %v2541_v17 = vsel %vm17080_vm11, %v13078_v5, %v11421_v54  ;;  %v11820_v63 = vld [vmem:[%s17319_s5 + $0x38] sm:$0xff]   ;;  %v11821_v5 = vld [vmem:[%s17319_s5 + $0x30] sm:$0xff]   ;;  %v11831_v50 = vld [vmem:[%s17319_s5 + $0x40] sm:$0xff]   ;;  %s17142_s5 = sand.u32 1, %s12219_s28  }
 0x250   : > { %v2715_v9 = vsel %vm17100_vm4, %v2708_v2, %v11412_v6  ;;  %v2714_v16 = vsel %vm17100_vm4, %v2707_v59, %v11411_v25  ;;  %v11425_v62 = vpop.permute.xlu0 %11424  ;;  %3032 = vmatpush1.bf16.msra.mxu0 %v11820_v63  ;;  %s14662_s1 = sshll.u32 %s17142_s5, 1  ;;  %s12240_s5 = smov 20  }
 0x251   : > { %v2720_v21 = vpack.c.bf16 %v2715_v9, %v2714_v16  ;;  %v11430_v47 = vpop.permute.xlu1 %11429  ;;  %v11427_v49 = vunpack.i.h.bf16 %v11425_v62  ;;  %v11426_v7 = vunpack.i.l.bf16 %v11425_v62  ;;  %3033 = vmatprep.subr.bf16.mxu0 %v17082_v13  ;;  %s576_s4 = scalar_lea.vmem [#allocation2], %s14662_s1  ;;  %s9390_s1 = scalar_lea.sflag [#allocation3], %s17845_s0 }
 0x252   : > { %v11432_v29 = vunpack.i.h.bf16 %v11430_v47  ;;  %v11431_v48 = vunpack.i.l.bf16 %v11430_v47  ;;  %s9406_s25 = sshll.u32 %s576_s4, 4  ;;  %s16807_s25 = int_to_ptr.vmem [resolvable:$true] %s9406_s25 }
 0x253   : > { %10719 = vmatmul.mubr.msk.bf16.vlgmr.msra.gmra.mxu1 %vm17079_vm5, %v2720_v21 }
 0x254   : > { %v2710_v37 = vsel %vm17080_vm11, %v13207_v19, %v11432_v29  ;;  %v2709_v38 = vsel %vm17080_vm11, %v13203_v14, %v11431_v48  ;;  %3185 = vmatpush1.bf16.msra.mxu1 %v11820_v63  ;;  %3034 = vmatpush1.bf16.msra.mxu0 %v11821_v5 }
 0x255   : > { %v2716_v22 = vsel %vm17100_vm4, %v2709_v38, %v11426_v7  ;;  %v2717_v40 = vsel %vm17100_vm4, %v2710_v37, %v11427_v49  ;;  %v11435_v24 = vpop.permute.xlu1 %11434  ;;  %3186 = vmatprep.subr.bf16.mxu1 %v17082_v13  ;;  %3035 = vmatprep.subr.bf16.mxu0 %v17082_v13 }
 0x256   : > { %v11437_v3 = vunpack.i.h.bf16 %v11435_v24  ;;  %v11436_v58 = vunpack.i.l.bf16 %v11435_v24  ;;  %v2721_v61 = vpack.c.bf16 %v2717_v40, %v2716_v22 }
 0x258   : > { %v2547_v19 = vsel %vm17100_vm4, %v2540_v27, %v11437_v3  ;;  %v2546_v14 = vsel %vm17100_vm4, %v2539_v15, %v11436_v58  ;;  %10722 = vmatprep.mubr.msk.bf16.mxu1 %vm17079_vm5, %v2721_v61  ;;  %3187 = vmatpush1.bf16.msra.mxu1 %v11821_v5 }
 0x259   : > { %v13478_v34 = vpop.permute.xlu1 %11439  ;;  %v2551_v45 = vpack.c.bf16 %v2547_v19, %v2546_v14  ;;  %3188 = vmatprep.subr.bf16.mxu1 %v17082_v13  ;;  %3036 = vmatpush1.bf16.msra.mxu0 %v11822_v20 }
 0x25a   : > { %17318 = vst [vmem:[#allocation66_spill] sm:$0xff] %v13478_v34  ;;  %v17081_v12 = vunpack.i.h.bf16 %v13478_v34  ;;  %v11441_v32 = vunpack.i.l.bf16 %v13478_v34  ;;  %3037 = vmatprep.subr.bf16.mxu0 %v17082_v13 }
 0x25b   : > { %10702 = vmatprep.mubr.msk.bf16.mxu0 %vm17079_vm5, %v2551_v45 }
 0x25c   : > { %v2548_v56 = vsel %vm17100_vm4, %v2541_v17, %v11441_v32  ;;  %v2718_v30 = vsel %vm17100_vm4, %v2711_v18, %v17081_v12  ;;  %3189 = vmatpush1.bf16.msra.mxu1 %v11822_v20 }
 0x25d   : > { %v2552_v0 = vpack.c.bf16 %v2548_v56, %v2548_v56  ;;  %v2722_v51 = vpack.c.bf16 %v2718_v30, %v2718_v30  ;;  %3190 = vmatprep.subr.bf16.mxu1 %v17082_v13  ;;  %3038 = vmatpush1.bf16.msra.mxu0 %v11823_v23 }
 0x25e   : > { %3039 = vmatprep.subr.bf16.mxu0 %v17082_v13 }
 0x25f   : > { %10703 = vmatmul.mubr.msk.bf16.gmra.mxu0 %vm17079_vm5, %v2552_v0  ;;  %10723 = vmatmul.mubr.msk.bf16.gmra.mxu1 %vm17079_vm5, %v2722_v51 }
 0x260   : > { %3191 = vmatpush1.bf16.msra.mxu1 %v11823_v23 }
 0x261   : > { %3192 = vmatprep.subr.bf16.mxu1 %v17082_v13  ;;  %3040 = vmatpush1.bf16.msra.mxu0 %v11824_v4 }
 0x262   : > { %3041 = vmatprep.subr.bf16.mxu0 %v17082_v13 }
 0x264   : > { %3193 = vmatpush1.bf16.msra.mxu1 %v11824_v4 }
 0x265   : > { %3194 = vmatprep.subr.bf16.mxu1 %v17082_v13  ;;  %3042 = vmatpush1.bf16.msra.mxu0 %v11825_v36 }
 0x266   : > { %3043 = vmatprep.subr.bf16.mxu0 %v17082_v13 }
 0x268   : > { %3195 = vmatpush1.bf16.msra.mxu1 %v11825_v36 }
 0x269   : > { %3196 = vmatprep.subr.bf16.mxu1 %v17082_v13  ;;  %3044 = vmatpush1.bf16.msra.mxu0 %v11826_v52 }
 0x26a   : > { %3045 = vmatprep.subr.bf16.mxu0 %v17082_v13 }
 0x26c   : > { %3197 = vmatpush1.bf16.msra.mxu1 %v11826_v52 }
 0x26d   : > { %3198 = vmatprep.subr.bf16.mxu1 %v17082_v13  ;;  %3046 = vmatpush1.bf16.msra.mxu0 %v11827_v42 }
 0x26e   : > { %3055 = vmatprep.subr.bf16.mxu0 %v17082_v13 }
 0x270   : > { %3199 = vmatpush1.bf16.msra.mxu1 %v11827_v42 }
 0x271   : > { %3208 = vmatprep.subr.bf16.mxu1 %v17082_v13  ;;  %3056 = vmatpush2.bf16.msra.mxu0 %v11828_v33 }
 0x272   : > { %3057 = vmatprep.subr.bf16.mxu0 %v17082_v13 }
 0x274   : > { %3209 = vmatpush2.bf16.msra.mxu1 %v11828_v33 }
 0x275   : > { %3210 = vmatprep.subr.bf16.mxu1 %v17082_v13  ;;  %3058 = vmatpush2.bf16.msra.mxu0 %v11829_v53 }
 0x276   : > { %3059 = vmatprep.subr.bf16.mxu0 %v17082_v13 }
 0x278   : > { %3211 = vmatpush2.bf16.msra.mxu1 %v11829_v53 }
 0x279   : > { %3212 = vmatprep.subr.bf16.mxu1 %v17082_v13  ;;  %3060 = vmatpush2.bf16.msra.mxu0 %v11830_v41 }
 0x27a   : > { %3061 = vmatprep.subr.bf16.mxu0 %v17082_v13 }
 0x27c   : > { %3213 = vmatpush2.bf16.msra.mxu1 %v11830_v41 }
 0x27d   : > { %3214 = vmatprep.subr.bf16.mxu1 %v17082_v13  ;;  %3062 = vmatpush2.bf16.msra.mxu0 %v11831_v50 }
 0x280   : > { %3215 = vmatpush2.bf16.msra.mxu1 %v11831_v50 }
 0x2d6   : > { %v10660_v26 = vpop.f32.mrf.mxu0 }
 0x2d7   : > { %v2286_v6 = vadd.f32 %v10660_v26, %v13553_v11 }
 0x2d8   : > { %v2277_v43 = vpop.f32.mrf.mxu0 }
 0x2d9   : > { %v2278_v25 = vadd.f32 %v13553_v11, %v2277_v43  ;;  %v2316_v59 = vmul.f32 0.01, %v2286_v6  ;;  %vm2309_vm5 = vcmp.gt.f32.partialorder %v2286_v6, 0.0 }
 0x2da   : > { %v10661_v39 = vpop.f32.mrf.mxu0 }
 0x2db   : > { %v2314_v9 = vmul.f32 0.01, %v2278_v25  ;;  %v2289_v16 = vadd.f32 %v10661_v39, %v13553_v11  ;;  %vm2307_vm11 = vcmp.gt.f32.partialorder %v2278_v25, 0.0  ;;  %v13561_v48 = vsel %vm2309_vm5, %v2286_v6, %v2316_v59 }
 0x2dc   : > { %v2280_v2 = vpop.f32.mrf.mxu0  ;;  %17321 = vst [vmem:[#allocation67_spill] sm:$0xff] %v13561_v48 }
 0x2dd   : > { %v2281_v47 = vadd.f32 %v13553_v11, %v2280_v2  ;;  %v13563_v44 = vsel %vm2307_vm11, %v2278_v25, %v2314_v9  ;;  %v2317_v1 = vmul.f32 0.01, %v2289_v16  ;;  %vm2310_vm10 = vcmp.gt.f32.partialorder %v2289_v16, 0.0 }
 0x2de   : > { %17322 = vst [vmem:[#allocation68_spill] sm:$0xff] %v13563_v44 }
 0x2df   : > { %vm2308_vm8 = vcmp.gt.f32.partialorder %v2281_v47, 0.0  ;;  %v2315_v24 = vmul.f32 0.01, %v2281_v47  ;;  %v13579_v19 = vsel %vm2310_vm10, %v2289_v16, %v2317_v1 }
 0x2e0   : > { %17325 = vst [vmem:[#allocation71_spill] sm:$0xff] %v13579_v19 }
 0x2e1   : > { %v13584_v18 = vsel %vm2308_vm8, %v2281_v47, %v2315_v24 }
 0x2e2   : > { %17327 = vst [vmem:[#allocation73_spill] sm:$0xff] %v13584_v18 }
 0x2ef   : > { %v10680_v62 = vpop.f32.mrf.mxu1 }
 0x2f0   : > { %v2450_v21 = vadd.f32 %v10680_v62, %v13553_v11 }
 0x2f1   : > { %v2441_v49 = vpop.f32.mrf.mxu1 }
 0x2f2   : > { %vm2473_vm15 = vcmp.gt.f32.partialorder %v2450_v21, 0.0  ;;  %v2480_v7 = vmul.f32 0.01, %v2450_v21  ;;  %v2442_v29 = vadd.f32 %v13553_v11, %v2441_v49 }
 0x2f3   : > { %v10681_v37 = vpop.f32.mrf.mxu1 }
 0x2f4   : > { %v13565_v38 = vsel %vm2473_vm15, %v2450_v21, %v2480_v7  ;;  %vm2471_vm7 = vcmp.gt.f32.partialorder %v2442_v29, 0.0  ;;  %v2478_v22 = vmul.f32 0.01, %v2442_v29  ;;  %v2453_v40 = vadd.f32 %v10681_v37, %v13553_v11 }
 0x2f5   : > { %17323 = vst [vmem:[#allocation69_spill] sm:$0xff] %v13565_v38  ;;  %v2444_v3 = vpop.f32.mrf.mxu1  ;;  %v13588_v17 = vmax.f32 %v13561_v48, %v13565_v38 }
 0x2f6   : > { %v13570_v58 = vsel %vm2471_vm7, %v2442_v29, %v2478_v22  ;;  %vm2474_vm5 = vcmp.gt.f32.partialorder %v2453_v40, 0.0  ;;  %v2481_v61 = vmul.f32 0.01, %v2453_v40  ;;  %v2445_v27 = vadd.f32 %v13553_v11, %v2444_v3  ;;  %v10664_v15 = vpop.f32.mrf.mxu0 }
 0x2f7   : > { %17324 = vst [vmem:[#allocation70_spill] sm:$0xff] %v13570_v58  ;;  %v2302_v54 = vadd.f32 %v10664_v15, %v13553_v11  ;;  %v13594_v30 = vmax.f32 %v13563_v44, %v13570_v58  ;;  %v17084_v43 = vrot.slane %v13588_v17, 2  ;;  %v5506_v44 = vld [vmem:[%s16955_s10] sm:$0xff] }
 0x2f8   : > { %v13581_v14 = vsel %vm2474_vm5, %v2453_v40, %v2481_v61  ;;  %vm2472_vm7 = vcmp.gt.f32.partialorder %v2445_v27, 0.0  ;;  %v2479_v45 = vmul.f32 0.01, %v2445_v27  ;;  %v2293_v32 = vpop.f32.mrf.mxu0 }
 0x2f9   : > { %17326 = vst [vmem:[#allocation72_spill] sm:$0xff] %v13581_v14  ;;  %v2294_v51 = vadd.f32 %v13553_v11, %v2293_v32  ;;  %v2320_v23 = vmul.f32 0.01, %v2302_v54  ;;  %v13608_v36 = vmax.f32 %v13579_v19, %v13581_v14  ;;  %vm2313_vm10 = vcmp.gt.f32.partialorder %v2302_v54, 0.0 }
 0x2fa   : > { %v10684_v56 = vpop.f32.mrf.mxu1  ;;  %v13596_v0 = vsel %vm2472_vm7, %v2445_v27, %v2479_v45  ;;  %v10665_v63 = vpop.f32.mrf.mxu0  ;;  %v3116_v39 = vrot.slane %v13594_v30, 2 }
 0x2fb   : > { %17328 = vst [vmem:[#allocation74_spill] sm:$0xff] %v13596_v0  ;;  %v2466_v5 = vadd.f32 %v10684_v56, %v13553_v11  ;;  %v13602_v20 = vmax.f32 %v13584_v18, %v13596_v0  ;;  %v2318_v6 = vmul.f32 0.01, %v2294_v51  ;;  %v13617_v2 = vsel %vm2313_vm10, %v2302_v54, %v2320_v23 }
 0x2fc   : > { %v2457_v4 = vpop.f32.mrf.mxu1  ;;  %v2296_v52 = vpop.f32.mrf.mxu0  ;;  %17329 = vst [vmem:[#allocation75_spill] sm:$0xff] %v13617_v2  ;;  %vm2311_vm7 = vcmp.gt.f32.partialorder %v2294_v51, 0.0  ;;  %v11453_v7 = vpack.i.bf16 %v13608_v36, %v13588_v17 }
 0x2fd   : > { %vm2477_vm5 = vcmp.gt.f32.partialorder %v2466_v5, 0.0  ;;  %v3117_v42 = vrot.slane %v13602_v20, 2  ;;  %v2484_v33 = vmul.f32 0.01, %v2466_v5  ;;  %v2297_v53 = vadd.f32 %v13553_v11, %v2296_v52 }
 0x2fe   : > { %v2458_v41 = vadd.f32 %v13553_v11, %v2457_v4  ;;  %v10685_v26 = vpop.f32.mrf.mxu1  ;;  %v11443_v25 = vpack.i.bf16 %v13602_v20, %v13594_v30  ;;  %v13631_v29 = vsel %vm2311_vm7, %v2294_v51, %v2318_v6 }
 0x2ff   : > { %v13619_v59 = vsel %vm2477_vm5, %v2466_v5, %v2484_v33  ;;  %v2319_v16 = vmul.f32 0.01, %v2297_v53  ;;  %v3118_v47 = vsel %vm780_vm0, %v3116_v39, %v3117_v42  ;;  %vm2312_vm13 = vcmp.gt.f32.partialorder %v2297_v53, 0.0  ;;  %17332 = vst [vmem:[#allocation77_spill] sm:$0xff] %v13631_v29 }
 0x300   : > { %17330 = vst [vmem:[#allocation76_spill] sm:$0xff] %v13619_v59  ;;  %vm2475_vm9 = vcmp.gt.f32.partialorder %v2458_v41, 0.0  ;;  %v2460_v9 = vpop.f32.mrf.mxu1  ;;  %v2482_v62 = vmul.f32 0.01, %v2458_v41  ;;  %11444 = vrot.lane.b32.xlu0 %v11443_v25, %s17331_s26  ;;  %v3120_v49 = vsel %vm780_vm0, %v3117_v42, %v17084_v43 }
 0x301   : > { %v2461_v21 = vadd.f32 %v13553_v11, %v2460_v9  ;;  %v3165_v22 = vpack.c.bf16 %v3120_v49, %v3118_v47  ;;  %v13637_v40 = vsel %vm2312_vm13, %v2297_v53, %v2319_v16 }
 0x302   : > { %v13633_v1 = vsel %vm2475_vm9, %v2458_v41, %v2482_v62  ;;  %17334 = vst [vmem:[#allocation79_spill] sm:$0xff] %v13637_v40 }
 0x303   : > { %17333 = vst [vmem:[#allocation78_spill] sm:$0xff] %v13633_v1  ;;  %vm2476_vm5 = vcmp.gt.f32.partialorder %v2461_v21, 0.0  ;;  %v2483_v37 = vmul.f32 0.01, %v2461_v21  ;;  %v13644_v3 = vmax.f32 %v13631_v29, %v13633_v1  ;;  %9620 = vmatprep.mubr.msk.bf16.mxu1 %vm17100_vm4, %v3165_v22 }
 0x304   : > { %11454 = vrot.lane.b32.xlu0 %v11453_v7, %s17331_s26 }
 0x305   : > { %v13639_v24 = vsel %vm2476_vm5, %v2461_v21, %v2483_v37 }
 0x306   : > { %17335 = vst [vmem:[#allocation80_spill] sm:$0xff] %v13639_v24  ;;  %v13648_v61 = vmax.f32 %v13637_v40, %v13639_v24 }
 0x308   : > { %v11463_v27 = vpack.i.bf16 %v13648_v61, %v13644_v3 }
 0x30a   : > { %11464 = vrot.lane.b32.xlu0 %v11463_v27, %s17331_s26 }
 0x30e   : > { %v10700_v15 = vpop.f32.mrf.mxu0 }
 0x30f   : > { %v2608_v50 = vadd.f32 %v10700_v15, %v13553_v11 }
 0x310   : > { %v2599_v54 = vpop.f32.mrf.mxu0 }
 0x311   : > { %v2638_v45 = vmul.f32 0.01, %v2608_v50  ;;  %v2600_v32 = vadd.f32 %v13553_v11, %v2599_v54  ;;  %vm2631_vm13 = vcmp.gt.f32.partialorder %v2608_v50, 0.0 }
 0x312   : > { %v10701_v63 = vpop.f32.mrf.mxu0 }
 0x313   : > { %v10720_v56 = vpop.f32.mrf.mxu1  ;;  %v2611_v5 = vadd.f32 %v10701_v63, %v13553_v11  ;;  %v2636_v4 = vmul.f32 0.01, %v2600_v32  ;;  %v13661_v53 = vsel %vm2631_vm13, %v2608_v50, %v2638_v45  ;;  %vm2629_vm5 = vcmp.gt.f32.partialorder %v2600_v32, 0.0 }
 0x314   : > { %v2778_v51 = vadd.f32 %v10720_v56, %v13553_v11  ;;  %v2602_v33 = vpop.f32.mrf.mxu0  ;;  %17336 = vst [vmem:[#allocation81_spill] sm:$0xff] %v13661_v53  ;;  %v13696_v45 = vmax.f32 %v13617_v2, %v13619_v59 }
 0x315   : > { %v2769_v23 = vpop.f32.mrf.mxu1  ;;  %v2639_v41 = vmul.f32 0.01, %v2611_v5  ;;  %v2603_v26 = vadd.f32 %v13553_v11, %v2602_v33  ;;  %vm2632_vm6 = vcmp.gt.f32.partialorder %v2611_v5, 0.0  ;;  %v13669_v62 = vsel %vm2629_vm5, %v2600_v32, %v2636_v4 }
 0x316   : > { %vm2801_vm7 = vcmp.gt.f32.partialorder %v2778_v51, 0.0  ;;  %v2808_v52 = vmul.f32 0.01, %v2778_v51  ;;  %v2770_v42 = vadd.f32 %v13553_v11, %v2769_v23  ;;  %17338 = vst [vmem:[#allocation83_spill] sm:$0xff] %v13669_v62 }
 0x317   : > { %v10721_v39 = vpop.f32.mrf.mxu1  ;;  %v13680_v37 = vsel %vm2632_vm6, %v2611_v5, %v2639_v41  ;;  %vm2630_vm12 = vcmp.gt.f32.partialorder %v2603_v26, 0.0  ;;  %v2637_v22 = vmul.f32 0.01, %v2603_v26 }
 0x318   : > { %v13664_v6 = vsel %vm2801_vm7, %v2778_v51, %v2808_v52  ;;  %vm2799_vm2 = vcmp.gt.f32.partialorder %v2770_v42, 0.0  ;;  %v2806_v25 = vmul.f32 0.01, %v2770_v42  ;;  %v2781_v9 = vadd.f32 %v10721_v39, %v13553_v11  ;;  %17340 = vst [vmem:[#allocation85_spill] sm:$0xff] %v13680_v37 }
 0x319   : > { %17337 = vst [vmem:[#allocation82_spill] sm:$0xff] %v13664_v6  ;;  %v2772_v16 = vpop.f32.mrf.mxu1  ;;  %v13675_v49 = vmax.f32 %v13661_v53, %v13664_v6  ;;  %v13702_v23 = vsel %vm2630_vm12, %v2603_v26, %v2637_v22 }
 0x31a   : > { %v13671_v21 = vsel %vm2799_vm2, %v2770_v42, %v2806_v25  ;;  %vm2802_vm13 = vcmp.gt.f32.partialorder %v2781_v9, 0.0  ;;  %v2809_v47 = vmul.f32 0.01, %v2781_v9  ;;  %v2773_v7 = vadd.f32 %v13553_v11, %v2772_v16  ;;  %17342 = vst [vmem:[#allocation87_spill] sm:$0xff] %v13702_v23 }
 0x31b   : > { %17339 = vst [vmem:[#allocation84_spill] sm:$0xff] %v13671_v21  ;;  %v13686_v15 = vmax.f32 %v13669_v62, %v13671_v21  ;;  %v2882_v32 = vrot.slane %v13675_v49, 6 }
 0x31c   : > { %v13682_v27 = vsel %vm2802_vm13, %v2781_v9, %v2809_v47  ;;  %vm2800_vm5 = vcmp.gt.f32.partialorder %v2773_v7, 0.0  ;;  %v2807_v54 = vmul.f32 0.01, %v2773_v7 }
 0x31d   : > { %17341 = vst [vmem:[#allocation86_spill] sm:$0xff] %v13682_v27  ;;  %v13692_v50 = vmax.f32 %v13680_v37, %v13682_v27  ;;  %v2879_v33 = vrot.slane %v13686_v15, 6 }
 0x31e   : > { %v13704_v4 = vsel %vm2800_vm5, %v2773_v7, %v2807_v54 }
 0x31f   : > { %v2884_v56 = vrot.slane %v13692_v50, 6  ;;  %v10704_v51 = vpop.f32.mrf.mxu0  ;;  %v10724_v63 = vpop.f32.mrf.mxu1  ;;  %17343 = vst [vmem:[#allocation88_spill] sm:$0xff] %v13704_v4  ;;  %v2842_v41 = vmax.f32 %v13702_v23, %v13704_v4  ;;  %v11458_v5 = vpack.i.bf16 %v13692_v50, %v13675_v49 }
 0x320   : > { %v2624_v52 = vadd.f32 %v10704_v51, %v13553_v11  ;;  %v2794_v42 = vadd.f32 %v10724_v63, %v13553_v11 }
 0x321   : > { %v2615_v39 = vpop.f32.mrf.mxu0  ;;  %v2785_v25 = vpop.f32.mrf.mxu1  ;;  %v13714_v9 = vsel %vm660_vm1, %v2882_v32, %v2884_v56  ;;  %v2880_v47 = vrot.slane %v2842_v41, 6  ;;  %v11448_v54 = vpack.i.bf16 %v2842_v41, %v13686_v15  ;;  %v2934_v43 = vpack.c.bf16 %v2842_v41, %v13686_v15 }
 0x322   : > { %vm2635_vm12 = vcmp.gt.f32.partialorder %v2624_v52, 0.0  ;;  %v2642_v26 = vmul.f32 0.01, %v2624_v52  ;;  %vm2805_vm13 = vcmp.gt.f32.partialorder %v2794_v42, 0.0  ;;  %v2812_v16 = vmul.f32 0.01, %v2794_v42 }
 0x323   : > { %v2616_v7 = vadd.f32 %v13553_v11, %v2615_v39  ;;  %v2786_v22 = vadd.f32 %v13553_v11, %v2785_v25  ;;  %v10705_v51 = vpop.f32.mrf.mxu0  ;;  %v10725_v63 = vpop.f32.mrf.mxu1  ;;  %11449 = vrot.lane.b32.xlu1 %v11448_v54, %s17331_s26  ;;  %9616 = vmatprep.mubr.msk.bf16.mxu0 %vm17100_vm4, %v2934_v43  ;;  %v2881_v41 = vsel %vm660_vm1, %v2879_v33, %v2880_v47 }
 0x324   : > { %v13719_v12 = vsel %vm2635_vm12, %v2624_v52, %v2642_v26  ;;  %v13721_v13 = vsel %vm2805_vm13, %v2794_v42, %v2812_v16  ;;  %v2883_v51 = vsel %vm660_vm1, %v2880_v47, %v2882_v32 }
 0x325   : > { %17344 = vst [vmem:[#allocation89_spill] sm:$0xff] %v13719_v12  ;;  %17345 = vst [vmem:[#allocation90_spill] sm:$0xff] %v13721_v13  ;;  %vm2633_vm5 = vcmp.gt.f32.partialorder %v2616_v7, 0.0  ;;  %v2640_v34 = vmul.f32 0.01, %v2616_v7  ;;  %vm2803_vm2 = vcmp.gt.f32.partialorder %v2786_v22, 0.0  ;;  %v2618_v39 = vpop.f32.mrf.mxu0  ;;  %v2788_v25 = vpop.f32.mrf.mxu1  ;;  %v2847_v15 = vmax.f32 %v13719_v12, %v13721_v13 }
 0x326   : > { %v2810_v57 = vmul.f32 0.01, %v2786_v22  ;;  %v2619_v52 = vadd.f32 %v13553_v11, %v2618_v39  ;;  %v2789_v42 = vadd.f32 %v13553_v11, %v2788_v25 }
 0x327   : > { %v13733_v26 = vsel %vm2633_vm5, %v2616_v7, %v2640_v34  ;;  %11459 = vrot.lane.b32.xlu1 %v11458_v5, %s17331_s26 }
 0x328   : > { %17346 = vst [vmem:[#allocation91_spill] sm:$0xff] %v13733_v26  ;;  %v13735_v16 = vsel %vm2803_vm2, %v2786_v22, %v2810_v57  ;;  %vm2634_vm6 = vcmp.gt.f32.partialorder %v2619_v52, 0.0  ;;  %v2641_v43 = vmul.f32 0.01, %v2619_v52  ;;  %vm2804_vm7 = vcmp.gt.f32.partialorder %v2789_v42, 0.0 }
 0x329   : > { %17347 = vst [vmem:[#allocation92_spill] sm:$0xff] %v13735_v16  ;;  %v2845_v11 = vmax.f32 %v13733_v26, %v13735_v16  ;;  %v2811_v54 = vmul.f32 0.01, %v2789_v42  ;;  %v11473_v57 = vpack.i.bf16 %v2847_v15, %v13696_v45  ;;  %v11899_v16 = vld [vmem:[%s16952_s7 + $0x2b8] sm:$0xff]  }
 0x32a   : > { %v13746_v7 = vsel %vm2634_vm6, %v2619_v52, %v2641_v43 }
 0x32b   : > { %v2886_v34 = vrot.slane %v2845_v11, 6  ;;  %17348 = vst [vmem:[#allocation93_spill] sm:$0xff] %v13746_v7  ;;  %v13748_v32 = vsel %vm2804_vm7, %v2789_v42, %v2811_v54  ;;  %11474 = vrot.lane.b32.xlu0 %v11473_v57, %s17331_s26  ;;  %v2897_v54 = vsel %vm660_vm1, 0.0, %v2879_v33 }
 0x32c   : > { %17349 = vst [vmem:[#allocation94_spill] sm:$0xff] %v13748_v32  ;;  %v2846_v47 = vmax.f32 %v13746_v7, %v13748_v32  ;;  %v11886_v32 = vld [vmem:[%s16952_s7 + $0x110] sm:$0xff]  }
 0x32d   : > { %v2887_v22 = vsel %vm660_vm1, %v2884_v56, %v2886_v34 }
 0x32e   : > { %v11468_v63 = vpack.i.bf16 %v2846_v47, %v2845_v11  ;;  %v2938_v39 = vpack.c.bf16 %v2846_v47, %v2845_v11  ;;  %v2888_v5 = vrot.slane %v2846_v47, 6  ;;  %v17350_v11 = vpack.c.bf16 %v13692_v50, %v13675_v49 }
 0x32f   : > { %v2940_v49 = vpack.c.bf16 %v2847_v15, %v2847_v15 }
 0x330   : > { %11469 = vrot.lane.b32.xlu1 %v11468_v63, %s17331_s26  ;;  %v2889_v25 = vsel %vm660_vm1, %v2886_v34, %v2888_v5 }
 0x372   : > { %v11445_v52 = vpop.permute.xlu0 %11444 }
 0x373   : > { %v11447_v42 = vunpack.i.h.bf16 %v11445_v52  ;;  %v11446_v43 = vunpack.i.l.bf16 %v11445_v52 }
 0x375   : > { %v2927_v57 = vsel %vm17100_vm4, %v2881_v41, %v11447_v42  ;;  %v2926_v60 = vsel %vm17100_vm4, %v2897_v54, %v11446_v43  ;;  %v17351_v54 = vrot.slane %v13588_v17, 2 }
 0x376   : > { %v2933_v56 = vpack.c.bf16 %v2927_v57, %v2926_v60  ;;  %v11455_v10 = vpop.permute.xlu0 %11454 }
 0x377   : > { %v11457_v8 = vunpack.i.h.bf16 %v11455_v10  ;;  %v11456_v31 = vunpack.i.l.bf16 %v11455_v10 }
 0x378   : > { %3064 = vmatmul.mubr.bf16.vlgmr.msra.gmra.mxu0 %v2933_v56 }
 0x379   : > { %9617 = vmatprep.mubr.msk.bf16.mxu0 %vm17100_vm4, %v17350_v11  ;;  %v2928_v34 = vsel %vm17100_vm4, %v2883_v51, %v11456_v31  ;;  %v2929_v47 = vsel %vm17100_vm4, %v13714_v9, %v11457_v8  ;;  %v3123_v31 = vrot.slane %v13644_v3, 2  ;;  %v3121_v8 = vrot.slane %v13608_v36, 2 }
 0x37a   : > { %v2935_v33 = vpack.c.bf16 %v2929_v47, %v2928_v34  ;;  %v3125_v47 = vrot.slane %v13648_v61, 2 }
 0x37b   : > { %v3124_v43 = vsel %vm780_vm0, %v3121_v8, %v3123_v31  ;;  %v3122_v57 = vsel %vm780_vm0, %v17351_v54, %v3121_v8  ;;  %v11837_v54 = vld [vmem:[%s16952_s7 + $0xf0] sm:$0xff]  }
 0x37c   : > { %v11465_v63 = vpop.permute.xlu0 %11464  ;;  %v3167_v34 = vpack.c.bf16 %v3124_v43, %v3122_v57  ;;  %v11838_v57 = vld [vmem:[%s16952_s7 + $0x30] sm:$0xff]  }
 0x37d   : > { %v11467_v41 = vunpack.i.h.bf16 %v11465_v63  ;;  %v11466_v52 = vunpack.i.l.bf16 %v11465_v63 }
 0x37f   : > { %v2930_v60 = vsel %vm17100_vm4, %v2887_v22, %v11466_v52  ;;  %v2931_v42 = vsel %vm17100_vm4, %v2889_v25, %v11467_v41 }
 0x380   : > { %v2937_v10 = vpack.c.bf16 %v2931_v42, %v2930_v60  ;;  %3072 = vmatmul.mubr.bf16.gmra.mxu0 %v2935_v33  ;;  %v3126_v42 = vsel %vm780_vm0, %v3123_v31, %v3125_v47  ;;  %v17101_v31 = vmov 0.0|0.0  }
 0x381   : > { %9618 = vmatprep.mubr.msk.bf16.mxu0 %vm17100_vm4, %v2938_v39 }
 0x388   : > { %3080 = vmatmul.mubr.bf16.gmra.mxu0 %v2937_v10 }
 0x389   : > { %9619 = vmatprep.mubr.msk.bf16.mxu0 %vm17100_vm4, %v2940_v49 }
 0x395   : > { %v11450_v50 = vpop.permute.xlu1 %11449 }
 0x396   : > { %v11452_v9 = vunpack.i.h.bf16 %v11450_v50  ;;  %v11451_v51 = vunpack.i.l.bf16 %v11450_v50 }
 0x398   : > { %v3157_v22 = vsel %vm17100_vm4, %v13594_v30, %v11451_v51  ;;  %v3158_v25 = vsel %vm17100_vm4, %v13602_v20, %v11452_v9  ;;  %v3127_v30 = vrot.slane %v13696_v45, 2 }
 0x399   : > { %v3164_v39 = vpack.c.bf16 %v3158_v25, %v3157_v22  ;;  %v11460_v15 = vpop.permute.xlu1 %11459 }
 0x39a   : > { %v11462_v56 = vunpack.i.h.bf16 %v11460_v15  ;;  %v11461_v11 = vunpack.i.l.bf16 %v11460_v15  ;;  %v3128_v10 = vsel %vm780_vm0, %v3125_v47, %v3127_v30  ;;  %v11835_v15 = vld [vmem:[%s16952_s7 + $0xb8] sm:$0xff]   ;;  %v11842_v47 = vld [vmem:[%s16952_s7 + $0x28] sm:$0xff]   ;;  %v11845_v30 = vld [vmem:[%s16952_s7 + $0xe0] sm:$0xff]  }
 0x39b   : > { %3217 = vmatmul.mubr.bf16.vlgmr.msra.gmra.mxu1 %v3164_v39  ;;  %v3169_v51 = vpack.c.bf16 %v3128_v10, %v3126_v42  ;;  %v11832_v39 = vld [vmem:[%s16952_s7 + $0x78] sm:$0xff]  }
 0x39c   : > { %9621 = vmatprep.mubr.msk.bf16.mxu1 %vm17100_vm4, %v3167_v34  ;;  %v3159_v41 = vsel %vm17100_vm4, %v13588_v17, %v11461_v11  ;;  %v3160_v52 = vsel %vm17100_vm4, %v13608_v36, %v11462_v56  ;;  %10107 = vmatprep.subr.bf16.mxu0 %v11832_v39  ;;  %v11839_v56 = vld [vmem:[%s16952_s7 + $0xb0] sm:$0xff]   ;;  %v11840_v11 = vld [vmem:[%s16952_s7 + $0x68] sm:$0xff]   ;;  %v11850_v42 = vld [vmem:[%s16952_s7 + $0x18] sm:$0xff]  }
 0x39d   : > { %v11475_v33 = vpop.permute.xlu0 %11474  ;;  %v3166_v8 = vpack.c.bf16 %v3160_v52, %v3159_v41  ;;  %v11841_v34 = vld [vmem:[%s16952_s7 + $0xe8] sm:$0xff]   ;;  %v11847_v41 = vld [vmem:[%s16952_s7 + $0xa0] sm:$0xff]   ;;  %v11848_v52 = vld [vmem:[%s16952_s7 + $0x58] sm:$0xff]  }
 0x39e   : > { %v11476_v63 = vunpack.i.l.bf16 %v11475_v33  ;;  %v11477_v43 = vunpack.i.h.bf16 %v11475_v33  ;;  %v11843_v33 = vld [vmem:[%s16952_s7 + $0xa8] sm:$0xff]   ;;  %v11851_v10 = vld [vmem:[%s16952_s7 + $0x98] sm:$0xff]   ;;  %v11863_v39 = vld [vmem:[%s16952_s7 + $0x80] sm:$0xff]  }
 0x3a0   : > { %v2932_v20 = vsel %vm17100_vm4, %v2888_v5, %v11476_v63  ;;  %v3163_v22 = vsel %vm17100_vm4, %v13696_v45, %v11477_v43  ;;  %v11836_v45 = vld [vmem:[%s16952_s7 + $0x70] sm:$0xff]   ;;  %v11844_v63 = vld [vmem:[%s16952_s7 + $0x60] sm:$0xff]  }
 0x3a1   : > { %v2939_v60 = vpack.c.bf16 %v2932_v20, %v2932_v20  ;;  %v3170_v25 = vpack.c.bf16 %v3163_v22, %v3163_v22  ;;  %v11846_v20 = vld [vmem:[%s16952_s7 + $0x20] sm:$0xff]  }
 0x3a2   : > { %v11470_v49 = vpop.permute.xlu1 %11469  ;;  %v11860_v43 = vld [vmem:[%s16952_s7 + $0x40] sm:$0xff]  }
 0x3a3   : > { %3088 = vmatmul.mubr.bf16.gmra.mxu0 %v2939_v60  ;;  %v11472_v50 = vunpack.i.h.bf16 %v11470_v49  ;;  %v11471_v9 = vunpack.i.l.bf16 %v11470_v49  ;;  %3225 = vmatmul.mubr.bf16.gmra.mxu1 %v3166_v8  ;;  %v11849_v60 = vld [vmem:[%s16952_s7 + $0xd8] sm:$0xff]   ;;  %v11852_v49 = vld [vmem:[%s16952_s7 + $0x50] sm:$0xff]   ;;  %v11861_v22 = vld [vmem:[%s16952_s7 + $0xc0] sm:$0xff]  }
 0x3a4   : > { %9622 = vmatprep.mubr.msk.bf16.mxu1 %vm17100_vm4, %v3169_v51  ;;  %v11853_v8 = vld [vmem:[%s16952_s7 + $0xd0] sm:$0xff]   ;;  %v11856_v51 = vld [vmem:[%s16952_s7 + $0x48] sm:$0xff]  }
 0x3a5   : > { %v3161_v17 = vsel %vm17100_vm4, %v13644_v3, %v11471_v9  ;;  %v3162_v36 = vsel %vm17100_vm4, %v13648_v61, %v11472_v50  ;;  %v11833_v3 = vld [vmem:[%s16952_s7 + $0xf8] sm:$0xff]   ;;  %v11854_v50 = vld [vmem:[%s16952_s7 + $0x10] sm:$0xff]  }
 0x3a6   : > { %v3168_v5 = vpack.c.bf16 %v3162_v36, %v3161_v17  ;;  %v11834_v61 = vld [vmem:[%s16952_s7 + $0x38] sm:$0xff]   ;;  %10129 = vmatprep.subr.bf16.mxu1 %v11833_v3  ;;  %v11855_v9 = vld [vmem:[%s16952_s7 + $0x90] sm:$0xff]   ;;  %v11857_v17 = vld [vmem:[%s16952_s7 + $0xc8] sm:$0xff]  }
 0x3a7   : > { %10108 = vmatpush3.bf16.msra.mxu0 %v11834_v61  ;;  %10130 = vmatpush3.bf16.msra.mxu1 %v11835_v15  ;;  %v11858_v36 = vld [vmem:[%s16952_s7 + $0x8] sm:$0xff]   ;;  %v11864_v3 = vld [vmem:[%s16952_s7 + $0x178] sm:$0xff]  }
 0x3a8   : > { %10109 = vmatprep.subr.bf16.mxu0 %v11836_v45  ;;  %10131 = vmatprep.subr.bf16.mxu1 %v11837_v54  ;;  %v11865_v61 = vld [vmem:[%s16952_s7 + $0x1f8] sm:$0xff]  }
 0x3ab   : > { %3233 = vmatmul.mubr.bf16.gmra.mxu1 %v3168_v5  ;;  %10110 = vmatpush3.bf16.msra.mxu0 %v11838_v57  ;;  %v11859_v5 = vld [vmem:[%s16952_s7 + $0x88] sm:$0xff]  }
 0x3ac   : > { %3240 = vmatprep.mubr.bf16.mxu1 %v17101_v31  ;;  %10132 = vmatpush3.bf16.msra.mxu1 %v11839_v56 }
 0x3ad   : > { %10111 = vmatprep.subr.bf16.mxu0 %v11840_v11  ;;  %10133 = vmatprep.subr.bf16.mxu1 %v11841_v34  ;;  %v13905_v34 = vld [vmem:[%s16951_s6] ss:$0 sm:$0xff] }
 0x3af   : > { %10112 = vmatpush3.bf16.msra.mxu0 %v11842_v47 }
 0x3b0   : > { %10134 = vmatpush3.bf16.msra.mxu1 %v11843_v33  ;;  %10113 = vmatprep.subr.bf16.mxu0 %v11844_v63 }
 0x3b1   : > { %10135 = vmatprep.subr.bf16.mxu1 %v11845_v30 }
 0x3b3   : > { %3241 = vmatmul.mubr.bf16.gmra.mxu1 %v3170_v25  ;;  %10114 = vmatpush3.bf16.msra.mxu0 %v11846_v20  ;;  %v11862_v25 = vld [vmem:[%s16952_s7] sm:$0xff]  }
 0x3b4   : > { %10136 = vmatpush3.bf16.msra.mxu1 %v11847_v41  ;;  %10115 = vmatprep.subr.bf16.mxu0 %v11848_v52 }
 0x3b5   : > { %10137 = vmatprep.subr.bf16.mxu1 %v11849_v60 }
 0x3b7   : > { %10116 = vmatpush3.bf16.msra.mxu0 %v11850_v42 }
 0x3b8   : > { %10138 = vmatpush3.bf16.msra.mxu1 %v11851_v10  ;;  %10117 = vmatprep.subr.bf16.mxu0 %v11852_v49 }
 0x3b9   : > { %10139 = vmatprep.subr.bf16.mxu1 %v11853_v8 }
 0x3bb   : > { %10118 = vmatpush3.bf16.msra.mxu0 %v11854_v50 }
 0x3bc   : > { %10140 = vmatpush3.bf16.msra.mxu1 %v11855_v9  ;;  %10119 = vmatprep.subr.bf16.mxu0 %v11856_v51 }
 0x3bd   : > { %10141 = vmatprep.subr.bf16.mxu1 %v11857_v17 }
 0x3bf   : > { %10120 = vmatpush3.bf16.msra.mxu0 %v11858_v36 }
 0x3c0   : > { %10142 = vmatpush3.bf16.msra.mxu1 %v11859_v5  ;;  %10121 = vmatprep.subr.bf16.mxu0 %v11860_v43 }
 0x3c1   : > { %10143 = vmatprep.subr.bf16.mxu1 %v11861_v22 }
 0x3c3   : > { %10122 = vmatpush3.bf16.msra.mxu0 %v11862_v25 }
 0x3c4   : > { %10144 = vmatpush3.bf16.msra.mxu1 %v11863_v39  ;;  %10151 = vmatprep.subr.bf16.mxu0 %v11864_v3 }
 0x3c5   : > { %10173 = vmatprep.subr.bf16.mxu1 %v11865_v61 }
 0x438   : > { %v3065_v15 = vpop.f32.mrf.mxu0 }
 0x439   : > { %v3066_v10 = vadd.f32 %v13905_v34, %v3065_v15 }
 0x43a   : > { %v3067_v45 = vpop.f32.mrf.mxu0 }
 0x43b   : > { %v3102_v49 = vmul.f32 0.01, %v3066_v10  ;;  %vm3095_vm7 = vcmp.gt.f32.partialorder %v3066_v10, 0.0 }
 0x43c   : > { %v3068_v54 = vpop.f32.mrf.mxu0 }
 0x43d   : > { %v3069_v8 = vadd.f32 %v13905_v34, %v3068_v54  ;;  %v13919_v36 = vsel %vm3095_vm7, %v3066_v10, %v3102_v49 }
 0x43e   : > { %v3070_v57 = vpop.f32.mrf.mxu0 }
 0x43f   : > { %v3103_v5 = vmul.f32 0.01, %v3069_v8  ;;  %vm3096_vm5 = vcmp.gt.f32.partialorder %v3069_v8, 0.0 }
 0x440   : > { %v3073_v56 = vpop.f32.mrf.mxu0 }
 0x441   : > { %v3074_v22 = vadd.f32 %v13905_v34, %v3073_v56  ;;  %v13932_v57 = vsel %vm3096_vm5, %v3069_v8, %v3103_v5  ;;  %v15214_v5 = vld [vmem:[%s16958_s13 + $0x38] sm:$0xff]  }
 0x442   : > { %v3075_v11 = vpop.f32.mrf.mxu0 }
 0x443   : > { %vm3097_vm7 = vcmp.gt.f32.partialorder %v3074_v22, 0.0 }
 0x444   : > { %v3076_v47 = vpop.f32.mrf.mxu0 }
 0x445   : > { %v13908_v33 = vadd.f32 %v13905_v34, %v3076_v47 }
 0x446   : > { %v3078_v63 = vpop.f32.mrf.mxu0 }
 0x447   : > { %vm3098_vm3 = vcmp.gt.f32.partialorder %v13908_v33, 0.0 }
 0x448   : > { %v3081_v30 = vpop.f32.mrf.mxu0 }
 0x449   : > { %v13911_v20 = vadd.f32 %v13905_v34, %v3081_v30 }
 0x44a   : > { %v3083_v41 = vpop.f32.mrf.mxu0 }
 0x44b   : > { %v3104_v41 = vmul.f32 0.01, %v3074_v22  ;;  %vm3099_vm11 = vcmp.gt.f32.partialorder %v13911_v20, 0.0 }
 0x44c   : > { %v3084_v52 = vpop.f32.mrf.mxu0 }
 0x44d   : > { %v13914_v60 = vadd.f32 %v13905_v34, %v3084_v52 }
 0x44e   : > { %v3086_v42 = vpop.f32.mrf.mxu0 }
 0x45b   : > { %v3218_v50 = vpop.f32.mrf.mxu1 }
 0x45c   : > { %v3219_v9 = vadd.f32 %v13905_v34, %v3218_v50 }
 0x45d   : > { %v3220_v51 = vpop.f32.mrf.mxu1 }
 0x45e   : > { %vm3248_vm6 = vcmp.gt.f32.partialorder %v3219_v9, 0.0  ;;  %v3255_v17 = vmul.f32 0.01, %v3219_v9  ;;  %v11866_v51 = vld [vmem:[%s16952_s7 + $0x138] sm:$0xff]  }
 0x45f   : > { %v3221_v43 = vpop.f32.mrf.mxu1 }
 0x460   : > { %v13922_v25 = vsel %vm3248_vm6, %v3219_v9, %v3255_v17  ;;  %v3222_v39 = vadd.f32 %v13905_v34, %v3221_v43  ;;  %v11867_v17 = vld [vmem:[%s16952_s7 + $0x1b8] sm:$0xff]  }
 0x461   : > { %vm3269_vm12 = vcmp.ge.f32.partialorder %v13919_v36, %v13922_v25  ;;  %v3276_v3 = vmax.f32 %v13919_v36, %v13922_v25  ;;  %v3223_v61 = vpop.f32.mrf.mxu1 }
 0x462   : > { %vm3249_vm2 = vcmp.gt.f32.partialorder %v3222_v39, 0.0  ;;  %v3256_v45 = vmul.f32 0.01, %v3222_v39 }
 0x463   : > { %v3089_v15 = vpop.f32.mrf.mxu0  ;;  %v3226_v56 = vpop.f32.mrf.mxu1  ;;  %v3284_v47 = vrot.slane %v3276_v3, 2  ;;  %v3288_v63 = vrot.slane %v3276_v3, 6  ;;  %v3286_v30 = vrot.slane %v3276_v3, 4 }
 0x464   : > { %v13930_v54 = vadd.f32 %v13905_v34, %v3089_v15  ;;  %v13934_v52 = vsel %vm3249_vm2, %v3222_v39, %v3256_v45  ;;  %v3227_v42 = vadd.f32 %v13905_v34, %v3226_v56  ;;  %vm13952_vm2 = vmneg %vm3269_vm12  ;;  %v3325_v39 = vpack.c.bf16 %v3276_v3, %v3276_v3  ;;  %v11868_v15 = vld [vmem:[%s16952_s7 + $0x170] sm:$0xff]  }
 0x465   : > { %v3091_v11 = vpop.f32.mrf.mxu0  ;;  %vm17113_vm6 = vcmp.ge.f32.partialorder %v13932_v57, %v13934_v52  ;;  %v13941_v10 = vmax.f32 %v13932_v57, %v13934_v52  ;;  %v3228_v49 = vpop.f32.mrf.mxu1  ;;  %v3326_v50 = vpack.c.bf16 %v3284_v47, %v3284_v47  ;;  %v3328_v9 = vpack.c.bf16 %v3288_v63, %v3288_v63  ;;  %v11869_v45 = vld [vmem:[%s16952_s7 + $0x1f0] sm:$0xff]  }
 0x466   : > { %vm3250_vm5 = vcmp.gt.f32.partialorder %v3227_v42, 0.0  ;;  %v3257_v43 = vmul.f32 0.01, %v3227_v42  ;;  %v3327_v61 = vpack.c.bf16 %v3286_v30, %v3286_v30  ;;  %vm13968_vm13 = vmpackc.low %vm17113_vm6, %vm3269_vm12  ;;  %v13982_v49 = vsel %vm3097_vm7, %v3074_v22, %v3104_v41  ;;  %v15220_v56 = vld [vmem:[%s16958_s13 + $0x30] sm:$0xff]  }
 0x467   : > { %v3092_v8 = vpop.f32.mrf.mxu0  ;;  %v3229_v3 = vpop.f32.mrf.mxu1  ;;  %4989 = vmatprep.mubr.bf16.mxu0 %v3326_v50  ;;  %5029 = vmatprep.mubr.bf16.mxu1 %v3328_v9  ;;  %v3291_v47 = vrot.slane %v13941_v10, 2  ;;  %v3295_v63 = vrot.slane %v13941_v10, 6  ;;  %vm13977_vm10 = vmneg %vm17113_vm6  ;;  %v3108_v55 = vmul.f32 0.01, %v13930_v54  ;;  %v17436_v30 = vmov 0.0|0.0  }
 0x468   : > { %v3105_v8 = vmul.f32 0.01, %v13908_v33  ;;  %v13986_v50 = vsel %vm3250_vm5, %v3227_v42, %v3257_v43  ;;  %v3230_v9 = vadd.f32 %v13905_v34, %v3229_v3  ;;  %4990 = vmatmul.mubr.bf16.vlgmr.msra.gmra.mxu0 %v3325_v39  ;;  %5030 = vmatmul.mubr.bf16.vlgmr.msra.gmra.mxu1 %v3327_v61  ;;  %v11870_v42 = vld [vmem:[%s16952_s7 + $0x130] sm:$0xff]  }
 0x469   : > { %v3093_v11 = vpop.f32.mrf.mxu0  ;;  %vm17104_vm7 = vcmp.ge.f32.partialorder %v13982_v49, %v13986_v50  ;;  %10152 = vmatpush3.bf16.msra.mxu0 %v11866_v51  ;;  %10174 = vmatpush3.bf16.msra.mxu1 %v11867_v17  ;;  %v3231_v22 = vpop.f32.mrf.mxu1  ;;  %v3330_v41 = vpack.c.bf16 %v3291_v47, %v3291_v47  ;;  %v11871_v43 = vld [vmem:[%s16952_s7 + $0x1b0] sm:$0xff]   ;;  %v3332_v61 = vpack.c.bf16 %v3295_v63, %v3295_v63  ;;  %v11872_v51 = vld [vmem:[%s16952_s7 + $0x168] sm:$0xff]   ;;  %v3106_v47 = vmul.f32 0.01, %v13911_v20 }
 0x46a   : > { %vm3251_vm5 = vcmp.gt.f32.partialorder %v3230_v9, 0.0  ;;  %v3258_v39 = vmul.f32 0.01, %v3230_v9  ;;  %10153 = vmatprep.subr.bf16.mxu0 %v11868_v15  ;;  %10175 = vmatprep.subr.bf16.mxu1 %v11869_v45  ;;  %v11873_v17 = vld [vmem:[%s16952_s7 + $0x1e8] sm:$0xff]   ;;  %v14011_v11 = vsel %vm3098_vm3, %v13908_v33, %v3105_v8  ;;  %vm14033_vm3 = vmneg %vm17104_vm7 }
 0x46b   : > { %v3234_v3 = vpop.f32.mrf.mxu1  ;;  %5069 = vmatprep.mubr.bf16.mxu0 %v3330_v41  ;;  %5109 = vmatprep.mubr.bf16.mxu1 %v3332_v61  ;;  %v11874_v8 = vld [vmem:[%s16952_s7 + $0x128] sm:$0xff]  }
 0x46c   : > { %v14014_v15 = vsel %vm3251_vm5, %v3230_v9, %v3258_v39  ;;  %v3235_v45 = vadd.f32 %v13905_v34, %v3234_v3  ;;  %v11875_v9 = vld [vmem:[%s16952_s7 + $0x1a8] sm:$0xff]   ;;  %v3107_v3 = vmul.f32 0.01, %v13914_v60  ;;  %v15238_v39 = vld [vmem:[%s16958_s13 + $0x20] sm:$0xff]  }
 0x46d   : > { %vm17103_vm14 = vcmp.ge.f32.partialorder %v14011_v11, %v14014_v15  ;;  %v14022_v63 = vmax.f32 %v14011_v11, %v14014_v15  ;;  %10154 = vmatpush3.bf16.msra.mxu0 %v11870_v42  ;;  %10176 = vmatpush3.bf16.msra.mxu1 %v11871_v43  ;;  %v3236_v33 = vpop.f32.mrf.mxu1  ;;  %v11876_v42 = vld [vmem:[%s16952_s7 + $0x160] sm:$0xff]   ;;  %v15229_v22 = vld [vmem:[%s16958_s13 + $0x28] sm:$0xff]  }
 0x46e   : > { %vm3252_vm5 = vcmp.gt.f32.partialorder %v3235_v45, 0.0  ;;  %v3259_v41 = vmul.f32 0.01, %v3235_v45  ;;  %10155 = vmatprep.subr.bf16.mxu0 %v11872_v51  ;;  %10177 = vmatprep.subr.bf16.mxu1 %v11873_v17  ;;  %v11877_v43 = vld [vmem:[%s16952_s7 + $0x1e0] sm:$0xff]   ;;  %vm14049_vm4 = vmpackc.low %vm17103_vm14, %vm17104_vm7  ;;  %v14063_v17 = vsel %vm3099_vm11, %v13911_v20, %v3106_v47  ;;  %v15247_v51 = vld [vmem:[%s16958_s13 + $0x18] sm:$0xff]  }
 0x46f   : > { %v3237_v61 = vpop.f32.mrf.mxu1  ;;  %vm14056_vm15 = vmneg %vm17103_vm14  ;;  %vm3100_vm14 = vcmp.gt.f32.partialorder %v13914_v60, 0.0 }
 0x470   : > { %v14066_v33 = vsel %vm3252_vm5, %v3235_v45, %v3259_v41  ;;  %v3238_v31 = vadd.f32 %v13905_v34, %v3237_v61  ;;  %v11878_v45 = vld [vmem:[%s16952_s7 + $0x120] sm:$0xff]   ;;  %vm3101_vm5 = vcmp.gt.f32.partialorder %v13930_v54, 0.0 }
 0x471   : > { %17364 = vst [vmem:[#allocation95_spill] sm:$0xff] %v14066_v33  ;;  %vm17114_vm7 = vcmp.ge.f32.partialorder %v14063_v17, %v14066_v33  ;;  %v14078_v20 = vmax.f32 %v14063_v17, %v14066_v33  ;;  %10156 = vmatpush3.bf16.msra.mxu0 %v11874_v8  ;;  %10178 = vmatpush3.bf16.msra.mxu1 %v11875_v9  ;;  %v3239_v47 = vpop.f32.mrf.mxu1  ;;  %v11879_v41 = vld [vmem:[%s16952_s7 + $0x1a0] sm:$0xff]   ;;  %v11881_v8 = vld [vmem:[%s16952_s7 + $0x1d8] sm:$0xff]  }
 0x472   : > { %vm3253_vm11 = vcmp.gt.f32.partialorder %v3238_v31, 0.0  ;;  %v3260_v61 = vmul.f32 0.01, %v3238_v31  ;;  %10157 = vmatprep.subr.bf16.mxu0 %v11876_v42  ;;  %10179 = vmatprep.subr.bf16.mxu1 %v11877_v43  ;;  %v14093_v47 = vsel %vm3100_vm14, %v13914_v60, %v3107_v3  ;;  %v11882_v60 = vld [vmem:[%s16952_s7 + $0x118] sm:$0xff]   ;;  %vm14115_vm14 = vmneg %vm17114_vm7 }
 0x473   : > { %v3242_v9 = vpop.f32.mrf.mxu1  ;;  %17365 = vst [vmem:[#allocation96_spill] sm:$0xff] %v14093_v47 }
 0x474   : > { %v14096_v46 = vsel %vm3253_vm11, %v3238_v31, %v3260_v61  ;;  %v3243_v13 = vadd.f32 %v13905_v34, %v3242_v9  ;;  %v11883_v31 = vld [vmem:[%s16952_s7 + $0x198] sm:$0xff]   ;;  %v17367_v34 = vmov 0  ;;  %v17370_v61 = vmov 0 }
 0x475   : > { %17366 = vst [vmem:[#allocation97_spill] sm:$0xff] %v14096_v46  ;;  %vm17141_vm8 = vcmp.ge.f32.partialorder %v14093_v47, %v14096_v46  ;;  %v14104_v42 = vmax.f32 %v14093_v47, %v14096_v46  ;;  %10158 = vmatpush3.bf16.msra.mxu0 %v11878_v45  ;;  %10180 = vmatpush3.bf16.msra.mxu1 %v11879_v41  ;;  %v3244_v43 = vpop.f32.mrf.mxu1  ;;  %v17368_v34 = vsel %vm14115_vm14, 4294967295, %v17367_v34  ;;  %v11884_v45 = vld [vmem:[%s16952_s7 + $0x150] sm:$0xff]  }
 0x476   : > { %17369 = vst [vmem:[#allocation98_spill] sm:$0xff] %v17368_v34  ;;  %vm3254_vm11 = vcmp.gt.f32.partialorder %v3243_v13, 0.0  ;;  %v3261_v3 = vmul.f32 0.01, %v3243_v13  ;;  %10159 = vmatprep.subr.bf16.mxu0 %v11880_v35  ;;  %10181 = vmatprep.subr.bf16.mxu1 %v11881_v8  ;;  %v11885_v41 = vld [vmem:[%s16952_s7 + $0x1d0] sm:$0xff]   ;;  %vm14131_vm9 = vmpackc.low %vm17141_vm8, %vm17114_vm7  ;;  %v17373_v8 = vmov 0  ;;  %v14145_v9 = vsel %vm3101_vm5, %v13930_v54, %v3108_v55 }
 0x477   : > { %v17371_v61 = vsel %vm14131_vm9, 4294967295, %v17370_v61  ;;  %v3245_v35 = vpop.f32.mrf.mxu1  ;;  %vm14138_vm6 = vmneg %vm17141_vm8  ;;  %17376 = vst [vmem:[#allocation101_spill] sm:$0xff] %v14145_v9  ;;  %v11887_v55 = vld [vmem:[%s16952_s7 + $0x190] sm:$0xff]   ;;  %v11889_v54 = vld [vmem:[%s16952_s7 + $0x1c8] sm:$0xff]   ;;  %vm5477_vm7 = vcmask 123904   ;;  %vm17206_vm8 = vcmask 130048  }
 0x478   : > { %17372 = vst [vmem:[#allocation99_spill] sm:$0xff] %v17371_v61  ;;  %v17374_v8 = vsel %vm14138_vm6, 4294967295, %v17373_v8  ;;  %v14147_v43 = vsel %vm3254_vm11, %v3243_v13, %v3261_v3  ;;  %v11888_v13 = vld [vmem:[%s16952_s7 + $0x148] sm:$0xff]   ;;  %v11893_v3 = vld [vmem:[%s16952_s7 + $0x1c0] sm:$0xff]   ;;  %vm12236_vm11 = vmmov 0   ;;  %vm9891_vm5 = vmneg %vm660_vm1 }
 0x479   : > { %17375 = vst [vmem:[#allocation100_spill] sm:$0xff] %v17374_v8  ;;  %17377 = vst [vmem:[#allocation102_spill] sm:$0xff] %v14147_v43  ;;  %v14155_v35 = vmax.f32 %v14145_v9, %v14147_v43  ;;  %10160 = vmatpush3.bf16.msra.mxu0 %v11882_v60  ;;  %10182 = vmatpush3.bf16.msra.mxu1 %v11883_v31  ;;  %v3246_v12 = vpop.f32.mrf.mxu1  ;;  %v11891_v60 = vld [vmem:[%s16952_s7 + $0x188] sm:$0xff]   ;;  %v11892_v31 = vld [vmem:[%s16952_s7 + $0x140] sm:$0xff]  }
 0x47a   : > { %10161 = vmatprep.subr.bf16.mxu0 %v11884_v45  ;;  %10183 = vmatprep.subr.bf16.mxu1 %v11885_v41  ;;  %v11890_v12 = vld [vmem:[%s16952_s7 + $0x108] sm:$0xff]   ;;  %v11894_v45 = vld [vmem:[%s16952_s7 + $0x100] sm:$0xff]  }
 0x47b   : > { %v11895_v41 = vld [vmem:[%s16952_s7 + $0x180] sm:$0xff]  }
 0x47d   : > { %10162 = vmatpush3.bf16.msra.mxu0 %v11886_v32  ;;  %10184 = vmatpush3.bf16.msra.mxu1 %v11887_v55  ;;  %v14185_v32 = vmax.f32 %v13982_v49, %v13986_v50  ;;  %v3293_v55 = vrot.slane %v13941_v10, 4 }
 0x47e   : > { %10163 = vmatprep.subr.bf16.mxu0 %v11888_v13  ;;  %10185 = vmatprep.subr.bf16.mxu1 %v11889_v54  ;;  %v11896_v13 = vld [vmem:[%s16952_s7 + $0x278] sm:$0xff]  }
 0x47f   : > { %v11897_v54 = vld [vmem:[%s16952_s7 + $0x2f8] sm:$0xff]   ;;  %v3331_v7 = vpack.c.bf16 %v3293_v55, %v3293_v55  ;;  %v11903_v55 = vld [vmem:[%s16952_s7 + $0x2b0] sm:$0xff]  }
 0x481   : > { %10164 = vmatpush3.bf16.msra.mxu0 %v11890_v12  ;;  %10186 = vmatpush3.bf16.msra.mxu1 %v11891_v60  ;;  %v3298_v12 = vrot.slane %v14185_v32, 2  ;;  %v3302_v60 = vrot.slane %v14185_v32, 6 }
 0x482   : > { %10165 = vmatprep.subr.bf16.mxu0 %v11892_v31  ;;  %10187 = vmatprep.subr.bf16.mxu1 %v11893_v3  ;;  %v11898_v31 = vld [vmem:[%s16952_s7 + $0x238] sm:$0xff]   ;;  %v3329_v3 = vpack.c.bf16 %v13941_v10, %v13941_v10  ;;  %v11902_v10 = vld [vmem:[%s16952_s7 + $0x230] sm:$0xff]  }
 0x483   : > { %v3334_v26 = vpack.c.bf16 %v3298_v12, %v3298_v12  ;;  %v3336_v27 = vpack.c.bf16 %v3302_v60, %v3302_v60  ;;  %v11910_v12 = vld [vmem:[%s16952_s7 + $0x220] sm:$0xff]  }
 0x484   : > { %v11911_v60 = vld [vmem:[%s16952_s7 + $0x2a0] sm:$0xff]  }
 0x485   : > { %10166 = vmatpush3.bf16.msra.mxu0 %v11894_v45  ;;  %10188 = vmatpush3.bf16.msra.mxu1 %v11895_v41  ;;  %v11900_v45 = vld [vmem:[%s16952_s7 + $0x270] sm:$0xff]  }
 0x486   : > { %10195 = vmatprep.subr.bf16.mxu0 %v11896_v13  ;;  %10217 = vmatprep.subr.bf16.mxu1 %v11897_v54  ;;  %v11901_v41 = vld [vmem:[%s16952_s7 + $0x2f0] sm:$0xff]   ;;  %v11904_v13 = vld [vmem:[%s16952_s7 + $0x268] sm:$0xff]   ;;  %v11909_v54 = vld [vmem:[%s16952_s7 + $0x2e0] sm:$0xff]  }
 0x488   : > { %5070 = vmatmul.mubr.bf16.vlgmr.msra.gmra.mxu0 %v3329_v3  ;;  %5110 = vmatmul.mubr.bf16.vlgmr.msra.gmra.mxu1 %v3331_v7  ;;  %v11908_v7 = vld [vmem:[%s16952_s7 + $0x260] sm:$0xff]   ;;  %v11913_v3 = vld [vmem:[%s16952_s7 + $0x2d8] sm:$0xff]  }
 0x489   : > { %10196 = vmatpush3.bf16.msra.mxu0 %v11898_v31  ;;  %5149 = vmatprep.mubr.bf16.mxu0 %v3334_v26  ;;  %v11905_v26 = vld [vmem:[%s16952_s7 + $0x2e8] sm:$0xff]   ;;  %v11912_v31 = vld [vmem:[%s16952_s7 + $0x258] sm:$0xff]  }
 0x48a   : > { %10218 = vmatpush3.bf16.msra.mxu1 %v11899_v16  ;;  %5189 = vmatprep.mubr.bf16.mxu1 %v3336_v27  ;;  %v11906_v16 = vld [vmem:[%s16952_s7 + $0x228] sm:$0xff]  }
 0x48b   : > { %10197 = vmatprep.subr.bf16.mxu0 %v11900_v45  ;;  %10219 = vmatprep.subr.bf16.mxu1 %v11901_v41  ;;  %v11907_v27 = vld [vmem:[%s16952_s7 + $0x2a8] sm:$0xff]   ;;  %v11914_v45 = vld [vmem:[%s16952_s7 + $0x218] sm:$0xff]  }
 0x48c   : > { %v11915_v41 = vld [vmem:[%s16952_s7 + $0x298] sm:$0xff]  }
 0x48d   : > { %10198 = vmatpush3.bf16.msra.mxu0 %v11902_v10  ;;  %v11916_v10 = vld [vmem:[%s16952_s7 + $0x250] sm:$0xff]  }
 0x48e   : > { %10220 = vmatpush3.bf16.msra.mxu1 %v11903_v55  ;;  %10199 = vmatprep.subr.bf16.mxu0 %v11904_v13  ;;  %v11917_v55 = vld [vmem:[%s16952_s7 + $0x2d0] sm:$0xff]  }
 0x48f   : > { %10221 = vmatprep.subr.bf16.mxu1 %v11905_v26  ;;  %v11918_v13 = vld [vmem:[%s16952_s7 + $0x210] sm:$0xff]  }
 0x490   : > { %v11919_v26 = vld [vmem:[%s16952_s7 + $0x290] sm:$0xff]  }
 0x491   : > { %10200 = vmatpush3.bf16.msra.mxu0 %v11906_v16  ;;  %v11920_v16 = vld [vmem:[%s16952_s7 + $0x248] sm:$0xff]  }
 0x492   : > { %10222 = vmatpush3.bf16.msra.mxu1 %v11907_v27  ;;  %10201 = vmatprep.subr.bf16.mxu0 %v11908_v7  ;;  %v11921_v27 = vld [vmem:[%s16952_s7 + $0x2c8] sm:$0xff]  }
 0x493   : > { %10223 = vmatprep.subr.bf16.mxu1 %v11909_v54  ;;  %v11922_v7 = vld [vmem:[%s16952_s7 + $0x208] sm:$0xff]  }
 0x494   : > { %v11923_v54 = vld [vmem:[%s16952_s7 + $0x288] sm:$0xff]  }
 0x495   : > { %10202 = vmatpush3.bf16.msra.mxu0 %v11910_v12  ;;  %v11924_v12 = vld [vmem:[%s16952_s7 + $0x240] sm:$0xff]  }
 0x496   : > { %10224 = vmatpush3.bf16.msra.mxu1 %v11911_v60  ;;  %10203 = vmatprep.subr.bf16.mxu0 %v11912_v31  ;;  %v11925_v60 = vld [vmem:[%s16952_s7 + $0x2c0] sm:$0xff]  }
 0x497   : > { %10225 = vmatprep.subr.bf16.mxu1 %v11913_v3  ;;  %v11926_v31 = vld [vmem:[%s16952_s7 + $0x200] sm:$0xff]  }
 0x498   : > { %v11927_v3 = vld [vmem:[%s16952_s7 + $0x280] sm:$0xff]  }
 0x499   : > { %10204 = vmatpush3.bf16.msra.mxu0 %v11914_v45  ;;  %v11928_v45 = vld [vmem:[%s16952_s7 + $0x378] sm:$0xff]  }
 0x49a   : > { %10226 = vmatpush3.bf16.msra.mxu1 %v11915_v41  ;;  %10205 = vmatprep.subr.bf16.mxu0 %v11916_v10  ;;  %v3300_v41 = vrot.slane %v14185_v32, 4  ;;  %v11929_v10 = vld [vmem:[%s16952_s7 + $0x3f8] sm:$0xff]  }
 0x49b   : > { %10227 = vmatprep.subr.bf16.mxu1 %v11917_v55  ;;  %v3305_v55 = vrot.slane %v14022_v63, 2 }
 0x49d   : > { %10206 = vmatpush3.bf16.msra.mxu0 %v11918_v13  ;;  %v11930_v13 = vld [vmem:[%s16952_s7 + $0x338] sm:$0xff]  }
 0x49e   : > { %10228 = vmatpush3.bf16.msra.mxu1 %v11919_v26  ;;  %10207 = vmatprep.subr.bf16.mxu0 %v11920_v16  ;;  %v3309_v26 = vrot.slane %v14022_v63, 6  ;;  %v3333_v16 = vpack.c.bf16 %v14185_v32, %v14185_v32 }
 0x49f   : > { %10229 = vmatprep.subr.bf16.mxu1 %v11921_v27  ;;  %v11931_v27 = vld [vmem:[%s16952_s7 + $0x3b8] sm:$0xff]  }
 0x4a0   : > { %v3340_v32 = vpack.c.bf16 %v3309_v26, %v3309_v26  ;;  %v11941_v26 = vld [vmem:[%s16952_s7 + $0x3e0] sm:$0xff]  }
 0x4a1   : > { %10208 = vmatpush3.bf16.msra.mxu0 %v11922_v7  ;;  %v3335_v7 = vpack.c.bf16 %v3300_v41, %v3300_v41  ;;  %v11937_v41 = vld [vmem:[%s16952_s7 + $0x3e8] sm:$0xff]  }
 0x4a2   : > { %10230 = vmatpush3.bf16.msra.mxu1 %v11923_v54  ;;  %10209 = vmatprep.subr.bf16.mxu0 %v11924_v12  ;;  %v11932_v54 = vld [vmem:[%s16952_s7 + $0x370] sm:$0xff]   ;;  %v3338_v12 = vpack.c.bf16 %v3305_v55, %v3305_v55  ;;  %v11939_v55 = vld [vmem:[%s16952_s7 + $0x3a8] sm:$0xff]  }
 0x4a3   : > { %10231 = vmatprep.subr.bf16.mxu1 %v11925_v60  ;;  %v11933_v60 = vld [vmem:[%s16952_s7 + $0x3f0] sm:$0xff]  }
 0x4a5   : > { %10210 = vmatpush3.bf16.msra.mxu0 %v11926_v31  ;;  %v11934_v31 = vld [vmem:[%s16952_s7 + $0x330] sm:$0xff]  }
 0x4a6   : > { %10232 = vmatpush3.bf16.msra.mxu1 %v11927_v3  ;;  %10239 = vmatprep.subr.bf16.mxu0 %v11928_v45  ;;  %v11935_v3 = vld [vmem:[%s16952_s7 + $0x3b0] sm:$0xff]   ;;  %v11936_v45 = vld [vmem:[%s16952_s7 + $0x368] sm:$0xff]  }
 0x4a7   : > { %10261 = vmatprep.subr.bf16.mxu1 %v11929_v10  ;;  %v11938_v10 = vld [vmem:[%s16952_s7 + $0x328] sm:$0xff]  }
 0x4a8   : > { %5150 = vmatmul.mubr.bf16.vlgmr.msra.gmra.mxu0 %v3333_v16  ;;  %v11942_v16 = vld [vmem:[%s16952_s7 + $0x320] sm:$0xff]  }
 0x4a9   : > { %5190 = vmatmul.mubr.bf16.vlgmr.msra.gmra.mxu1 %v3335_v7  ;;  %10240 = vmatpush3.bf16.msra.mxu0 %v11930_v13  ;;  %v11940_v13 = vld [vmem:[%s16952_s7 + $0x360] sm:$0xff]   ;;  %v11944_v7 = vld [vmem:[%s16952_s7 + $0x358] sm:$0xff]  }
 0x4aa   : > { %5229 = vmatprep.mubr.bf16.mxu0 %v3338_v12  ;;  %10262 = vmatpush3.bf16.msra.mxu1 %v11931_v27  ;;  %v11943_v27 = vld [vmem:[%s16952_s7 + $0x3a0] sm:$0xff]   ;;  %v11946_v12 = vld [vmem:[%s16952_s7 + $0x318] sm:$0xff]  }
 0x4ab   : > { %5269 = vmatprep.mubr.bf16.mxu1 %v3340_v32  ;;  %10241 = vmatprep.subr.bf16.mxu0 %v11932_v54  ;;  %v11945_v54 = vld [vmem:[%s16952_s7 + $0x3d8] sm:$0xff]   ;;  %v11948_v32 = vld [vmem:[%s16952_s7 + $0x350] sm:$0xff]  }
 0x4ac   : > { %10263 = vmatprep.subr.bf16.mxu1 %v11933_v60  ;;  %v11947_v60 = vld [vmem:[%s16952_s7 + $0x398] sm:$0xff]  }
 0x4ad   : > { %10242 = vmatpush3.bf16.msra.mxu0 %v11934_v31  ;;  %v11949_v31 = vld [vmem:[%s16952_s7 + $0x3d0] sm:$0xff]  }
 0x4ae   : > { %10264 = vmatpush3.bf16.msra.mxu1 %v11935_v3  ;;  %10243 = vmatprep.subr.bf16.mxu0 %v11936_v45  ;;  %v11950_v3 = vld [vmem:[%s16952_s7 + $0x310] sm:$0xff]  }
 0x4af   : > { %10265 = vmatprep.subr.bf16.mxu1 %v11937_v41  ;;  %v11951_v45 = vld [vmem:[%s16952_s7 + $0x390] sm:$0xff]   ;;  %v11952_v41 = vld [vmem:[%s16952_s7 + $0x348] sm:$0xff]  }
 0x4b1   : > { %10244 = vmatpush3.bf16.msra.mxu0 %v11938_v10  ;;  %v11953_v10 = vld [vmem:[%s16952_s7 + $0x3c8] sm:$0xff]  }
 0x4b2   : > { %10266 = vmatpush3.bf16.msra.mxu1 %v11939_v55  ;;  %10245 = vmatprep.subr.bf16.mxu0 %v11940_v13  ;;  %v11954_v55 = vld [vmem:[%s16952_s7 + $0x308] sm:$0xff]  }
 0x4b3   : > { %10267 = vmatprep.subr.bf16.mxu1 %v11941_v26  ;;  %v11955_v13 = vld [vmem:[%s16952_s7 + $0x388] sm:$0xff]   ;;  %v11956_v26 = vld [vmem:[%s16952_s7 + $0x340] sm:$0xff]  }
 0x4b5   : > { %10246 = vmatpush3.bf16.msra.mxu0 %v11942_v16  ;;  %v11957_v16 = vld [vmem:[%s16952_s7 + $0x3c0] sm:$0xff]  }
 0x4b6   : > { %10268 = vmatpush3.bf16.msra.mxu1 %v11943_v27  ;;  %10247 = vmatprep.subr.bf16.mxu0 %v11944_v7  ;;  %v11958_v27 = vld [vmem:[%s16952_s7 + $0x300] sm:$0xff]  }
 0x4b7   : > { %10269 = vmatprep.subr.bf16.mxu1 %v11945_v54  ;;  %v11959_v7 = vld [vmem:[%s16952_s7 + $0x380] sm:$0xff]   ;;  %v11960_v54 = vld [vmem:[%s16952_s7 + $0x478] sm:$0xff]  }
 0x4b9   : > { %10248 = vmatpush3.bf16.msra.mxu0 %v11946_v12  ;;  %v3307_v12 = vrot.slane %v14022_v63, 4 }
 0x4ba   : > { %10270 = vmatpush3.bf16.msra.mxu1 %v11947_v60  ;;  %10249 = vmatprep.subr.bf16.mxu0 %v11948_v32  ;;  %v11961_v60 = vld [vmem:[%s16952_s7 + $0x4f8] sm:$0xff]   ;;  %v3312_v32 = vrot.slane %v14078_v20, 2 }
 0x4bb   : > { %10271 = vmatprep.subr.bf16.mxu1 %v11949_v31  ;;  %v11962_v31 = vld [vmem:[%s16952_s7 + $0x438] sm:$0xff]  }
 0x4bd   : > { %10250 = vmatpush3.bf16.msra.mxu0 %v11950_v3  ;;  %v3316_v3 = vrot.slane %v14078_v20, 6 }
 0x4be   : > { %10272 = vmatpush3.bf16.msra.mxu1 %v11951_v45  ;;  %10251 = vmatprep.subr.bf16.mxu0 %v11952_v41  ;;  %v3337_v45 = vpack.c.bf16 %v14022_v63, %v14022_v63  ;;  %v11963_v41 = vld [vmem:[%s16952_s7 + $0x4b8] sm:$0xff]  }
 0x4bf   : > { %10273 = vmatprep.subr.bf16.mxu1 %v11953_v10  ;;  %v3339_v10 = vpack.c.bf16 %v3307_v12, %v3307_v12  ;;  %v3344_v63 = vpack.c.bf16 %v3316_v3, %v3316_v3  ;;  %v11970_v12 = vld [vmem:[%s16952_s7 + $0x428] sm:$0xff]   ;;  %v11974_v3 = vld [vmem:[%s16952_s7 + $0x420] sm:$0xff]  }
 0x4c1   : > { %10252 = vmatpush3.bf16.msra.mxu0 %v11954_v55  ;;  %v11964_v55 = vld [vmem:[%s16952_s7 + $0x470] sm:$0xff]  }
 0x4c2   : > { %10274 = vmatpush3.bf16.msra.mxu1 %v11955_v13  ;;  %10253 = vmatprep.subr.bf16.mxu0 %v11956_v26  ;;  %v3342_v13 = vpack.c.bf16 %v3312_v32, %v3312_v32  ;;  %v11965_v26 = vld [vmem:[%s16952_s7 + $0x4f0] sm:$0xff]   ;;  %v11972_v32 = vld [vmem:[%s16952_s7 + $0x460] sm:$0xff]  }
 0x4c3   : > { %10275 = vmatprep.subr.bf16.mxu1 %v11957_v16  ;;  %v11966_v16 = vld [vmem:[%s16952_s7 + $0x430] sm:$0xff]  }
 0x4c5   : > { %10254 = vmatpush3.bf16.msra.mxu0 %v11958_v27  ;;  %v11967_v27 = vld [vmem:[%s16952_s7 + $0x4b0] sm:$0xff]  }
 0x4c6   : > { %10276 = vmatpush3.bf16.msra.mxu1 %v11959_v7  ;;  %10283 = vmatprep.subr.bf16.mxu0 %v11960_v54  ;;  %v11968_v7 = vld [vmem:[%s16952_s7 + $0x468] sm:$0xff]  }
 0x4c7   : > { %10305 = vmatprep.subr.bf16.mxu1 %v11961_v60  ;;  %v11969_v54 = vld [vmem:[%s16952_s7 + $0x4e8] sm:$0xff]  }
 0x4c8   : > { %5230 = vmatmul.mubr.bf16.vlgmr.msra.gmra.mxu0 %v3337_v45  ;;  %v11971_v60 = vld [vmem:[%s16952_s7 + $0x4a8] sm:$0xff]   ;;  %v11975_v45 = vld [vmem:[%s16952_s7 + $0x4a0] sm:$0xff]  }
 0x4c9   : > { %5270 = vmatmul.mubr.bf16.vlgmr.msra.gmra.mxu1 %v3339_v10  ;;  %10284 = vmatpush3.bf16.msra.mxu0 %v11962_v31  ;;  %v11973_v31 = vld [vmem:[%s16952_s7 + $0x4e0] sm:$0xff]   ;;  %v11977_v10 = vld [vmem:[%s16952_s7 + $0x4d8] sm:$0xff]  }
 0x4ca   : > { %5309 = vmatprep.mubr.bf16.mxu0 %v3342_v13  ;;  %10306 = vmatpush3.bf16.msra.mxu1 %v11963_v41  ;;  %v11976_v41 = vld [vmem:[%s16952_s7 + $0x458] sm:$0xff]  }
 0x4cb   : > { %5349 = vmatprep.mubr.bf16.mxu1 %v3344_v63  ;;  %10285 = vmatprep.subr.bf16.mxu0 %v11964_v55  ;;  %v11978_v55 = vld [vmem:[%s16952_s7 + $0x418] sm:$0xff]   ;;  %v11981_v63 = vld [vmem:[%s16952_s7 + $0x4d0] sm:$0xff]  }
 0x4cc   : > { %10307 = vmatprep.subr.bf16.mxu1 %v11965_v26  ;;  %v11979_v13 = vld [vmem:[%s16952_s7 + $0x498] sm:$0xff]   ;;  %v11980_v26 = vld [vmem:[%s16952_s7 + $0x450] sm:$0xff]  }
 0x4cd   : > { %10286 = vmatpush3.bf16.msra.mxu0 %v11966_v16  ;;  %v11982_v16 = vld [vmem:[%s16952_s7 + $0x410] sm:$0xff]  }
 0x4ce   : > { %10308 = vmatpush3.bf16.msra.mxu1 %v11967_v27  ;;  %10287 = vmatprep.subr.bf16.mxu0 %v11968_v7  ;;  %v11983_v27 = vld [vmem:[%s16952_s7 + $0x490] sm:$0xff]   ;;  %v11984_v7 = vld [vmem:[%s16952_s7 + $0x448] sm:$0xff]  }
 0x4cf   : > { %10309 = vmatprep.subr.bf16.mxu1 %v11969_v54  ;;  %v11985_v54 = vld [vmem:[%s16952_s7 + $0x4c8] sm:$0xff]  }
 0x4d1   : > { %10288 = vmatpush3.bf16.msra.mxu0 %v11970_v12  ;;  %v11986_v12 = vld [vmem:[%s16952_s7 + $0x408] sm:$0xff]  }
 0x4d2   : > { %10310 = vmatpush3.bf16.msra.mxu1 %v11971_v60  ;;  %10289 = vmatprep.subr.bf16.mxu0 %v11972_v32  ;;  %v11987_v60 = vld [vmem:[%s16952_s7 + $0x488] sm:$0xff]   ;;  %v11988_v32 = vld [vmem:[%s16952_s7 + $0x440] sm:$0xff]  }
 0x4d3   : > { %10311 = vmatprep.subr.bf16.mxu1 %v11973_v31  ;;  %v11989_v31 = vld [vmem:[%s16952_s7 + $0x4c0] sm:$0xff]  }
 0x4d5   : > { %10290 = vmatpush3.bf16.msra.mxu0 %v11974_v3  ;;  %v11990_v3 = vld [vmem:[%s16952_s7 + $0x400] sm:$0xff]  }
 0x4d6   : > { %10312 = vmatpush3.bf16.msra.mxu1 %v11975_v45  ;;  %10291 = vmatprep.subr.bf16.mxu0 %v11976_v41  ;;  %v11991_v45 = vld [vmem:[%s16952_s7 + $0x480] sm:$0xff]   ;;  %v11992_v41 = vld [vmem:[%s16952_s7 + $0x578] sm:$0xff]  }
 0x4d7   : > { %10313 = vmatprep.subr.bf16.mxu1 %v11977_v10  ;;  %v3314_v10 = vrot.slane %v14078_v20, 4 }
 0x4d9   : > { %10292 = vmatpush3.bf16.msra.mxu0 %v11978_v55  ;;  %v11993_v55 = vld [vmem:[%s16952_s7 + $0x5f8] sm:$0xff]  }
 0x4da   : > { %10314 = vmatpush3.bf16.msra.mxu1 %v11979_v13  ;;  %10293 = vmatprep.subr.bf16.mxu0 %v11980_v26  ;;  %v3319_v13 = vrot.slane %v14104_v42, 2  ;;  %v11994_v26 = vld [vmem:[%s16952_s7 + $0x538] sm:$0xff]  }
 0x4db   : > { %10315 = vmatprep.subr.bf16.mxu1 %v11981_v63  ;;  %v3323_v63 = vrot.slane %v14104_v42, 6 }
 0x4dd   : > { %10294 = vmatpush3.bf16.msra.mxu0 %v11982_v16  ;;  %v3341_v16 = vpack.c.bf16 %v14078_v20, %v14078_v20  ;;  %v3348_v20 = vpack.c.bf16 %v3323_v63, %v3323_v63  ;;  %v12007_v63 = vld [vmem:[%s16952_s7 + $0x5a0] sm:$0xff]  }
 0x4de   : > { %10316 = vmatpush3.bf16.msra.mxu1 %v11983_v27  ;;  %10295 = vmatprep.subr.bf16.mxu0 %v11984_v7  ;;  %v11995_v27 = vld [vmem:[%s16952_s7 + $0x5b8] sm:$0xff]   ;;  %v3343_v7 = vpack.c.bf16 %v3314_v10, %v3314_v10  ;;  %v12003_v10 = vld [vmem:[%s16952_s7 + $0x5a8] sm:$0xff]  }
 0x4df   : > { %10317 = vmatprep.subr.bf16.mxu1 %v11985_v54  ;;  %v11996_v54 = vld [vmem:[%s16952_s7 + $0x570] sm:$0xff]  }
 0x4e1   : > { %10296 = vmatpush3.bf16.msra.mxu0 %v11986_v12  ;;  %v3346_v12 = vpack.c.bf16 %v3319_v13, %v3319_v13  ;;  %v12005_v13 = vld [vmem:[%s16952_s7 + $0x5e0] sm:$0xff]  }
 0x4e2   : > { %10318 = vmatpush3.bf16.msra.mxu1 %v11987_v60  ;;  %10297 = vmatprep.subr.bf16.mxu0 %v11988_v32  ;;  %v11997_v60 = vld [vmem:[%s16952_s7 + $0x5f0] sm:$0xff]  }
 0x4e3   : > { %10319 = vmatprep.subr.bf16.mxu1 %v11989_v31  ;;  %v11998_v32 = vld [vmem:[%s16952_s7 + $0x530] sm:$0xff]  }
 0x4e4   : > { %v11999_v31 = vld [vmem:[%s16952_s7 + $0x5b0] sm:$0xff]  }
 0x4e5   : > { %10298 = vmatpush3.bf16.msra.mxu0 %v11990_v3  ;;  %v12000_v3 = vld [vmem:[%s16952_s7 + $0x568] sm:$0xff]  }
 0x4e6   : > { %10320 = vmatpush3.bf16.msra.mxu1 %v11991_v45  ;;  %10327 = vmatprep.subr.bf16.mxu0 %v11992_v41  ;;  %v12001_v45 = vld [vmem:[%s16952_s7 + $0x5e8] sm:$0xff]  }
 0x4e7   : > { %10349 = vmatprep.subr.bf16.mxu1 %v11993_v55  ;;  %v12002_v41 = vld [vmem:[%s16952_s7 + $0x528] sm:$0xff]   ;;  %v12004_v55 = vld [vmem:[%s16952_s7 + $0x560] sm:$0xff]  }
 0x4e8   : > { %5310 = vmatmul.mubr.bf16.vlgmr.msra.gmra.mxu0 %v3341_v16  ;;  %v12008_v16 = vld [vmem:[%s16952_s7 + $0x558] sm:$0xff]  }
 0x4e9   : > { %5350 = vmatmul.mubr.bf16.vlgmr.msra.gmra.mxu1 %v3343_v7  ;;  %10328 = vmatpush3.bf16.msra.mxu0 %v11994_v26  ;;  %v12006_v26 = vld [vmem:[%s16952_s7 + $0x520] sm:$0xff]   ;;  %v12010_v7 = vld [vmem:[%s16952_s7 + $0x518] sm:$0xff]  }
 0x4ea   : > { %5389 = vmatprep.mubr.bf16.mxu0 %v3346_v12  ;;  %10350 = vmatpush3.bf16.msra.mxu1 %v11995_v27  ;;  %v12009_v27 = vld [vmem:[%s16952_s7 + $0x5d8] sm:$0xff]   ;;  %v12012_v12 = vld [vmem:[%s16952_s7 + $0x550] sm:$0xff]  }
 0x4eb   : > { %5429 = vmatprep.mubr.bf16.mxu1 %v3348_v20  ;;  %10329 = vmatprep.subr.bf16.mxu0 %v11996_v54  ;;  %v12011_v54 = vld [vmem:[%s16952_s7 + $0x598] sm:$0xff]   ;;  %v12014_v20 = vld [vmem:[%s16952_s7 + $0x510] sm:$0xff]  }
 0x4ec   : > { %10351 = vmatprep.subr.bf16.mxu1 %v11997_v60  ;;  %v12013_v60 = vld [vmem:[%s16952_s7 + $0x5d0] sm:$0xff]  }
 0x4ed   : > { %10330 = vmatpush3.bf16.msra.mxu0 %v11998_v32  ;;  %v12015_v32 = vld [vmem:[%s16952_s7 + $0x590] sm:$0xff]  }
 0x4ee   : > { %10352 = vmatpush3.bf16.msra.mxu1 %v11999_v31  ;;  %10331 = vmatprep.subr.bf16.mxu0 %v12000_v3  ;;  %v12016_v31 = vld [vmem:[%s16952_s7 + $0x548] sm:$0xff]  }
 0x4ef   : > { %10353 = vmatprep.subr.bf16.mxu1 %v12001_v45  ;;  %v12017_v3 = vld [vmem:[%s16952_s7 + $0x5c8] sm:$0xff]  }
 0x4f0   : > { %v12018_v45 = vld [vmem:[%s16952_s7 + $0x508] sm:$0xff]  }
 0x4f1   : > { %10332 = vmatpush3.bf16.msra.mxu0 %v12002_v41  ;;  %v12019_v41 = vld [vmem:[%s16952_s7 + $0x588] sm:$0xff]  }
 0x4f2   : > { %10354 = vmatpush3.bf16.msra.mxu1 %v12003_v10  ;;  %10333 = vmatprep.subr.bf16.mxu0 %v12004_v55  ;;  %v12020_v10 = vld [vmem:[%s16952_s7 + $0x540] sm:$0xff]  }
 0x4f3   : > { %10355 = vmatprep.subr.bf16.mxu1 %v12005_v13  ;;  %v12021_v55 = vld [vmem:[%s16952_s7 + $0x5c0] sm:$0xff]  }
 0x4f4   : > { %v12022_v13 = vld [vmem:[%s16952_s7 + $0x500] sm:$0xff]  }
 0x4f5   : > { %10334 = vmatpush3.bf16.msra.mxu0 %v12006_v26  ;;  %v12023_v26 = vld [vmem:[%s16952_s7 + $0x580] sm:$0xff]  }
 0x4f6   : > { %10356 = vmatpush3.bf16.msra.mxu1 %v12007_v63  ;;  %10335 = vmatprep.subr.bf16.mxu0 %v12008_v16  ;;  %v3321_v63 = vrot.slane %v14104_v42, 4  ;;  %v12024_v16 = vld [vmem:[%s16952_s7 + $0x638] sm:$0xff]  }
 0x4f7   : > { %10357 = vmatprep.subr.bf16.mxu1 %v12009_v27  ;;  %v3345_v27 = vpack.c.bf16 %v14104_v42, %v14104_v42  ;;  %v12026_v42 = vld [vmem:[%s16952_s7 + $0x628] sm:$0xff]  }
 0x4f9   : > { %10336 = vmatpush3.bf16.msra.mxu0 %v12010_v7  ;;  %v3347_v7 = vpack.c.bf16 %v3321_v63, %v3321_v63 }
 0x4fa   : > { %10358 = vmatpush3.bf16.msra.mxu1 %v12011_v54  ;;  %10337 = vmatprep.subr.bf16.mxu0 %v12012_v12  ;;  %v12025_v54 = vld [vmem:[%s16952_s7 + $0x630] sm:$0xff]   ;;  %v17378_v12 = vmov 0  }
 0x4fb   : > { %10359 = vmatprep.subr.bf16.mxu1 %v12013_v60  ;;  %v12027_v60 = vld [vmem:[%s16952_s7 + $0x620] sm:$0xff]  }
 0x4fd   : > { %10338 = vmatpush3.bf16.msra.mxu0 %v12014_v20  ;;  %v12028_v20 = vld [vmem:[%s16952_s7 + $0x618] sm:$0xff]  }
 0x4fe   : > { %10360 = vmatpush3.bf16.msra.mxu1 %v12015_v32  ;;  %10339 = vmatprep.subr.bf16.mxu0 %v12016_v31  ;;  %v12029_v32 = vld [vmem:[%s16952_s7 + $0x610] sm:$0xff]   ;;  %v12030_v31 = vld [vmem:[%s16952_s7 + $0x608] sm:$0xff]  }
 0x4ff   : > { %10361 = vmatprep.subr.bf16.mxu1 %v12017_v3  ;;  %v12031_v3 = vld [vmem:[%s16952_s7 + $0x600] sm:$0xff]  }
 0x501   : > { %10340 = vmatpush3.bf16.msra.mxu0 %v12018_v45  ;;  %v3349_v45 = vpack.c.bf16 %v14155_v35, %v14155_v35 }
 0x502   : > { %10362 = vmatpush3.bf16.msra.mxu1 %v12019_v41  ;;  %10341 = vmatprep.subr.bf16.mxu0 %v12020_v10 }
 0x503   : > { %10363 = vmatprep.subr.bf16.mxu1 %v12021_v55  ;;  %v9623_v55 = vld [vmem:[%s16953_s8] ss:$0 sm:$0xff] }
 0x505   : > { %10342 = vmatpush3.bf16.msra.mxu0 %v12022_v13 }
 0x506   : > { %10364 = vmatpush3.bf16.msra.mxu1 %v12023_v26  ;;  %10726 = vmatprep.subr.bf16.mxu0 %v17315_v28 }
 0x508   : > { %5390 = vmatmul.mubr.bf16.vlgmr.msra.gmra.mxu0 %v3345_v27 }
 0x509   : > { %5430 = vmatmul.mubr.bf16.vlgmr.msra.gmra.mxu1 %v3347_v7  ;;  %10727 = vmatpush3.bf16.msra.mxu0 %v12024_v16 }
 0x50a   : > { %10728 = vmatprep.subr.bf16.mxu0 %v17315_v28  ;;  %10742 = vmatprep.mubr.msk.bf16.mxu0 %vm12236_vm11, %v17315_v28 }
 0x50b   : > { %5801 = vmatprep.mubr.bf16.mxu1 %v17378_v12 }
 0x50d   : > { %10729 = vmatpush3.bf16.msra.mxu0 %v12025_v54 }
 0x50e   : > { %10730 = vmatprep.subr.bf16.mxu0 %v17315_v28 }
 0x511   : > { %10731 = vmatpush3.bf16.msra.mxu0 %v12026_v42 }
 0x512   : > { %10732 = vmatprep.subr.bf16.mxu0 %v17315_v28 }
 0x515   : > { %10733 = vmatpush3.bf16.msra.mxu0 %v12027_v60 }
 0x516   : > { %10734 = vmatprep.subr.bf16.mxu0 %v17315_v28 }
 0x519   : > { %10735 = vmatpush3.bf16.msra.mxu0 %v12028_v20 }
 0x51a   : > { %10736 = vmatprep.subr.bf16.mxu0 %v17315_v28 }
 0x51d   : > { %10737 = vmatpush3.bf16.msra.mxu0 %v12029_v32 }
 0x51e   : > { %10738 = vmatprep.subr.bf16.mxu0 %v17315_v28 }
 0x521   : > { %10739 = vmatpush3.bf16.msra.mxu0 %v12030_v31 }
 0x522   : > { %10740 = vmatprep.subr.bf16.mxu0 %v17315_v28 }
 0x525   : > { %10741 = vmatpush3.bf16.msra.mxu0 %v12031_v3 }
 0x528   : > { %10743 = vmatmul.mubr.bf16.vlgmr.msra.gmra.mxu0 %v3349_v45  ;;  %v10123_v41 = vpop.f32.mrf.mxu0  ;;  %v10145_v10 = vpop.f32.mrf.mxu1 }
 0x529   : > { %5965 = vmatprep.mubr.bf16.mxu0 %v17378_v12 }
 0x52a   : > { %v10124_v13 = vpop.f32.mrf.mxu0  ;;  %v10146_v26 = vpop.f32.mrf.mxu1 }
 0x52b   : > { %v10125_v63 = vadd.f32 %v10124_v13, %v10123_v41  ;;  %v10147_v16 = vadd.f32 %v10146_v26, %v10145_v10  ;;  %v12032_v41 = vld [vmem:[%s16954_s9] ss:$100 sps:$4 sm:$0xff]  }
 0x52c   : > { %v10126_v27 = vpop.f32.mrf.mxu0  ;;  %v10148_v7 = vpop.f32.mrf.mxu1  ;;  %v12034_v10 = vld [vmem:[%s16954_s9 + $0x4] ss:$100 sps:$4 sm:$0xff]  }
 0x52d   : > { %v4992_v54 = vadd.f32 %v10125_v63, %v9623_v55  ;;  %5783 = vmatprep.subr.bf16.mxu1 %v12034_v10  ;;  %v12040_v63 = vld [vmem:[%s16954_s9 + $0xc] ss:$100 sps:$4 sm:$0xff]  }
 0x52e   : > { %v10127_v42 = vpop.f32.mrf.mxu0  ;;  %v10149_v60 = vpop.f32.mrf.mxu1  ;;  %5784 = vmatpush1.bf16.msra.mxu1 %v12032_v41 }
 0x52f   : > { %v5032_v20 = vadd.f32 %v10147_v16, %v4992_v54  ;;  %5824 = vmatprep.subr.bf16.mxu1 %v12040_v63  ;;  %v12043_v54 = vld [vmem:[%s16954_s9 + $0x34] ss:$100 sps:$4 sm:$0xff]  }
 0x548   : > { %v10167_v35 = vpop.f32.mrf.mxu0  ;;  %v10189_v32 = vpop.f32.mrf.mxu1 }
 0x54a   : > { %v10168_v31 = vpop.f32.mrf.mxu0  ;;  %v10190_v3 = vpop.f32.mrf.mxu1 }
 0x54b   : > { %v10169_v45 = vadd.f32 %v10168_v31, %v10167_v35  ;;  %v10191_v37 = vadd.f32 %v10190_v3, %v10189_v32 }
 0x54c   : > { %v10170_v6 = vpop.f32.mrf.mxu0  ;;  %v10192_v53 = vpop.f32.mrf.mxu1 }
 0x54d   : > { %v5072_v4 = vadd.f32 %v10169_v45, %v5032_v20  ;;  %v12037_v53 = vld [vmem:[%s16954_s9 + $0x24] ss:$100 sps:$4 sm:$0xff]  }
 0x54e   : > { %v10171_v23 = vpop.f32.mrf.mxu0  ;;  %v10193_v21 = vpop.f32.mrf.mxu1  ;;  %5947 = vmatprep.subr.bf16.mxu0 %v12037_v53 }
 0x54f   : > { %v5112_v62 = vadd.f32 %v10191_v37, %v5072_v4  ;;  %v12035_v21 = vld [vmem:[%s16954_s9 + $0x20] ss:$100 sps:$4 sm:$0xff]  }
 0x550   : > { %5948 = vmatpush1.bf16.msra.mxu0 %v12035_v21 }
 0x551   : > { %6029 = vmatprep.subr.bf16.mxu0 %v12043_v54 }
 0x568   : > { %v10211_v55 = vpop.f32.mrf.mxu0 }
 0x569   : > { %v10233_v13 = vpop.f32.mrf.mxu1 }
 0x56a   : > { %v10212_v6 = vpop.f32.mrf.mxu0 }
 0x56b   : > { %v10213_v37 = vadd.f32 %v10212_v6, %v10211_v55  ;;  %v10234_v23 = vpop.f32.mrf.mxu1 }
 0x56c   : > { %v10235_v4 = vadd.f32 %v10234_v23, %v10233_v13  ;;  %v10214_v26 = vpop.f32.mrf.mxu0 }
 0x56d   : > { %v5152_v16 = vadd.f32 %v10213_v37, %v5112_v62  ;;  %v10236_v27 = vpop.f32.mrf.mxu1 }
 0x56e   : > { %v10215_v7 = vpop.f32.mrf.mxu0 }
 0x56f   : > { %v5192_v42 = vadd.f32 %v10235_v4, %v5152_v16  ;;  %v10237_v60 = vpop.f32.mrf.mxu1 }
 0x588   : > { %v10255_v20 = vpop.f32.mrf.mxu0 }
 0x589   : > { %v10277_v35 = vpop.f32.mrf.mxu1 }
 0x58a   : > { %v10256_v32 = vpop.f32.mrf.mxu0 }
 0x58b   : > { %v10257_v31 = vadd.f32 %v10256_v32, %v10255_v20  ;;  %v10278_v3 = vpop.f32.mrf.mxu1 }
 0x58c   : > { %v10279_v45 = vadd.f32 %v10278_v3, %v10277_v35  ;;  %v10258_v41 = vpop.f32.mrf.mxu0 }
 0x58d   : > { %v5232_v10 = vadd.f32 %v10257_v31, %v5192_v42  ;;  %v10280_v55 = vpop.f32.mrf.mxu1 }
 0x58e   : > { %v10259_v62 = vpop.f32.mrf.mxu0 }
 0x58f   : > { %v5272_v13 = vadd.f32 %v10279_v45, %v5232_v10  ;;  %v10281_v53 = vpop.f32.mrf.mxu1 }
 0x5a8   : > { %v10299_v6 = vpop.f32.mrf.mxu0 }
 0x5a9   : > { %v10321_v21 = vpop.f32.mrf.mxu1 }
 0x5aa   : > { %v10300_v37 = vpop.f32.mrf.mxu0 }
 0x5ab   : > { %v10322_v23 = vpop.f32.mrf.mxu1  ;;  %v10301_v31 = vadd.f32 %v10300_v37, %v10299_v6  ;;  %v12041_v6 = vld [vmem:[%s16954_s9 + $0x30] ss:$100 sps:$4 sm:$0xff]  }
 0x5ac   : > { %v10302_v26 = vpop.f32.mrf.mxu0  ;;  %v10323_v45 = vadd.f32 %v10322_v23, %v10321_v21  ;;  %v12046_v37 = vld [vmem:[%s16954_s9 + $0x14] ss:$100 sps:$4 sm:$0xff]  }
 0x5ad   : > { %v10324_v4 = vpop.f32.mrf.mxu1  ;;  %v5312_v3 = vadd.f32 %v10301_v31, %v5272_v13  ;;  %v12038_v13 = vld [vmem:[%s16954_s9 + $0x8] ss:$100 sps:$4 sm:$0xff]  }
 0x5ae   : > { %v10303_v63 = vpop.f32.mrf.mxu0  ;;  %v12056_v31 = vld [vmem:[%s16954_s9 + $0x28] ss:$100 sps:$4 sm:$0xff]  }
 0x5af   : > { %v10325_v16 = vpop.f32.mrf.mxu1  ;;  %v5352_v10 = vadd.f32 %v10323_v45, %v5312_v3  ;;  %v12059_v3 = vld [vmem:[%s16954_s9 + $0x60] ss:$100 sps:$4 sm:$0xff]  }
 0x5b0   : > { %v12049_v16 = vld [vmem:[%s16954_s9 + $0x44] ss:$100 sps:$4 sm:$0xff]   ;;  %v12062_v45 = vld [vmem:[%s16954_s9 + $0x3c] ss:$100 sps:$4 sm:$0xff]  }
 0x5c8   : > { %v10343_v27 = vpop.f32.mrf.mxu0 }
 0x5c9   : > { %v10365_v7 = vpop.f32.mrf.mxu1 }
 0x5ca   : > { %v10344_v54 = vpop.f32.mrf.mxu0 }
 0x5cb   : > { %v10366_v60 = vpop.f32.mrf.mxu1  ;;  %v10345_v41 = vadd.f32 %v10344_v54, %v10343_v27  ;;  %v12047_v54 = vld [vmem:[%s16954_s9 + $0x40] ss:$100 sps:$4 sm:$0xff]  }
 0x5cc   : > { %v10346_v20 = vpop.f32.mrf.mxu0  ;;  %v10367_v62 = vadd.f32 %v10366_v60, %v10365_v7  ;;  %v12044_v7 = vld [vmem:[%s16954_s9 + $0x10] ss:$100 sps:$4 sm:$0xff]   ;;  %v12052_v60 = vld [vmem:[%s16954_s9 + $0x1c] ss:$100 sps:$4 sm:$0xff]  }
 0x5cd   : > { %v10368_v42 = vpop.f32.mrf.mxu1  ;;  %v5392_v55 = vadd.f32 %v10345_v41, %v5352_v10  ;;  %v12055_v20 = vld [vmem:[%s16954_s9 + $0x54] ss:$100 sps:$4 sm:$0xff]   ;;  %v12065_v10 = vld [vmem:[%s16954_s9 + $0x4c] ss:$100 sps:$4 sm:$0xff]  }
 0x5ce   : > { %v10347_v35 = vpop.f32.mrf.mxu0  ;;  %v12050_v42 = vld [vmem:[%s16954_s9 + $0x18] ss:$100 sps:$4 sm:$0xff]  }
 0x5cf   : > { %v10369_v32 = vpop.f32.mrf.mxu1  ;;  %v5432_v53 = vadd.f32 %v10367_v62, %v5392_v55  ;;  %v12053_v35 = vld [vmem:[%s16954_s9 + $0x50] ss:$100 sps:$4 sm:$0xff]   ;;  %v12060_v41 = vld [vmem:[%s16954_s9 + $0x38] ss:$100 sps:$4 sm:$0xff]  }
 0x5d0   : > { %v12058_v32 = vld [vmem:[%s16954_s9 + $0x2c] ss:$100 sps:$4 sm:$0xff]   ;;  %v12068_v55 = vld [vmem:[%s16954_s9 + $0x5c] ss:$100 sps:$4 sm:$0xff]  }
 0x5d1   : > { %v12066_v62 = vld [vmem:[%s16954_s9 + $0x58] ss:$100 sps:$4 sm:$0xff]  }
 0x5e8   : > { %v5471_v26 = vpop.f32.mrf.mxu0 }
 0x5e9   : > { %v5472_v4 = vadd.f32 %v5471_v26, %v5432_v53  ;;  %v12069_v53 = vld [vmem:[%s16956_s11 + $0x78] sm:$0xff]  }
 0x5ea   : > { %v10744_v63 = vpop.f32.mrf.mxu0  ;;  %v14771_v26 = vld [vmem:[%s16956_s11 + $0x38] sm:$0xff]  }
 0x5eb   : > { %v14670_v21 = vpack.c.bf16 %v5472_v4, %v5472_v4  ;;  %5478 = vst.msk [vmem:[%s576_s4] sm:$0x3] %vm5477_vm7, %v5472_v4  ;;  %v14777_v4 = vld [vmem:[%s16956_s11 + $0x70] sm:$0xff]   ;;  %vm6338_vm7 = vcmask 1043456   ;;  %s12167_s4 = scalar_lea.vmem %s16807_s25, 32 }
 0x5ec   : > { %v5474_v23 = vpop.f32.mrf.mxu0  ;;  %v14782_v63 = vld [vmem:[%s16956_s11 + $0x30] sm:$0xff]   ;;  %p12168_p11 = scmp.ne.s32.totalorder %s16807_s25, %s12167_s4 }
 0x5ed   : > { %9850 = vmatmul.mubr.msk.bf16.vlgmr.msra.gmra.mxu1 %vm17206_vm8, %v14670_v21  ;;  %9854 = vmatmul.mubr.msk.bf16.vlgmr.msra.gmra.mxu0 %vm17206_vm8, %v14670_v21  ;;  %v14812_v23 = vld [vmem:[%s16956_s11 + $0x20] sm:$0xff]  }
 0x5ee   : > { %5825 = vmatpush1.bf16.msra.mxu1 %v12038_v13  ;;  %v10745_v27 = vpop.f32.mrf.mxu0  ;;  %6030 = vmatpush1.bf16.msra.mxu0 %v12041_v6  ;;  %v14789_v13 = vld [vmem:[%s16956_s11 + $0x68] sm:$0xff]   ;;  %p12169_p12 = pnand %p12168_p11, %p12377_p5 }
 0x5ef   : > { %5842 = vmatprep.mubr.bf16.mxu1 %v17378_v12  ;;  %5865 = vmatprep.subr.bf16.mxu1 %v12046_v37  ;;  %v14794_v6 = vld [vmem:[%s16956_s11 + $0x28] sm:$0xff]   ;;  %v14806_v37 = vld [vmem:[%s16956_s11 + $0x60] sm:$0xff]   ;;  %v14825_v27 = vld [vmem:[%s16956_s11 + $0x58] sm:$0xff]  }
 0x5f0   : > { %6047 = vmatprep.mubr.bf16.mxu0 %v17378_v12  ;;  %6111 = vmatprep.subr.bf16.mxu0 %v12049_v16  ;;  %v14820_v16 = vld [vmem:[%s16956_s11 + $0xb0] sm:$0xff]   ;;  %p12170_p13 = pneg %p12169_p12 }
 0x5f5   : > { %9851 = vmatmul.mubr.msk.bf16.vlgmr.msra.gmra.mxu1 %vm17206_vm8, %v14670_v21  ;;  %9856 = vmatmul.mubr.msk.bf16.vlgmr.msra.gmra.mxu0 %vm17206_vm8, %v14670_v21 }
 0x5f6   : > { %5866 = vmatpush1.bf16.msra.mxu1 %v12044_v7  ;;  %6112 = vmatpush1.bf16.msra.mxu0 %v12047_v54  ;;  %v14831_v7 = vld [vmem:[%s16956_s11 + $0x18] sm:$0xff]   ;;  %v14839_v54 = vld [vmem:[%s16956_s11 + $0xa8] sm:$0xff]  }
 0x5f7   : > { %5883 = vmatprep.mubr.bf16.mxu1 %v17378_v12  ;;  %5906 = vmatprep.subr.bf16.mxu1 %v12052_v60  ;;  %17379 = vst [vmem:[#allocation103_spill] sm:$0xff] %v14839_v54  ;;  %v14844_v60 = vld [vmem:[%s16956_s11 + $0x50] sm:$0xff]  }
 0x5f8   : > { %6129 = vmatprep.mubr.bf16.mxu0 %v17378_v12  ;;  %6193 = vmatprep.subr.bf16.mxu0 %v12055_v20  ;;  %17380 = vst [vmem:[#allocation104_spill] sm:$0xff] %v14844_v60  ;;  %v14850_v20 = vld [vmem:[%s16956_s11 + $0x10] sm:$0xff]  }
 0x5f9   : > { %17381 = vst [vmem:[#allocation105_spill] sm:$0xff] %v14850_v20 }
 0x5fd   : > { %9852 = vmatmul.mubr.msk.bf16.vlgmr.msra.gmra.mxu1 %vm17206_vm8, %v14670_v21  ;;  %9858 = vmatmul.mubr.msk.bf16.vlgmr.msra.gmra.mxu0 %vm17206_vm8, %v14670_v21 }
 0x5fe   : > { %5907 = vmatpush1.bf16.msra.mxu1 %v12050_v42  ;;  %6194 = vmatpush1.bf16.msra.mxu0 %v12053_v35  ;;  %v14858_v42 = vld [vmem:[%s16956_s11 + $0xa0] sm:$0xff]   ;;  %v14863_v35 = vld [vmem:[%s16956_s11 + $0x48] sm:$0xff]  }
 0x5ff   : > { %5924 = vmatprep.mubr.bf16.mxu1 %v17378_v12  ;;  %5988 = vmatprep.subr.bf16.mxu1 %v12058_v32  ;;  %17382 = vst [vmem:[#allocation106_spill] sm:$0xff] %v14858_v42  ;;  %17383 = vst [vmem:[#allocation107_spill] sm:$0xff] %v14863_v35  ;;  %v14869_v32 = vld [vmem:[%s16956_s11 + $0x8] sm:$0xff]  }
 0x600   : > { %6211 = vmatprep.mubr.bf16.mxu0 %v17378_v12  ;;  %10746 = vmatprep.subr.bf16.mxu0 %v17315_v28  ;;  %17384 = vst [vmem:[#allocation108_spill] sm:$0xff] %v14869_v32 }
 0x605   : > { %9853 = vmatmul.mubr.msk.bf16.vlgmr.msra.gmra.mxu1 %vm17206_vm8, %v14670_v21  ;;  %9860 = vmatmul.mubr.msk.bf16.vlgmr.msra.gmra.mxu0 %vm17206_vm8, %v14670_v21 }
 0x606   : > { %5989 = vmatpush1.bf16.msra.mxu1 %v12056_v31  ;;  %10747 = vmatpush3.bf16.msra.mxu0 %v12059_v3  ;;  %v14877_v31 = vld [vmem:[%s16956_s11 + $0x98] sm:$0xff]   ;;  %v14882_v3 = vld [vmem:[%s16956_s11 + $0x40] sm:$0xff]  }
 0x607   : > { %6006 = vmatprep.mubr.bf16.mxu1 %v17378_v12  ;;  %6070 = vmatprep.subr.bf16.mxu1 %v12062_v45  ;;  %17385 = vst [vmem:[#allocation109_spill] sm:$0xff] %v14877_v31  ;;  %17386 = vst [vmem:[#allocation110_spill] sm:$0xff] %v14882_v3  ;;  %v14888_v45 = vld [vmem:[%s16956_s11] sm:$0xff]  }
 0x608   : > { %10748 = vmatprep.mubr.msk.bf16.mxu0 %vm12236_vm11, %v17315_v28  ;;  %v12063_v28 = vld [vmem:[%s16954_s9 + $0x48] ss:$100 sps:$4 sm:$0xff]   ;;  %17387 = vst [vmem:[#allocation111_spill] sm:$0xff] %v14888_v45  ;;  %vm17392_vm11 = vcmp.ge.f32.partialorder %v13932_v57, %v13934_v52 }
 0x60d   : > { %9855 = vmatmul.mubr.msk.bf16.vlgmr.msra.gmra.mxu1 %vm17206_vm8, %v14670_v21  ;;  %10749 = vmatmul.mubr.msk.bf16.vlgmr.msra.gmra.mxu0 %vm17206_vm8, %v14670_v21 }
 0x60e   : > { %6071 = vmatpush1.bf16.msra.mxu1 %v12060_v41  ;;  %6088 = vmatprep.mubr.bf16.mxu1 %v17378_v12  ;;  %v14896_v41 = vld [vmem:[%s16956_s11 + $0x90] sm:$0xff]  }
 0x60f   : > { %6152 = vmatprep.subr.bf16.mxu1 %v12065_v10  ;;  %17388 = vst [vmem:[#allocation112_spill] sm:$0xff] %v14896_v41  ;;  %v14903_v10 = vld [vmem:[%s16956_s11 + $0x88] sm:$0xff]  }
 0x610   : > { %17389 = vst [vmem:[#allocation113_spill] sm:$0xff] %v14903_v10 }
 0x615   : > { %9857 = vmatmul.mubr.msk.bf16.vlgmr.msra.gmra.mxu1 %vm17206_vm8, %v14670_v21 }
 0x616   : > { %6153 = vmatpush1.bf16.msra.mxu1 %v12063_v28  ;;  %6170 = vmatprep.mubr.bf16.mxu1 %v17378_v12  ;;  %v14910_v28 = vld [vmem:[%s16956_s11 + $0x80] sm:$0xff]  }
 0x617   : > { %6234 = vmatprep.subr.bf16.mxu1 %v12068_v55  ;;  %17390 = vst [vmem:[#allocation114_spill] sm:$0xff] %v14910_v28 }
 0x61d   : > { %9859 = vmatmul.mubr.msk.bf16.vlgmr.msra.gmra.mxu1 %vm17206_vm8, %v14670_v21 }
 0x61e   : > { %6235 = vmatpush1.bf16.msra.mxu1 %v12066_v62  ;;  %6252 = vmatprep.mubr.bf16.mxu1 %v17378_v12 }
 0x61f   : > { %10382 = vmatprep.subr.bf16.mxu1 %v12069_v53 }
 0x625   : > { %9861 = vmatmul.mubr.msk.bf16.vlgmr.msra.gmra.mxu1 %vm17206_vm8, %v14670_v21  ;;  %v14801_v21 = vld [vmem:[%s16956_s11 + $0xb8] sm:$0xff]   ;;  %vm17393_vm8 = vmmov %vm17392_vm11 }
 0x626   : > { %10383 = vmatpush3.bf16.msra.mxu1 %v14771_v26  ;;  %10752 = vmatprep.subr.bf16.mxu0 %v14801_v21 }
 0x627   : > { %10384 = vmatprep.subr.bf16.mxu1 %v14777_v4  ;;  %10753 = vmatpush3.bf16.msra.mxu0 %v14801_v21 }
 0x628   : > { %10754 = vmatprep.subr.bf16.mxu0 %v14820_v16 }
 0x62a   : > { %10385 = vmatpush3.bf16.msra.mxu1 %v14782_v63 }
 0x62b   : > { %10386 = vmatprep.subr.bf16.mxu1 %v14789_v13  ;;  %10755 = vmatpush3.bf16.msra.mxu0 %v14820_v16 }
 0x62c   : > { %10756 = vmatprep.subr.bf16.mxu0 %v14839_v54 }
 0x62e   : > { %10387 = vmatpush3.bf16.msra.mxu1 %v14794_v6 }
 0x62f   : > { %10388 = vmatprep.subr.bf16.mxu1 %v14806_v37  ;;  %10757 = vmatpush3.bf16.msra.mxu0 %v14839_v54 }
 0x630   : > { %10758 = vmatprep.subr.bf16.mxu0 %v14858_v42 }
 0x632   : > { %10389 = vmatpush3.bf16.msra.mxu1 %v14812_v23 }
 0x633   : > { %10390 = vmatprep.subr.bf16.mxu1 %v14825_v27  ;;  %10759 = vmatpush3.bf16.msra.mxu0 %v14858_v42  ;;  %v14953_v42 = vld [vmem:[%s16955_s10 + $0x8] sm:$0xff] }
 0x634   : > { %10760 = vmatprep.subr.bf16.mxu0 %v14877_v31 }
 0x636   : > { %10391 = vmatpush3.bf16.msra.mxu1 %v14831_v7 }
 0x637   : > { %10392 = vmatprep.subr.bf16.mxu1 %v14844_v60  ;;  %10761 = vmatpush3.bf16.msra.mxu0 %v14877_v31 }
 0x638   : > { %10762 = vmatprep.subr.bf16.mxu0 %v14896_v41 }
 0x63a   : > { %10393 = vmatpush3.bf16.msra.mxu1 %v14850_v20 }
 0x63b   : > { %10394 = vmatprep.subr.bf16.mxu1 %v14863_v35  ;;  %10763 = vmatpush3.bf16.msra.mxu0 %v14896_v41 }
 0x63c   : > { %10764 = vmatprep.subr.bf16.mxu0 %v14903_v10 }
 0x63e   : > { %10395 = vmatpush3.bf16.msra.mxu1 %v14869_v32 }
 0x63f   : > { %10396 = vmatprep.subr.bf16.mxu1 %v14882_v3  ;;  %10765 = vmatpush3.bf16.msra.mxu0 %v14903_v10 }
 0x640   : > { %10766 = vmatprep.subr.bf16.mxu0 %v14910_v28 }
 0x642   : > { %10397 = vmatpush3.bf16.msra.mxu1 %v14888_v45 }
 0x643   : > { %10434 = vmatprep.subr.bf16.mxu1 %v12069_v53  ;;  %10767 = vmatpush3.bf16.msra.mxu0 %v14910_v28  ;;  %v5514_v53 = vlaneseq }
 0x644   : > { %10776 = vmatprep.subr.bf16.mxu0 %v14801_v21 }
 0x645   : > { %v5515_v1 = vshrl.u32 %v5514_v53, 7 }
 0x647   : > { %v14917_v19 = vsub.s32 1, %v5515_v1  ;;  %v14919_v38 = vsub.s32 2, %v5515_v1  ;;  %v14932_v28 = vsub.s32 0, %v5515_v1  ;;  %v14934_v10 = vsub.s32 5, %v5515_v1 }
 0x648   : > { %v14941_v47 = vsub.s32 6, %v5515_v1 }
 0x649   : > { %v5537_v31 = vrot.slane %v5506_v44, %v14934_v10  ;;  %v5517_v46 = vrot.slane %v5506_v44, %v14932_v28 }
 0x64a   : > { %v5541_v35 = vrot.slane %v5506_v44, %v14941_v47 }
 0x6ad   : > { %v5803_v55 = vpop.f32.mrf.mxu1  ;;  %v14915_v62 = vpop.f32.mrf.mxu0 }
 0x6ae   : > { %v5804_v9 = vadd.f32 %v5803_v55, %v5517_v46 }
 0x6af   : > { %v5805_v59 = vpop.f32.mrf.mxu1  ;;  %v5969_v2 = vpop.f32.mrf.mxu0 }
 0x6b1   : > { %v5807_v24 = vpop.f32.mrf.mxu1  ;;  %v5971_v40 = vpop.f32.mrf.mxu0 }
 0x6b2   : > { %v5521_v24 = vrot.slane %v5506_v44, %v14917_v19  ;;  %v14929_v40 = vsub.s32 3, %v5515_v1 }
 0x6b3   : > { %v5808_v29 = vpop.f32.mrf.mxu1  ;;  %v5972_v14 = vpop.f32.mrf.mxu0 }
 0x6b4   : > { %v5525_v14 = vrot.slane %v5506_v44, %v14919_v38  ;;  %v5806_v41 = vadd.f32 %v5805_v59, %v5521_v24  ;;  %v5529_v34 = vrot.slane %v5506_v44, %v14929_v40 }
 0x6b5   : > { %v5844_v48 = vpop.f32.mrf.mxu1  ;;  %v14921_v58 = vpop.f32.mrf.mxu0 }
 0x6b6   : > { %v5845_v8 = vadd.f32 %v5844_v48, %v5525_v14  ;;  %v6302_v32 = vrot.slane %v5806_v41, 6 }
 0x6b7   : > { %v5846_v0 = vpop.f32.mrf.mxu1  ;;  %v14926_v18 = vpop.f32.mrf.mxu0 }
 0x6b8   : > { %v5847_v43 = vadd.f32 %v5846_v0, %v5529_v34  ;;  %v6305_v59 = vrot.slane %v5845_v8, 4  ;;  %v6337_v8 = vsel %vm660_vm1, %v5804_v9, %v6302_v32 }
 0x6b9   : > { %v5848_v29 = vpop.f32.mrf.mxu1  ;;  %v6053_v53 = vpop.f32.mrf.mxu0 }
 0x6ba   : > { %v6339_v55 = vsel %vm6338_vm7, %v6337_v8, %v6305_v59 }
 0x6bb   : > { %v5849_v12 = vpop.f32.mrf.mxu1  ;;  %v6054_v45 = vpop.f32.mrf.mxu0 }
 0x6bc   : > { %v14945_v12 = vsub.s32 7, %v5515_v1  ;;  %v14947_v45 = vsub.s32 4, %v5515_v1  ;;  %v5553_v1 = vrot.slane %v14953_v42, %v14917_v19 }
 0x6bd   : > { %v5885_v61 = vpop.f32.mrf.mxu1  ;;  %v14937_v3 = vpop.f32.mrf.mxu0 }
 0x6be   : > { %v5533_v41 = vrot.slane %v5506_v44, %v14947_v45  ;;  %v5545_v46 = vrot.slane %v5506_v44, %v14945_v12 }
 0x6bf   : > { %v5887_v29 = vpop.f32.mrf.mxu1  ;;  %v14943_v53 = vpop.f32.mrf.mxu0 }
 0x6c0   : > { %v5888_v48 = vadd.f32 %v5887_v29, %v5537_v31  ;;  %v6308_v31 = vrot.slane %v5847_v43, 2  ;;  %v5886_v60 = vadd.f32 %v5885_v61, %v5533_v41  ;;  %v5549_v43 = vrot.slane %v14953_v42, %v14932_v28 }
 0x6c1   : > { %v5889_v24 = vpop.f32.mrf.mxu1  ;;  %v6135_v14 = vpop.f32.mrf.mxu0  ;;  %v5557_v61 = vrot.slane %v14953_v42, %v14919_v38 }
 0x6c2   : > { %v6311_v29 = vrot.slane %v5888_v48, 6  ;;  %v6340_v9 = vsel %vm780_vm0, %v6339_v55, %v6308_v31 }
 0x6c3   : > { %v5890_v0 = vpop.f32.mrf.mxu1  ;;  %v6136_v34 = vpop.f32.mrf.mxu0 }
 0x6c4   : > { %v5970_v0 = vadd.f32 %v5969_v2, %v5553_v1  ;;  %v6341_v44 = vsel %vm660_vm1, %v5886_v60, %v6311_v29  ;;  %v6381_v2 = vsel %vm3269_vm12, 0.0, %v6340_v9  ;;  %v5561_v60 = vrot.slane %v14953_v42, %v14929_v40 }
 0x6c5   : > { %v5926_v24 = vpop.f32.mrf.mxu1  ;;  %v14961_v14 = vpop.f32.mrf.mxu0  ;;  %v6374_v1 = vsel %vm3269_vm12, %v6340_v9, 0.0  ;;  %v6443_v36 = vrot.slane %v6381_v2, 6  ;;  %vm12237_vm12 = vmmov 1  }
 0x6c6   : > { %17391 = vst [vmem:[#allocation115_spill] sm:$0xff] %v14961_v14  ;;  %v5927_v20 = vadd.f32 %v5926_v24, %v5541_v35  ;;  %v6320_v41 = vrot.slane %v5970_v0, 6 }
 0x6c7   : > { %v5928_v54 = vpop.f32.mrf.mxu1  ;;  %v14963_v33 = vpop.f32.mrf.mxu0 }
 0x6c8   : > { %v6314_v32 = vrot.slane %v5927_v20, 4  ;;  %v5929_v34 = vadd.f32 %v5928_v54, %v5545_v46  ;;  %v5569_v54 = vrot.slane %v14953_v42, %v14934_v10  ;;  %v5968_v46 = vadd.f32 %v14915_v62, %v5549_v43 }
 0x6c9   : > { %v5930_v59 = vpop.f32.mrf.mxu1  ;;  %v6217_v48 = vpop.f32.mrf.mxu0  ;;  %v6780_v62 = vrot.slane %v6374_v1, 2  ;;  %v5573_v1 = vrot.slane %v14953_v42, %v14941_v47 }
 0x6ca   : > { %v6342_v8 = vsel %vm6338_vm7, %v6341_v44, %v6314_v32  ;;  %v6317_v14 = vrot.slane %v5929_v34, 2  ;;  %v6344_v57 = vsel %vm660_vm1, %v5968_v46, %v6320_v41  ;;  %v6052_v59 = vadd.f32 %v14926_v18, %v5569_v54  ;;  %v15018_v18 = vld [vmem:[%s16955_s10 + $0x10] sm:$0xff] }
 0x6cb   : > { %v5931_v20 = vpop.f32.mrf.mxu1  ;;  %v6218_v35 = vpop.f32.mrf.mxu0  ;;  %v5565_v41 = vrot.slane %v14953_v42, %v14947_v45  ;;  %v5577_v54 = vrot.slane %v14953_v42, %v14945_v12 }
 0x6cc   : > { %v6343_v31 = vsel %vm780_vm0, %v6342_v8, %v6317_v14 }
 0x6cd   : > { %v6375_v55 = vsel %vm17392_vm11, %v6343_v31, 0.0  ;;  %v6382_v29 = vsel %vm17393_vm8, 0.0, %v6343_v31  ;;  %v6008_v24 = vpop.f32.mrf.mxu1  ;;  %v14990_v32 = vpop.f32.mrf.mxu0  ;;  %v14992_v0 = vpack.c.bf16 %v6343_v31, %v6340_v9  ;;  %vm17394_vm8 = vmpackc.low %vm13977_vm10, %vm13952_vm2 }
 0x6ce   : > { %v6444_v25 = vrot.slane %v6382_v29, 6  ;;  %v6781_v14 = vrot.slane %v6375_v55, 2  ;;  %v6009_v34 = vadd.f32 %v6008_v24, %v5557_v61  ;;  %vm9892_vm11 = vmpackc.low %vm12237_vm12, %vm9891_vm5  ;;  %v5585_v29 = vrot.slane %v15018_v18, %v14917_v19 }
 0x6cf   : > { %v6010_v43 = vpop.f32.mrf.mxu1  ;;  %v10750_v44 = vpop.f32.mrf.mxu0  ;;  %9890 = vmatprep.mubr.msk.bf16.mxu1 %vm13968_vm13, %v14992_v0  ;;  %10768 = vmatprep.mubr.msk.bf16.mxu0 %vm17394_vm8, %v14992_v0  ;;  %vm17395_vm5 = vcmp.ge.f32.partialorder %v13982_v49, %v13986_v50  ;;  %vm17397_vm12 = vcmp.ge.f32.partialorder %v14011_v11, %v14014_v15 }
 0x6d0   : > { %v6445_v52 = vsel %vm660_vm1, %v6443_v36, %v6444_v25  ;;  %v6323_v9 = vrot.slane %v6009_v34, 4  ;;  %v6011_v8 = vadd.f32 %v6010_v43, %v5561_v60  ;;  %v15008_v20 = vsel %vm780_vm0, %v6780_v62, %v6781_v14  ;;  %vm17396_vm8 = vmmov %vm17395_vm5 }
 0x6d1   : > { %v9893_v48 = vpack.c.bf16 %v6445_v52, %v6443_v36  ;;  %v6012_v61 = vpop.f32.mrf.mxu1  ;;  %v6298_v2 = vpop.f32.mrf.mxu0  ;;  %v6329_v60 = vrot.slane %v6052_v59, 6 }
 0x6d2   : > { %v6345_v35 = vsel %vm6338_vm7, %v6344_v57, %v6323_v9  ;;  %v6326_v31 = vrot.slane %v6011_v8, 2  ;;  %v6134_v9 = vadd.f32 %v14943_v53, %v5585_v29  ;;  %v5589_v8 = vrot.slane %v15018_v18, %v14919_v38 }
 0x6d3   : > { %v6013_v46 = vpop.f32.mrf.mxu1  ;;  %v10751_v55 = vpop.f32.mrf.mxu0  ;;  %9894 = vmatmul.mubr.msk.bf16.vlgmr.msra.gmra.mxu1 %vm9892_vm11, %v9893_v48  ;;  %v5581_v53 = vrot.slane %v15018_v18, %v14932_v28  ;;  %vm17398_vm11 = vmmov %vm17397_vm12 }
 0x6d4   : > { %10435 = vmatpush3.bf16.msra.mxu1 %v14771_v26  ;;  %v6346_v24 = vsel %vm780_vm0, %v6345_v35, %v6326_v31  ;;  %v6050_v26 = vadd.f32 %v14921_v58, %v5565_v41  ;;  %v6351_v2 = vrot.slane %v6134_v9, 6 }
 0x6d5   : > { %v6090_v36 = vpop.f32.mrf.mxu1  ;;  %10436 = vmatprep.subr.bf16.mxu1 %v14777_v4  ;;  %v6376_v34 = vsel %vm17395_vm5, %v6346_v24, 0.0  ;;  %v6383_v62 = vsel %vm17396_vm8, 0.0, %v6346_v24  ;;  %vm17399_vm5 = vmpackc.low %vm14056_vm15, %vm14033_vm3 }
 0x6d6   : > { %v6091_v42 = vadd.f32 %v6090_v36, %v5573_v1  ;;  %v6446_v43 = vrot.slane %v6383_v62, 6  ;;  %v6783_v44 = vrot.slane %v6376_v34, 2  ;;  %v6347_v4 = vsel %vm660_vm1, %v6050_v26, %v6329_v60 }
 0x6d7   : > { %v6092_v57 = vpop.f32.mrf.mxu1  ;;  %v5597_v36 = vrot.slane %v15018_v18, %v14947_v45 }
 0x6d8   : > { %v6332_v19 = vrot.slane %v6091_v42, 4  ;;  %v6093_v52 = vadd.f32 %v6092_v57, %v5577_v54  ;;  %10437 = vmatpush3.bf16.msra.mxu1 %v14782_v63  ;;  %v6447_v48 = vsel %vm660_vm1, %v6444_v25, %v6446_v43  ;;  %v15040_v49 = vsel %vm780_vm0, %v6781_v14, %v6783_v44 }
 0x6d9   : > { %v6094_v59 = vpop.f32.mrf.mxu1  ;;  %10438 = vmatprep.subr.bf16.mxu1 %v14789_v13  ;;  %v6799_v63 = vpack.c.bf16 %v15040_v49, %v15008_v20  ;;  %v5601_v25 = vrot.slane %v15018_v18, %v14934_v10  ;;  %v5593_v14 = vrot.slane %v15018_v18, %v14929_v40  ;;  %v6132_v40 = vadd.f32 %v14937_v3, %v5581_v53  ;;  %v17407_v53 = vld [vmem:[#allocation106_spill] sm:$0xff]  ;;  %v17432_v20 = vld [vmem:[#allocation113_spill] sm:$0xff] }
 0x6da   : > { %v6348_v58 = vsel %vm6338_vm7, %v6347_v4, %v6332_v19  ;;  %v6335_v50 = vrot.slane %v6093_v52, 2  ;;  %v17433_v49 = vld [vmem:[#allocation114_spill] sm:$0xff] }
 0x6db   : > { %v6095_v61 = vpop.f32.mrf.mxu1  ;;  %v6368_v46 = vsel %vm660_vm1, %v6132_v40, %v6351_v2  ;;  %v6216_v55 = vadd.f32 %v14963_v33, %v5601_v25  ;;  %v9824_v33 = vld [vmem:[%s16955_s10 + $0x18] ss:$0 sm:$0xff] }
 0x6dc   : > { %v6349_v13 = vsel %vm780_vm0, %v6348_v58, %v6335_v50  ;;  %10439 = vmatpush3.bf16.msra.mxu1 %v14794_v6  ;;  %v17408_v61 = vld [vmem:[#allocation107_spill] sm:$0xff] }
 0x6dd   : > { %v6377_v38 = vsel %vm17397_vm12, %v6349_v13, 0.0  ;;  %v6384_v28 = vsel %vm17398_vm11, 0.0, %v6349_v13  ;;  %v6172_v35 = vpop.f32.mrf.mxu1  ;;  %v15061_v1 = vpack.c.bf16 %v6349_v13, %v6346_v24  ;;  %10440 = vmatprep.subr.bf16.mxu1 %v14806_v37  ;;  %v6360_v62 = vrot.slane %v6216_v55, 6  ;;  %v17409_v13 = vld [vmem:[#allocation101_spill] sm:$0xff] }
 0x6de   : > { %v6448_v10 = vrot.slane %v6384_v28, 6  ;;  %v6785_v41 = vrot.slane %v6377_v38, 2  ;;  %v6173_v31 = vadd.f32 %v6172_v35, %v5589_v8  ;;  %v17412_v35 = vld [vmem:[#allocation108_spill] sm:$0xff] }
 0x6df   : > { %v6174_v6 = vpop.f32.mrf.mxu1  ;;  %9897 = vmatprep.mubr.msk.bf16.mxu1 %vm14049_vm4, %v15061_v1  ;;  %10769 = vmatmul.mubr.msk.bf16.vlgmr.msra.gmra.mxu0 %vm17399_vm5, %v15061_v1 }
 0x6e0   : > { %v15075_v11 = vsel %vm780_vm0, %v6783_v44, %v6785_v41  ;;  %v6354_v15 = vrot.slane %v6173_v31, 4  ;;  %v6175_v37 = vadd.f32 %v6174_v6, %v5593_v14  ;;  %10777 = vmatpush3.bf16.msra.mxu0 %v14801_v21  ;;  %v6449_v3 = vsel %vm660_vm1, %v6446_v43, %v6448_v10  ;;  %10441 = vmatpush3.bf16.msra.mxu1 %v14812_v23  ;;  %v17403_v43 = vld [vmem:[#allocation103_spill] sm:$0xff]  ;;  %v17404_v44 = vld [vmem:[#allocation104_spill] sm:$0xff]  ;;  %v17410_v14 = vld [vmem:[#allocation102_spill] sm:$0xff] }
 0x6e1   : > { %v6176_v54 = vpop.f32.mrf.mxu1  ;;  %10778 = vmatprep.subr.bf16.mxu0 %v14820_v16  ;;  %v6465_v60 = vpack.c.bf16 %v6449_v3, %v6447_v48  ;;  %10442 = vmatprep.subr.bf16.mxu1 %v14825_v27  ;;  %v5605_v21 = vrot.slane %v15018_v18, %v14941_v47  ;;  %v5609_v27 = vrot.slane %v15018_v18, %v14945_v12  ;;  %v17400_v47 = vld [vmem:[#allocation95_spill] sm:$0xff]  ;;  %v17406_v48 = vld [vmem:[#allocation105_spill] sm:$0xff] }
 0x6e2   : > { %v6369_v29 = vsel %vm6338_vm7, %v6368_v46, %v6354_v15  ;;  %v6357_v24 = vrot.slane %v6175_v37, 2  ;;  %vm17401_vm8 = vcmp.ge.f32.partialorder %v14063_v17, %v17400_v47  ;;  %v17405_v12 = vld [vmem:[#allocation115_spill] sm:$0xff]  ;;  %vm17411_vm11 = vcmp.ge.f32.partialorder %v17409_v13, %v17410_v14  ;;  %v17417_v6 = vld [vmem:[#allocation109_spill] sm:$0xff]  ;;  %v17421_v37 = vld [vmem:[#allocation110_spill] sm:$0xff] }
 0x6e3   : > { %v6177_v23 = vpop.f32.mrf.mxu1  ;;  %6665 = vmatmul.mubr.bf16.gmra.mxu1 %v6465_v60  ;;  %vm17402_vm12 = vmmov %vm17401_vm8  ;;  %v6214_v18 = vadd.f32 %v17405_v12, %v5597_v36 }
 0x6e4   : > { %v6370_v34 = vsel %vm780_vm0, %v6369_v29, %v6357_v24  ;;  %10779 = vmatpush3.bf16.msra.mxu0 %v14820_v16  ;;  %10443 = vmatpush3.bf16.msra.mxu1 %v14831_v7  ;;  %v6296_v7 = vadd.f32 %v9824_v33, %v14990_v32  ;;  %v17426_v33 = vld [vmem:[#allocation112_spill] sm:$0xff] }
 0x6e5   : > { %v6378_v45 = vsel %vm17401_vm8, %v6370_v34, 0.0  ;;  %v6385_v42 = vsel %vm17402_vm12, 0.0, %v6370_v34  ;;  %v6254_v26 = vpop.f32.mrf.mxu1  ;;  %10780 = vmatprep.subr.bf16.mxu0 %v17403_v43  ;;  %10444 = vmatprep.subr.bf16.mxu1 %v17404_v44  ;;  %v6371_v58 = vsel %vm660_vm1, %v6214_v18, %v6360_v62  ;;  %v17427_v62 = vld [vmem:[#allocation111_spill] sm:$0xff] }
 0x6e6   : > { %v6450_v16 = vrot.slane %v6385_v42, 6  ;;  %v6787_v57 = vrot.slane %v6378_v45, 2  ;;  %v6255_v19 = vadd.f32 %v6254_v26, %v5605_v21  ;;  %v6380_v2 = vsel %vm17411_vm11, %v6296_v7, 0.0  ;;  %v15274_v42 = vld [vmem:[%s16958_s13] sm:$0xff]   ;;  %v15283_v26 = vld [vmem:[%s16958_s13 + $0x58] sm:$0xff]  }
 0x6e7   : > { %v6256_v52 = vpop.f32.mrf.mxu1  ;;  %v6791_v3 = vrot.slane %v6380_v2, 2  ;;  %v9902_v54 = vpack.c.bf16 %v6296_v7, %v6296_v7  ;;  %v17431_v45 = vmov 0   ;;  %v15313_v7 = vld [vmem:[%s16957_s12] ss:$0 sm:$0xff] }
 0x6e8   : > { %v6788_v4 = vsel %vm780_vm0, %v6785_v41, %v6787_v57  ;;  %v6363_v9 = vrot.slane %v6255_v19, 4  ;;  %v6257_v59 = vadd.f32 %v6256_v52, %v5609_v27  ;;  %10781 = vmatpush3.bf16.msra.mxu0 %v17403_v43  ;;  %v6451_v17 = vsel %vm660_vm1, %v6448_v10, %v6450_v16  ;;  %10445 = vmatpush3.bf16.msra.mxu1 %v17406_v48  ;;  %v17413_v10 = vld [vmem:[#allocation96_spill] sm:$0xff]  ;;  %v17414_v41 = vld [vmem:[#allocation97_spill] sm:$0xff] }
 0x6e9   : > { %v6800_v50 = vpack.c.bf16 %v6788_v4, %v15075_v11  ;;  %v6258_v8 = vpop.f32.mrf.mxu1  ;;  %10782 = vmatprep.subr.bf16.mxu0 %v17407_v53  ;;  %10446 = vmatprep.subr.bf16.mxu1 %v17408_v61  ;;  %vm17415_vm5 = vcmp.ge.f32.partialorder %v17413_v10, %v17414_v41  ;;  %v15292_v43 = vld [vmem:[%s16958_s13 + $0x50] sm:$0xff]   ;;  %v15319_v48 = vld [vmem:[%s16958_s13 + $0x40] sm:$0xff]  }
 0x6ea   : > { %v6372_v32 = vsel %vm6338_vm7, %v6371_v58, %v6363_v9  ;;  %v6366_v25 = vrot.slane %v6257_v59, 2  ;;  %vm17416_vm8 = vmmov %vm17415_vm5 }
 0x6eb   : > { %v6259_v38 = vpop.f32.mrf.mxu1  ;;  %vm17418_vm7 = vmmov %vm17411_vm11 }
 0x6ec   : > { %v6373_v28 = vsel %vm780_vm0, %v6372_v32, %v6366_v25  ;;  %10783 = vmatpush3.bf16.msra.mxu0 %v17407_v53  ;;  %10447 = vmatpush3.bf16.msra.mxu1 %v17412_v35  ;;  %vm15132_vm12 = vmneg %vm17418_vm7 }
 0x6ed   : > { %v6379_v31 = vsel %vm17415_vm5, %v6373_v28, 0.0  ;;  %v6386_v40 = vsel %vm17416_vm8, 0.0, %v6373_v28  ;;  %10784 = vmatprep.subr.bf16.mxu0 %v17417_v6  ;;  %v9899_v11 = vpack.c.bf16 %v6373_v28, %v6370_v34  ;;  %10448 = vmatprep.subr.bf16.mxu1 %v17421_v37  ;;  %vm17425_vm11 = vmpackc.low %vm14138_vm6, %vm14115_vm14  ;;  %v17442_v37 = vld [vmem:[#allocation68_spill] sm:$0xff] }
 0x6ee   : > { %v6452_v46 = vrot.slane %v6386_v40, 6  ;;  %v6789_v55 = vrot.slane %v6379_v31, 2  ;;  %vm9921_vm5 = vmpackc.low %vm15132_vm12, %vm15132_vm12  ;;  %v17438_v40 = vld [vmem:[#allocation73_spill] sm:$0xff] }
 0x6ef   : > { %9900 = vmatprep.mubr.msk.bf16.mxu1 %vm14131_vm9, %v9899_v11  ;;  %10772 = vmatprep.mubr.msk.bf16.mxu0 %vm17425_vm11, %v9899_v11  ;;  %vm17428_vm8 = vmmov %vm17418_vm7 }
 0x6f0   : > { %10785 = vmatpush3.bf16.msra.mxu0 %v17417_v6  ;;  %v6453_v21 = vsel %vm660_vm1, %v6450_v16, %v6452_v46  ;;  %v6790_v36 = vsel %vm780_vm0, %v6787_v57, %v6789_v55  ;;  %v6792_v23 = vsel %vm780_vm0, %v6789_v55, %v6791_v3  ;;  %10449 = vmatpush3.bf16.msra.mxu1 %v17427_v62  ;;  %vm15165_vm7 = vmpackc.low %vm17428_vm8, %vm17428_vm8  ;;  %v15301_v16 = vld [vmem:[%s16958_s13 + $0x48] sm:$0xff]  }
 0x6f1   : > { %10773 = vmatmul.mubr.msk.bf16.gmra.mxu0 %vm9921_vm5, %v9902_v54  ;;  %10786 = vmatprep.subr.bf16.mxu0 %v17426_v33  ;;  %v6468_v34 = vpack.c.bf16 %v6453_v21, %v6451_v17  ;;  %v6801_v27 = vpack.c.bf16 %v6792_v23, %v6790_v36  ;;  %vm17434_vm11 = vmpackc.low %vm13977_vm10, %vm13952_vm2  ;;  %v17439_v6 = vld [vmem:[#allocation74_spill] sm:$0xff] }
 0x6f2   : > { %10792 = vmatprep.mubr.bf16.mxu0 %v6799_v63  ;;  %7162 = vmatprep.subr.bf16.mxu1 %v17431_v45  ;;  %v6471_v63 = vpack.c.bf16 %v6452_v46, %v6452_v46  ;;  %vm17435_vm8 = vmpackc.low %vm14056_vm15, %vm14033_vm3  ;;  %v17443_v3 = vld [vmem:[#allocation70_spill] sm:$0xff] }
 0x6f3   : > { %6673 = vmatmul.mubr.bf16.gmra.mxu1 %v6468_v34  ;;  %vm17437_vm10 = vmpackc.low %vm14138_vm6, %vm14115_vm14  ;;  %vm17444_vm6 = vcmp.ge.f32.partialorder %v17442_v37, %v17443_v3  ;;  %vm17446_vm14 = vcmask 523264  }
 0x6f4   : > { %10787 = vmatpush3.bf16.msra.mxu0 %v17426_v33  ;;  %9903 = vmatprep.mubr.msk.bf16.mxu1 %vm15165_vm7, %v9902_v54  ;;  %vm17445_vm2 = vmmov %vm17444_vm6 }
 0x6f5   : > { %10788 = vmatprep.subr.bf16.mxu0 %v17432_v20 }
 0x6f8   : > { %10789 = vmatpush3.bf16.msra.mxu0 %v17432_v20  ;;  %v17447_v20 = vld [vmem:[#allocation67_spill] sm:$0xff] }
 0x6f9   : > { %10790 = vmatprep.subr.bf16.mxu0 %v17433_v49 }
 0x6fb   : > { %6681 = vmatmul.mubr.bf16.gmra.mxu1 %v6471_v63 }
 0x6fc   : > { %10791 = vmatpush3.bf16.msra.mxu0 %v17433_v49  ;;  %9928 = vmatprep.mubr.msk.bf16.mxu1 %vm17434_vm11, %v14992_v0  ;;  %v17448_v49 = vld [vmem:[#allocation69_spill] sm:$0xff] }
 0x6fd   : > { %7302 = vmatprep.subr.bf16.mxu0 %v17431_v45 }
 0x6ff   : > { %10793 = vmatmul.mubr.bf16.vlgmr.msra.gmra.mxu0 %v6800_v50 }
 0x700   : > { %10796 = vmatprep.mubr.bf16.mxu0 %v6801_v27  ;;  %7303 = vmatpush1.bf16.msra.mxu0 %v15214_v5 }
 0x701   : > { %7304 = vmatprep.subr.bf16.mxu0 %v17431_v45 }
 0x703   : > { %9931 = vmatmul.mubr.msk.bf16.vlgmr.msra.gmra.mxu1 %vm13968_vm13, %v14992_v0  ;;  %v15256_v0 = vld [vmem:[%s16958_s13 + $0x10] sm:$0xff]  }
 0x704   : > { %9936 = vmatprep.mubr.msk.bf16.mxu1 %vm17435_vm8, %v15061_v1  ;;  %7163 = vmatpush1.bf16.msra.mxu1 %v15214_v5 }
 0x705   : > { %7164 = vmatprep.subr.bf16.mxu1 %v17431_v45  ;;  %7305 = vmatpush1.bf16.msra.mxu0 %v15220_v56 }
 0x706   : > { %7306 = vmatprep.subr.bf16.mxu0 %v17431_v45 }
 0x707   : > { %10797 = vmatmul.mubr.bf16.gmra.mxu0 %v17436_v30 }
 0x708   : > { %7165 = vmatpush1.bf16.msra.mxu1 %v15220_v56 }
 0x709   : > { %7166 = vmatprep.subr.bf16.mxu1 %v17431_v45  ;;  %7307 = vmatpush1.bf16.msra.mxu0 %v15229_v22 }
 0x70a   : > { %7308 = vmatprep.subr.bf16.mxu0 %v17431_v45 }
 0x70b   : > { %9939 = vmatmul.mubr.msk.bf16.gmra.mxu1 %vm14049_vm4, %v15061_v1  ;;  %v15265_v1 = vld [vmem:[%s16958_s13 + $0x8] sm:$0xff]  }
 0x70c   : > { %9944 = vmatprep.mubr.msk.bf16.mxu1 %vm17437_vm10, %v9899_v11  ;;  %7167 = vmatpush1.bf16.msra.mxu1 %v15229_v22 }
 0x70d   : > { %7168 = vmatprep.subr.bf16.mxu1 %v17431_v45  ;;  %7309 = vmatpush1.bf16.msra.mxu0 %v15238_v39 }
 0x70e   : > { %7310 = vmatprep.subr.bf16.mxu0 %v17431_v45 }
 0x710   : > { %7169 = vmatpush1.bf16.msra.mxu1 %v15238_v39 }
 0x711   : > { %7170 = vmatprep.subr.bf16.mxu1 %v17431_v45  ;;  %7311 = vmatpush1.bf16.msra.mxu0 %v15247_v51 }
 0x712   : > { %7312 = vmatprep.subr.bf16.mxu0 %v17431_v45 }
 0x713   : > { %9947 = vmatmul.mubr.msk.bf16.gmra.mxu1 %vm14131_vm9, %v9899_v11  ;;  %vm17440_vm9 = vcmp.ge.f32.partialorder %v17438_v40, %v17439_v6 }
 0x714   : > { %9952 = vmatprep.mubr.msk.bf16.mxu1 %vm9921_vm5, %v9902_v54  ;;  %7171 = vmatpush1.bf16.msra.mxu1 %v15247_v51  ;;  %vm17441_vm13 = vmmov %vm17440_vm9  ;;  %vm17449_vm5 = vcmp.ge.f32.partialorder %v17447_v20, %v17448_v49 }
 0x715   : > { %7172 = vmatprep.subr.bf16.mxu1 %v17431_v45  ;;  %7313 = vmatpush1.bf16.msra.mxu0 %v15256_v0  ;;  %vm17453_vm11 = vmmov %vm17449_vm5 }
 0x716   : > { %7314 = vmatprep.subr.bf16.mxu0 %v17431_v45 }
 0x718   : > { %7173 = vmatpush1.bf16.msra.mxu1 %v15256_v0 }
 0x719   : > { %7174 = vmatprep.subr.bf16.mxu1 %v17431_v45  ;;  %7315 = vmatpush1.bf16.msra.mxu0 %v15265_v1 }
 0x71a   : > { %7316 = vmatprep.subr.bf16.mxu0 %v17431_v45 }
 0x71b   : > { %9955 = vmatmul.mubr.msk.bf16.gmra.mxu1 %vm15165_vm7, %v9902_v54 }
 0x71c   : > { %7175 = vmatpush1.bf16.msra.mxu1 %v15265_v1 }
 0x71d   : > { %7176 = vmatprep.subr.bf16.mxu1 %v17431_v45  ;;  %7317 = vmatpush1.bf16.msra.mxu0 %v15274_v42 }
 0x71e   : > { %7326 = vmatprep.subr.bf16.mxu0 %v17431_v45 }
 0x720   : > { %7177 = vmatpush1.bf16.msra.mxu1 %v15274_v42 }
 0x721   : > { %7186 = vmatprep.subr.bf16.mxu1 %v17431_v45  ;;  %7327 = vmatpush2.bf16.msra.mxu0 %v15283_v26 }
 0x722   : > { %7328 = vmatprep.subr.bf16.mxu0 %v17431_v45 }
 0x724   : > { %7187 = vmatpush2.bf16.msra.mxu1 %v15283_v26 }
 0x725   : > { %7188 = vmatprep.subr.bf16.mxu1 %v17431_v45  ;;  %7329 = vmatpush2.bf16.msra.mxu0 %v15292_v43 }
 0x726   : > { %7330 = vmatprep.subr.bf16.mxu0 %v17431_v45 }
 0x728   : > { %7189 = vmatpush2.bf16.msra.mxu1 %v15292_v43 }
 0x729   : > { %7190 = vmatprep.subr.bf16.mxu1 %v17431_v45  ;;  %7331 = vmatpush2.bf16.msra.mxu0 %v15301_v16 }
 0x72a   : > { %7332 = vmatprep.subr.bf16.mxu0 %v17431_v45 }
 0x72c   : > { %7191 = vmatpush2.bf16.msra.mxu1 %v15301_v16 }
 0x72d   : > { %7192 = vmatprep.subr.bf16.mxu1 %v17431_v45  ;;  %7333 = vmatpush2.bf16.msra.mxu0 %v15319_v48 }
 0x72e   : > { %7591 = vmatprep.subr.bf16.mxu0 %v17431_v45 }
 0x730   : > { %7193 = vmatpush2.bf16.msra.mxu1 %v15319_v48 }
 0x731   : > { %7442 = vmatprep.subr.bf16.mxu1 %v17431_v45 }
 0x793   : > { %v10398_v44 = vpop.f32.mrf.mxu1 }
 0x795   : > { %v10399_v57 = vpop.f32.mrf.mxu1 }
 0x796   : > { %v10400_v12 = vadd.f32 %v10399_v57, %v10398_v44  ;;  %v17450_v44 = vld [vmem:[#allocation71_spill] sm:$0xff]  ;;  %v17451_v57 = vld [vmem:[#allocation72_spill] sm:$0xff] }
 0x797   : > { %v10401_v19 = vpop.f32.mrf.mxu1  ;;  %vm17452_vm7 = vcmp.ge.f32.partialorder %v17450_v44, %v17451_v57 }
 0x798   : > { %v6659_v9 = vadd.f32 %v10400_v12, %v15313_v7  ;;  %vm17454_vm8 = vmmov %vm17452_vm7 }
 0x799   : > { %v10402_v18 = vpop.f32.mrf.mxu1 }
 0x79a   : > { %v10403_v4 = vadd.f32 %v10402_v18, %v10401_v19 }
 0x79c   : > { %v6662_v8 = vadd.f32 %v10403_v4, %v15313_v7 }
 0x79f   : > { %v10770_v52 = vpop.f32.mrf.mxu0 }
 0x7a1   : > { %v6722_v59 = vpop.f32.mrf.mxu0 }
 0x7a2   : > { %v6723_v17 = vadd.f32 %v6722_v59, %v6659_v9 }
 0x7a3   : > { %v10404_v58 = vpop.f32.mrf.mxu1  ;;  %v10771_v50 = vpop.f32.mrf.mxu0 }
 0x7a4   : > { %v6759_v53 = vmul.f32 0.01, %v6723_v17  ;;  %vm6752_vm4 = vcmp.gt.f32.partialorder %v6723_v17, 0.0 }
 0x7a5   : > { %v10405_v61 = vpop.f32.mrf.mxu1  ;;  %v6725_v32 = vpop.f32.mrf.mxu0 }
 0x7a6   : > { %v10406_v25 = vadd.f32 %v10405_v61, %v10404_v58  ;;  %v6726_v13 = vadd.f32 %v6725_v32, %v6662_v8  ;;  %v6766_v28 = vsel %vm6752_vm4, %v6723_v17, %v6759_v53 }
 0x7a7   : > { %v10407_v14 = vpop.f32.mrf.mxu1  ;;  %v15340_v46 = vsel %vm17444_vm6, %v6766_v28, 0.0  ;;  %v15345_v55 = vsel %vm17445_vm2, 0.0, %v6766_v28 }
 0x7a8   : > { %v6667_v2 = vadd.f32 %v10406_v25, %v15313_v7  ;;  %vm6753_vm15 = vcmp.gt.f32.partialorder %v6726_v13, 0.0  ;;  %v6760_v38 = vmul.f32 0.01, %v6726_v13 }
 0x7a9   : > { %v10408_v35 = vpop.f32.mrf.mxu1 }
 0x7aa   : > { %v6731_v10 = vadd.f32 %v10770_v52, %v6667_v2  ;;  %v6767_v41 = vsel %vm6753_vm15, %v6726_v13, %v6760_v38  ;;  %v10409_v31 = vadd.f32 %v10408_v35, %v10407_v14 }
 0x7ab   : > { %v15330_v11 = vsel %vm17440_vm9, %v6767_v41, 0.0  ;;  %v15335_v15 = vsel %vm17441_vm13, 0.0, %v6767_v41 }
 0x7ac   : > { %v6761_v54 = vmul.f32 0.01, %v6731_v10  ;;  %v6670_v60 = vadd.f32 %v10409_v31, %v15313_v7  ;;  %vm6754_vm3 = vcmp.gt.f32.partialorder %v6731_v10, 0.0  ;;  %v7065_v29 = vpack.c.bf16 %v15335_v15, %v15345_v55 }
 0x7ad   : > { %v11478_v24 = vpack.i.bf16 %v15330_v11, %v15340_v46  ;;  %v11488_v34 = vpack.i.bf16 %v15335_v15, %v15345_v55 }
 0x7ae   : > { %v6734_v21 = vadd.f32 %v10771_v50, %v6670_v60  ;;  %9969 = vmatprep.mubr.msk.bf16.mxu1 %vm17446_vm14, %v7065_v29  ;;  %v6768_v23 = vsel %vm6754_vm3, %v6731_v10, %v6761_v54 }
 0x7af   : > { %11479 = vrot.lane.b32.xlu1 %v11478_v24, %s17331_s26  ;;  %v15360_v63 = vsel %vm17449_vm5, %v6768_v23, 0.0  ;;  %v15370_v12 = vsel %vm17453_vm11, 0.0, %v6768_v23  ;;  %v17455_v24 = vld [vmem:[#allocation77_spill] sm:$0xff]  ;;  %v17458_v23 = vld [vmem:[#allocation79_spill] sm:$0xff] }
 0x7b0   : > { %vm6755_vm12 = vcmp.gt.f32.partialorder %v6734_v21, 0.0  ;;  %v6762_v36 = vmul.f32 0.01, %v6734_v21 }
 0x7b1   : > { %v10774_v33 = vpop.f32.mrf.mxu0 }
 0x7b2   : > { %v6769_v27 = vsel %vm6755_vm12, %v6734_v21, %v6762_v36  ;;  %v17456_v21 = vld [vmem:[#allocation78_spill] sm:$0xff] }
 0x7b3   : > { %v6738_v62 = vpop.f32.mrf.mxu0  ;;  %11489 = vrot.lane.b32.xlu1 %v11488_v34, %s17331_s26  ;;  %v10410_v47 = vpop.f32.mrf.mxu1  ;;  %v15365_v19 = vsel %vm17452_vm7, %v6769_v27, 0.0  ;;  %v15375_v18 = vsel %vm17454_vm8, 0.0, %v6769_v27  ;;  %vm17457_vm15 = vcmp.ge.f32.partialorder %v17455_v24, %v17456_v21  ;;  %v17459_v34 = vld [vmem:[#allocation80_spill] sm:$0xff] }
 0x7b4   : > { %v11483_v52 = vpack.i.bf16 %v15365_v19, %v15360_v63  ;;  %v11498_v4 = vpack.i.bf16 %v15375_v18, %v15370_v12  ;;  %vm17460_vm9 = vcmp.ge.f32.partialorder %v17458_v23, %v17459_v34  ;;  %vm17461_vm13 = vmmov %vm17457_vm15 }
 0x7b5   : > { %v10775_v9 = vpop.f32.mrf.mxu0  ;;  %v10411_v59 = vpop.f32.mrf.mxu1  ;;  %vm17462_vm6 = vmmov %vm17460_vm9 }
 0x7b6   : > { %v10412_v17 = vadd.f32 %v10411_v59, %v10410_v47  ;;  %11484 = vrot.lane.b32.xlu0 %v11483_v52, %s17331_s26 }
 0x7b7   : > { %11499 = vrot.lane.b32.xlu1 %v11498_v4, %s17331_s26  ;;  %v10413_v58 = vpop.f32.mrf.mxu1  ;;  %v6741_v14 = vpop.f32.mrf.mxu0 }
 0x7b8   : > { %v6675_v50 = vadd.f32 %v10412_v17, %v15313_v7 }
 0x7b9   : > { %v10414_v8 = vpop.f32.mrf.mxu1 }
 0x7ba   : > { %v6739_v53 = vadd.f32 %v6738_v62, %v6675_v50  ;;  %v10415_v61 = vadd.f32 %v10414_v8, %v10413_v58  ;;  %v17463_v50 = vld [vmem:[#allocation75_spill] sm:$0xff]  ;;  %v17464_v8 = vld [vmem:[#allocation76_spill] sm:$0xff] }
 0x7bb   : > { %v10416_v32 = vpop.f32.mrf.mxu1  ;;  %vm17465_vm3 = vcmp.ge.f32.partialorder %v17463_v50, %v17464_v8 }
 0x7bc   : > { %v6763_v25 = vmul.f32 0.01, %v6739_v53  ;;  %v6678_v13 = vadd.f32 %v10415_v61, %v15313_v7  ;;  %vm6756_vm10 = vcmp.gt.f32.partialorder %v6739_v53, 0.0  ;;  %vm17466_vm14 = vmmov %vm17465_vm3 }
 0x7bd   : > { %v10417_v2 = vpop.f32.mrf.mxu1 }
 0x7be   : > { %v6742_v38 = vadd.f32 %v6741_v14, %v6678_v13  ;;  %v10418_v28 = vadd.f32 %v10417_v2, %v10416_v32  ;;  %v6770_v40 = vsel %vm6756_vm10, %v6739_v53, %v6763_v25 }
 0x7bf   : > { %v10794_v35 = vpop.f32.mrf.mxu0  ;;  %v10419_v10 = vpop.f32.mrf.mxu1  ;;  %v15389_v36 = vsel %vm17457_vm15, %v6770_v40, 0.0  ;;  %v15399_v62 = vsel %vm17461_vm13, 0.0, %v6770_v40  ;;  %vm17475_vm15 = vcmask 523264  }
 0x7c0   : > { %vm6757_vm4 = vcmp.gt.f32.partialorder %v6742_v38, 0.0  ;;  %v6764_v41 = vmul.f32 0.01, %v6742_v38  ;;  %v6683_v31 = vadd.f32 %v10418_v28, %v15313_v7 }
 0x7c1   : > { %v6900_v6 = vpop.f32.mrf.mxu0  ;;  %v10420_v37 = vpop.f32.mrf.mxu1 }
 0x7c2   : > { %v6747_v3 = vadd.f32 %v10774_v33, %v6683_v31  ;;  %v6771_v54 = vsel %vm6757_vm4, %v6742_v38, %v6764_v41 }
 0x7c3   : > { %v10795_v60 = vpop.f32.mrf.mxu0  ;;  %v10450_v29 = vpop.f32.mrf.mxu1  ;;  %v15394_v27 = vsel %vm17460_vm9, %v6771_v54, 0.0  ;;  %v15404_v33 = vsel %vm17462_vm6, 0.0, %v6771_v54  ;;  %v17467_v54 = vld [vmem:[#allocation83_spill] sm:$0xff] }
 0x7c4   : > { %v11493_v47 = vpack.i.bf16 %v15394_v27, %v15389_v36  ;;  %v11503_v20 = vpack.i.bf16 %v15404_v33, %v15399_v62  ;;  %vm6758_vm2 = vcmp.gt.f32.partialorder %v6747_v3, 0.0  ;;  %v6765_v57 = vmul.f32 0.01, %v6747_v3 }
 0x7c5   : > { %v6903_v49 = vpop.f32.mrf.mxu0  ;;  %v10451_v44 = vpop.f32.mrf.mxu1 }
 0x7c6   : > { %v10452_v52 = vadd.f32 %v10451_v44, %v10450_v29  ;;  %11494 = vrot.lane.b32.xlu0 %v11493_v47, %s17331_s26  ;;  %11504 = vrot.lane.b32.xlu1 %v11503_v20, %s17331_s26  ;;  %v6772_v9 = vsel %vm6758_vm2, %v6747_v3, %v6765_v57  ;;  %v17468_v29 = vld [vmem:[#allocation84_spill] sm:$0xff]  ;;  %v17471_v44 = vld [vmem:[#allocation87_spill] sm:$0xff] }
 0x7c7   : > { %v10453_v4 = vpop.f32.mrf.mxu1  ;;  %v15412_v59 = vpop.f32.mrf.mxu0  ;;  %v15418_v53 = vsel %vm17465_vm3, %v6772_v9, 0.0  ;;  %v15423_v61 = vsel %vm17466_vm14, 0.0, %v6772_v9  ;;  %vm17469_vm7 = vcmp.ge.f32.partialorder %v17467_v54, %v17468_v29  ;;  %v17472_v57 = vld [vmem:[#allocation88_spill] sm:$0xff] }
 0x7c8   : > { %v6837_v17 = vadd.f32 %v10452_v52, %v15313_v7  ;;  %vm17470_vm11 = vmmov %vm17469_vm7  ;;  %vm17473_vm8 = vcmp.ge.f32.partialorder %v17471_v44, %v17472_v57  ;;  %v17480_v57 = vld [vmem:[#allocation85_spill] sm:$0xff] }
 0x7c9   : > { %v10454_v58 = vpop.f32.mrf.mxu1  ;;  %v6916_v32 = vpop.f32.mrf.mxu0  ;;  %vm17474_vm10 = vmmov %vm17473_vm8 }
 0x7ca   : > { %v6901_v25 = vadd.f32 %v6900_v6, %v6837_v17  ;;  %v10455_v13 = vadd.f32 %v10454_v58, %v10453_v4  ;;  %7048 = vrot.lane.b32.xlu0 %v15418_v53, %s17331_s26  ;;  %7266 = vrot.lane.b32.xlu1 %v15423_v61, %s17331_s26 }
 0x7cb   : > { %v10456_v14 = vpop.f32.mrf.mxu1  ;;  %v10799_v2 = vpop.f32.mrf.mxu0 }
 0x7cc   : > { %vm6930_vm12 = vcmp.gt.f32.partialorder %v6901_v25, 0.0  ;;  %v6937_v38 = vmul.f32 0.01, %v6901_v25  ;;  %v6840_v28 = vadd.f32 %v10455_v13, %v15313_v7 }
 0x7cd   : > { %v10457_v10 = vpop.f32.mrf.mxu1 }
 0x7ce   : > { %v6944_v41 = vsel %vm6930_vm12, %v6901_v25, %v6937_v38  ;;  %v6904_v31 = vadd.f32 %v6903_v49, %v6840_v28  ;;  %v10458_v40 = vadd.f32 %v10457_v10, %v10456_v14 }
 0x7cf   : > { %v10459_v37 = vpop.f32.mrf.mxu1  ;;  %v15434_v24 = vsel %vm17469_vm7, 0.0, %v6944_v41  ;;  %v15439_v49 = vsel %vm17470_vm11, %v6944_v41, 0.0  ;;  %v17476_v41 = vld [vmem:[#allocation81_spill] sm:$0xff] }
 0x7d0   : > { %vm6931_vm5 = vcmp.gt.f32.partialorder %v6904_v31, 0.0  ;;  %v6938_v6 = vmul.f32 0.01, %v6904_v31  ;;  %v6845_v3 = vadd.f32 %v10458_v40, %v15313_v7  ;;  %v7010_v9 = vrot.slane %v15434_v24, 6 }
 0x7d1   : > { %v10460_v21 = vpop.f32.mrf.mxu1 }
 0x7d2   : > { %v6945_v23 = vsel %vm6931_vm5, %v6904_v31, %v6938_v6  ;;  %v6909_v34 = vadd.f32 %v10794_v35, %v6845_v3  ;;  %v10461_v47 = vadd.f32 %v10460_v21, %v10459_v37  ;;  %v17477_v31 = vld [vmem:[#allocation82_spill] sm:$0xff] }
 0x7d3   : > { %v10462_v20 = vpop.f32.mrf.mxu1  ;;  %v15444_v52 = vsel %vm17473_vm8, %v6945_v23, 0.0  ;;  %v15449_v4 = vsel %vm17474_vm10, 0.0, %v6945_v23  ;;  %vm17478_vm9 = vcmp.ge.f32.partialorder %v17476_v41, %v17477_v31 }
 0x7d4   : > { %vm6932_vm4 = vcmp.gt.f32.partialorder %v6909_v34, 0.0  ;;  %v6939_v35 = vmul.f32 0.01, %v6909_v34  ;;  %v6848_v17 = vadd.f32 %v10461_v47, %v15313_v7  ;;  %v11508_v58 = vpack.i.bf16 %v15444_v52, %v15439_v49  ;;  %vm17479_vm6 = vmmov %vm17478_vm9 }
 0x7d5   : > { %v10463_v50 = vpop.f32.mrf.mxu1  ;;  %v7283_v8 = vpack.c.bf16 %v15444_v52, %v15439_v49  ;;  %v7011_v25 = vrot.slane %v15449_v4, 6  ;;  %v11523_v13 = vpack.i.bf16 %v15449_v4, %v15434_v24 }
 0x7d6   : > { %v6946_v2 = vsel %vm6932_vm4, %v6909_v34, %v6939_v35  ;;  %v6912_v38 = vadd.f32 %v10795_v60, %v6848_v17  ;;  %v10464_v28 = vadd.f32 %v10463_v50, %v10462_v20  ;;  %11509 = vrot.lane.b32.xlu0 %v11508_v58, %s17331_s26  ;;  %v6919_v20 = vpop.f32.mrf.mxu0  ;;  %v17481_v35 = vld [vmem:[#allocation86_spill] sm:$0xff] }
 0x7d7   : > { %9973 = vmatprep.mubr.msk.bf16.mxu0 %vm17475_vm15, %v7283_v8  ;;  %v10465_v10 = vpop.f32.mrf.mxu1  ;;  %v15467_v40 = vsel %vm17478_vm9, 0.0, %v6946_v2  ;;  %v7012_v37 = vsel %vm660_vm1, %v7010_v9, %v7011_v25  ;;  %v15480_v44 = vsel %vm17479_vm6, %v6946_v2, 0.0  ;;  %vm17482_vm2 = vcmp.ge.f32.partialorder %v17480_v57, %v17481_v35 }
 0x7d8   : > { %vm6933_vm13 = vcmp.gt.f32.partialorder %v6912_v38, 0.0  ;;  %v6940_v6 = vmul.f32 0.01, %v6912_v38  ;;  %v6853_v3 = vadd.f32 %v10464_v28, %v15313_v7  ;;  %v7013_v60 = vrot.slane %v15467_v40, 6  ;;  %vm17483_vm3 = vmmov %vm17482_vm2 }
 0x7d9   : > { %v10466_v54 = vpop.f32.mrf.mxu1  ;;  %vm17496_vm9 = vcmask 523264  }
 0x7da   : > { %v6947_v29 = vsel %vm6933_vm13, %v6912_v38, %v6940_v6  ;;  %v10467_v21 = vadd.f32 %v10466_v54, %v10465_v10  ;;  %v6917_v23 = vadd.f32 %v6916_v32, %v6853_v3  ;;  %v15475_v34 = vsel %vm660_vm1, %v7011_v25, %v7013_v60  ;;  %v17484_v6 = vld [vmem:[#allocation91_spill] sm:$0xff]  ;;  %v17485_v3 = vld [vmem:[#allocation92_spill] sm:$0xff]  ;;  %vm17497_vm13 = vmmov %vm17496_vm9 }
 0x7db   : > { %v10468_v47 = vpop.f32.mrf.mxu1  ;;  %v15485_v17 = vsel %vm17482_vm2, %v6947_v29, 0.0  ;;  %v15490_v58 = vsel %vm17483_vm3, 0.0, %v6947_v29  ;;  %vm17486_vm12 = vcmp.ge.f32.partialorder %v17484_v6, %v17485_v3  ;;  %vm17498_vm6 = vmmov %vm17496_vm9 }
 0x7dc   : > { %vm6934_vm14 = vcmp.gt.f32.partialorder %v6917_v23, 0.0  ;;  %v6941_v32 = vmul.f32 0.01, %v6917_v23  ;;  %v6856_v50 = vadd.f32 %v10467_v21, %v15313_v7  ;;  %v11513_v8 = vpack.i.bf16 %v15485_v17, %v15480_v44  ;;  %vm17487_vm7 = vmmov %vm17486_vm12 }
 0x7dd   : > { %v10469_v25 = vpop.f32.mrf.mxu1  ;;  %v11528_v2 = vpack.i.bf16 %v15490_v58, %v15467_v40  ;;  %v7015_v38 = vrot.slane %v15490_v58, 6  ;;  %vm17499_vm2 = vmmov %vm17498_vm6 }
 0x7de   : > { %v6948_v10 = vsel %vm6934_vm14, %v6917_v23, %v6941_v32  ;;  %v10470_v41 = vadd.f32 %v10469_v25, %v10468_v47  ;;  %v6920_v31 = vadd.f32 %v6919_v20, %v6856_v50  ;;  %11514 = vrot.lane.b32.xlu0 %v11513_v8, %s17331_s26  ;;  %v17489_v50 = vld [vmem:[#allocation94_spill] sm:$0xff]  ;;  %vm17500_vm3 = vmmov %vm17499_vm2 }
 0x7df   : > { %v15504_v54 = vsel %vm17486_vm12, 0.0, %v6948_v10  ;;  %v10471_v29 = vpop.f32.mrf.mxu1  ;;  %v7016_v21 = vsel %vm660_vm1, %v7013_v60, %v7015_v38  ;;  %v15517_v32 = vsel %vm17487_vm7, %v6948_v10, 0.0  ;;  %v17488_v60 = vld [vmem:[#allocation93_spill] sm:$0xff]  ;;  %vm17501_vm14 = vmmov %vm17499_vm2 }
 0x7e0   : > { %v7017_v57 = vrot.slane %v15504_v54, 6  ;;  %v6861_v35 = vadd.f32 %v10470_v41, %v15313_v7  ;;  %vm6935_vm5 = vcmp.gt.f32.partialorder %v6920_v31, 0.0  ;;  %v6942_v14 = vmul.f32 0.01, %v6920_v31  ;;  %v17492_v41 = vld [vmem:[#allocation89_spill] sm:$0xff]  ;;  %vm17502_vm12 = vmmov %vm17499_vm2 }
 0x7e1   : > { %v10472_v28 = vpop.f32.mrf.mxu1  ;;  %vm17490_vm11 = vcmp.ge.f32.partialorder %v17488_v60, %v17489_v50  ;;  %vm17504_vm7 = vmmov %vm17499_vm2 }
 0x7e2   : > { %v6925_v23 = vadd.f32 %v15412_v59, %v6861_v35  ;;  %v6949_v47 = vsel %vm6935_vm5, %v6920_v31, %v6942_v14  ;;  %11524 = vrot.lane.b32.xlu0 %v11523_v13, %s17331_s26  ;;  %v15512_v20 = vsel %vm660_vm1, %v7015_v38, %v7017_v57  ;;  %vm17491_vm8 = vmmov %vm17490_vm11  ;;  %v17493_v31 = vld [vmem:[#allocation90_spill] sm:$0xff]  ;;  %v7028_v35 = vsel %vm660_vm1, 0.0, %v7010_v9 }
 0x7e3   : > { %v15522_v7 = vsel %vm17490_vm11, %v6949_v47, 0.0  ;;  %v15527_v59 = vsel %vm17491_vm8, 0.0, %v6949_v47  ;;  %vm17494_vm4 = vcmp.ge.f32.partialorder %v17492_v41, %v17493_v31  ;;  %vm17503_vm5 = vmmov %vm17499_vm2 }
 0x7e4   : > { %v11518_v13 = vpack.i.bf16 %v15522_v7, %v15517_v32  ;;  %vm6936_vm10 = vcmp.gt.f32.partialorder %v6925_v23, 0.0  ;;  %v6943_v14 = vmul.f32 0.01, %v6925_v23  ;;  %v11533_v8 = vpack.i.bf16 %v15527_v59, %v15504_v54  ;;  %vm17495_vm15 = vmmov %vm17494_vm4 }
 0x7e5   : > { %v7019_v25 = vrot.slane %v15527_v59, 6  ;;  %v7427_v38 = vpack.c.bf16 %v15527_v59, %v15504_v54  ;;  %vm17505_vm11 = vmmov %vm17499_vm2 }
 0x7e6   : > { %11529 = vrot.lane.b32.xlu0 %v11528_v2, %s17331_s26  ;;  %11519 = vrot.lane.b32.xlu1 %v11518_v13, %s17331_s26  ;;  %v6950_v28 = vsel %vm6936_vm10, %v6925_v23, %v6943_v14  ;;  %vm17506_vm8 = vmmov %vm17499_vm2 }
 0x7e7   : > { %v15541_v10 = vsel %vm660_vm1, %v7017_v57, %v7019_v25  ;;  %v15546_v6 = vsel %vm17494_vm4, 0.0, %v6950_v28  ;;  %v15551_v3 = vsel %vm17495_vm15, %v6950_v28, 0.0  ;;  %v7067_v28 = vpack.c.bf16 %v15375_v18, %v15370_v12  ;;  %vm17507_vm10 = vmmov %vm17499_vm2 }
 0x7e8   : > { %vm17508_vm4 = vmmov %vm17499_vm2  ;;  %v7429_v59 = vpack.c.bf16 %v15546_v6, %v15546_v6 }
 0x7e9   : > { %vm17509_vm15 = vmmov %vm17499_vm2 }
 0x7ea   : > { %7559 = vrot.lane.b32.xlu0 %v15546_v6, %s17331_s26  ;;  %7406 = vrot.lane.b32.xlu1 %v15551_v3, %s17331_s26 }
 0x7ee   : > { %11534 = vrot.lane.b32.xlu1 %v11533_v8, %s17331_s26 }
 0x821   : > { %v11480_v2 = vpop.permute.xlu1 %11479 }
 0x822   : > { %v11482_v29 = vunpack.i.h.bf16 %v11480_v2  ;;  %v11481_v57 = vunpack.i.l.bf16 %v11480_v2 }
 0x824   : > { %v7058_v23 = vsel %vm17496_vm9, %v7012_v37, %v11482_v29  ;;  %v7057_v47 = vsel %vm17497_vm13, %v7028_v35, %v11481_v57  ;;  %vm17510_vm9 = vmmov %vm17499_vm2 }
 0x825   : > { %v7064_v60 = vpack.c.bf16 %v7058_v23, %v7057_v47  ;;  %v11490_v50 = vpop.permute.xlu1 %11489  ;;  %v7285_v23 = vpack.c.bf16 %v15485_v17, %v15480_v44  ;;  %vm17511_vm13 = vmmov %vm17499_vm2 }
 0x826   : > { %v11492_v13 = vunpack.i.h.bf16 %v11490_v50  ;;  %v11491_v14 = vunpack.i.l.bf16 %v11490_v50 }
 0x827   : > { %7195 = vmatmul.mubr.bf16.vlgmr.msra.gmra.mxu1 %v7064_v60 }
 0x828   : > { %v7276_v8 = vsel %vm17498_vm6, %v15330_v11, %v11492_v13  ;;  %v7275_v41 = vsel %vm17499_vm2, %v15340_v46, %v11491_v14  ;;  %7443 = vmatpush1.bf16.msra.mxu1 %v15214_v5  ;;  %9970 = vmatprep.mubr.msk.bf16.mxu1 %vm17500_vm3, %v7067_v28  ;;  %v11485_v9 = vpop.permute.xlu0 %11484  ;;  %vm17512_vm6 = vmmov %vm17499_vm2 }
 0x829   : > { %v7282_v37 = vpack.c.bf16 %v7276_v8, %v7275_v41  ;;  %v11487_v31 = vunpack.i.h.bf16 %v11485_v9  ;;  %v11486_v2 = vunpack.i.l.bf16 %v11485_v9  ;;  %v11500_v29 = vpop.permute.xlu1 %11499  ;;  %7444 = vmatprep.subr.bf16.mxu1 %v17431_v45  ;;  %vm17513_vm3 = vmmov %vm17499_vm2 }
 0x82a   : > { %v11502_v57 = vunpack.i.h.bf16 %v11500_v29  ;;  %v11501_v35 = vunpack.i.l.bf16 %v11500_v29 }
 0x82b   : > { %v7059_v47 = vsel %vm17501_vm14, %v15475_v34, %v11486_v2  ;;  %v7060_v60 = vsel %vm17502_vm12, %v7016_v21, %v11487_v31  ;;  %7335 = vmatmul.mubr.bf16.vlgmr.msra.gmra.mxu0 %v7282_v37  ;;  %v7069_v34 = vpack.c.bf16 %v15404_v33, %v15399_v62  ;;  %v7287_v21 = vpack.c.bf16 %v15522_v7, %v15517_v32  ;;  %vm17514_vm14 = vmmov %vm17499_vm2 }
 0x82c   : > { %7445 = vmatpush1.bf16.msra.mxu1 %v15220_v56  ;;  %9974 = vmatprep.mubr.msk.bf16.mxu0 %vm17503_vm5, %v7285_v23  ;;  %v7066_v50 = vpack.c.bf16 %v7060_v60, %v7059_v47  ;;  %v7278_v13 = vsel %vm17504_vm7, %v15365_v19, %v11502_v57  ;;  %v7277_v14 = vsel %vm17505_vm11, %v15360_v63, %v11501_v35  ;;  %vm17516_vm12 = vmmov %vm17499_vm2 }
 0x82d   : > { %7592 = vmatpush1.bf16.msra.mxu0 %v15214_v5  ;;  %7446 = vmatprep.subr.bf16.mxu1 %v17431_v45  ;;  %v7284_v5 = vpack.c.bf16 %v7278_v13, %v7277_v14  ;;  %v7071_v35 = vpack.c.bf16 %v15423_v61, %v15423_v61  ;;  %v7527_v13 = vrot.slane %v15340_v46, 2  ;;  %v17515_v46 = vpack.c.bf16 %v15449_v4, %v15434_v24  ;;  %vm17517_vm5 = vmmov %vm17499_vm2 }
 0x82e   : > { %7593 = vmatprep.subr.bf16.mxu0 %v17431_v45  ;;  %vm17518_vm7 = vmmov %vm17499_vm2 }
 0x82f   : > { %7203 = vmatmul.mubr.bf16.gmra.mxu1 %v7066_v50  ;;  %vm17519_vm11 = vmmov %vm17499_vm2 }
 0x830   : > { %7447 = vmatpush1.bf16.msra.mxu1 %v15229_v22  ;;  %9971 = vmatprep.mubr.msk.bf16.mxu1 %vm17506_vm8, %v7069_v34  ;;  %vm17520_vm8 = vmmov %vm17499_vm2 }
 0x831   : > { %7594 = vmatpush1.bf16.msra.mxu0 %v15220_v56  ;;  %7448 = vmatprep.subr.bf16.mxu1 %v17431_v45 }
 0x832   : > { %7595 = vmatprep.subr.bf16.mxu0 %v17431_v45 }
 0x833   : > { %7343 = vmatmul.mubr.bf16.gmra.mxu0 %v7284_v5 }
 0x834   : > { %7449 = vmatpush1.bf16.msra.mxu1 %v15238_v39  ;;  %9975 = vmatprep.mubr.msk.bf16.mxu0 %vm17507_vm10, %v7287_v21  ;;  %vm17521_vm10 = vmmov %vm17499_vm2 }
 0x835   : > { %7596 = vmatpush1.bf16.msra.mxu0 %v15229_v22  ;;  %7450 = vmatprep.subr.bf16.mxu1 %v17431_v45 }
 0x836   : > { %7597 = vmatprep.subr.bf16.mxu0 %v17431_v45 }
 0x838   : > { %7451 = vmatpush1.bf16.msra.mxu1 %v15247_v51  ;;  %v11495_v56 = vpop.permute.xlu0 %11494  ;;  %v11505_v28 = vpop.permute.xlu1 %11504 }
 0x839   : > { %7598 = vmatpush1.bf16.msra.mxu0 %v15238_v39  ;;  %v11497_v8 = vunpack.i.h.bf16 %v11495_v56  ;;  %v11496_v41 = vunpack.i.l.bf16 %v11495_v56  ;;  %v11507_v9 = vunpack.i.h.bf16 %v11505_v28  ;;  %v11506_v37 = vunpack.i.l.bf16 %v11505_v28  ;;  %7452 = vmatprep.subr.bf16.mxu1 %v17431_v45 }
 0x83a   : > { %7599 = vmatprep.subr.bf16.mxu0 %v17431_v45 }
 0x83b   : > { %v7061_v22 = vsel %vm17508_vm4, %v15512_v20, %v11496_v41  ;;  %v7280_v31 = vsel %vm17509_vm15, %v15394_v27, %v11507_v9  ;;  %v7279_v2 = vsel %vm17510_vm9, %v15389_v36, %v11506_v37  ;;  %v7062_v39 = vsel %vm17511_vm13, %v15541_v10, %v11497_v8  ;;  %vm17523_vm4 = vmmov %vm17499_vm2 }
 0x83c   : > { %7453 = vmatpush1.bf16.msra.mxu1 %v15256_v0  ;;  %v7068_v29 = vpack.c.bf16 %v7062_v39, %v7061_v22  ;;  %v7286_v57 = vpack.c.bf16 %v7280_v31, %v7279_v2  ;;  %v7289_v20 = vpack.c.bf16 %v15551_v3, %v15551_v3  ;;  %v7049_v23 = vpop.permute.xlu0 %7048  ;;  %v7267_v47 = vpop.permute.xlu1 %7266  ;;  %v7530_v10 = vrot.slane %v15360_v63, 2  ;;  %vm17524_vm15 = vmmov %vm17499_vm2 }
 0x83d   : > { %7600 = vmatpush1.bf16.msra.mxu0 %v15247_v51  ;;  %7454 = vmatprep.subr.bf16.mxu1 %v17431_v45  ;;  %v7528_v51 = vrot.slane %v15330_v11, 2  ;;  %v7063_v60 = vsel %vm17513_vm3, %v7019_v25, %v7049_v23  ;;  %v7281_v50 = vsel %vm17514_vm14, %v15418_v53, %v7267_v47  ;;  %v7532_v41 = vrot.slane %v15365_v19, 2  ;;  %vm17525_vm9 = vmmov %vm17499_vm2 }
 0x83e   : > { %7211 = vmatmul.mubr.bf16.gmra.mxu1 %v7068_v29  ;;  %7351 = vmatmul.mubr.bf16.gmra.mxu0 %v7286_v57  ;;  %v7070_v11 = vpack.c.bf16 %v7063_v60, %v7063_v60  ;;  %v7288_v34 = vpack.c.bf16 %v7281_v50, %v7281_v50  ;;  %v17522_v22 = vpack.c.bf16 %v15490_v58, %v15467_v40  ;;  %v7538_v39 = vrot.slane %v15418_v53, 2  ;;  %vm17526_vm13 = vmmov %vm17499_vm2 }
 0x83f   : > { %7601 = vmatprep.subr.bf16.mxu0 %v17431_v45  ;;  %9972 = vmatprep.mubr.msk.bf16.mxu1 %vm17512_vm6, %v7071_v35  ;;  %v7531_v14 = vsel %vm780_vm0, %v7528_v51, %v7530_v10  ;;  %v7536_v57 = vrot.slane %v15394_v27, 2  ;;  %vm17527_vm6 = vmmov %vm17499_vm2 }
 0x840   : > { %7455 = vmatpush1.bf16.msra.mxu1 %v15265_v1  ;;  %9976 = vmatprep.mubr.msk.bf16.mxu0 %vm17499_vm2, %v7289_v20  ;;  %vm17528_vm3 = vmmov %vm17499_vm2 }
 0x841   : > { %7602 = vmatpush1.bf16.msra.mxu0 %v15256_v0  ;;  %7456 = vmatprep.subr.bf16.mxu1 %v17431_v45  ;;  %v7529_v0 = vsel %vm780_vm0, %v7527_v13, %v7528_v51  ;;  %v7539_v20 = vsel %vm780_vm0, %v7536_v57, %v7538_v39  ;;  %vm17529_vm14 = vmmov %vm17499_vm2 }
 0x842   : > { %7603 = vmatprep.subr.bf16.mxu0 %v17431_v45  ;;  %v7576_v25 = vpack.c.bf16 %v7531_v14, %v7529_v0 }
 0x844   : > { %7457 = vmatpush1.bf16.msra.mxu1 %v15274_v42 }
 0x845   : > { %7604 = vmatpush1.bf16.msra.mxu0 %v15265_v1  ;;  %7466 = vmatprep.subr.bf16.mxu1 %v17431_v45 }
 0x846   : > { %7219 = vmatmul.mubr.bf16.gmra.mxu1 %v7070_v11  ;;  %7359 = vmatmul.mubr.bf16.gmra.mxu0 %v7288_v34 }
 0x847   : > { %7605 = vmatprep.subr.bf16.mxu0 %v17431_v45  ;;  %9977 = vmatprep.mubr.msk.bf16.mxu1 %vm17516_vm12, %v17515_v46  ;;  %vm17530_vm12 = vmmov %vm17499_vm2 }
 0x848   : > { %7467 = vmatpush2.bf16.msra.mxu1 %v15283_v26  ;;  %9981 = vmatprep.mubr.msk.bf16.mxu0 %vm17517_vm5, %v7576_v25  ;;  %v11510_v1 = vpop.permute.xlu0 %11509  ;;  %vm17531_vm5 = vmmov %vm17499_vm2  ;;  %v15733_v25 = vld [vmem:[%s16960_s15 + $0x20] sm:$0xff]  }
 0x849   : > { %7606 = vmatpush1.bf16.msra.mxu0 %v15274_v42  ;;  %7468 = vmatprep.subr.bf16.mxu1 %v17431_v45  ;;  %v11512_v24 = vunpack.i.h.bf16 %v11510_v1  ;;  %v11511_v4 = vunpack.i.l.bf16 %v11510_v1 }
 0x84a   : > { %7615 = vmatprep.subr.bf16.mxu0 %v17431_v45 }
 0x84b   : > { %v7416_v42 = vsel %vm17518_vm7, %v15335_v15, %v11512_v24  ;;  %v7415_v21 = vsel %vm17519_vm11, %v15345_v55, %v11511_v4  ;;  %vm17532_vm7 = vmmov %vm17499_vm2 }
 0x84c   : > { %7469 = vmatpush2.bf16.msra.mxu1 %v15292_v43  ;;  %v7422_v28 = vpack.c.bf16 %v7416_v42, %v7415_v21  ;;  %vm17533_vm11 = vmmov %vm17499_vm2 }
 0x84d   : > { %7616 = vmatpush2.bf16.msra.mxu0 %v15283_v26  ;;  %7470 = vmatprep.subr.bf16.mxu1 %v17431_v45  ;;  %v7534_v26 = vrot.slane %v15389_v36, 2 }
 0x84e   : > { %7617 = vmatprep.subr.bf16.mxu0 %v17431_v45 }
 0x84f   : > { %v7535_v19 = vsel %vm780_vm0, %v7532_v41, %v7534_v26 }
 0x850   : > { %7471 = vmatpush2.bf16.msra.mxu1 %v15301_v16  ;;  %v11515_v5 = vpop.permute.xlu0 %11514 }
 0x851   : > { %7618 = vmatpush2.bf16.msra.mxu0 %v15292_v43  ;;  %7472 = vmatprep.subr.bf16.mxu1 %v17431_v45  ;;  %v11517_v9 = vunpack.i.h.bf16 %v11515_v5  ;;  %v11516_v37 = vunpack.i.l.bf16 %v11515_v5 }
 0x852   : > { %7619 = vmatprep.subr.bf16.mxu0 %v17431_v45 }
 0x854   : > { %7473 = vmatpush2.bf16.msra.mxu1 %v15319_v48  ;;  %v11525_v56 = vpop.permute.xlu0 %11524 }
 0x855   : > { %7620 = vmatpush2.bf16.msra.mxu0 %v15301_v16  ;;  %v11527_v8 = vunpack.i.h.bf16 %v11525_v56  ;;  %v11526_v43 = vunpack.i.l.bf16 %v11525_v56  ;;  %v15744_v56 = vld [vmem:[%s16960_s15 + $0x18] sm:$0xff]  }
 0x856   : > { %7621 = vmatprep.subr.bf16.mxu0 %v17431_v45  ;;  %v7418_v45 = vsel %vm17524_vm15, %v15375_v18, %v11517_v9  ;;  %v17537_v9 = vld [vmem:[#allocation16_spill] sm:$0xff] }
 0x857   : > { %v7569_v15 = vsel %vm17520_vm8, %v15444_v52, %v11527_v8  ;;  %v7568_v55 = vsel %vm17521_vm10, %v15439_v49, %v11526_v43  ;;  %7475 = vmatmul.mubr.bf16.vlgmr.msra.gmra.mxu1 %v7422_v28  ;;  %v7417_v52 = vsel %vm17525_vm9, %v15370_v12, %v11516_v37  ;;  %v7533_v49 = vsel %vm780_vm0, %v7530_v10, %v7532_v41  ;;  %vm17534_vm8 = vmmov %vm17499_vm2  ;;  %v17538_v37 = vld [vmem:[#allocation17_spill] sm:$0xff] }
 0x858   : > { %v7575_v36 = vpack.c.bf16 %v7569_v15, %v7568_v55  ;;  %9978 = vmatprep.mubr.msk.bf16.mxu1 %vm17523_vm4, %v17522_v22  ;;  %v11530_v16 = vpop.permute.xlu0 %11529  ;;  %v11520_v31 = vpop.permute.xlu1 %11519  ;;  %v7578_v58 = vpack.c.bf16 %v7535_v19, %v7533_v49  ;;  %vm17535_vm10 = vmmov %vm17499_vm2 }
 0x859   : > { %7622 = vmatpush2.bf16.msra.mxu0 %v15319_v48  ;;  %v11532_v2 = vunpack.i.h.bf16 %v11530_v16  ;;  %v11531_v40 = vunpack.i.l.bf16 %v11530_v16  ;;  %v7424_v48 = vpack.c.bf16 %v7418_v45, %v7417_v52  ;;  %v11522_v18 = vunpack.i.h.bf16 %v11520_v31  ;;  %vm17536_vm4 = vmmov %vm17499_vm2  ;;  %v17541_v16 = vld [vmem:[#allocation13_spill] sm:$0xff] }
 0x85a   : > { %v11521_v35 = vunpack.i.l.bf16 %v11520_v31  ;;  %v17542_v31 = vld [vmem:[#allocation12_spill] sm:$0xff] }
 0x85b   : > { %v7571_v12 = vsel %vm17527_vm6, %v15485_v17, %v11532_v2  ;;  %v7570_v63 = vsel %vm17499_vm2, %v15480_v44, %v11531_v40  ;;  %v7420_v27 = vsel %vm17529_vm14, %v15404_v33, %v11522_v18  ;;  %v7537_v17 = vsel %vm780_vm0, %v7534_v26, %v7536_v57 }
 0x85c   : > { %7624 = vmatmul.mubr.bf16.vlgmr.msra.gmra.mxu0 %v7575_v36  ;;  %v7407_v29 = vpop.permute.xlu1 %7406  ;;  %v7419_v23 = vsel %vm17530_vm12, %v15399_v62, %v11521_v35  ;;  %v7577_v47 = vpack.c.bf16 %v7571_v12, %v7570_v63  ;;  %v7580_v51 = vpack.c.bf16 %v7539_v20, %v7537_v17  ;;  %v7560_v50 = vpop.permute.xlu0 %7559  ;;  %v17545_v63 = vld [vmem:[#allocation30_spill] sm:$0xff] }
 0x85d   : > { %9982 = vmatprep.mubr.msk.bf16.mxu0 %vm17526_vm13, %v7578_v58  ;;  %v7426_v54 = vpack.c.bf16 %v7420_v27, %v7419_v23  ;;  %v7421_v62 = vsel %vm17535_vm10, %v15423_v61, %v7407_v29  ;;  %v7574_v6 = vsel %vm17536_vm4, %v15551_v3, %v7560_v50  ;;  %v15723_v61 = vld [vmem:[%s16960_s15 + $0x28] sm:$0xff]   ;;  %vm17539_vm13 = vcmp.ge.f32.partialorder %v17537_v9, %v17538_v37  ;;  %v15777_v58 = vld [vmem:[%s16960_s15 + $0x10] sm:$0xff]   ;;  %v17564_v9 = vld [vmem:[#allocation29_spill] sm:$0xff] }
 0x85e   : > { %v7428_v13 = vpack.c.bf16 %v7421_v62, %v7421_v62  ;;  %10820 = vmatprep.subr.bf16.mxu0 %v15723_v61  ;;  %10800 = vmatprep.subr.bf16.mxu1 %v15723_v61  ;;  %vm17540_vm6 = vmmov %vm17539_vm13  ;;  %v17549_v27 = vld [vmem:[#allocation27_spill] sm:$0xff]  ;;  %v17550_v23 = vld [vmem:[#allocation26_spill] sm:$0xff] }
 0x85f   : > { %7483 = vmatmul.mubr.bf16.gmra.mxu1 %v7424_v48  ;;  %10821 = vmatpush3.bf16.msra.mxu0 %v15723_v61  ;;  %v17554_v50 = vld [vmem:[#allocation14_spill] sm:$0xff] }
 0x860   : > { %9979 = vmatprep.mubr.msk.bf16.mxu1 %vm17528_vm3, %v7427_v38  ;;  %v11535_v53 = vpop.permute.xlu1 %11534  ;;  %10801 = vmatpush3.bf16.msra.mxu1 %v15723_v61  ;;  %vm17543_vm3 = vcmp.ge.f32.partialorder %v17541_v16, %v17542_v31  ;;  %v17567_v31 = vld [vmem:[#allocation25_spill] sm:$0xff] }
 0x861   : > { %v11537_v10 = vunpack.i.h.bf16 %v11535_v53  ;;  %v11536_v44 = vunpack.i.l.bf16 %v11535_v53  ;;  %10822 = vmatprep.subr.bf16.mxu0 %v15733_v25  ;;  %10802 = vmatprep.subr.bf16.mxu1 %v15733_v25  ;;  %vm17544_vm14 = vmmov %vm17543_vm3  ;;  %v17546_v53 = vld [vmem:[#allocation31_spill] sm:$0xff] }
 0x863   : > { %v7573_v38 = vsel %vm17532_vm7, %v15522_v7, %v11537_v10  ;;  %v7572_v33 = vsel %vm17533_vm11, %v15517_v32, %v11536_v44  ;;  %v7581_v7 = vpack.c.bf16 %v7574_v6, %v7574_v6  ;;  %v15718_v32 = vld [vmem:[%s16959_s14] ss:$0 sm:$0xff]  ;;  %10823 = vmatpush3.bf16.msra.mxu0 %v15733_v25  ;;  %vm17547_vm7 = vcmp.ge.f32.partialorder %v17545_v63, %v17546_v53 }
 0x864   : > { %7632 = vmatmul.mubr.bf16.gmra.mxu0 %v7577_v47  ;;  %v7579_v60 = vpack.c.bf16 %v7573_v38, %v7572_v33  ;;  %10803 = vmatpush3.bf16.msra.mxu1 %v15733_v25  ;;  %vm17551_vm11 = vcmp.ge.f32.partialorder %v17549_v27, %v17550_v23  ;;  %vm17553_vm10 = vmmov %vm17547_vm7 }
 0x865   : > { %9983 = vmatprep.mubr.msk.bf16.mxu0 %vm17531_vm5, %v7580_v51  ;;  %10824 = vmatprep.subr.bf16.mxu0 %v15744_v56  ;;  %v15801_v51 = vld [vmem:[%s16960_s15 + $0x8] sm:$0xff]  }
 0x866   : > { %10804 = vmatprep.subr.bf16.mxu1 %v15744_v56 }
 0x867   : > { %7491 = vmatmul.mubr.bf16.gmra.mxu1 %v7426_v54  ;;  %10825 = vmatpush3.bf16.msra.mxu0 %v15744_v56 }
 0x868   : > { %9980 = vmatprep.mubr.msk.bf16.mxu1 %vm17534_vm8, %v7429_v59  ;;  %10805 = vmatpush3.bf16.msra.mxu1 %v15744_v56 }
 0x869   : > { %10826 = vmatprep.subr.bf16.mxu0 %v15777_v58  ;;  %10806 = vmatprep.subr.bf16.mxu1 %v15777_v58 }
 0x86b   : > { %10827 = vmatpush3.bf16.msra.mxu0 %v15777_v58 }
 0x86c   : > { %7640 = vmatmul.mubr.bf16.gmra.mxu0 %v7579_v60  ;;  %10807 = vmatpush3.bf16.msra.mxu1 %v15777_v58 }
 0x86d   : > { %7647 = vmatprep.mubr.bf16.mxu0 %v17436_v30  ;;  %10828 = vmatprep.subr.bf16.mxu0 %v15801_v51 }
 0x86e   : > { %10808 = vmatprep.subr.bf16.mxu1 %v15801_v51 }
 0x86f   : > { %7499 = vmatmul.mubr.bf16.gmra.mxu1 %v7428_v13  ;;  %v17555_v13 = vld [vmem:[#allocation15_spill] sm:$0xff]  ;;  %10829 = vmatpush3.bf16.msra.mxu0 %v15801_v51 }
 0x870   : > { %vm17556_vm4 = vcmp.ge.f32.partialorder %v17554_v50, %v17555_v13  ;;  %10809 = vmatpush3.bf16.msra.mxu1 %v15801_v51 }
 0x874   : > { %7648 = vmatmul.mubr.bf16.gmra.mxu0 %v7581_v7 }
 0x8e7   : > { %v7196_v14 = vpop.f32.mrf.mxu1 }
 0x8e8   : > { %v7197_v30 = vadd.f32 %v15718_v32, %v7196_v14  ;;  %v17558_v14 = vld [vmem:[#allocation11_spill] sm:$0xff] }
 0x8e9   : > { %v7198_v3 = vpop.f32.mrf.mxu1 }
 0x8ea   : > { %v7233_v11 = vmul.f32 0.01, %v7197_v30  ;;  %vm7226_vm15 = vcmp.gt.f32.partialorder %v7197_v30, 0.0 }
 0x8eb   : > { %v7199_v34 = vpop.f32.mrf.mxu1  ;;  %v7336_v0 = vpop.f32.mrf.mxu0 }
 0x8ec   : > { %v7200_v46 = vadd.f32 %v15718_v32, %v7199_v34  ;;  %v7337_v1 = vadd.f32 %v15718_v32, %v7336_v0  ;;  %v7240_v42 = vsel %vm7226_vm15, %v7197_v30, %v7233_v11  ;;  %vm17557_vm15 = vmmov %vm17551_vm11  ;;  %v17559_v30 = vld [vmem:[#allocation10_spill] sm:$0xff] }
 0x8ed   : > { %v7201_v24 = vpop.f32.mrf.mxu1  ;;  %v7338_v4 = vpop.f32.mrf.mxu0  ;;  %v15763_v19 = vsel %vm17543_vm3, 0.0, %v7240_v42  ;;  %v15770_v45 = vsel %vm17544_vm14, %v7240_v42, 0.0 }
 0x8ee   : > { %vm7227_vm9 = vcmp.gt.f32.partialorder %v7200_v46, 0.0  ;;  %v7234_v5 = vmul.f32 0.01, %v7200_v46  ;;  %v7373_v8 = vmul.f32 0.01, %v7337_v1  ;;  %vm7366_vm2 = vcmp.gt.f32.partialorder %v7337_v1, 0.0 }
 0x8ef   : > { %v7204_v21 = vpop.f32.mrf.mxu1  ;;  %v7339_v26 = vpop.f32.mrf.mxu0 }
 0x8f0   : > { %v7241_v28 = vsel %vm7227_vm9, %v7200_v46, %v7234_v5  ;;  %v7205_v43 = vadd.f32 %v15718_v32, %v7204_v21  ;;  %v7340_v41 = vadd.f32 %v15718_v32, %v7339_v26  ;;  %v7380_v39 = vsel %vm7366_vm2, %v7337_v1, %v7373_v8  ;;  %v15840_v1 = vld [vmem:[%s16960_s15] sm:$0xff]  }
 0x8f1   : > { %v15751_v15 = vsel %vm17539_vm13, %v7241_v28, 0.0  ;;  %v15756_v55 = vsel %vm17540_vm6, 0.0, %v7241_v28  ;;  %v7206_v36 = vpop.f32.mrf.mxu1  ;;  %v7341_v22 = vpop.f32.mrf.mxu0  ;;  %v15794_v47 = vsel %vm17551_vm11, 0.0, %v7380_v39  ;;  %v15824_v7 = vsel %vm17557_vm15, %v7380_v39, 0.0  ;;  %vm17561_vm6 = vmmov %vm17556_vm4  ;;  %10830 = vmatprep.subr.bf16.mxu0 %v15840_v1  ;;  %10810 = vmatprep.subr.bf16.mxu1 %v15840_v1 }
 0x8f2   : > { %vm7367_vm12 = vcmp.gt.f32.partialorder %v7340_v41, 0.0  ;;  %v7374_v52 = vmul.f32 0.01, %v7340_v41  ;;  %v11548_v40 = vpack.i.bf16 %v15756_v55, %v15763_v19  ;;  %v7235_v29 = vmul.f32 0.01, %v7205_v43  ;;  %17552 = vst [vmem:[#allocation103_spill] sm:$0xff] %v15794_v47  ;;  %10831 = vmatpush3.bf16.msra.mxu0 %v15840_v1  ;;  %10811 = vmatpush3.bf16.msra.mxu1 %v15840_v1 }
 0x8f3   : > { %v7207_v49 = vpop.f32.mrf.mxu1  ;;  %v7344_v2 = vpop.f32.mrf.mxu0  ;;  %v11538_v57 = vpack.i.bf16 %v15751_v15, %v15770_v45  ;;  %vm7228_vm5 = vcmp.gt.f32.partialorder %v7205_v43, 0.0  ;;  %vm17560_vm9 = vcmp.ge.f32.partialorder %v17558_v14, %v17559_v30  ;;  %10860 = vmatprep.subr.bf16.mxu0 %v15723_v61  ;;  %10840 = vmatprep.subr.bf16.mxu1 %v15723_v61 }
 0x8f4   : > { %v7208_v48 = vadd.f32 %v15718_v32, %v7207_v49  ;;  %v7381_v18 = vsel %vm7367_vm12, %v7340_v41, %v7374_v52  ;;  %11549 = vrot.lane.b32.xlu0 %v11548_v40, %s17262_s22  ;;  %v7345_v10 = vadd.f32 %v15718_v32, %v7344_v2  ;;  %v7242_v54 = vsel %vm7228_vm5, %v7205_v43, %v7235_v29  ;;  %vm17562_vm3 = vmmov %vm17560_vm9  ;;  %v17563_v41 = vld [vmem:[#allocation28_spill] sm:$0xff] }
 0x8f5   : > { %v7209_v35 = vpop.f32.mrf.mxu1  ;;  %v7346_v12 = vpop.f32.mrf.mxu0  ;;  %v15787_v20 = vsel %vm17547_vm7, 0.0, %v7381_v18  ;;  %11539 = vrot.lane.b32.xlu1 %v11538_v57, %s17262_s22  ;;  %v15811_v33 = vsel %vm17553_vm10, %v7381_v18, 0.0  ;;  %v15829_v3 = vsel %vm17560_vm9, %v7242_v54, 0.0  ;;  %v15853_v21 = vsel %vm17562_vm3, 0.0, %v7242_v54  ;;  %v17568_v52 = vld [vmem:[#allocation24_spill] sm:$0xff] }
 0x8f6   : > { %17548 = vst [vmem:[#allocation95_spill] sm:$0xff] %v15787_v20  ;;  %vm7229_vm8 = vcmp.gt.f32.partialorder %v7208_v48, 0.0  ;;  %v7236_v17 = vmul.f32 0.01, %v7208_v48  ;;  %v11568_v38 = vpack.i.bf16 %v15787_v20, %v15794_v47  ;;  %v7375_v34 = vmul.f32 0.01, %v7345_v10 }
 0x8f7   : > { %v7347_v44 = vpop.f32.mrf.mxu0  ;;  %v11553_v46 = vpack.i.bf16 %v15811_v33, %v15824_v7  ;;  %vm7368_vm2 = vcmp.gt.f32.partialorder %v7345_v10, 0.0  ;;  %vm17565_vm14 = vcmp.ge.f32.partialorder %v17563_v41, %v17564_v9  ;;  %vm17569_vm12 = vcmp.ge.f32.partialorder %v17567_v31, %v17568_v52  ;;  %v17658_v47 = vld [vmem:[#allocation65_spill] sm:$0xff] }
 0x8f8   : > { %v7348_v59 = vadd.f32 %v15718_v32, %v7347_v44  ;;  %v7243_v62 = vsel %vm7229_vm8, %v7208_v48, %v7236_v17  ;;  %11569 = vrot.lane.b32.xlu0 %v11568_v38, %s17262_s22  ;;  %v7382_v26 = vsel %vm7368_vm2, %v7345_v10, %v7375_v34  ;;  %vm17571_vm11 = vmmov %vm17565_vm14  ;;  %v17576_v34 = vld [vmem:[#allocation21_spill] sm:$0xff] }
 0x8f9   : > { %v7349_v60 = vpop.f32.mrf.mxu0  ;;  %v15817_v6 = vsel %vm17556_vm4, %v7243_v62, 0.0  ;;  %11544 = vrot.lane.b32.xlu1 %v11548_v40, %s17331_s26  ;;  %v15846_v24 = vsel %vm17561_vm6, 0.0, %v7243_v62  ;;  %v15873_v49 = vsel %vm17569_vm12, %v7382_v26, 0.0  ;;  %vm17573_vm10 = vmmov %vm17569_vm12 }
 0x8fa   : > { %vm7369_vm13 = vcmp.gt.f32.partialorder %v7348_v59, 0.0  ;;  %v7376_v11 = vmul.f32 0.01, %v7348_v59  ;;  %v11573_v0 = vpack.i.bf16 %v15817_v6, %v15829_v3  ;;  %v11583_v28 = vpack.i.bf16 %v15846_v24, %v15853_v21  ;;  %17570 = vst [vmem:[#allocation115_spill] sm:$0xff] %v15873_v49 }
 0x8fb   : > { %v15894_v62 = vsel %vm17573_vm10, 0.0, %v7382_v26  ;;  %v17582_v26 = vld [vmem:[#allocation18_spill] sm:$0xff] }
 0x8fc   : > { %v7383_v4 = vsel %vm7369_vm13, %v7348_v59, %v7376_v11  ;;  %11574 = vrot.lane.b32.xlu0 %v11573_v0, %s17262_s22  ;;  %17574 = vst [vmem:[#allocation106_spill] sm:$0xff] %v15894_v62  ;;  %v17575_v11 = vld [vmem:[#allocation20_spill] sm:$0xff] }
 0x8fd   : > { %11554 = vrot.lane.b32.xlu1 %v11553_v46, %s17331_s26  ;;  %v15863_v37 = vsel %vm17565_vm14, %v7383_v4, 0.0  ;;  %v15885_v27 = vsel %vm17571_vm11, 0.0, %v7383_v4  ;;  %vm17577_vm4 = vcmp.ge.f32.partialorder %v17575_v11, %v17576_v34  ;;  %v17580_v4 = vld [vmem:[#allocation23_spill] sm:$0xff] }
 0x8fe   : > { %v7212_v5 = vpop.f32.mrf.mxu1  ;;  %v7352_v42 = vpop.f32.mrf.mxu0  ;;  %17566 = vst [vmem:[#allocation104_spill] sm:$0xff] %v15863_v37  ;;  %v11588_v40 = vpack.i.bf16 %v15863_v37, %v15873_v49  ;;  %17572 = vst [vmem:[#allocation105_spill] sm:$0xff] %v15885_v27  ;;  %v11603_v13 = vpack.i.bf16 %v15885_v27, %v15894_v62 }
 0x8ff   : > { %v7213_v36 = vadd.f32 %v15718_v32, %v7212_v5  ;;  %v7353_v60 = vadd.f32 %v15718_v32, %v7352_v42  ;;  %vm17585_vm13 = vmmov %vm17577_vm4 }
 0x900   : > { %v7214_v8 = vpop.f32.mrf.mxu1  ;;  %v7354_v43 = vpop.f32.mrf.mxu0  ;;  %11584 = vrot.lane.b32.xlu0 %v11583_v28, %s17262_s22 }
 0x901   : > { %11559 = vrot.lane.b32.xlu1 %v11553_v46, %s17262_s22  ;;  %v7237_v48 = vmul.f32 0.01, %v7213_v36  ;;  %vm7230_vm5 = vcmp.gt.f32.partialorder %v7213_v36, 0.0  ;;  %v17579_v46 = vld [vmem:[#allocation22_spill] sm:$0xff]  ;;  %vm7370_vm3 = vcmp.gt.f32.partialorder %v7353_v60, 0.0 }
 0x902   : > { %v7215_v22 = vpop.f32.mrf.mxu1  ;;  %v7355_v16 = vpop.f32.mrf.mxu0  ;;  %vm17581_vm15 = vcmp.ge.f32.partialorder %v17579_v46, %v17580_v4 }
 0x903   : > { %v7216_v2 = vadd.f32 %v15718_v32, %v7215_v22  ;;  %v7244_v23 = vsel %vm7230_vm5, %v7213_v36, %v7237_v48  ;;  %v7356_v10 = vadd.f32 %v15718_v32, %v7355_v16  ;;  %v7377_v36 = vmul.f32 0.01, %v7353_v60  ;;  %vm17586_vm14 = vmmov %vm17581_vm15  ;;  %v17589_v48 = vld [vmem:[#allocation36_spill] sm:$0xff] }
 0x904   : > { %v7217_v39 = vpop.f32.mrf.mxu1  ;;  %v7357_v29 = vpop.f32.mrf.mxu0  ;;  %11589 = vrot.lane.b32.xlu0 %v11588_v40, %s17331_s26  ;;  %v15902_v0 = vsel %vm17577_vm4, 0.0, %v7244_v23  ;;  %v15921_v9 = vsel %vm17585_vm13, %v7244_v23, 0.0  ;;  %v17598_v23 = vld [vmem:[#allocation35_spill] sm:$0xff] }
 0x905   : > { %v7238_v57 = vmul.f32 0.01, %v7216_v2  ;;  %11564 = vrot.lane.b32.xlu1 %v11568_v38, %s17331_s26  ;;  %vm7231_vm7 = vcmp.gt.f32.partialorder %v7216_v2, 0.0  ;;  %17578 = vst [vmem:[#allocation107_spill] sm:$0xff] %v15902_v0  ;;  %v7378_v8 = vmul.f32 0.01, %v7356_v10 }
 0x906   : > { %v7220_v18 = vpop.f32.mrf.mxu1  ;;  %v7360_v35 = vpop.f32.mrf.mxu0  ;;  %vm7371_vm6 = vcmp.gt.f32.partialorder %v7356_v10, 0.0 }
 0x907   : > { %v7221_v12 = vadd.f32 %v15718_v32, %v7220_v18  ;;  %v7245_v17 = vsel %vm7231_vm7, %v7216_v2, %v7238_v57  ;;  %v7361_v54 = vadd.f32 %v15718_v32, %v7360_v35  ;;  %v7385_v52 = vsel %vm7371_vm6, %v7356_v10, %v7378_v8  ;;  %v17590_v57 = vld [vmem:[#allocation37_spill] sm:$0xff]  ;;  %v17593_v35 = vld [vmem:[#allocation32_spill] sm:$0xff] }
 0x908   : > { %v7222_v63 = vpop.f32.mrf.mxu1  ;;  %v7362_v53 = vpop.f32.mrf.mxu0  ;;  %11594 = vrot.lane.b32.xlu0 %v11588_v40, %s17262_s22  ;;  %v15907_v5 = vsel %vm17581_vm15, %v7245_v17, 0.0  ;;  %v15928_v16 = vsel %vm17586_vm14, 0.0, %v7245_v17  ;;  %v7384_v40 = vsel %vm7370_vm3, %v7353_v60, %v7377_v36  ;;  %vm17591_vm5 = vcmp.ge.f32.partialorder %v17589_v48, %v17590_v57  ;;  %v17608_v48 = vld [vmem:[#allocation45_spill] sm:$0xff] }
 0x909   : > { %vm7232_vm8 = vcmp.gt.f32.partialorder %v7221_v12, 0.0  ;;  %v7239_v44 = vmul.f32 0.01, %v7221_v12  ;;  %11579 = vrot.lane.b32.xlu1 %v11583_v28, %s17331_s26  ;;  %v17583_v28 = vld [vmem:[#allocation19_spill] sm:$0xff]  ;;  %v7379_v43 = vmul.f32 0.01, %v7361_v54  ;;  %v11608_v22 = vpack.i.bf16 %v15907_v5, %v15921_v9 }
 0x90a   : > { %v7223_v59 = vpop.f32.mrf.mxu1  ;;  %v7363_v38 = vpop.f32.mrf.mxu0  ;;  %vm17584_vm9 = vcmp.ge.f32.partialorder %v17582_v26, %v17583_v28  ;;  %vm7372_vm2 = vcmp.gt.f32.partialorder %v7361_v54, 0.0  ;;  %v11613_v29 = vpack.i.bf16 %v15928_v16, %v15902_v0  ;;  %v15944_v18 = vsel %vm17591_vm5, %v7385_v52, 0.0  ;;  %v17597_v53 = vld [vmem:[#allocation34_spill] sm:$0xff] }
 0x90b   : > { %v7246_v50 = vsel %vm7232_vm8, %v7221_v12, %v7239_v44  ;;  %vm17587_vm12 = vmmov %vm17584_vm9  ;;  %v7386_v2 = vsel %vm7372_vm2, %v7361_v54, %v7379_v43  ;;  %17592 = vst [vmem:[#allocation102_spill] sm:$0xff] %v15944_v18  ;;  %v17594_v12 = vld [vmem:[#allocation33_spill] sm:$0xff]  ;;  %vm17599_vm11 = vcmp.ge.f32.partialorder %v17597_v53, %v17598_v23 }
 0x90c   : > { %v7224_v14 = vpop.f32.mrf.mxu1  ;;  %v7364_v30 = vpop.f32.mrf.mxu0  ;;  %v15912_v42 = vsel %vm17584_vm9, %v7246_v50, 0.0  ;;  %11604 = vrot.lane.b32.xlu0 %v11603_v13, %s17262_s22  ;;  %v15933_v31 = vsel %vm17587_vm12, 0.0, %v7246_v50  ;;  %vm17595_vm7 = vcmp.ge.f32.partialorder %v17593_v35, %v17594_v12  ;;  %v15956_v17 = vsel %vm17599_vm11, %v7384_v40, 0.0  ;;  %vm17601_vm8 = vmmov %vm17591_vm5 }
 0x90d   : > { %11599 = vrot.lane.b32.xlu1 %v11603_v13, %s17331_s26  ;;  %v11628_v41 = vpack.i.bf16 %v15902_v0, %v15912_v42  ;;  %17588 = vst [vmem:[#allocation101_spill] sm:$0xff] %v15933_v31  ;;  %v11633_v39 = vpack.i.bf16 %v15933_v31, %v15928_v16  ;;  %v15949_v63 = vsel %vm17595_vm7, %v7386_v2, 0.0  ;;  %17600 = vst [vmem:[#allocation96_spill] sm:$0xff] %v15956_v17  ;;  %v15966_v38 = vsel %vm17601_vm8, 0.0, %v7385_v52 }
 0x90e   : > { %17596 = vst [vmem:[#allocation108_spill] sm:$0xff] %v15949_v63  ;;  %v11643_v54 = vpack.i.bf16 %v15949_v63, %v15944_v18  ;;  %v11618_v59 = vpack.i.bf16 %v15944_v18, %v15956_v17  ;;  %17602 = vst [vmem:[#allocation97_spill] sm:$0xff] %v15966_v38 }
 0x90f   : > { %vm17603_vm10 = vmmov %vm17599_vm11 }
 0x910   : > { %11629 = vrot.lane.b32.xlu0 %v11628_v41, %s17262_s22  ;;  %v15973_v50 = vsel %vm17603_vm10, 0.0, %v7384_v40  ;;  %vm17605_vm15 = vmmov %vm17595_vm7 }
 0x911   : > { %11609 = vrot.lane.b32.xlu1 %v11608_v22, %s17262_s22  ;;  %17604 = vst [vmem:[#allocation109_spill] sm:$0xff] %v15973_v50  ;;  %v11648_v34 = vpack.i.bf16 %v15973_v50, %v15949_v63  ;;  %v11623_v46 = vpack.i.bf16 %v15966_v38, %v15973_v50  ;;  %v15983_v4 = vsel %vm17605_vm15, 0.0, %v7386_v2  ;;  %v17667_v63 = vld [vmem:[#allocation60_spill] sm:$0xff] }
 0x912   : > { %17606 = vst [vmem:[#allocation110_spill] sm:$0xff] %v15983_v4  ;;  %v11653_v2 = vpack.i.bf16 %v15983_v4, %v15966_v38 }
 0x914   : > { %11634 = vrot.lane.b32.xlu0 %v11633_v39, %s17262_s22  ;;  %v11638_v39 = vpack.i.bf16 %v15956_v17, %v15933_v31  ;;  %v17668_v31 = vld [vmem:[#allocation61_spill] sm:$0xff] }
 0x915   : > { %11614 = vrot.lane.b32.xlu1 %v11613_v29, %s17331_s26  ;;  %v17607_v29 = vld [vmem:[#allocation44_spill] sm:$0xff] }
 0x916   : > { %vm17609_vm13 = vcmp.ge.f32.partialorder %v17607_v29, %v17608_v48  ;;  %v17619_v29 = vld [vmem:[#allocation55_spill] sm:$0xff]  ;;  %v17620_v48 = vld [vmem:[#allocation54_spill] sm:$0xff] }
 0x917   : > { %v7476_v10 = vpop.f32.mrf.mxu1  ;;  %vm17611_vm6 = vmmov %vm17609_vm13  ;;  %vm17621_vm8 = vcmp.ge.f32.partialorder %v17619_v29, %v17620_v48  ;;  %v17639_v48 = vld [vmem:[#allocation53_spill] sm:$0xff] }
 0x918   : > { %v7477_v44 = vadd.f32 %v15718_v32, %v7476_v10  ;;  %11644 = vrot.lane.b32.xlu0 %v11643_v54, %s17331_s26  ;;  %v17613_v10 = vld [vmem:[#allocation41_spill] sm:$0xff]  ;;  %vm17630_vm15 = vmmov %vm17621_vm8 }
 0x919   : > { %v7478_v60 = vpop.f32.mrf.mxu1  ;;  %11619 = vrot.lane.b32.xlu1 %v11618_v59, %s17262_s22 }
 0x91a   : > { %v7513_v13 = vmul.f32 0.01, %v7477_v44  ;;  %vm7506_vm4 = vcmp.gt.f32.partialorder %v7477_v44, 0.0 }
 0x91b   : > { %v7479_v14 = vpop.f32.mrf.mxu1 }
 0x91c   : > { %v7480_v30 = vadd.f32 %v15718_v32, %v7479_v14  ;;  %v7625_v11 = vpop.f32.mrf.mxu0  ;;  %11649 = vrot.lane.b32.xlu0 %v11648_v34, %s17262_s22  ;;  %v7520_v41 = vsel %vm7506_vm4, %v7477_v44, %v7513_v13  ;;  %v17614_v44 = vld [vmem:[#allocation40_spill] sm:$0xff] }
 0x91d   : > { %v7626_v26 = vadd.f32 %v15718_v32, %v7625_v11  ;;  %v7481_v28 = vpop.f32.mrf.mxu1  ;;  %11624 = vrot.lane.b32.xlu1 %v11623_v46, %s17331_s26  ;;  %vm17615_vm2 = vcmp.ge.f32.partialorder %v17613_v10, %v17614_v44  ;;  %v17622_v44 = vld [vmem:[#allocation42_spill] sm:$0xff] }
 0x91e   : > { %vm7507_vm9 = vcmp.gt.f32.partialorder %v7480_v30, 0.0  ;;  %v7514_v8 = vmul.f32 0.01, %v7480_v30  ;;  %v7627_v43 = vpop.f32.mrf.mxu0  ;;  %v16007_v54 = vsel %vm17615_vm2, 0.0, %v7520_v41  ;;  %vm17617_vm14 = vmmov %vm17615_vm2 }
 0x91f   : > { %v7484_v36 = vpop.f32.mrf.mxu1  ;;  %v7662_v12 = vmul.f32 0.01, %v7626_v26  ;;  %17616 = vst [vmem:[#allocation98_spill] sm:$0xff] %v16007_v54  ;;  %vm7655_vm3 = vcmp.gt.f32.partialorder %v7626_v26, 0.0  ;;  %v16014_v60 = vsel %vm17617_vm14, %v7520_v41, 0.0 }
 0x920   : > { %v7521_v22 = vsel %vm7507_vm9, %v7480_v30, %v7514_v8  ;;  %v7485_v52 = vadd.f32 %v15718_v32, %v7484_v36  ;;  %v7628_v40 = vpop.f32.mrf.mxu0  ;;  %11654 = vrot.lane.b32.xlu0 %v11653_v2, %s17262_s22  ;;  %17618 = vst [vmem:[#allocation112_spill] sm:$0xff] %v16014_v60 }
 0x921   : > { %v15996_v57 = vsel %vm17609_vm13, %v7521_v22, 0.0  ;;  %v16001_v35 = vsel %vm17611_vm6, 0.0, %v7521_v22  ;;  %v7629_v53 = vadd.f32 %v15718_v32, %v7628_v40  ;;  %v7486_v23 = vpop.f32.mrf.mxu1  ;;  %11639 = vrot.lane.b32.xlu1 %v11638_v39, %s17331_s26  ;;  %v7669_v28 = vsel %vm7655_vm3, %v7626_v26, %v7662_v12 }
 0x922   : > { %17610 = vst [vmem:[#allocation99_spill] sm:$0xff] %v15996_v57  ;;  %17612 = vst [vmem:[#allocation100_spill] sm:$0xff] %v16001_v35  ;;  %v7630_v59 = vpop.f32.mrf.mxu0  ;;  %v7515_v13 = vmul.f32 0.01, %v7485_v52  ;;  %v11673_v30 = vpack.i.bf16 %v16001_v35, %v16007_v54  ;;  %vm7508_vm12 = vcmp.gt.f32.partialorder %v7485_v52, 0.0  ;;  %v11658_v46 = vpack.i.bf16 %v15996_v57, %v16014_v60  ;;  %v17657_v57 = vld [vmem:[#allocation64_spill] sm:$0xff] }
 0x923   : > { %v7487_v14 = vpop.f32.mrf.mxu1  ;;  %v7663_v8 = vmul.f32 0.01, %v7629_v53  ;;  %vm7656_vm5 = vcmp.gt.f32.partialorder %v7629_v53, 0.0  ;;  %v16027_v26 = vsel %vm17621_vm8, 0.0, %v7669_v28  ;;  %v17623_v59 = vld [vmem:[#allocation43_spill] sm:$0xff] }
 0x924   : > { %v7488_v11 = vadd.f32 %v15718_v32, %v7487_v14  ;;  %v7633_v34 = vpop.f32.mrf.mxu0  ;;  %11674 = vrot.lane.b32.xlu0 %v11673_v30, %s17262_s22  ;;  %v7522_v40 = vsel %vm7508_vm12, %v7485_v52, %v7515_v13  ;;  %vm17624_vm10 = vcmp.ge.f32.partialorder %v17622_v44, %v17623_v59 }
 0x925   : > { %v7634_v43 = vadd.f32 %v15718_v32, %v7633_v34  ;;  %v7489_v36 = vpop.f32.mrf.mxu1  ;;  %11659 = vrot.lane.b32.xlu1 %v11658_v46, %s17331_s26  ;;  %v7670_v10 = vsel %vm7656_vm5, %v7629_v53, %v7663_v8  ;;  %v16045_v53 = vsel %vm17630_vm15, %v7669_v28, 0.0  ;;  %vm17642_vm14 = vmmov %vm17624_vm10 }
 0x926   : > { %vm7509_vm7 = vcmp.gt.f32.partialorder %v7488_v11, 0.0  ;;  %v7516_v41 = vmul.f32 0.01, %v7488_v11  ;;  %v7635_v22 = vpop.f32.mrf.mxu0  ;;  %v17626_v36 = vld [vmem:[#allocation39_spill] sm:$0xff]  ;;  %17631 = vst [vmem:[#allocation114_spill] sm:$0xff] %v16045_v53 }
 0x927   : > { %vm7657_vm11 = vcmp.gt.f32.partialorder %v7634_v43, 0.0  ;;  %v7664_v2 = vmul.f32 0.01, %v7634_v43  ;;  %v7492_v39 = vpop.f32.mrf.mxu1  ;;  %v17627_v22 = vld [vmem:[#allocation38_spill] sm:$0xff] }
 0x928   : > { %v7523_v12 = vsel %vm7509_vm7, %v7488_v11, %v7516_v41  ;;  %v7636_v23 = vpop.f32.mrf.mxu0  ;;  %v7493_v34 = vadd.f32 %v15718_v32, %v7492_v39  ;;  %vm17628_vm4 = vcmp.ge.f32.partialorder %v17626_v36, %v17627_v22 }
 0x929   : > { %v16032_v14 = vsel %vm17624_vm10, %v7523_v12, 0.0  ;;  %v7637_v52 = vadd.f32 %v15718_v32, %v7636_v23  ;;  %v7494_v13 = vpop.f32.mrf.mxu1  ;;  %v16039_v54 = vsel %vm17628_vm4, %v7522_v40, 0.0  ;;  %v7671_v35 = vsel %vm7657_vm11, %v7634_v43, %v7664_v2  ;;  %11664 = vrot.lane.b32.xlu1 %v11658_v46, %s17262_s22  ;;  %vm17632_vm13 = vmmov %vm17628_vm4  ;;  %v17634_v46 = vld [vmem:[#allocation58_spill] sm:$0xff]  ;;  %v17635_v2 = vld [vmem:[#allocation59_spill] sm:$0xff] }
 0x92a   : > { %17625 = vst [vmem:[#allocation111_spill] sm:$0xff] %v16032_v14  ;;  %17629 = vst [vmem:[#allocation113_spill] sm:$0xff] %v16039_v54  ;;  %v7638_v11 = vpop.f32.mrf.mxu0  ;;  %v11683_v39 = vpack.i.bf16 %v16032_v14, %v16039_v54  ;;  %v16053_v43 = vsel %vm17632_vm13, 0.0, %v7522_v40  ;;  %vm17636_vm6 = vcmp.ge.f32.partialorder %v17634_v46, %v17635_v2  ;;  %v7517_v50 = vmul.f32 0.01, %v7493_v34 }
 0x92b   : > { %vm7658_vm9 = vcmp.gt.f32.partialorder %v7637_v52, 0.0  ;;  %v7665_v8 = vmul.f32 0.01, %v7637_v52  ;;  %v7495_v41 = vpop.f32.mrf.mxu1  ;;  %17633 = vst [vmem:[#allocation73_spill] sm:$0xff] %v16053_v43  ;;  %v16058_v13 = vsel %vm17636_vm6, 0.0, %v7670_v10  ;;  %vm17637_vm2 = vmmov %vm17636_vm6  ;;  %v17640_v11 = vld [vmem:[#allocation52_spill] sm:$0xff]  ;;  %vm17659_vm6 = vcmp.ge.f32.partialorder %v17657_v57, %v17658_v47 }
 0x92c   : > { %v7641_v28 = vpop.f32.mrf.mxu0  ;;  %v16063_v29 = vsel %vm17637_vm2, %v7670_v10, 0.0  ;;  %vm17641_vm3 = vcmp.ge.f32.partialorder %v17639_v48, %v17640_v11  ;;  %11684 = vrot.lane.b32.xlu0 %v11683_v39, %s17331_s26  ;;  %v16075_v22 = vsel %vm17642_vm14, 0.0, %v7523_v12  ;;  %vm7510_vm12 = vcmp.gt.f32.partialorder %v7493_v34, 0.0 }
 0x92d   : > { %17638 = vst [vmem:[#allocation74_spill] sm:$0xff] %v16063_v29  ;;  %v16068_v23 = vsel %vm17641_vm3, 0.0, %v7671_v35  ;;  %v7642_v40 = vadd.f32 %v15718_v32, %v7641_v28  ;;  %v7497_v36 = vpop.f32.mrf.mxu1  ;;  %17643 = vst [vmem:[#allocation68_spill] sm:$0xff] %v16075_v22  ;;  %v7672_v10 = vsel %vm7658_vm9, %v7637_v52, %v7665_v8  ;;  %v7496_v46 = vadd.f32 %v15718_v32, %v7495_v41  ;;  %v17646_v8 = vld [vmem:[#allocation56_spill] sm:$0xff]  ;;  %v17647_v41 = vld [vmem:[#allocation57_spill] sm:$0xff] }
 0x92e   : > { %11669 = vrot.lane.b32.xlu1 %v11673_v30, %s17331_s26  ;;  %v7643_v2 = vpop.f32.mrf.mxu0  ;;  %v7752_v38 = vrot.slane %v16058_v13, 6  ;;  %vm17644_vm7 = vmmov %vm17641_vm3  ;;  %v7754_v12 = vrot.slane %v16068_v23, 6  ;;  %v11678_v52 = vpack.i.bf16 %v16063_v29, %v16045_v53  ;;  %v7524_v30 = vsel %vm7510_vm12, %v7493_v34, %v7517_v50  ;;  %v17652_v53 = vld [vmem:[#allocation49_spill] sm:$0xff] }
 0x92f   : > { %vm7659_vm5 = vcmp.gt.f32.partialorder %v7642_v40, 0.0  ;;  %v7666_v54 = vmul.f32 0.01, %v7642_v40  ;;  %v7500_v14 = vpop.f32.mrf.mxu1  ;;  %v16084_v28 = vsel %vm17644_vm7, %v7671_v35, 0.0  ;;  %vm17648_vm11 = vcmp.ge.f32.partialorder %v17646_v8, %v17647_v41 }
 0x930   : > { %17645 = vst [vmem:[#allocation70_spill] sm:$0xff] %v16084_v28  ;;  %v7501_v44 = vadd.f32 %v15718_v32, %v7500_v14  ;;  %v7644_v59 = vpop.f32.mrf.mxu0  ;;  %v7728_v36 = vsel %vm17648_vm11, 0.0, %v7672_v10  ;;  %11689 = vrot.lane.b32.xlu0 %v11683_v39, %s17262_s22  ;;  %v11698_v35 = vpack.i.bf16 %v16075_v22, %v16053_v43  ;;  %v7518_v11 = vmul.f32 0.01, %v7496_v46  ;;  %vm17649_vm10 = vmmov %vm17648_vm11  ;;  %v17655_v22 = vld [vmem:[#allocation63_spill] sm:$0xff] }
 0x931   : > { %v7645_v2 = vadd.f32 %v15718_v32, %v7644_v59  ;;  %v7502_v48 = vpop.f32.mrf.mxu1  ;;  %v16097_v62 = vsel %vm7659_vm5, %v7642_v40, %v7666_v54  ;;  %v16103_v34 = vsel %vm17649_vm10, %v7672_v10, 0.0  ;;  %vm7511_vm4 = vcmp.gt.f32.partialorder %v7496_v46, 0.0 }
 0x932   : > { %vm7512_vm8 = vcmp.gt.f32.partialorder %v7501_v44, 0.0  ;;  %v7519_v14 = vmul.f32 0.01, %v7501_v44  ;;  %11679 = vrot.lane.b32.xlu1 %v11678_v52, %s17331_s26  ;;  %v7646_v50 = vpop.f32.mrf.mxu0  ;;  %17650 = vst [vmem:[#allocation67_spill] sm:$0xff] %v16103_v34  ;;  %v17651_v48 = vld [vmem:[#allocation48_spill] sm:$0xff]  ;;  %v7756_v54 = vrot.slane %v7728_v36, 6  ;;  %v11743_v29 = vpack.i.bf16 %v16058_v13, %v16027_v26 }
 0x933   : > { %vm7660_vm15 = vcmp.gt.f32.partialorder %v7645_v2, 0.0  ;;  %v7667_v39 = vmul.f32 0.01, %v7645_v2  ;;  %v7503_v59 = vpop.f32.mrf.mxu1  ;;  %vm17653_vm9 = vcmp.ge.f32.partialorder %v17651_v48, %v17652_v53  ;;  %v17654_v50 = vld [vmem:[#allocation62_spill] sm:$0xff]  ;;  %v7525_v60 = vsel %vm7511_vm4, %v7496_v46, %v7518_v11  ;;  %v17661_v11 = vld [vmem:[#allocation47_spill] sm:$0xff]  ;;  %vm17676_vm4 = vmmov %vm17659_vm6 }
 0x934   : > { %v16108_v43 = vsel %vm17653_vm9, %v7524_v30, 0.0  ;;  %v7649_v40 = vpop.f32.mrf.mxu0  ;;  %vm17656_vm13 = vcmp.ge.f32.partialorder %v17654_v50, %v17655_v22  ;;  %v7526_v8 = vsel %vm7512_vm8, %v7501_v44, %v7519_v14  ;;  %11699 = vrot.lane.b32.xlu0 %v11698_v35, %s17262_s22  ;;  %v11703_v18 = vpack.i.bf16 %v16103_v34, %v16084_v28  ;;  %v17660_v46 = vld [vmem:[#allocation46_spill] sm:$0xff]  ;;  %v17665_v34 = vld [vmem:[#allocation51_spill] sm:$0xff]  ;;  %vm17672_vm7 = vmmov %vm17653_vm9 }
 0x935   : > { %v16116_v10 = vsel %vm17656_vm13, 0.0, %v16097_v62  ;;  %v7674_v41 = vsel %vm7660_vm15, %v7645_v2, %v7667_v39  ;;  %v7650_v59 = vadd.f32 %v15718_v32, %v7649_v40  ;;  %v7504_v27 = vpop.f32.mrf.mxu1  ;;  %v11753_v44 = vpack.i.bf16 %v7728_v36, %v16068_v23  ;;  %v17664_v28 = vld [vmem:[#allocation50_spill] sm:$0xff]  ;;  %vm17674_vm8 = vmmov %vm17656_vm13 }
 0x936   : > { %v16123_v20 = vsel %vm17659_vm6, 0.0, %v7674_v41  ;;  %11694 = vrot.lane.b32.xlu1 %v11698_v35, %s17331_s26  ;;  %v7651_v13 = vpop.f32.mrf.mxu0  ;;  %v11708_v32 = vpack.i.bf16 %v16108_v43, %v15983_v4  ;;  %v7758_v27 = vrot.slane %v16116_v10, 6  ;;  %vm17662_vm3 = vcmp.ge.f32.partialorder %v17660_v46, %v17661_v11 }
 0x937   : > { %vm7661_vm2 = vcmp.gt.f32.partialorder %v7650_v59, 0.0  ;;  %v7668_v2 = vmul.f32 0.01, %v7650_v59  ;;  %v16135_v14 = vsel %vm17662_vm3, %v7526_v8, 0.0  ;;  %v11793_v23 = vpack.i.bf16 %v16123_v20, %v16116_v10  ;;  %vm17673_vm11 = vmmov %vm17662_vm3 }
 0x938   : > { %v7652_v39 = vpop.f32.mrf.mxu0  ;;  %11704 = vrot.lane.b32.xlu0 %v11703_v18, %s17331_s26  ;;  %v17663_v36 = vrot.slane %v16027_v26, 6  ;;  %vm17666_vm14 = vcmp.ge.f32.partialorder %v17664_v28, %v17665_v34  ;;  %vm17669_vm12 = vcmp.ge.f32.partialorder %v17667_v63, %v17668_v31  ;;  %v16162_v17 = vsel %vm660_vm1, %v7754_v12, %v7756_v54 }
 0x939   : > { %v7675_v40 = vsel %vm7661_vm2, %v7650_v59, %v7668_v2  ;;  %v16149_v4 = vsel %vm17666_vm14, %v7525_v60, 0.0  ;;  %v16156_v2 = vsel %vm660_vm1, %v7752_v38, %v7754_v12  ;;  %v16165_v49 = vsel %vm660_vm1, %v7756_v54, %v7758_v27  ;;  %vm17671_vm5 = vmmov %vm17666_vm14 }
 0x93a   : > { %v16144_v13 = vsel %vm660_vm1, %v17663_v36, %v7752_v38  ;;  %v7731_v39 = vsel %vm17669_vm12, 0.0, %v7675_v40  ;;  %11709 = vrot.lane.b32.xlu1 %v11708_v32, %s17331_s26  ;;  %v7653_v59 = vpop.f32.mrf.mxu0  ;;  %v11728_v36 = vpack.i.bf16 %v16135_v14, %v16149_v4  ;;  %v17670_v37 = vrot.slane %v16123_v20, 6  ;;  %vm17675_vm10 = vmmov %vm17669_vm12 }
 0x93b   : > { %v11803_v35 = vpack.i.bf16 %v7731_v39, %v16123_v20  ;;  %v11718_v38 = vpack.i.bf16 %v16149_v4, %v16108_v43  ;;  %v16179_v12 = vsel %vm17671_vm5, 0.0, %v7525_v60  ;;  %v16199_v60 = vsel %vm17673_vm11, 0.0, %v7526_v8 }
 0x93c   : > { %v16170_v0 = vsel %vm660_vm1, %v7758_v27, %v17670_v37  ;;  %11729 = vrot.lane.b32.xlu0 %v11728_v36, %s17331_s26  ;;  %v16186_v37 = vsel %vm17672_vm7, 0.0, %v7524_v30  ;;  %v8964_v53 = vrot.slane %v15829_v3, 2  ;;  %v8962_v28 = vrot.slane %v15751_v15, 2 }
 0x93d   : > { %v11763_v30 = vpack.i.bf16 %v16199_v60, %v16179_v12  ;;  %v8968_v34 = vrot.slane %v15921_v9, 2  ;;  %v16217_v48 = vsel %vm17675_vm10, %v7675_v40, 0.0  ;;  %v8961_v8 = vrot.slane %v15770_v45, 2 }
 0x93e   : > { %11714 = vrot.lane.b32.xlu1 %v11678_v52, %s17262_s22  ;;  %v11723_v52 = vpack.i.bf16 %v16179_v12, %v16186_v37  ;;  %v8966_v22 = vrot.slane %v15817_v6, 2  ;;  %v16228_v50 = vsel %vm17676_vm4, %v7674_v41, 0.0  ;;  %v8970_v57 = vrot.slane %v15907_v5, 2 }
 0x93f   : > { %v11778_v31 = vpack.i.bf16 %v16217_v48, %v16228_v50  ;;  %v8963_v63 = vsel %vm780_vm0, %v8961_v8, %v8962_v28  ;;  %v11798_v41 = vpack.i.bf16 %v16116_v10, %v16217_v48  ;;  %v8972_v59 = vrot.slane %v15912_v42, 2 }
 0x940   : > { %11734 = vrot.lane.b32.xlu0 %v11703_v18, %s17262_s22  ;;  %v11758_v18 = vpack.i.bf16 %v16186_v37, %v16135_v14  ;;  %v8969_v32 = vsel %vm780_vm0, %v8966_v22, %v8968_v34  ;;  %v8967_v27 = vsel %vm780_vm0, %v8964_v53, %v8966_v22  ;;  %v8971_v11 = vsel %vm780_vm0, %v8968_v34, %v8970_v57 }
 0x941   : > { %v11783_v46 = vpack.i.bf16 %v8969_v32, %v8967_v27  ;;  %v11808_v40 = vpack.i.bf16 %v8971_v11, %v7731_v39  ;;  %v8973_v36 = vsel %vm780_vm0, %v8970_v57, %v8972_v59  ;;  %vm17678_vm15 = vcmask 261120  }
 0x942   : > { %11719 = vrot.lane.b32.xlu1 %v11718_v38, %s17262_s22  ;;  %vm17680_vm9 = vcmask 523264   ;;  %vm17684_vm2 = vcmask 785408  }
 0x943   : > { %vm17681_vm13 = vmmov %vm17680_vm9 }
 0x944   : > { %11744 = vrot.lane.b32.xlu0 %v11743_v29, %s17262_s22  ;;  %vm17685_vm3 = vmmov %vm17680_vm9 }
 0x945   : > { %vm17686_vm14 = vmmov %vm17685_vm3 }
 0x946   : > { %11724 = vrot.lane.b32.xlu1 %v11723_v52, %s17331_s26  ;;  %vm17687_vm12 = vmmov %vm17684_vm2 }
 0x947   : > { %vm17690_vm11 = vmmov %vm17685_vm3 }
 0x948   : > { %11754 = vrot.lane.b32.xlu0 %v11753_v44, %s17262_s22 }
 0x94a   : > { %11739 = vrot.lane.b32.xlu1 %v11743_v29, %s17331_s26  ;;  %v16209_v29 = vsel %vm17674_vm8, %v16097_v62, 0.0  ;;  %v8965_v62 = vsel %vm780_vm0, %v8962_v28, %v8964_v53  ;;  %v17677_v28 = vrot.slane %v16027_v26, 6  ;;  %vm17679_vm0 = vmmov %vm17678_vm15 }
 0x94b   : > { %v11768_v54 = vpack.i.bf16 %v16209_v29, %v16199_v60  ;;  %v11788_v47 = vpack.i.bf16 %v16228_v50, %v16209_v29  ;;  %vm17683_vm6 = vmmov %vm17679_vm0 }
 0x94c   : > { %11759 = vrot.lane.b32.xlu0 %v11758_v18, %s17262_s22  ;;  %v7769_v39 = vsel %vm660_vm1, 0.0, %v17677_v28  ;;  %vm17682_vm1 = vmmov %vm17679_vm0 }
 0x94d   : > { %vm17688_vm5 = vmmov %vm17679_vm0 }
 0x94e   : > { %11749 = vrot.lane.b32.xlu1 %v11753_v44, %s17331_s26  ;;  %v11773_v44 = vpack.i.bf16 %v8965_v62, %v8963_v63  ;;  %vm17689_vm7 = vmmov %vm17679_vm0 }
 0x94f   : > { %vm17691_vm8 = vmmov %vm17685_vm3 }
 0x950   : > { %11764 = vrot.lane.b32.xlu0 %v11763_v30, %s17262_s22  ;;  %vm17692_vm10 = vmmov %vm17679_vm0 }
 0x951   : > { %vm17693_vm4 = vmmov %vm17679_vm0 }
 0x952   : > { %11769 = vrot.lane.b32.xlu1 %v11768_v54, %s17331_s26 }
 0x954   : > { %11779 = vrot.lane.b32.xlu0 %v11778_v31, %s17331_s26 }
 0x956   : > { %11774 = vrot.lane.b32.xlu1 %v11773_v44, %s17331_s26 }
 0x958   : > { %11784 = vrot.lane.b32.xlu0 %v11783_v46, %s17331_s26 }
 0x95a   : > { %11789 = vrot.lane.b32.xlu1 %v11788_v47, %s17262_s22 }
 0x95c   : > { %11799 = vrot.lane.b32.xlu0 %v11798_v41, %s17262_s22 }
 0x95e   : > { %11794 = vrot.lane.b32.xlu1 %v11793_v23, %s17331_s26 }
 0x960   : > { %11804 = vrot.lane.b32.xlu0 %v11803_v35, %s17262_s22 }
 0x962   : > { %11809 = vrot.lane.b32.xlu1 %v11808_v40, %s17331_s26 }
 0x964   : > { %9005 = vrot.lane.b32.xlu0 %v8973_v36, %s17331_s26 }
 0x966   : > { %v11550_v38 = vpop.permute.xlu0 %11549 }
 0x967   : > { %v11540_v52 = vpop.permute.xlu1 %11539  ;;  %v11552_v35 = vunpack.i.h.bf16 %v11550_v38  ;;  %v11551_v54 = vunpack.i.l.bf16 %v11550_v38 }
 0x968   : > { %v11542_v10 = vunpack.i.h.bf16 %v11540_v52  ;;  %v11541_v18 = vunpack.i.l.bf16 %v11540_v52 }
 0x969   : > { %v8033_v46 = vsel %vm17682_vm1, %v15751_v15, %v11552_v35  ;;  %v8032_v47 = vsel %vm17683_vm6, %v15770_v45, %v11551_v54  ;;  %vm17698_vm6 = vmmov %vm17682_vm1 }
 0x96a   : > { %v16253_v53 = vpop.permute.xlu0 %11569  ;;  %v7826_v8 = vsel %vm17678_vm15, %v7769_v39, %v11541_v18  ;;  %v7827_v62 = vsel %vm17679_vm0, %v16144_v13, %v11542_v10  ;;  %vm17694_vm15 = vmmov %vm17684_vm2 }
 0x96b   : > { %v11545_v23 = vpop.permute.xlu1 %11544  ;;  %vm17695_vm0 = vmmov %vm17685_vm3 }
 0x96c   : > { %v11547_v30 = vunpack.i.h.bf16 %v11545_v23  ;;  %v11546_v34 = vunpack.i.l.bf16 %v11545_v23 }
 0x96e   : > { %v7833_v22 = vsel %vm17680_vm9, %v7826_v8, %v11546_v34  ;;  %v7834_v31 = vsel %vm17681_vm13, %v7827_v62, %v11547_v30  ;;  %v11575_v63 = vpop.permute.xlu0 %11574  ;;  %vm17696_vm9 = vmmov %vm17695_vm0 }
 0x96f   : > { %v11555_v44 = vpop.permute.xlu1 %11554  ;;  %v7840_v32 = vpack.c.bf16 %v7834_v31, %v7833_v22  ;;  %v11577_v45 = vunpack.i.h.bf16 %v11575_v63  ;;  %v11576_v18 = vunpack.i.l.bf16 %v11575_v63  ;;  %vm17697_vm13 = vmmov %vm17684_vm2 }
 0x970   : > { %v11557_v27 = vunpack.i.h.bf16 %v11555_v44  ;;  %v11556_v26 = vunpack.i.l.bf16 %v11555_v44 }
 0x971   : > { %10812 = vmatprep.mubr.msk.bf16.mxu1 %vm17684_vm2, %v7840_v32  ;;  %v7828_v22 = vsel %vm17692_vm10, %v16156_v2, %v11576_v18  ;;  %v7829_v31 = vsel %vm17693_vm4, %v16162_v17, %v11577_v45  ;;  %vm17699_vm2 = vmmov %vm17695_vm0 }
 0x972   : > { %v8040_v57 = vsel %vm17685_vm3, %v8033_v46, %v11557_v27  ;;  %v8039_v13 = vsel %vm17686_vm14, %v8032_v47, %v11556_v26  ;;  %v11585_v41 = vpop.permute.xlu0 %11584  ;;  %vm17700_vm3 = vmmov %vm17695_vm0 }
 0x973   : > { %v16270_v11 = vpop.permute.xlu1 %11559  ;;  %v8046_v40 = vpack.c.bf16 %v8040_v57, %v8039_v13  ;;  %v11587_v59 = vunpack.i.h.bf16 %v11585_v41  ;;  %v11586_v36 = vunpack.i.l.bf16 %v11585_v41  ;;  %vm17701_vm14 = vmmov %vm17687_vm12 }
 0x974   : > { %vm17707_vm10 = vmmov %vm17682_vm1 }
 0x975   : > { %10832 = vmatprep.mubr.msk.bf16.mxu0 %vm17687_vm12, %v8046_v40  ;;  %v8035_v23 = vsel %vm17688_vm5, %v15817_v6, %v11587_v59  ;;  %v8034_v28 = vsel %vm17689_vm7, %v15829_v3, %v11586_v36  ;;  %vm17702_vm12 = vmmov %vm17682_vm1 }
 0x976   : > { %v11590_v38 = vpop.permute.xlu0 %11589  ;;  %vm17703_vm5 = vmmov %vm17682_vm1 }
 0x977   : > { %v16273_v52 = vpop.permute.xlu1 %11564  ;;  %v11592_v15 = vunpack.i.h.bf16 %v11590_v38  ;;  %v11591_v10 = vunpack.i.l.bf16 %v11590_v38  ;;  %vm17704_vm7 = vmmov %vm17682_vm1 }
 0x978   : > { %vm17708_vm4 = vmmov %vm17682_vm1 }
 0x979   : > { %v8041_v39 = vsel %vm17690_vm11, %v8034_v28, %v11591_v10  ;;  %v8042_v30 = vsel %vm17691_vm8, %v8035_v23, %v11592_v15  ;;  %v11567_v15 = vunpack.i.h.bf16 %v16273_v52  ;;  %v11566_v10 = vunpack.i.l.bf16 %v16273_v52  ;;  %vm17705_vm11 = vmmov %vm17695_vm0 }
 0x97a   : > { %v8047_v34 = vpack.c.bf16 %v8042_v30, %v8041_v39  ;;  %v16281_v35 = vpop.permute.xlu0 %11594  ;;  %v11571_v30 = vunpack.i.l.bf16 %v16253_v53  ;;  %vm17706_vm8 = vmmov %vm17695_vm0 }
 0x97b   : > { %v11580_v54 = vpop.permute.xlu1 %11579 }
 0x97c   : > { %v11582_v8 = vunpack.i.h.bf16 %v11580_v54  ;;  %v11581_v62 = vunpack.i.l.bf16 %v11580_v54  ;;  %10833 = vmatmul.mubr.msk.bf16.vlgmr.msra.gmra.mxu0 %vm17694_vm15, %v8047_v34  ;;  %vm17710_vm15 = vmmov %vm17682_vm1 }
 0x97d   : > { %10861 = vmatpush3.bf16.msra.mxu0 %v15723_v61 }
 0x97e   : > { %v7835_v6 = vsel %vm17695_vm0, %v7828_v22, %v11581_v62  ;;  %v7836_v3 = vsel %vm17696_vm9, %v7829_v31, %v11582_v8  ;;  %v16291_v44 = vpop.permute.xlu0 %11604  ;;  %10862 = vmatprep.subr.bf16.mxu0 %v15733_v25  ;;  %v11597_v31 = vunpack.i.h.bf16 %v16281_v35  ;;  %vm17711_vm0 = vmmov %vm17682_vm1 }
 0x97f   : > { %v7841_v63 = vpack.c.bf16 %v7836_v3, %v7835_v6  ;;  %v16293_v32 = vpop.permute.xlu1 %11599  ;;  %v16356_v3 = vld [vmem:[%s16960_s15 + $0x28] sm:$0xff]   ;;  %vm17712_vm9 = vmmov %vm17699_vm2 }
 0x981   : > { %10813 = vmatmul.mubr.msk.bf16.vlgmr.msra.gmra.mxu1 %vm17697_vm13, %v7841_v63  ;;  %10863 = vmatpush3.bf16.msra.mxu0 %v15733_v25  ;;  %vm17713_vm13 = vmmov %vm17699_vm2 }
 0x982   : > { %10841 = vmatpush3.bf16.msra.mxu1 %v15723_v61  ;;  %v16298_v17 = vpop.permute.xlu0 %11629  ;;  %10864 = vmatprep.subr.bf16.mxu0 %v15744_v56 }
 0x983   : > { %v11610_v2 = vpop.permute.xlu1 %11609  ;;  %10842 = vmatprep.subr.bf16.mxu1 %v15733_v25 }
 0x984   : > { %v11612_v27 = vunpack.i.h.bf16 %v11610_v2  ;;  %v11611_v26 = vunpack.i.l.bf16 %v11610_v2 }
 0x985   : > { %10865 = vmatpush3.bf16.msra.mxu0 %v15744_v56 }
 0x986   : > { %10843 = vmatpush3.bf16.msra.mxu1 %v15733_v25  ;;  %v11635_v46 = vpop.permute.xlu0 %11634  ;;  %10866 = vmatprep.subr.bf16.mxu0 %v15777_v58  ;;  %v7830_v13 = vsel %vm17682_vm1, %v16165_v49, %v11611_v26  ;;  %v7831_v41 = vsel %vm17698_vm6, %v16170_v0, %v11612_v27  ;;  %v11562_v49 = vunpack.i.h.bf16 %v16270_v11  ;;  %v11561_v0 = vunpack.i.l.bf16 %v16270_v11  ;;  %vm17714_vm1 = vmmov %vm17699_vm2 }
 0x987   : > { %v11615_v47 = vpop.permute.xlu1 %11614  ;;  %10844 = vmatprep.subr.bf16.mxu1 %v15744_v56  ;;  %v11637_v23 = vunpack.i.h.bf16 %v11635_v46  ;;  %v11632_v11 = vunpack.i.h.bf16 %v16298_v17  ;;  %v11636_v28 = vunpack.i.l.bf16 %v11635_v46  ;;  %v11602_v27 = vunpack.i.h.bf16 %v16293_v32  ;;  %vm17715_vm6 = vmmov %vm17714_vm1 }
 0x988   : > { %v11617_v61 = vunpack.i.h.bf16 %v11615_v47  ;;  %v11616_v57 = vunpack.i.l.bf16 %v11615_v47  ;;  %v8197_v52 = vsel %vm17702_vm12, %v15756_v55, %v11562_v49  ;;  %v8196_v34 = vsel %vm17703_vm5, %v15763_v19, %v11561_v0  ;;  %vm17719_vm12 = vmmov %vm17711_vm0 }
 0x989   : > { %10867 = vmatpush3.bf16.msra.mxu0 %v15777_v58  ;;  %v8203_v62 = vsel %vm17705_vm11, %v8196_v34, %v11566_v10  ;;  %v8204_v22 = vsel %vm17706_vm8, %v8197_v52, %v11567_v15  ;;  %v11596_v55 = vunpack.i.l.bf16 %v16281_v35  ;;  %v8038_v19 = vsel %vm17707_vm10, %v15912_v42, %v11637_v23  ;;  %vm17720_vm5 = vmmov %vm17714_vm1 }
 0x98a   : > { %v7837_v40 = vsel %vm17699_vm2, %v7830_v13, %v11616_v57  ;;  %v7838_v25 = vsel %vm17700_vm3, %v7831_v41, %v11617_v61  ;;  %10845 = vmatpush3.bf16.msra.mxu1 %v15744_v56  ;;  %v11645_v36 = vpop.permute.xlu0 %11644  ;;  %10868 = vmatprep.subr.bf16.mxu0 %v15801_v51  ;;  %v11572_v56 = vunpack.i.h.bf16 %v16253_v53  ;;  %v8036_v63 = vsel %vm17708_vm4, %v15921_v9, %v11632_v11  ;;  %vm17716_vm2 = vmmov %vm17711_vm0 }
 0x98b   : > { %v7842_v59 = vpack.c.bf16 %v7838_v25, %v7837_v40  ;;  %v16314_v38 = vpop.permute.xlu1 %11619  ;;  %10846 = vmatprep.subr.bf16.mxu1 %v15777_v58  ;;  %v11647_v39 = vunpack.i.h.bf16 %v11645_v36  ;;  %v11646_v54 = vunpack.i.l.bf16 %v11645_v36  ;;  %v8037_v42 = vsel %vm17711_vm0, %v15907_v5, %v11636_v28  ;;  %vm17717_vm3 = vmmov %vm17701_vm14  ;;  %v17727_v28 = vld [vmem:[#allocation107_spill] sm:$0xff] }
 0x98c   : > { %v8361_v8 = vsel %vm17704_vm7, %v15811_v33, %v11572_v56  ;;  %v11601_v9 = vunpack.i.l.bf16 %v16293_v32  ;;  %v11621_v41 = vunpack.i.l.bf16 %v16314_v38  ;;  %v8210_v36 = vpack.c.bf16 %v8204_v22, %v8203_v62  ;;  %vm17721_vm7 = vmmov %vm17714_vm1  ;;  %v17731_v62 = vld [vmem:[#allocation104_spill] sm:$0xff] }
 0x98d   : > { %10816 = vmatprep.mubr.msk.bf16.mxu1 %vm17701_vm14, %v7842_v59  ;;  %10869 = vmatpush3.bf16.msra.mxu0 %v15801_v51  ;;  %v8045_v2 = vsel %vm17712_vm9, %v8038_v19, %v11647_v39  ;;  %v8044_v26 = vsel %vm17713_vm13, %v8037_v42, %v11646_v54  ;;  %v8360_v59 = vsel %vm17716_vm2, %v15824_v7, %v11571_v30  ;;  %vm17718_vm14 = vmmov %vm17717_vm3  ;;  %v11607_v15 = vunpack.i.h.bf16 %v16291_v44 }
 0x98e   : > { %10847 = vmatpush3.bf16.msra.mxu1 %v15777_v58  ;;  %v16326_v45 = vpop.permute.xlu0 %11649  ;;  %10870 = vmatprep.subr.bf16.mxu0 %v15840_v1  ;;  %v11631_v58 = vunpack.i.l.bf16 %v16298_v17  ;;  %v17709_v17 = vrot.slane %v16123_v20, 6  ;;  %v11622_v20 = vunpack.i.h.bf16 %v16314_v38  ;;  %v8049_v5 = vpack.c.bf16 %v8045_v2, %v8045_v2  ;;  %vm17722_vm11 = vmmov %vm17717_vm3 }
 0x98f   : > { %v16328_v18 = vpop.permute.xlu1 %11624  ;;  %10848 = vmatprep.subr.bf16.mxu1 %v15801_v51  ;;  %v8199_v49 = vsel %vm17719_vm12, %v15846_v24, %v11597_v31  ;;  %vm17723_vm8 = vmmov %vm17711_vm0  ;;  %v11606_v10 = vunpack.i.l.bf16 %v16291_v44  ;;  %v17733_v31 = vld [vmem:[#allocation115_spill] sm:$0xff]  ;;  %v11652_v42 = vunpack.i.h.bf16 %v16326_v45  ;;  %v11651_v2 = vunpack.i.l.bf16 %v16326_v45 }
 0x990   : > { %v7832_v35 = vsel %vm17710_vm15, %v17709_v17, %v11631_v58  ;;  %v11626_v32 = vunpack.i.l.bf16 %v16328_v18  ;;  %v8198_v7 = vsel %vm17723_vm8, %v15853_v21, %v11596_v55  ;;  %vm17724_vm10 = vmmov %vm17717_vm3  ;;  %v8201_v58 = vsel %vm17711_vm0, %v15928_v16, %v11622_v20  ;;  %v16419_v17 = vld [vmem:[%s16960_s15 + $0x20] sm:$0xff]  }
 0x991   : > { %10871 = vmatpush3.bf16.msra.mxu0 %v15840_v1  ;;  %vm17725_vm4 = vmmov %vm17714_vm1 }
 0x992   : > { %10849 = vmatpush3.bf16.msra.mxu1 %v15801_v51  ;;  %v16351_v51 = vpop.permute.xlu0 %11654  ;;  %10900 = vmatprep.subr.bf16.mxu0 %v16356_v3  ;;  %v8206_v24 = vsel %vm17725_vm4, %v8199_v49, %v11602_v27  ;;  %vm17726_vm15 = vmmov %vm17714_vm1  ;;  %v16457_v49 = vld [vmem:[%s16960_s15 + $0x10] sm:$0xff]  }
 0x993   : > { %v11640_v6 = vpop.permute.xlu1 %11639  ;;  %10850 = vmatprep.subr.bf16.mxu1 %v15840_v1  ;;  %v8205_v11 = vsel %vm17726_vm15, %v8198_v7, %v11601_v9  ;;  %vm17728_vm9 = vmmov %vm17711_vm0  ;;  %v11657_v27 = vunpack.i.h.bf16 %v16351_v51 }
 0x994   : > { %v11642_v53 = vunpack.i.h.bf16 %v11640_v6  ;;  %v11641_v33 = vunpack.i.l.bf16 %v11640_v6  ;;  %v8200_v39 = vsel %vm17728_vm9, %v17727_v28, %v11621_v41  ;;  %vm17729_vm13 = vmmov %vm17714_vm1  ;;  %v8211_v52 = vpack.c.bf16 %v8206_v24, %v8205_v11  ;;  %v17742_v41 = vld [vmem:[#allocation101_spill] sm:$0xff] }
 0x995   : > { %v8207_v21 = vsel %vm17729_vm13, %v8200_v39, %v11626_v32  ;;  %vm17732_vm2 = vmmov %vm17711_vm0 }
 0x996   : > { %v8043_v46 = vsel %vm17714_vm1, %v8036_v63, %v11642_v53  ;;  %v7839_v47 = vsel %vm17715_vm6, %v7832_v35, %v11641_v33  ;;  %10851 = vmatpush3.bf16.msra.mxu1 %v15840_v1  ;;  %v11627_v1 = vunpack.i.h.bf16 %v16328_v18  ;;  %v16384_v0 = vpop.permute.xlu0 %11674  ;;  %vm17730_vm6 = vmmov %vm17717_vm3  ;;  %v8363_v22 = vsel %vm17732_vm2, %v17731_v62, %v11607_v15  ;;  %v17749_v15 = vld [vmem:[#allocation103_spill] sm:$0xff] }
 0x997   : > { %v8048_v61 = vpack.c.bf16 %v8044_v26, %v8043_v46  ;;  %v7843_v57 = vpack.c.bf16 %v7839_v47, %v7839_v47  ;;  %v11660_v13 = vpop.permute.xlu1 %11659  ;;  %10880 = vmatprep.subr.bf16.mxu1 %v16356_v3  ;;  %vm17736_vm12 = vmmov %vm17714_vm1  ;;  %v11656_v26 = vunpack.i.l.bf16 %v16351_v51  ;;  %v16437_v47 = vld [vmem:[%s16960_s15 + $0x18] sm:$0xff]  }
 0x998   : > { %v11662_v40 = vunpack.i.h.bf16 %v11660_v13  ;;  %v11661_v25 = vunpack.i.l.bf16 %v11660_v13  ;;  %v8208_v30 = vsel %vm17714_vm1, %v8201_v58, %v11627_v1  ;;  %v17740_v51 = vld [vmem:[#allocation96_spill] sm:$0xff]  ;;  %vm17741_vm8 = vmmov %vm17711_vm0 }
 0x999   : > { %10817 = vmatmul.mubr.msk.bf16.gmra.mxu1 %vm17717_vm3, %v7843_v57  ;;  %10836 = vmatprep.mubr.msk.bf16.mxu0 %vm17718_vm14, %v8048_v61  ;;  %vm17734_vm3 = vmmov %vm17711_vm0  ;;  %v8212_v6 = vpack.c.bf16 %v8208_v30, %v8207_v21  ;;  %v11677_v61 = vunpack.i.h.bf16 %v16384_v0 }
 0x99a   : > { %v8368_v38 = vsel %vm17720_vm5, %v8361_v8, %v11662_v40  ;;  %v8367_v56 = vsel %vm17721_vm7, %v8360_v59, %v11661_v25  ;;  %10837 = vmatmul.mubr.msk.bf16.gmra.mxu0 %vm17722_vm11, %v8049_v5  ;;  %10852 = vmatprep.mubr.msk.bf16.mxu1 %vm17724_vm10, %v8210_v36  ;;  %v8362_v16 = vsel %vm17734_vm3, %v17733_v31, %v11606_v10  ;;  %vm17735_vm14 = vmmov %vm17714_vm1  ;;  %v17744_v25 = vld [vmem:[#allocation108_spill] sm:$0xff]  ;;  %v17746_v36 = vld [vmem:[#allocation102_spill] sm:$0xff] }
 0x99b   : > { %v8374_v18 = vpack.c.bf16 %v8368_v38, %v8367_v56  ;;  %v11665_v23 = vpop.permute.xlu1 %11664  ;;  %vm17737_vm5 = vmmov %vm17730_vm6  ;;  %v8364_v5 = vsel %vm17741_vm8, %v17740_v51, %v11652_v42  ;;  %v11676_v38 = vunpack.i.l.bf16 %v16384_v0  ;;  %v17748_v56 = vld [vmem:[#allocation95_spill] sm:$0xff]  ;;  %v17755_v31 = vld [vmem:[#allocation112_spill] sm:$0xff] }
 0x99c   : > { %vm17738_vm7 = vmmov %vm17737_vm5  ;;  %v11667_v9 = vunpack.i.h.bf16 %v11665_v23  ;;  %v11666_v20 = vunpack.i.l.bf16 %v11665_v23  ;;  %v17751_v23 = vld [vmem:[#allocation99_spill] sm:$0xff] }
 0x99d   : > { %10872 = vmatprep.mubr.msk.bf16.mxu0 %vm17730_vm6, %v8374_v18  ;;  %vm17739_vm11 = vmmov %vm17737_vm5 }
 0x99e   : > { %v11685_v44 = vpop.permute.xlu0 %11684  ;;  %vm17743_vm10 = vmmov %vm17711_vm0  ;;  %v8525_v7 = vsel %vm17711_vm0, %v17748_v56, %v11667_v9  ;;  %v17771_v56 = vld [vmem:[#allocation111_spill] sm:$0xff] }
 0x99f   : > { %v11687_v34 = vunpack.i.h.bf16 %v11685_v44  ;;  %v11686_v54 = vunpack.i.l.bf16 %v11685_v44  ;;  %v8202_v40 = vsel %vm17743_vm10, %v17742_v41, %v11651_v2  ;;  %vm17745_vm4 = vmmov %vm17711_vm0  ;;  %v16509_v41 = vld [vmem:[%s16960_s15] sm:$0xff]  }
 0x9a0   : > { %v11670_v8 = vpop.permute.xlu1 %11669  ;;  %v8366_v59 = vsel %vm17745_vm4, %v17744_v25, %v11657_v27  ;;  %vm17747_vm15 = vmmov %vm17711_vm0 }
 0x9a1   : > { %v8369_v55 = vsel %vm17735_vm14, %v8362_v16, %v11686_v54  ;;  %v8370_v19 = vsel %vm17736_vm12, %v8363_v22, %v11687_v34  ;;  %10853 = vmatmul.mubr.msk.bf16.vlgmr.msra.gmra.mxu1 %vm17737_vm5, %v8211_v52  ;;  %v11672_v57 = vunpack.i.h.bf16 %v11670_v8  ;;  %v11671_v13 = vunpack.i.l.bf16 %v11670_v8  ;;  %vm17750_vm9 = vmmov %vm17711_vm0  ;;  %v16482_v22 = vld [vmem:[%s16960_s15 + $0x8] sm:$0xff]  }
 0x9a2   : > { %v8375_v53 = vpack.c.bf16 %v8370_v19, %v8369_v55  ;;  %v16410_v33 = vpop.permute.xlu0 %11689  ;;  %10856 = vmatprep.mubr.msk.bf16.mxu1 %vm17738_vm7, %v8212_v6  ;;  %10881 = vmatpush3.bf16.msra.mxu1 %v16356_v3  ;;  %v8365_v1 = vsel %vm17747_vm15, %v17746_v36, %v11656_v26  ;;  %v8524_v10 = vsel %vm17750_vm9, %v17749_v15, %v11666_v20  ;;  %vm17752_vm13 = vmmov %vm17711_vm0  ;;  %v17773_v15 = vld [vmem:[#allocation113_spill] sm:$0xff] }
 0x9a3   : > { %10882 = vmatprep.subr.bf16.mxu1 %v16419_v17  ;;  %v8689_v24 = vsel %vm17752_vm13, %v17751_v23, %v11677_v61  ;;  %v8531_v11 = vsel %vm17714_vm1, %v8524_v10, %v11671_v13  ;;  %vm17753_vm6 = vmmov %vm17714_vm1  ;;  %v11692_v39 = vunpack.i.h.bf16 %v16410_v33  ;;  %v11691_v52 = vunpack.i.l.bf16 %v16410_v33  ;;  %v17764_v61 = vld [vmem:[#allocation106_spill] sm:$0xff] }
 0x9a4   : > { %v16414_v63 = vpop.permute.xlu1 %11679  ;;  %10873 = vmatmul.mubr.msk.bf16.vlgmr.msra.gmra.mxu0 %vm17739_vm11, %v8375_v53  ;;  %v8532_v58 = vsel %vm17753_vm6, %v8525_v7, %v11672_v57  ;;  %vm17754_vm2 = vmmov %vm17714_vm1 }
 0x9a5   : > { %10901 = vmatpush3.bf16.msra.mxu0 %v16356_v3  ;;  %v11682_v0 = vunpack.i.h.bf16 %v16414_v63  ;;  %v11681_v21 = vunpack.i.l.bf16 %v16414_v63  ;;  %vm17756_vm3 = vmmov %vm17711_vm0  ;;  %v8538_v6 = vpack.c.bf16 %v8532_v58, %v8531_v11 }
 0x9a6   : > { %v16424_v35 = vpop.permute.xlu0 %11699  ;;  %10883 = vmatpush3.bf16.msra.mxu1 %v16419_v17  ;;  %10902 = vmatprep.subr.bf16.mxu0 %v16419_v17  ;;  %v8688_v16 = vsel %vm17756_vm3, %v17755_v31, %v11676_v38  ;;  %vm17757_vm14 = vmmov %vm17714_vm1 }
 0x9a7   : > { %10884 = vmatprep.subr.bf16.mxu1 %v16437_v47  ;;  %vm17758_vm12 = vmmov %vm17714_vm1  ;;  %v11702_v13 = vunpack.i.h.bf16 %v16424_v35  ;;  %v11701_v51 = vunpack.i.l.bf16 %v16424_v35 }
 0x9a8   : > { %v16432_v46 = vpop.permute.xlu1 %11694  ;;  %vm17759_vm5 = vmmov %vm17714_vm1 }
 0x9a9   : > { %10903 = vmatpush3.bf16.msra.mxu0 %v16419_v17  ;;  %v11697_v55 = vunpack.i.h.bf16 %v16432_v46  ;;  %v11696_v19 = vunpack.i.l.bf16 %v16432_v46  ;;  %vm17760_vm11 = vmmov %vm17714_vm1  ;;  %v17762_v46 = vld [vmem:[#allocation105_spill] sm:$0xff] }
 0x9aa   : > { %v16442_v45 = vpop.permute.xlu0 %11704  ;;  %10885 = vmatpush3.bf16.msra.mxu1 %v16437_v47  ;;  %10904 = vmatprep.subr.bf16.mxu0 %v16437_v47  ;;  %v8696_v42 = vsel %vm17760_vm11, %v8689_v24, %v11682_v0  ;;  %vm17761_vm8 = vmmov %vm17714_vm1  ;;  %v17780_v0 = vld [vmem:[#allocation109_spill] sm:$0xff] }
 0x9ab   : > { %10886 = vmatprep.subr.bf16.mxu1 %v16457_v49  ;;  %v8695_v2 = vsel %vm17761_vm8, %v8688_v16, %v11681_v21  ;;  %vm17763_vm10 = vmmov %vm17711_vm0  ;;  %v11706_v36 = vunpack.i.l.bf16 %v16442_v45 }
 0x9ac   : > { %v11710_v32 = vpop.permute.xlu1 %11709  ;;  %v8527_v20 = vsel %vm17763_vm10, %v17762_v46, %v11692_v39  ;;  %vm17765_vm4 = vmmov %vm17711_vm0  ;;  %v8702_v35 = vpack.c.bf16 %v8696_v42, %v8695_v2  ;;  %v17787_v2 = vld [vmem:[#allocation100_spill] sm:$0xff] }
 0x9ad   : > { %v11711_v18 = vunpack.i.l.bf16 %v11710_v32  ;;  %v11712_v28 = vunpack.i.h.bf16 %v11710_v32  ;;  %10905 = vmatpush3.bf16.msra.mxu0 %v16437_v47  ;;  %v8526_v57 = vsel %vm17765_vm4, %v17764_v61, %v11691_v52  ;;  %vm17766_vm15 = vmmov %vm17738_vm7 }
 0x9ae   : > { %v11730_v44 = vpop.permute.xlu0 %11729  ;;  %10887 = vmatpush3.bf16.msra.mxu1 %v16457_v49  ;;  %10906 = vmatprep.subr.bf16.mxu0 %v16457_v49  ;;  %vm17767_vm0 = vmmov %vm17714_vm1 }
 0x9af   : > { %v8209_v30 = vsel %vm17754_vm2, %v8202_v40, %v11711_v18  ;;  %v11732_v54 = vunpack.i.h.bf16 %v11730_v44  ;;  %v11731_v8 = vunpack.i.l.bf16 %v11730_v44  ;;  %10888 = vmatprep.subr.bf16.mxu1 %v16482_v22  ;;  %v8371_v53 = vsel %vm17757_vm14, %v8364_v5, %v11712_v28  ;;  %vm17768_vm9 = vmmov %vm17767_vm0  ;;  %v17778_v28 = vld [vmem:[#allocation97_spill] sm:$0xff] }
 0x9b0   : > { %v8213_v34 = vpack.c.bf16 %v8209_v30, %v8209_v30  ;;  %v16477_v62 = vpop.permute.xlu1 %11714  ;;  %v8534_v40 = vsel %vm17767_vm0, %v8527_v20, %v11697_v55  ;;  %v8533_v25 = vsel %vm17768_vm9, %v8526_v57, %v11696_v19  ;;  %vm17769_vm13 = vmmov %vm17738_vm7  ;;  %v17791_v20 = vld [vmem:[#allocation68_spill] sm:$0xff] }
 0x9b1   : > { %v8373_v33 = vsel %vm17758_vm12, %v8366_v59, %v11732_v54  ;;  %v8372_v63 = vsel %vm17759_vm5, %v8365_v1, %v11731_v8  ;;  %10907 = vmatpush3.bf16.msra.mxu0 %v16457_v49  ;;  %v11707_v59 = vunpack.i.h.bf16 %v16442_v45  ;;  %vm17770_vm1 = vmmov %vm17738_vm7  ;;  %v8539_v10 = vpack.c.bf16 %v8534_v40, %v8533_v25 }
 0x9b2   : > { %10857 = vmatmul.mubr.msk.bf16.gmra.mxu1 %vm17738_vm7, %v8213_v34  ;;  %v8377_v27 = vpack.c.bf16 %v8373_v33, %v8373_v33  ;;  %v8376_v26 = vpack.c.bf16 %v8372_v63, %v8371_v53  ;;  %v16496_v9 = vpop.permute.xlu0 %11734  ;;  %10908 = vmatprep.subr.bf16.mxu0 %v16482_v22  ;;  %vm17772_vm6 = vmmov %vm17756_vm3  ;;  %v11717_v31 = vunpack.i.h.bf16 %v16477_v62 }
 0x9b3   : > { %10889 = vmatpush3.bf16.msra.mxu1 %v16482_v22  ;;  %10892 = vmatprep.mubr.msk.bf16.mxu1 %vm17766_vm15, %v8538_v6  ;;  %v8691_v7 = vsel %vm17772_vm6, %v17771_v56, %v11702_v13  ;;  %vm17774_vm2 = vmmov %vm17756_vm3  ;;  %v11716_v6 = vunpack.i.l.bf16 %v16477_v62  ;;  %v11737_v55 = vunpack.i.h.bf16 %v16496_v9  ;;  %v11736_v57 = vunpack.i.l.bf16 %v16496_v9 }
 0x9b4   : > { %v11720_v5 = vpop.permute.xlu1 %11719  ;;  %10890 = vmatprep.subr.bf16.mxu1 %v16509_v41  ;;  %10876 = vmatprep.mubr.msk.bf16.mxu0 %vm17769_vm13, %v8376_v26  ;;  %v8690_v45 = vsel %vm17774_vm2, %v17773_v15, %v11701_v51  ;;  %vm17775_vm3 = vmmov %vm17770_vm1 }
 0x9b5   : > { %v11722_v1 = vunpack.i.h.bf16 %v11720_v5  ;;  %v11721_v32 = vunpack.i.l.bf16 %v11720_v5  ;;  %10877 = vmatmul.mubr.msk.bf16.gmra.mxu0 %vm17770_vm1, %v8377_v27  ;;  %vm17776_vm14 = vmmov %vm17767_vm0  ;;  %v17793_v5 = vld [vmem:[#allocation74_spill] sm:$0xff] }
 0x9b6   : > { %10909 = vmatpush3.bf16.msra.mxu0 %v16482_v22  ;;  %v11745_v38 = vpop.permute.xlu0 %11744  ;;  %10912 = vmatprep.mubr.msk.bf16.mxu0 %vm17775_vm3, %v8702_v35  ;;  %v8698_v23 = vsel %vm17776_vm14, %v8691_v7, %v11707_v59  ;;  %vm17777_vm12 = vmmov %vm17767_vm0 }
 0x9b7   : > { %10891 = vmatpush3.bf16.msra.mxu1 %v16509_v41  ;;  %10910 = vmatprep.subr.bf16.mxu0 %v16509_v41  ;;  %v8697_v24 = vsel %vm17777_vm12, %v8690_v45, %v11706_v36  ;;  %vm17779_vm5 = vmmov %vm17774_vm2  ;;  %v11747_v53 = vunpack.i.h.bf16 %v11745_v38  ;;  %v11746_v33 = vunpack.i.l.bf16 %v11745_v38  ;;  %v17795_v36 = vld [vmem:[#allocation114_spill] sm:$0xff] }
 0x9b8   : > { %v11725_v18 = vpop.permute.xlu1 %11724  ;;  %10920 = vmatprep.subr.bf16.mxu1 %v16356_v3  ;;  %v8529_v39 = vsel %vm17779_vm5, %v17778_v28, %v11722_v1  ;;  %vm17781_vm7 = vmmov %vm17774_vm2  ;;  %v8703_v34 = vpack.c.bf16 %v8698_v23, %v8697_v24 }
 0x9b9   : > { %v11727_v11 = vunpack.i.h.bf16 %v11725_v18  ;;  %v11726_v58 = vunpack.i.l.bf16 %v11725_v18  ;;  %v8528_v21 = vsel %vm17781_vm7, %v17780_v0, %v11721_v32  ;;  %vm17782_vm11 = vmmov %vm17770_vm1  ;;  %v17798_v32 = vld [vmem:[#allocation110_spill] sm:$0xff] }
 0x9ba   : > { %10893 = vmatmul.mubr.msk.bf16.vlgmr.msra.gmra.mxu1 %vm17782_vm11, %v8539_v10  ;;  %vm17783_vm8 = vmmov %vm17767_vm0  ;;  %10911 = vmatpush3.bf16.msra.mxu0 %v16509_v41  ;;  %v16538_v52 = vpop.permute.xlu0 %11754 }
 0x9bb   : > { %v8535_v30 = vsel %vm17783_vm8, %v8528_v21, %v11726_v58  ;;  %vm17784_vm10 = vmmov %vm17767_vm0  ;;  %10921 = vmatpush3.bf16.msra.mxu1 %v16356_v3  ;;  %10940 = vmatprep.subr.bf16.mxu0 %v16356_v3 }
 0x9bc   : > { %v8536_v44 = vsel %vm17784_vm10, %v8529_v39, %v11727_v11  ;;  %v11740_v8 = vpop.permute.xlu1 %11739  ;;  %10922 = vmatprep.subr.bf16.mxu1 %v16419_v17  ;;  %vm17785_vm4 = vmmov %vm17770_vm1 }
 0x9bd   : > { %v8540_v54 = vpack.c.bf16 %v8536_v44, %v8535_v30  ;;  %vm17786_vm15 = vmmov %vm17770_vm1  ;;  %v11741_v63 = vunpack.i.l.bf16 %v11740_v8  ;;  %v11742_v26 = vunpack.i.h.bf16 %v11740_v8 }
 0x9be   : > { %10913 = vmatmul.mubr.msk.bf16.vlgmr.msra.gmra.mxu0 %vm17786_vm15, %v8703_v34  ;;  %v11760_v16 = vpop.permute.xlu0 %11759  ;;  %vm17788_vm0 = vmmov %vm17774_vm2 }
 0x9bf   : > { %10896 = vmatprep.mubr.msk.bf16.mxu1 %vm17785_vm4, %v8540_v54  ;;  %10923 = vmatpush3.bf16.msra.mxu1 %v16419_v17  ;;  %v11761_v42 = vunpack.i.l.bf16 %v11760_v16  ;;  %v8847_v27 = vsel %vm17788_vm0, %v17787_v2, %v11717_v31  ;;  %vm17790_vm9 = vmmov %vm17788_vm0  ;;  %v11762_v13 = vunpack.i.h.bf16 %v11760_v16 }
 0x9c0   : > { %10941 = vmatpush3.bf16.msra.mxu0 %v16356_v3  ;;  %v16550_v19 = vpop.permute.xlu1 %11749  ;;  %10924 = vmatprep.subr.bf16.mxu1 %v16437_v47  ;;  %v17789_v3 = vld [vmem:[#allocation98_spill] sm:$0xff]  ;;  %vm17792_vm13 = vmmov %vm17788_vm0 }
 0x9c1   : > { %10942 = vmatprep.subr.bf16.mxu0 %v16419_v17  ;;  %v8846_v62 = vsel %vm17790_vm9, %v17789_v3, %v11716_v6  ;;  %v8849_v61 = vsel %vm17792_vm13, %v17791_v20, %v11737_v55  ;;  %vm17794_vm1 = vmmov %vm17788_vm0  ;;  %v11752_v7 = vunpack.i.h.bf16 %v16550_v19  ;;  %v11751_v15 = vunpack.i.l.bf16 %v16550_v19  ;;  %v17819_v3 = vld [vmem:[#allocation70_spill] sm:$0xff] }
 0x9c2   : > { %v11765_v46 = vpop.permute.xlu0 %11764  ;;  %v9014_v40 = vsel %vm17794_vm1, %v17793_v5, %v11747_v53  ;;  %vm17796_vm6 = vmmov %vm17788_vm0  ;;  %v11757_v6 = vunpack.i.h.bf16 %v16538_v52  ;;  %v11756_v55 = vunpack.i.l.bf16 %v16538_v52 }
 0x9c3   : > { %10925 = vmatpush3.bf16.msra.mxu1 %v16437_v47  ;;  %v11767_v25 = vunpack.i.h.bf16 %v11765_v46  ;;  %v11766_v59 = vunpack.i.l.bf16 %v11765_v46  ;;  %v9013_v35 = vsel %vm17796_vm6, %v17795_v36, %v11746_v33  ;;  %vm17797_vm2 = vmmov %vm17783_vm8 }
 0x9c4   : > { %10943 = vmatpush3.bf16.msra.mxu0 %v16419_v17  ;;  %v11770_v51 = vpop.permute.xlu1 %11769  ;;  %10926 = vmatprep.subr.bf16.mxu1 %v16457_v49  ;;  %v8853_v1 = vsel %vm17797_vm2, %v8846_v62, %v11741_v63  ;;  %vm17799_vm3 = vmmov %vm17788_vm0 }
 0x9c5   : > { %10944 = vmatprep.subr.bf16.mxu0 %v16437_v47  ;;  %v11771_v17 = vunpack.i.l.bf16 %v11770_v51  ;;  %v8530_v9 = vsel %vm17799_vm3, %v17798_v32, %v11761_v42  ;;  %v11772_v38 = vunpack.i.h.bf16 %v11770_v51  ;;  %vm17800_vm14 = vmmov %vm17797_vm2 }
 0x9c6   : > { %v8854_v56 = vsel %vm17800_vm14, %v8847_v27, %v11742_v26  ;;  %vm17801_vm12 = vmmov %vm17797_vm2  ;;  %v11780_v10 = vpop.permute.xlu0 %11779 }
 0x9c7   : > { %v8537_v45 = vsel %vm17801_vm12, %v8530_v9, %v11771_v17  ;;  %10927 = vmatpush3.bf16.msra.mxu1 %v16457_v49  ;;  %vm17802_vm5 = vmmov %vm17788_vm0  ;;  %v11782_v24 = vunpack.i.h.bf16 %v11780_v10  ;;  %v11781_v11 = vunpack.i.l.bf16 %v11780_v10 }
 0x9c8   : > { %10945 = vmatpush3.bf16.msra.mxu0 %v16437_v47  ;;  %v8692_v18 = vsel %vm17802_vm5, %v16108_v43, %v11762_v13  ;;  %v8541_v23 = vpack.c.bf16 %v8537_v45, %v8537_v45  ;;  %v11775_v58 = vpop.permute.xlu1 %11774  ;;  %10928 = vmatprep.subr.bf16.mxu1 %v16482_v22  ;;  %vm17803_vm7 = vmmov %vm17788_vm0  ;;  %v8860_v47 = vpack.c.bf16 %v8854_v56, %v8853_v1 }
 0x9c9   : > { %10946 = vmatprep.subr.bf16.mxu0 %v16457_v49  ;;  %v8694_v28 = vsel %vm17803_vm7, %v16135_v14, %v11767_v25  ;;  %vm17804_vm11 = vmmov %vm17788_vm0  ;;  %v11777_v0 = vunpack.i.h.bf16 %v11775_v58  ;;  %v11776_v21 = vunpack.i.l.bf16 %v11775_v58  ;;  %v17835_v58 = vld [vmem:[#allocation66_spill] sm:$0xff] }
 0x9ca   : > { %v8693_v39 = vsel %vm17804_vm11, %v16149_v4, %v11766_v59  ;;  %vm17805_vm8 = vmmov %vm17797_vm2  ;;  %10897 = vmatmul.mubr.msk.bf16.gmra.mxu1 %vm17786_vm15, %v8541_v23  ;;  %v11785_v31 = vpop.permute.xlu0 %11784  ;;  %v17810_v4 = vld [vmem:[#allocation73_spill] sm:$0xff] }
 0x9cb   : > { %v8699_v30 = vsel %vm17805_vm8, %v8692_v18, %v11772_v38  ;;  %vm17806_vm10 = vmmov %vm17797_vm2  ;;  %10929 = vmatpush3.bf16.msra.mxu1 %v16482_v22  ;;  %v11787_v42 = vunpack.i.h.bf16 %v11785_v31  ;;  %v11786_v2 = vunpack.i.l.bf16 %v11785_v31 }
 0x9cc   : > { %v8700_v43 = vsel %vm17806_vm10, %v8693_v39, %v11781_v11  ;;  %vm17807_vm4 = vmmov %vm17797_vm2  ;;  %10947 = vmatpush3.bf16.msra.mxu0 %v16457_v49  ;;  %v11790_v53 = vpop.permute.xlu1 %11789  ;;  %10930 = vmatprep.subr.bf16.mxu1 %v16509_v41  ;;  %v17818_v49 = vld [vmem:[#allocation67_spill] sm:$0xff] }
 0x9cd   : > { %v8701_v44 = vsel %vm17807_vm4, %v8694_v28, %v11782_v24  ;;  %v8704_v34 = vpack.c.bf16 %v8700_v43, %v8699_v30  ;;  %vm17808_vm0 = vmmov %vm17797_vm2  ;;  %v11792_v27 = vunpack.i.h.bf16 %v11790_v53  ;;  %v11791_v26 = vunpack.i.l.bf16 %v11790_v53  ;;  %10948 = vmatprep.subr.bf16.mxu0 %v16482_v22 }
 0x9ce   : > { %v8705_v54 = vpack.c.bf16 %v8701_v44, %v8701_v44  ;;  %v9021_v8 = vsel %vm17808_vm0, %v9014_v40, %v11777_v0  ;;  %vm17809_vm9 = vmmov %vm17808_vm0  ;;  %v11800_v52 = vpop.permute.xlu0 %11799  ;;  %v9016_v46 = vsel %vm17802_vm5, %v17818_v49, %v11757_v6  ;;  %v17836_v28 = vunpack.i.h.bf16 %v17835_v58 }
 0x9cf   : > { %v9020_v14 = vsel %vm17809_vm9, %v9013_v35, %v11776_v21  ;;  %vm17811_vm13 = vmmov %vm17794_vm1  ;;  %10931 = vmatpush3.bf16.msra.mxu1 %v16509_v41  ;;  %v11802_v59 = vunpack.i.h.bf16 %v11800_v52  ;;  %v11801_v17 = vunpack.i.l.bf16 %v11800_v52 }
 0x9d0   : > { %v8848_v16 = vsel %vm17811_vm13, %v17810_v4, %v11736_v57  ;;  %v9027_v19 = vpack.c.bf16 %v9021_v8, %v9020_v14  ;;  %vm17812_vm1 = vmmov %vm17786_vm15  ;;  %10949 = vmatpush3.bf16.msra.mxu0 %v16482_v22 }
 0x9d1   : > { %10932 = vmatprep.mubr.msk.bf16.mxu1 %vm17812_vm1, %v8860_v47  ;;  %vm17813_vm6 = vmmov %vm17808_vm0  ;;  %10950 = vmatprep.subr.bf16.mxu0 %v16509_v41 }
 0x9d2   : > { %v8856_v33 = vsel %vm17813_vm6, %v8849_v61, %v11752_v7  ;;  %vm17814_vm2 = vmmov %vm17808_vm0  ;;  %v11795_v61 = vpop.permute.xlu1 %11794  ;;  %v11805_v35 = vpop.permute.xlu0 %11804 }
 0x9d3   : > { %v8855_v63 = vsel %vm17814_vm2, %v8848_v16, %v11751_v15  ;;  %vm17815_vm3 = vmmov %vm17812_vm1  ;;  %v11797_v51 = vunpack.i.h.bf16 %v11795_v61  ;;  %v11796_v5 = vunpack.i.l.bf16 %v11795_v61  ;;  %v11807_v32 = vunpack.i.h.bf16 %v11805_v35 }
 0x9d4   : > { %10916 = vmatprep.mubr.msk.bf16.mxu0 %vm17815_vm3, %v8704_v34  ;;  %vm17816_vm14 = vmmov %vm17812_vm1  ;;  %v8861_v20 = vpack.c.bf16 %v8856_v33, %v8855_v63  ;;  %v11806_v9 = vunpack.i.l.bf16 %v11805_v35  ;;  %10951 = vmatpush3.bf16.msra.mxu0 %v16509_v41 }
 0x9d5   : > { %10917 = vmatmul.mubr.msk.bf16.gmra.mxu0 %vm17816_vm14, %v8705_v54  ;;  %vm17817_vm12 = vmmov %vm17812_vm1 }
 0x9d6   : > { %10952 = vmatprep.mubr.msk.bf16.mxu0 %vm17817_vm12, %v9027_v19  ;;  %vm17820_vm7 = vmmov %vm17802_vm5  ;;  %v11810_v38 = vpop.permute.xlu1 %11809  ;;  %v9006_v18 = vpop.permute.xlu0 %9005 }
 0x9d7   : > { %v9015_v62 = vsel %vm17820_vm7, %v17819_v3, %v11756_v55  ;;  %vm17821_vm11 = vmmov %vm17808_vm0  ;;  %v11811_v7 = vunpack.i.l.bf16 %v11810_v38 }
 0x9d8   : > { %v9022_v57 = vsel %vm17821_vm11, %v9015_v62, %v11786_v2  ;;  %vm17822_vm8 = vmmov %vm17808_vm0 }
 0x9d9   : > { %v9023_v13 = vsel %vm17822_vm8, %v9016_v46, %v11787_v42  ;;  %vm17823_vm10 = vmmov %vm17802_vm5 }
 0x9da   : > { %v8851_v40 = vsel %vm17823_vm10, %v16179_v12, %v11792_v27  ;;  %vm17824_vm4 = vmmov %vm17802_vm5  ;;  %v9028_v56 = vpack.c.bf16 %v9023_v13, %v9022_v57  ;;  %v11812_v12 = vunpack.i.h.bf16 %v11810_v38 }
 0x9db   : > { %v8850_v25 = vsel %vm17824_vm4, %v16186_v37, %v11791_v26  ;;  %vm17825_vm15 = vmmov %vm17812_vm1 }
 0x9dc   : > { %10933 = vmatmul.mubr.msk.bf16.vlgmr.msra.gmra.mxu1 %vm17825_vm15, %v8861_v20  ;;  %v8857_v22 = vsel %vm17808_vm0, %v8850_v25, %v11796_v5  ;;  %vm17826_vm9 = vmmov %vm17808_vm0 }
 0x9dd   : > { %v8858_v36 = vsel %vm17826_vm9, %v8851_v40, %v11797_v51  ;;  %vm17827_vm13 = vmmov %vm17824_vm4 }
 0x9de   : > { %v8862_v1 = vpack.c.bf16 %v8858_v36, %v8857_v22  ;;  %v8852_v37 = vsel %vm17827_vm13, %v16199_v60, %v11801_v17  ;;  %vm17828_vm6 = vmmov %vm17824_vm4 }
 0x9df   : > { %v9017_v15 = vsel %vm17828_vm6, %v16209_v29, %v11802_v59  ;;  %vm17829_vm2 = vmmov %vm17824_vm4 }
 0x9e0   : > { %10936 = vmatprep.mubr.msk.bf16.mxu1 %vm17812_vm1, %v8862_v1  ;;  %v9018_v45 = vsel %vm17829_vm2, %v16228_v50, %v11806_v9  ;;  %vm17830_vm3 = vmmov %vm17829_vm2  ;;  %v16645_v50 = vld [vmem:[%s16961_s16] ss:$0 sm:$0xff] }
 0x9e1   : > { %v9019_v10 = vsel %vm17830_vm3, %v16217_v48, %v11807_v32  ;;  %vm17831_vm14 = vmmov %vm17808_vm0 }
 0x9e2   : > { %v8859_v41 = vsel %vm17831_vm14, %v8852_v37, %v11811_v7  ;;  %vm17832_vm12 = vmmov %vm17812_vm1 }
 0x9e3   : > { %10953 = vmatmul.mubr.msk.bf16.vlgmr.msra.gmra.mxu0 %vm17832_vm12, %v9028_v56  ;;  %vm17833_vm5 = vmmov %vm17808_vm0  ;;  %v8863_v24 = vpack.c.bf16 %v8859_v41, %v8859_v41 }
 0x9e4   : > { %v9024_v23 = vsel %vm17833_vm5, %v9017_v15, %v11812_v12  ;;  %vm17834_vm7 = vmmov %vm17808_vm0 }
 0x9e5   : > { %v9025_v60 = vsel %vm17834_vm7, %v9018_v45, %v9006_v18  ;;  %vm17837_vm11 = vmmov %vm17808_vm0 }
 0x9e6   : > { %v9029_v11 = vpack.c.bf16 %v9025_v60, %v9024_v23  ;;  %v9026_v29 = vsel %vm17837_vm11, %v9019_v10, %v17836_v28  ;;  %vm17838_vm8 = vmmov %vm17812_vm1 }
 0x9e7   : > { %10937 = vmatmul.mubr.msk.bf16.gmra.mxu1 %vm17838_vm8, %v8863_v24  ;;  %vm17839_vm10 = vmmov %vm17812_vm1  ;;  %v9030_v48 = vpack.c.bf16 %v9026_v29, %v9026_v29 }
 0x9e8   : > { %10956 = vmatprep.mubr.msk.bf16.mxu0 %vm17839_vm10, %v9029_v11  ;;  %vm17840_vm4 = vmmov %vm17812_vm1 }
 0x9eb   : > { %10957 = vmatmul.mubr.msk.bf16.gmra.mxu0 %vm17840_vm4, %v9030_v48 }
 0xa3c   : > { %v10834_v39 = vpop.f32.mrf.mxu0 }
 0xa3d   : > { %v8105_v0 = vadd.f32 %v10834_v39, %v16645_v50 }
 0xa3e   : > { %v8096_v21 = vpop.f32.mrf.mxu0 }
 0xa3f   : > { %vm8128_vm15 = vcmp.gt.f32.partialorder %v8105_v0, 0.0  ;;  %v8135_v47 = vmul.f32 0.01, %v8105_v0  ;;  %v8097_v30 = vadd.f32 %v16645_v50, %v8096_v21 }
 0xa40   : > { %v10835_v43 = vpop.f32.mrf.mxu0 }
 0xa41   : > { %v8108_v44 = vadd.f32 %v10835_v43, %v16645_v50  ;;  %v8133_v34 = vmul.f32 0.01, %v8097_v30  ;;  %v8142_v8 = vsel %vm8128_vm15, %v8105_v0, %v8135_v47  ;;  %vm8126_vm0 = vcmp.gt.f32.partialorder %v8097_v30, 0.0  ;;  %v16654_v19 = vpop.f32.mrf.mxu1 }
 0xa42   : > { %v8099_v54 = vpop.f32.mrf.mxu0  ;;  %9139 = vrot.lane.b32.xlu1 %v8142_v8, %s17841_s27 }
 0xa43   : > { %vm8129_vm9 = vcmp.gt.f32.partialorder %v8108_v44, 0.0  ;;  %v8136_v14 = vmul.f32 0.01, %v8108_v44  ;;  %v8100_v31 = vadd.f32 %v16645_v50, %v8099_v54  ;;  %v8140_v6 = vsel %vm8126_vm0, %v8097_v30, %v8133_v34  ;;  %v16657_v53 = vpop.f32.mrf.mxu1 }
 0xa45   : > { %v8143_v4 = vsel %vm8129_vm9, %v8108_v44, %v8136_v14  ;;  %vm8127_vm13 = vcmp.gt.f32.partialorder %v8100_v31, 0.0  ;;  %v8134_v16 = vmul.f32 0.01, %v8100_v31  ;;  %v16659_v33 = vpop.f32.mrf.mxu1 }
 0xa46   : > { %9141 = vrot.lane.b32.xlu0 %v8143_v4, %s17841_s27  ;;  %9135 = vrot.lane.b32.xlu1 %v8140_v6, %s17841_s27 }
 0xa47   : > { %v8141_v55 = vsel %vm8127_vm13, %v8100_v31, %v8134_v16  ;;  %v16661_v63 = vpop.f32.mrf.mxu1 }
 0xa4a   : > { %9137 = vrot.lane.b32.xlu0 %v8141_v55, %s17841_s27 }
 0xa59   : > { %v16663_v42 = vpop.f32.mrf.mxu1 }
 0xa5a   : > { %v10838_v2 = vpop.f32.mrf.mxu0 }
 0xa5b   : > { %v8121_v27 = vadd.f32 %v10838_v2, %v16645_v50  ;;  %v16666_v26 = vpop.f32.mrf.mxu1 }
 0xa5c   : > { %v8112_v52 = vpop.f32.mrf.mxu0 }
 0xa5d   : > { %vm8132_vm1 = vcmp.gt.f32.partialorder %v8121_v27, 0.0  ;;  %v8139_v49 = vmul.f32 0.01, %v8121_v27  ;;  %v8113_v46 = vadd.f32 %v16645_v50, %v8112_v52  ;;  %v10819_v3 = vpop.f32.mrf.mxu1 }
 0xa5e   : > { %v10839_v62 = vpop.f32.mrf.mxu0 }
 0xa5f   : > { %v8137_v20 = vmul.f32 0.01, %v8113_v46  ;;  %v16669_v61 = vpop.f32.mrf.mxu1  ;;  %v8146_v57 = vsel %vm8132_vm1, %v8121_v27, %v8139_v49  ;;  %vm8130_vm6 = vcmp.gt.f32.partialorder %v8113_v46, 0.0 }
 0xa60   : > { %v8115_v13 = vpop.f32.mrf.mxu0  ;;  %9147 = vrot.lane.b32.xlu1 %v8146_v57, %s17841_s27 }
 0xa61   : > { %v8116_v51 = vadd.f32 %v16645_v50, %v8115_v13  ;;  %v10854_v5 = vpop.f32.mrf.mxu1  ;;  %v8144_v17 = vsel %vm8130_vm6, %v8113_v46, %v8137_v20 }
 0xa62   : > { %v8269_v40 = vadd.f32 %v10854_v5, %v16645_v50 }
 0xa63   : > { %vm8131_vm2 = vcmp.gt.f32.partialorder %v8116_v51, 0.0  ;;  %v8138_v25 = vmul.f32 0.01, %v8116_v51  ;;  %v8260_v59 = vpop.f32.mrf.mxu1 }
 0xa64   : > { %9143 = vrot.lane.b32.xlu1 %v8144_v17, %s17841_s27  ;;  %v8299_v22 = vmul.f32 0.01, %v8269_v40  ;;  %v8261_v36 = vadd.f32 %v16645_v50, %v8260_v59  ;;  %vm8292_vm3 = vcmp.gt.f32.partialorder %v8269_v40, 0.0  ;;  %v10874_v9 = vpop.f32.mrf.mxu0 }
 0xa65   : > { %v10855_v35 = vpop.f32.mrf.mxu1  ;;  %v8145_v1 = vsel %vm8131_vm2, %v8116_v51, %v8138_v25  ;;  %v8433_v44 = vadd.f32 %v10874_v9, %v16645_v50 }
 0xa66   : > { %v8272_v32 = vadd.f32 %v10855_v35, %v16645_v50  ;;  %9145 = vrot.lane.b32.xlu0 %v8145_v1, %s17841_s27  ;;  %v8297_v7 = vmul.f32 0.01, %v8261_v36  ;;  %v8306_v37 = vsel %vm8292_vm3, %v8269_v40, %v8299_v22  ;;  %vm8290_vm12 = vcmp.gt.f32.partialorder %v8261_v36, 0.0  ;;  %v8424_v10 = vpop.f32.mrf.mxu0  ;;  %s12243_s27 = smov [#allocation2]  }
 0xa67   : > { %v8263_v38 = vpop.f32.mrf.mxu1  ;;  %v8463_v2 = vmul.f32 0.01, %v8433_v44  ;;  %v8425_v27 = vadd.f32 %v16645_v50, %v8424_v10  ;;  %vm8456_vm4 = vcmp.gt.f32.partialorder %v8433_v44, 0.0 }
 0xa68   : > { %vm8293_vm14 = vcmp.gt.f32.partialorder %v8272_v32, 0.0  ;;  %v8300_v56 = vmul.f32 0.01, %v8272_v32  ;;  %v8264_v12 = vadd.f32 %v16645_v50, %v8263_v38  ;;  %v8304_v41 = vsel %vm8290_vm12, %v8261_v36, %v8297_v7  ;;  %v10875_v23 = vpop.f32.mrf.mxu0 }
 0xa69   : > { %v8436_v0 = vadd.f32 %v10875_v23, %v16645_v50  ;;  %v8461_v57 = vmul.f32 0.01, %v8425_v27  ;;  %v8470_v51 = vsel %vm8456_vm4, %v8433_v44, %v8463_v2  ;;  %vm8454_vm0 = vcmp.gt.f32.partialorder %v8425_v27, 0.0 }
 0xa6a   : > { %v8298_v15 = vmul.f32 0.01, %v8264_v12  ;;  %9167 = vrot.lane.b32.xlu0 %v8306_v37, %s17248_s19  ;;  %v8307_v45 = vsel %vm8293_vm14, %v8272_v32, %v8300_v56  ;;  %vm8291_vm5 = vcmp.gt.f32.partialorder %v8264_v12, 0.0  ;;  %v8427_v11 = vpop.f32.mrf.mxu0 }
 0xa6b   : > { %9169 = vrot.lane.b32.xlu1 %v8307_v45, %s17248_s19  ;;  %v8464_v14 = vmul.f32 0.01, %v8436_v0  ;;  %vm8457_vm10 = vcmp.gt.f32.partialorder %v8436_v0, 0.0  ;;  %v8428_v46 = vadd.f32 %v16645_v50, %v8427_v11  ;;  %v8468_v35 = vsel %vm8454_vm0, %v8425_v27, %v8461_v57 }
 0xa6c   : > { %v8305_v18 = vsel %vm8291_vm5, %v8264_v12, %v8298_v15 }
 0xa6d   : > { %v8471_v62 = vsel %vm8457_vm10, %v8436_v0, %v8464_v14  ;;  %v8462_v40 = vmul.f32 0.01, %v8428_v46  ;;  %vm8455_vm9 = vcmp.gt.f32.partialorder %v8428_v46, 0.0 }
 0xa6e   : > { %9163 = vrot.lane.b32.xlu0 %v8304_v41, %s17248_s19 }
 0xa6f   : > { %9165 = vrot.lane.b32.xlu1 %v8305_v18, %s17248_s19  ;;  %v8469_v32 = vsel %vm8455_vm9, %v8428_v46, %v8462_v40 }
 0xa72   : > { %v10858_v24 = vpop.f32.mrf.mxu1 }
 0xa73   : > { %v8285_v60 = vadd.f32 %v10858_v24, %v16645_v50 }
 0xa74   : > { %v8276_v58 = vpop.f32.mrf.mxu1 }
 0xa75   : > { %vm8296_vm7 = vcmp.gt.f32.partialorder %v8285_v60, 0.0  ;;  %v8303_v28 = vmul.f32 0.01, %v8285_v60  ;;  %v8277_v29 = vadd.f32 %v16645_v50, %v8276_v58  ;;  %v10878_v39 = vpop.f32.mrf.mxu0 }
 0xa76   : > { %v10859_v48 = vpop.f32.mrf.mxu1  ;;  %v8449_v9 = vadd.f32 %v10878_v39, %v16645_v50 }
 0xa77   : > { %v8301_v21 = vmul.f32 0.01, %v8277_v29  ;;  %v8310_v47 = vsel %vm8296_vm7, %v8285_v60, %v8303_v28  ;;  %vm8294_vm11 = vcmp.gt.f32.partialorder %v8277_v29, 0.0  ;;  %v8440_v30 = vpop.f32.mrf.mxu0 }
 0xa78   : > { %9175 = vrot.lane.b32.xlu0 %v8310_v47, %s17248_s19  ;;  %v8279_v43 = vpop.f32.mrf.mxu1  ;;  %v8467_v45 = vmul.f32 0.01, %v8449_v9  ;;  %v8441_v10 = vadd.f32 %v16645_v50, %v8440_v30  ;;  %vm8460_vm3 = vcmp.gt.f32.partialorder %v8449_v9, 0.0 }
 0xa79   : > { %v8280_v34 = vadd.f32 %v16645_v50, %v8279_v43  ;;  %v10879_v54 = vpop.f32.mrf.mxu0  ;;  %v8308_v4 = vsel %vm8294_vm11, %v8277_v29, %v8301_v21 }
 0xa7a   : > { %v10894_v8 = vpop.f32.mrf.mxu1  ;;  %v8465_v21 = vmul.f32 0.01, %v8441_v10  ;;  %v8474_v30 = vsel %vm8460_vm3, %v8449_v9, %v8467_v45  ;;  %vm8458_vm12 = vcmp.gt.f32.partialorder %v8441_v10, 0.0 }
 0xa7b   : > { %vm8295_vm8 = vcmp.gt.f32.partialorder %v8280_v34, 0.0  ;;  %v8302_v31 = vmul.f32 0.01, %v8280_v34  ;;  %v8597_v16 = vadd.f32 %v10894_v8, %v16645_v50  ;;  %v8443_v6 = vpop.f32.mrf.mxu0 }
 0xa7c   : > { %9171 = vrot.lane.b32.xlu0 %v8308_v4, %s17248_s19  ;;  %v8588_v55 = vpop.f32.mrf.mxu1  ;;  %v8444_v28 = vadd.f32 %v16645_v50, %v8443_v6  ;;  %v8472_v6 = vsel %vm8458_vm12, %v8441_v10, %v8465_v21 }
 0xa7d   : > { %v8309_v52 = vsel %vm8295_vm8, %v8280_v34, %v8302_v31  ;;  %v8627_v3 = vmul.f32 0.01, %v8597_v16  ;;  %vm8620_vm15 = vcmp.gt.f32.partialorder %v8597_v16, 0.0  ;;  %v8589_v25 = vadd.f32 %v16645_v50, %v8588_v55 }
 0xa7e   : > { %9173 = vrot.lane.b32.xlu1 %v8309_v52, %s17248_s19  ;;  %v10895_v49 = vpop.f32.mrf.mxu1  ;;  %v16694_v20 = vpop.f32.mrf.mxu0  ;;  %s12239_s19 = smov 16   ;;  %v8466_v34 = vmul.f32 0.01, %v8444_v28  ;;  %vm8459_vm5 = vcmp.gt.f32.partialorder %v8444_v28, 0.0 }
 0xa7f   : > { %v8600_v13 = vadd.f32 %v10895_v49, %v16645_v50  ;;  %v8634_v59 = vsel %vm8620_vm15, %v8597_v16, %v8627_v3  ;;  %v8625_v1 = vmul.f32 0.01, %v8589_v25  ;;  %vm8618_vm1 = vcmp.gt.f32.partialorder %v8589_v25, 0.0 }
 0xa80   : > { %9197 = vrot.lane.b32.xlu0 %v8471_v62, %s12238_s23  ;;  %v8591_v5 = vpop.f32.mrf.mxu1  ;;  %v16700_v17 = vpop.f32.mrf.mxu0  ;;  %v8761_v4 = vadd.f32 %v16694_v20, %v16645_v50  ;;  %v8473_v49 = vsel %vm8459_vm5, %v8444_v28, %v8466_v34 }
 0xa81   : > { %v8628_v22 = vmul.f32 0.01, %v8600_v13  ;;  %v8592_v36 = vadd.f32 %v16645_v50, %v8591_v5  ;;  %vm8621_vm13 = vcmp.gt.f32.partialorder %v8600_v13, 0.0  ;;  %v8632_v15 = vsel %vm8618_vm1, %v8589_v25, %v8625_v1 }
 0xa82   : > { %9195 = vrot.lane.b32.xlu1 %v8470_v51, %s12238_s23  ;;  %v10915_v38 = vpop.f32.mrf.mxu0  ;;  %v8791_v3 = vmul.f32 0.01, %v8761_v4  ;;  %v8753_v62 = vadd.f32 %v16645_v50, %v16700_v17  ;;  %vm8784_vm8 = vcmp.gt.f32.partialorder %v8761_v4, 0.0 }
 0xa83   : > { %v8626_v56 = vmul.f32 0.01, %v8592_v36  ;;  %v8635_v12 = vsel %vm8621_vm13, %v8600_v13, %v8628_v22  ;;  %vm8619_vm6 = vcmp.gt.f32.partialorder %v8592_v36, 0.0  ;;  %v8764_v54 = vadd.f32 %v10915_v38, %v16645_v50 }
 0xa84   : > { %9223 = vrot.lane.b32.xlu0 %v8634_v59, %s12239_s19  ;;  %v8755_v41 = vpop.f32.mrf.mxu0  ;;  %v8789_v22 = vmul.f32 0.01, %v8753_v62  ;;  %vm8782_vm4 = vcmp.gt.f32.partialorder %v8753_v62, 0.0 }
 0xa85   : > { %v8633_v60 = vsel %vm8619_vm6, %v8592_v36, %v8626_v56  ;;  %v8792_v2 = vmul.f32 0.01, %v8764_v54  ;;  %v8756_v27 = vadd.f32 %v16645_v50, %v8755_v41  ;;  %vm8785_vm11 = vcmp.gt.f32.partialorder %v8764_v54, 0.0 }
 0xa86   : > { %9191 = vrot.lane.b32.xlu1 %v8468_v35, %s12238_s23  ;;  %v8798_v35 = vsel %vm8784_vm8, %v8761_v4, %v8791_v3 }
 0xa87   : > { %v8790_v51 = vmul.f32 0.01, %v8756_v27  ;;  %v8799_v25 = vsel %vm8785_vm11, %v8764_v54, %v8792_v2  ;;  %vm8783_vm10 = vcmp.gt.f32.partialorder %v8756_v27, 0.0  ;;  %v7944_v2 = vadd.f32 %v16659_v33, %v16645_v50 }
 0xa88   : > { %9193 = vrot.lane.b32.xlu0 %v8469_v32, %s12238_s23 }
 0xa89   : > { %v8797_v56 = vsel %vm8783_vm10, %v8756_v27, %v8790_v51  ;;  %v16776_v51 = vadd.f32 %v16645_v50, %v16661_v63  ;;  %vm7965_vm10 = vcmp.gt.f32.partialorder %v7944_v2, 0.0 }
 0xa8a   : > { %9225 = vrot.lane.b32.xlu1 %v8635_v12, %s12239_s19  ;;  %v10898_v7 = vpop.f32.mrf.mxu1 }
 0xa8b   : > { %v8613_v37 = vadd.f32 %v10898_v7, %v16645_v50 }
 0xa8c   : > { %v8604_v18 = vpop.f32.mrf.mxu1  ;;  %9219 = vrot.lane.b32.xlu0 %v8632_v15, %s12239_s19  ;;  %v8796_v15 = vsel %vm8782_vm4, %v8753_v62, %v8789_v22 }
 0xa8d   : > { %vm8624_vm2 = vcmp.gt.f32.partialorder %v8613_v37, 0.0  ;;  %v8631_v23 = vmul.f32 0.01, %v8613_v37  ;;  %v8605_v24 = vadd.f32 %v16645_v50, %v8604_v18 }
 0xa8e   : > { %v10899_v11 = vpop.f32.mrf.mxu1  ;;  %9221 = vrot.lane.b32.xlu1 %v8633_v60, %s12239_s19 }
 0xa8f   : > { %v8629_v29 = vmul.f32 0.01, %v8605_v24  ;;  %v8638_v48 = vsel %vm8624_vm2, %v8613_v37, %v8631_v23  ;;  %vm8622_vm14 = vcmp.gt.f32.partialorder %v8605_v24, 0.0 }
 0xa90   : > { %v8607_v39 = vpop.f32.mrf.mxu1  ;;  %9231 = vrot.lane.b32.xlu0 %v8638_v48, %s12239_s19 }
 0xa91   : > { %v8608_v47 = vadd.f32 %v16645_v50, %v8607_v39  ;;  %v8636_v8 = vsel %vm8622_vm14, %v8605_v24, %v8629_v29 }
 0xa92   : > { %9203 = vrot.lane.b32.xlu1 %v8474_v30, %s12238_s23 }
 0xa93   : > { %v8630_v16 = vmul.f32 0.01, %v8608_v47  ;;  %vm8623_vm7 = vcmp.gt.f32.partialorder %v8608_v47, 0.0 }
 0xa94   : > { %9227 = vrot.lane.b32.xlu0 %v8636_v8, %s12239_s19 }
 0xa95   : > { %v10918_v58 = vpop.f32.mrf.mxu0  ;;  %v8637_v57 = vsel %vm8623_vm7, %v8608_v47, %v8630_v16 }
 0xa96   : > { %9199 = vrot.lane.b32.xlu1 %v8472_v6, %s12238_s23  ;;  %v8777_v17 = vadd.f32 %v10918_v58, %v16645_v50 }
 0xa97   : > { %v8768_v0 = vpop.f32.mrf.mxu0 }
 0xa98   : > { %9201 = vrot.lane.b32.xlu0 %v8473_v49, %s12238_s23  ;;  %v8795_v12 = vmul.f32 0.01, %v8777_v17  ;;  %v8769_v7 = vadd.f32 %v16645_v50, %v8768_v0  ;;  %vm8788_vm0 = vcmp.gt.f32.partialorder %v8777_v17, 0.0  ;;  %s12171_s23 = sshll.u32 %s12243_s27, 4  ;;  %s12172_s23 = int_to_ptr.vmem [resolvable:$false] %s12171_s23 }
 0xa99   : > { %v10919_v44 = vpop.f32.mrf.mxu0  ;;  %p12174_p0 = scmp.lt.s32.totalorder %s16807_s25, %s12172_s23 }
 0xa9a   : > { %9229 = vrot.lane.b32.xlu1 %v8637_v57, %s12239_s19  ;;  %v8793_v23 = vmul.f32 0.01, %v8769_v7  ;;  %v8802_v60 = vsel %vm8788_vm0, %v8777_v17, %v8795_v12  ;;  %vm8786_vm13 = vcmp.gt.f32.partialorder %v8769_v7, 0.0  ;;  %s12173_s19 = scalar_lea.vmem %s12172_s23, 64 }
 0xa9b   : > { %v8771_v31 = vpop.f32.mrf.mxu0  ;;  %p12175_p1 = scmp.lt.s32.totalorder %s12173_s19, %s12167_s4 }
 0xa9c   : > { %v10934_v43 = vpop.f32.mrf.mxu1  ;;  %9253 = vrot.lane.b32.xlu0 %v8799_v25, %s12240_s5  ;;  %v8772_v10 = vadd.f32 %v16645_v50, %v8771_v31  ;;  %v8800_v39 = vsel %vm8786_vm13, %v8769_v7, %v8793_v23 }
 0xa9d   : > { %v8919_v5 = vadd.f32 %v10934_v43, %v16645_v50  ;;  %v7941_v43 = vadd.f32 %v16654_v19, %v16645_v50  ;;  %v7933_v19 = vadd.f32 %v16645_v50, %v16657_v53  ;;  %p12176_p2 = por %p12175_p1, %p12174_p0 }
 0xa9e   : > { %v8910_v14 = vpop.f32.mrf.mxu1  ;;  %9251 = vrot.lane.b32.xlu1 %v8798_v35, %s12240_s5  ;;  %v8794_v11 = vmul.f32 0.01, %v8772_v10  ;;  %vm8787_vm1 = vcmp.gt.f32.partialorder %v8772_v10, 0.0 }
 0xa9f   : > { %v8949_v32 = vmul.f32 0.01, %v8919_v5  ;;  %v8911_v9 = vadd.f32 %v16645_v50, %v8910_v14  ;;  %vm8942_vm15 = vcmp.gt.f32.partialorder %v8919_v5, 0.0  ;;  %vm7964_vm14 = vcmp.gt.f32.partialorder %v7941_v43, 0.0  ;;  %p12177_p3 = pnand %p12176_p2, %p12170_p13 }
 0xaa0   : > { %v10935_v55 = vpop.f32.mrf.mxu1  ;;  %9249 = vrot.lane.b32.xlu0 %v8797_v56, %s12240_s5  ;;  %v8801_v30 = vsel %vm8787_vm1, %v8772_v10, %v8794_v11  ;;  %v7971_v4 = vmul.f32 0.01, %v7941_v43  ;;  %vm7962_vm11 = vcmp.gt.f32.partialorder %v7933_v19, 0.0  ;;  %v7969_v57 = vmul.f32 0.01, %v7933_v19 }
 0xaa1   : > { %v8947_v45 = vmul.f32 0.01, %v8911_v9  ;;  %v8956_v18 = vsel %vm8942_vm15, %v8919_v5, %v8949_v32  ;;  %vm8940_vm9 = vcmp.gt.f32.partialorder %v8911_v9, 0.0  ;;  %v8922_v24 = vadd.f32 %v10935_v55, %v16645_v50 }
 0xaa2   : > { %v8913_v46 = vpop.f32.mrf.mxu1  ;;  %9247 = vrot.lane.b32.xlu1 %v8796_v15, %s12240_s5  ;;  %v7978_v53 = vsel %vm7964_vm14, %v7941_v43, %v7971_v4  ;;  %vm17842_vm15 = vcmask 31744   ;;  %v7976_v32 = vsel %vm7962_vm11, %v7933_v19, %v7969_v57 }
 0xaa3   : > { %v16723_v52 = vpop.f32.mrf.mxu0  ;;  %v8954_v28 = vsel %vm8940_vm9, %v8911_v9, %v8947_v45  ;;  %v8950_v29 = vmul.f32 0.01, %v8922_v24  ;;  %v8914_v48 = vadd.f32 %v16645_v50, %v8913_v46  ;;  %vm8943_vm6 = vcmp.gt.f32.partialorder %v8922_v24, 0.0  ;;  %vm17843_vm13 = vmmov %vm17842_vm15 }
 0xaa4   : > { %9279 = vrot.lane.b32.xlu0 %v8956_v18, %s12241_s20  ;;  %v9086_v16 = vadd.f32 %v16723_v52, %v16645_v50  ;;  %vm7963_vm9 = vcmp.gt.f32.partialorder %v16776_v51, 0.0 }
 0xaa5   : > { %v16728_v20 = vpop.f32.mrf.mxu0  ;;  %v8948_v44 = vmul.f32 0.01, %v8914_v48  ;;  %v8957_v54 = vsel %vm8943_vm6, %v8922_v24, %v8950_v29  ;;  %vm8941_vm3 = vcmp.gt.f32.partialorder %v8914_v48, 0.0  ;;  %vm17844_vm6 = vmmov %vm17843_vm13 }
 0xaa6   : > { %9259 = vrot.lane.b32.xlu1 %v8802_v60, %s12240_s5  ;;  %v9116_v52 = vmul.f32 0.01, %v9086_v16  ;;  %v9078_v62 = vadd.f32 %v16645_v50, %v16728_v20  ;;  %vm9109_vm8 = vcmp.gt.f32.partialorder %v9086_v16, 0.0 }
 0xaa7   : > { %v10938_v13 = vpop.f32.mrf.mxu1  ;;  %v10955_v40 = vpop.f32.mrf.mxu0  ;;  %v8955_v55 = vsel %vm8941_vm3, %v8914_v48, %v8948_v44 }
 0xaa8   : > { %v8935_v58 = vadd.f32 %v10938_v13, %v16645_v50  ;;  %9275 = vrot.lane.b32.xlu0 %v8954_v28, %s12241_s20  ;;  %v9089_v8 = vadd.f32 %v10955_v40, %v16645_v50  ;;  %v7972_v13 = vmul.f32 0.01, %v7944_v2  ;;  %v9114_v63 = vmul.f32 0.01, %v9078_v62 }
 0xaa9   : > { %v8926_v59 = vpop.f32.mrf.mxu1  ;;  %v16734_v36 = vpop.f32.mrf.mxu0  ;;  %v9123_v17 = vsel %vm9109_vm8, %v9086_v16, %v9116_v52  ;;  %vm9107_vm0 = vcmp.gt.f32.partialorder %v9078_v62, 0.0 }
 0xaaa   : > { %9255 = vrot.lane.b32.xlu1 %v8800_v39, %s12240_s5  ;;  %v8953_v21 = vmul.f32 0.01, %v8935_v58  ;;  %v8927_v47 = vadd.f32 %v16645_v50, %v8926_v59  ;;  %vm8946_vm2 = vcmp.gt.f32.partialorder %v8935_v58, 0.0  ;;  %v9117_v27 = vmul.f32 0.01, %v9089_v8 }
 0xaab   : > { %v10939_v1 = vpop.f32.mrf.mxu1  ;;  %v16738_v38 = vpop.f32.mrf.mxu0  ;;  %v9081_v49 = vadd.f32 %v16645_v50, %v16734_v36  ;;  %vm9110_vm7 = vcmp.gt.f32.partialorder %v9089_v8, 0.0  ;;  %v7970_v36 = vmul.f32 0.01, %v16776_v51  ;;  %v9121_v10 = vsel %vm9107_vm0, %v9078_v62, %v9114_v63 }
 0xaac   : > { %9257 = vrot.lane.b32.xlu0 %v8801_v30, %s12240_s5  ;;  %v8951_v14 = vmul.f32 0.01, %v8927_v47  ;;  %v8960_v31 = vsel %vm8946_vm2, %v8935_v58, %v8953_v21  ;;  %vm8944_vm12 = vcmp.gt.f32.partialorder %v8927_v47, 0.0  ;;  %v9124_v59 = vsel %vm9110_vm7, %v9089_v8, %v9117_v27 }
 0xaad   : > { %v16742_v37 = vpop.f32.mrf.mxu0  ;;  %v8929_v0 = vpop.f32.mrf.mxu1  ;;  %v9115_v5 = vmul.f32 0.01, %v9081_v49  ;;  %vm9108_vm4 = vcmp.gt.f32.partialorder %v9081_v49, 0.0  ;;  %v7979_v1 = vsel %vm7965_vm10, %v7944_v2, %v7972_v13  ;;  %v9102_v15 = vadd.f32 %v16738_v38, %v16645_v50 }
 0xaae   : > { %v8930_v34 = vadd.f32 %v16645_v50, %v8929_v0  ;;  %9281 = vrot.lane.b32.xlu1 %v8957_v54, %s12241_s20  ;;  %v8958_v46 = vsel %vm8944_vm12, %v8927_v47, %v8951_v14  ;;  %v9094_v22 = vadd.f32 %v16645_v50, %v16742_v37 }
 0xaaf   : > { %v10959_v41 = vpop.f32.mrf.mxu0  ;;  %v9122_v7 = vsel %vm9108_vm4, %v9081_v49, %v9115_v5 }
 0xab0   : > { %9287 = vrot.lane.b32.xlu0 %v8960_v31, %s12241_s20  ;;  %v8952_v6 = vmul.f32 0.01, %v8930_v34  ;;  %vm8945_vm5 = vcmp.gt.f32.partialorder %v8930_v34, 0.0  ;;  %v9118_v45 = vmul.f32 0.01, %v9094_v22 }
 0xab1   : > { %v9096_v3 = vpop.f32.mrf.mxu0 }
 0xab2   : > { %9277 = vrot.lane.b32.xlu1 %v8955_v55, %s12241_s20  ;;  %v8959_v33 = vsel %vm8945_vm5, %v8930_v34, %v8952_v6  ;;  %v9097_v40 = vadd.f32 %v16645_v50, %v9096_v3 }
 0xab4   : > { %9283 = vrot.lane.b32.xlu0 %v8958_v46, %s12241_s20  ;;  %v9140_v25 = vpop.permute.xlu1 %9139  ;;  %v9119_v9 = vmul.f32 0.01, %v9097_v40  ;;  %vm9112_vm1 = vcmp.gt.f32.partialorder %v9097_v40, 0.0 }
 0xab5   : > { %v16782_v20 = vsel %vm17842_vm15, %v7978_v53, %v9140_v25 }
 0xab6   : > { %9285 = vrot.lane.b32.xlu1 %v8959_v33, %s12241_s20 }
 0xab8   : > { %9309 = vrot.lane.b32.xlu0 %v9124_v59, %s12242_s3  ;;  %v9142_v35 = vpop.permute.xlu0 %9141  ;;  %v9136_v12 = vpop.permute.xlu1 %9135 }
 0xab9   : > { %v16793_v56 = vsel %vm17843_vm13, %v7979_v1, %v9142_v35  ;;  %v16804_v37 = vsel %vm17844_vm6, %v7976_v32, %v9136_v12 }
 0xaba   : > { %9307 = vrot.lane.b32.xlu1 %v9123_v17, %s12242_s3 }
 0xabc   : > { %9305 = vrot.lane.b32.xlu0 %v9122_v7, %s12242_s3 }
 0xabd   : > { %12180 = shalt.err (!%p12177_p3)
}
 0xabe   : > { %s12181_s5 = scalar_lea.hbm %s16799_s21, 32  ;;  %s12185_s22 = scalar_lea.hbm %s16963_s18, 64 }
 0xabf   : > { %p12182_p4 = scmp.ne.s32.totalorder %s16799_s21, %s12181_s5  ;;  %p12186_p9 = scmp.lt.s32.totalorder %s16799_s21, %s16963_s18 }
 0xac0   : > { %p12187_p10 = scmp.lt.s32.totalorder %s12185_s22, %s12181_s5 }
 0xac1   : > { %p12183_p7 = pnand %p12182_p4, %p12377_p5 }
 0xac2   : > { %p12188_p11 = por %p12187_p10, %p12186_p9 }
 0xac3   : > { %p12184_p8 = pneg %p12183_p7 }
 0xac5   : > { %p12189_p12 = pnand %p12188_p11, %p12184_p8 }
 0xac7   : > { %12192 = shalt.err (!%p12189_p12)
}
 0xac8   : > { %10970 = dma.vmem_to_hbm [thread:$0]  (%p12377_p5), %s16807_s25, 32, %s16799_s21, %s9390_s1   ;;  %vm9111_vm2 = vcmp.gt.f32.partialorder %v9094_v22, 0.0  ;;  %v9138_v38 = vpop.permute.xlu0 %9137  ;;  %v7977_v41 = vsel %vm7963_vm9, %v16776_v51, %v7970_v36  ;;  %9303 = vrot.lane.b32.xlu1 %v9121_v10, %s12242_s3  ;;  %vm17846_vm3 = vmmov %vm17844_vm6  ;;  %v9126_v23 = vsel %vm9112_vm1, %v9097_v40, %v9119_v9  ;;  %v9120_v24 = vmul.f32 0.01, %v9102_v15 }
 0xac9   : > { %v16839_v18 = vsel %vm17846_vm3, %v7977_v41, %v9138_v38  ;;  %9313 = vrot.lane.b32.xlu0 %v9126_v23, %s12242_s3  ;;  %v9125_v60 = vsel %vm9111_vm2, %v9094_v22, %v9118_v45  ;;  %vm9113_vm14 = vcmp.gt.f32.partialorder %v9102_v15, 0.0  ;;  %v7957_v58 = vadd.f32 %v16663_v42, %v16645_v50  ;;  %vm17847_vm7 = vmmov %vm17846_vm3  ;;  %s10969_s2 = smul.u32 56, %s12389_s24 }
 0xaca   : > { %v9127_v11 = vsel %vm9113_vm14, %v9102_v15, %v9120_v24  ;;  %v7949_v29 = vadd.f32 %v16645_v50, %v16666_v26  ;;  %v7952_v48 = vadd.f32 %v16645_v50, %v16669_v61  ;;  %vm17848_vm8 = vmmov %vm17846_vm3  ;;  %vm17850_vm4 = vcmask 64512  }
 0xacb   : > { %v7975_v28 = vmul.f32 0.01, %v7957_v58  ;;  %vm7968_vm12 = vcmp.gt.f32.partialorder %v7957_v58, 0.0  ;;  %vm17849_vm10 = vmmov %vm17846_vm3  ;;  %vm9352_vm1 = vcmask 162816   ;;  %vm17855_vm6 = vcmask 97280   ;;  %s16876_s24 = scalar_lea.vmem %s16962_s17, %s10969_s2 }
 0xacc   : > { %9311 = vrot.lane.b32.xlu1 %v9125_v60, %s12242_s3  ;;  %v7973_v39 = vmul.f32 0.01, %v7949_v29  ;;  %vm7966_vm5 = vcmp.gt.f32.partialorder %v7949_v29, 0.0  ;;  %v7974_v30 = vmul.f32 0.01, %v7952_v48  ;;  %vm7967_vm11 = vcmp.gt.f32.partialorder %v7952_v48, 0.0  ;;  %vm17851_vm15 = vmmov %vm17850_vm4 }
 0xacd   : > { %v7982_v0 = vsel %vm7968_vm12, %v7957_v58, %v7975_v28  ;;  %vm17852_vm0 = vmmov %vm17850_vm4  ;;  %vm17857_vm3 = vcmask 130048   ;;  %vm9368_vm14 = vcmask 228352   ;;  %vm9360_vm12 = vcmask 195584  }
 0xace   : > { %v7980_v43 = vsel %vm7966_vm5, %v7949_v29, %v7973_v39  ;;  %v7981_v54 = vsel %vm7967_vm11, %v7952_v48, %v7974_v30  ;;  %vm17853_vm9 = vmmov %vm17852_vm0 }
 0xacf   : > { %vm17854_vm13 = vmmov %vm17852_vm0 }
 0xad0   : > { %9315 = vrot.lane.b32.xlu1 %v9127_v11, %s12242_s3  ;;  %vm17856_vm2 = vmmov %vm17855_vm6 }
 0xad1   : > { %vm17858_vm5 = vmmov %vm17852_vm0 }
 0xad2   : > { %v9148_v21 = vpop.permute.xlu1 %9147  ;;  %vm17860_vm11 = vmmov %vm17856_vm2 }
 0xad3   : > { %v9330_v47 = vsel %vm17847_vm7, %v7982_v0, %v9148_v21  ;;  %vm17859_vm7 = vmmov %vm17857_vm3 }
 0xad6   : > { %v9144_v44 = vpop.permute.xlu1 %9143 }
 0xad7   : > { %v9328_v42 = vsel %vm17848_vm8, %v7980_v43, %v9144_v44  ;;  %vm17861_vm8 = vmmov %vm17852_vm0 }
 0xad8   : > { %v9146_v34 = vpop.permute.xlu0 %9145 }
 0xad9   : > { %v9329_v26 = vsel %vm17849_vm10, %v7981_v54, %v9146_v34  ;;  %vm17862_vm10 = vmmov %vm17857_vm3 }
 0xadc   : > { %v9168_v8 = vpop.permute.xlu0 %9167 }
 0xadd   : > { %v9333_v50 = vsel %vm17850_vm4, %v16782_v20, %v9168_v8  ;;  %v9170_v31 = vpop.permute.xlu1 %9169  ;;  %vm17863_vm4 = vcmask 261120  }
 0xae0   : > { %v9164_v61 = vpop.permute.xlu0 %9163 }
 0xae1   : > { %v9331_v14 = vsel %vm17851_vm15, %v16804_v37, %v9164_v61  ;;  %v9166_v16 = vpop.permute.xlu1 %9165  ;;  %v9334_v37 = vsel %vm17854_vm13, %v16793_v56, %v9170_v31  ;;  %vm17864_vm15 = vmmov %vm17856_vm2 }
 0xae2   : > { %v9332_v56 = vsel %vm17858_vm5, %v16839_v18, %v9166_v16  ;;  %vm17867_vm13 = vmmov %vm17863_vm4 }
 0xaea   : > { %v9176_v4 = vpop.permute.xlu0 %9175 }
 0xaeb   : > { %v16859_v19 = vsel %vm17852_vm0, %v9330_v47, %v9176_v4  ;;  %vm17865_vm0 = vmmov %vm17856_vm2 }
 0xaee   : > { %v9172_v6 = vpop.permute.xlu0 %9171 }
 0xaef   : > { %v9335_v55 = vsel %vm17853_vm9, %v9328_v42, %v9172_v6  ;;  %vm17866_vm9 = vmmov %vm17857_vm3 }
 0xaf0   : > { %v9174_v2 = vpop.permute.xlu1 %9173 }
 0xaf1   : > { %v9336_v48 = vsel %vm17861_vm8, %v9329_v26, %v9174_v2 }
 0xaf2   : > { %v9198_v27 = vpop.permute.xlu0 %9197 }
 0xaf3   : > { %v9341_v45 = vsel %vm17855_vm6, %v9334_v37, %v9198_v27  ;;  %vm17868_vm6 = vmmov %vm17865_vm0 }
 0xaf4   : > { %v9196_v49 = vpop.permute.xlu1 %9195 }
 0xaf5   : > { %v9340_v10 = vsel %vm17856_vm2, %v9333_v50, %v9196_v49  ;;  %vm17869_vm2 = vmmov %vm17857_vm3 }
 0xaf6   : > { %v9224_v46 = vpop.permute.xlu0 %9223  ;;  %vm17871_vm5 = vmmov %vm17869_vm2 }
 0xaf7   : > { %v9347_v24 = vsel %vm17859_vm7, %v9340_v10, %v9224_v46 }
 0xaf8   : > { %v9192_v3 = vpop.permute.xlu1 %9191 }
 0xaf9   : > { %v9338_v21 = vsel %vm17864_vm15, %v9331_v14, %v9192_v3  ;;  %vm9382_vm15 = vcmask 254976  }
 0xafa   : > { %v9194_v53 = vpop.permute.xlu0 %9193 }
 0xafb   : > { %v9339_v58 = vsel %vm17860_vm11, %v9332_v56, %v9194_v53  ;;  %vm17873_vm11 = vmmov %vm17865_vm0 }
 0xafc   : > { %v9226_v52 = vpop.permute.xlu1 %9225 }
 0xafd   : > { %v9348_v38 = vsel %vm17857_vm3, %v9341_v45, %v9226_v52  ;;  %vm17870_vm3 = vmmov %vm17863_vm4 }
 0xafe   : > { %v9220_v62 = vpop.permute.xlu0 %9219  ;;  %vm17872_vm7 = vmmov %vm17870_vm3 }
 0xaff   : > { %v9345_v44 = vsel %vm17866_vm9, %v9338_v21, %v9220_v62  ;;  %vm17874_vm8 = vmmov %vm17870_vm3 }
 0xb00   : > { %v9222_v33 = vpop.permute.xlu1 %9221 }
 0xb01   : > { %v9346_v39 = vsel %vm17862_vm10, %v9339_v58, %v9222_v33  ;;  %vm17875_vm10 = vmmov %vm17869_vm2 }
 0xb02   : > { %v16862_v57 = vpop.permute.xlu0 %9231 }
 0xb04   : > { %v16864_v13 = vpop.permute.xlu1 %9203 }
 0xb05   : > { %v9344_v2 = vsel %vm17873_vm11, %v16859_v19, %v16864_v13 }
 0xb06   : > { %v9228_v51 = vpop.permute.xlu0 %9227  ;;  %v9351_v52 = vsel %vm17875_vm10, %v9344_v2, %v16862_v57 }
 0xb08   : > { %v9200_v5 = vpop.permute.xlu1 %9199 }
 0xb09   : > { %v9342_v54 = vsel %vm17868_vm6, %v9335_v55, %v9200_v5 }
 0xb0a   : > { %v9202_v40 = vpop.permute.xlu0 %9201  ;;  %v9349_v16 = vsel %vm17871_vm5, %v9342_v54, %v9228_v51 }
 0xb0b   : > { %v9343_v47 = vsel %vm17865_vm0, %v9336_v48, %v9202_v40 }
 0xb0c   : > { %v9230_v25 = vpop.permute.xlu1 %9229 }
 0xb0d   : > { %v9350_v50 = vsel %vm17869_vm2, %v9343_v47, %v9230_v25 }
 0xb0e   : > { %v9254_v59 = vpop.permute.xlu0 %9253 }
 0xb0f   : > { %v9356_v23 = vsel %vm9352_vm1, %v9348_v38, %v9254_v59 }
 0xb10   : > { %v9252_v20 = vpop.permute.xlu1 %9251 }
 0xb11   : > { %v9355_v28 = vsel %vm9352_vm1, %v9347_v24, %v9252_v20 }
 0xb12   : > { %v9250_v63 = vpop.permute.xlu0 %9249 }
 0xb13   : > { %v9354_v30 = vsel %vm9352_vm1, %v9346_v39, %v9250_v63 }
 0xb14   : > { %v9248_v22 = vpop.permute.xlu1 %9247 }
 0xb15   : > { %v9353_v26 = vsel %vm9352_vm1, %v9345_v44, %v9248_v22 }
 0xb16   : > { %v9280_v17 = vpop.permute.xlu0 %9279 }
 0xb17   : > { %v9363_v0 = vsel %vm9360_vm12, %v9355_v28, %v9280_v17 }
 0xb18   : > { %v9260_v36 = vpop.permute.xlu1 %9259 }
 0xb19   : > { %v9359_v62 = vsel %vm9352_vm1, %v9351_v52, %v9260_v36 }
 0xb1a   : > { %v9276_v35 = vpop.permute.xlu0 %9275 }
 0xb1b   : > { %v9361_v61 = vsel %vm9360_vm12, %v9353_v26, %v9276_v35 }
 0xb1c   : > { %v9256_v1 = vpop.permute.xlu1 %9255 }
 0xb1d   : > { %v9357_v27 = vsel %vm9352_vm1, %v9349_v16, %v9256_v1 }
 0xb1e   : > { %v9258_v32 = vpop.permute.xlu0 %9257 }
 0xb1f   : > { %v9358_v31 = vsel %vm9352_vm1, %v9350_v50, %v9258_v32 }
 0xb20   : > { %v9282_v9 = vpop.permute.xlu1 %9281 }
 0xb21   : > { %v9364_v60 = vsel %vm9360_vm12, %v9356_v23, %v9282_v9 }
 0xb22   : > { %v9288_v12 = vpop.permute.xlu0 %9287 }
 0xb23   : > { %v9367_v19 = vsel %vm9360_vm12, %v9359_v62, %v9288_v12 }
 0xb24   : > { %v9278_v7 = vpop.permute.xlu1 %9277 }
 0xb25   : > { %v9362_v42 = vsel %vm9360_vm12, %v9354_v30, %v9278_v7 }
 0xb26   : > { %v9284_v15 = vpop.permute.xlu0 %9283 }
 0xb27   : > { %v9365_v46 = vsel %vm9360_vm12, %v9357_v27, %v9284_v15 }
 0xb28   : > { %v9286_v41 = vpop.permute.xlu1 %9285 }
 0xb29   : > { %v9366_v6 = vsel %vm9360_vm12, %v9358_v31, %v9286_v41 }
 0xb2a   : > { %v9310_v11 = vpop.permute.xlu0 %9309 }
 0xb2b   : > { %v9372_v29 = vsel %vm9368_vm14, %v9364_v60, %v9310_v11 }
 0xb2c   : > { %9379 = vst.msk [vmem:[%s16876_s24 + $0x18] sm:$0xff] %vm17863_vm4, %v9372_v29  ;;  %v9308_v18 = vpop.permute.xlu1 %9307  ;;  %vm17876_vm4 = vmmov %vm17870_vm3 }
 0xb2d   : > { %v9371_v43 = vsel %vm9368_vm14, %v9363_v0, %v9308_v18 }
 0xb2e   : > { %9378 = vst.msk [vmem:[%s16876_s24 + $0x10] sm:$0xff] %vm17867_vm13, %v9371_v43  ;;  %v9306_v34 = vpop.permute.xlu0 %9305 }
 0xb2f   : > { %v9370_v8 = vsel %vm9368_vm14, %v9362_v42, %v9306_v34 }
 0xb30   : > { %9377 = vst.msk [vmem:[%s16876_s24 + $0x8] sm:$0xff] %vm17870_vm3, %v9370_v8 }
 0xb3a   : > { %v9304_v14 = vpop.permute.xlu1 %9303 }
 0xb3b   : > { %v9369_v4 = vsel %vm9368_vm14, %v9361_v61, %v9304_v14  ;;  %v9314_v55 = vpop.permute.xlu0 %9313 }
 0xb3c   : > { %9376 = vst.msk [vmem:[%s16876_s24] sm:$0xff] %vm17872_vm7, %v9369_v4  ;;  %v9374_v49 = vsel %vm9368_vm14, %v9366_v6, %v9314_v55 }
 0xb3d   : > { %9381 = vst.msk [vmem:[%s16876_s24 + $0x28] sm:$0xff] %vm17874_vm8, %v9374_v49 }
 0xb3e   : > { %v9312_v3 = vpop.permute.xlu1 %9311 }
 0xb3f   : > { %v9373_v53 = vsel %vm9368_vm14, %v9365_v46, %v9312_v3 }
 0xb40   : > { %9380 = vst.msk [vmem:[%s16876_s24 + $0x20] sm:$0xff] %vm17876_vm4, %v9373_v53 }
 0xb42   : > { %v9316_v33 = vpop.permute.xlu1 %9315 }
 0xb43   : > { %v9375_v13 = vsel %vm9368_vm14, %v9367_v19, %v9316_v33 }
 0xb44   : > { %9383 = vst.msk [vmem:[%s16876_s24 + $0x30] sm:$0x3] %vm9382_vm15, %v9375_v13 }
 0xb45 PF: > { %s17877_s25 = sld [smem:[#allocation5_spill]]  ;;  %p10976_p5 = scmp.ge.s32.totalorder %s12227_s30, 2 }
 0xb47   : > { %p10973_p13 = pnand %p10976_p5, %p12381_p6 }
 0xb49   : > { %p10974_p0 = pneg %p10973_p13 }
 0xb4b   : > { %s9426_s4 = sand.u32 1, %s17877_s25  }
 0xb4c   : > { %s9427_s27 = scalar_lea.sflag [#allocation3], %s9426_s4 }
 0xb4d   : > { %12210 = dma.done.wait (%p10974_p0), %s9427_s27, 32  }
 0xb4e   : > { %12212 = vsyncadd (%p10974_p0), %s9427_s27, 4294967264  ;;  %s17879_s30 = sld [smem:[#allocation7_spill]]  ;;  %s17882_s27 = smov %s12219_s28 }
 0xb4f   : > { %s17880_s23 = sld [smem:[#allocation6_spill]] }
 0xb50   : > { %s17881_s29 = sld [smem:[#allocation8_spill]] }
 0xb54   : > { %p29_p1 = scmp.ge.s32.totalorder %s17879_s30, 4  }
 0xb55   : > { %s17883_s28 = smov %s17880_s23 }
 0xb56   :  { %31 = sbr.rel (!%p29_p1) target bundleno = 10 (0xa), region = 142 }
 0xb5b   :  { %9432 = vsyncpa [#allocation3], 1 }
 0xb5c   :  { %9434 = vsyncpa [#allocation3 + $0x1], 1 }

</bundles_post_ra>
